<compile_context>
chip_gen: v5e
topology: v5e:2x2
jax: 0.10.0
libtpu: 0.0.40
codegen_flags: <defaults>
</compile_context>

<pallas_src>
import functools

import jax
import jax.numpy as jnp
from jax.experimental import pallas as pl
from jax.experimental.pallas import tpu as pltpu


def _round_up(v, m):
    return ((v + m - 1) // m) * m


def _psi(p):
    sign = jnp.where(p > 0.0, 1.0, jnp.where(p < 0.0, -1.0, 0.0))
    return sign * jnp.log(jnp.abs(p) + 1.0)


# ---------------------------------------------------------------------------
# Pallas kernel
# ---------------------------------------------------------------------------
def _lgeb_kernel(
    # python constants bound via functools.partial (literals, not captured arrays)
    c_weight, inv_num_edges, inv_num_nodes, n_nodes_real, n_input,
    # per-edge-tile inputs
    ii_col_ref, jj_col_ref, ii_row_ref,
    # node-resident inputs
    hx_ref, nattr_ref, invdeg_ref,
    # phi_e
    we1_i_ref, we1_j_ref, we1_nd_ref, bne_g_ref, bne_b_ref, we2_ref, be2_ref,
    # phi_m
    wm_ref, bm_ref,
    # phi_x
    wx1_ref, bx1_ref, wx2_ref,
    # phi_h
    wh1_h_ref, wh1_agg_ref, wh1_attr_ref, bh1_ref, bnh_g_ref, bnh_b_ref,
    wh2_ref, bh2_ref,
    # outputs
    hout_ref, xout_ref, mout_ref,
    # scratch (persists across the whole grid)
    sum_ref, sq_ref, aggm_ref, aggx_ref, zc_ref, xdc_ref,
):
    f32 = jnp.float32
    p = pl.program_id(0)                 # 0 = gather + BN-stats pass, 1 = compute pass
    e = pl.program_id(1)                 # edge tile
    n_tiles = pl.num_programs(1)

    te = ii_col_ref.shape[0]
    n_pad = hx_ref.shape[0]
    h_pad = sum_ref.shape[1]

    # ======================= pass 0: gather + z + BN stats ====================
    @pl.when(p == 0)
    def _pass0():
        @pl.when(e == 0)
        def _init():
            sum_ref[...] = jnp.zeros_like(sum_ref)
            sq_ref[...] = jnp.zeros_like(sq_ref)
            aggm_ref[...] = jnp.zeros_like(aggm_ref)
            aggx_ref[...] = jnp.zeros_like(aggx_ref)
            hout_ref[...] = jnp.zeros_like(hout_ref)
            xout_ref[...] = jnp.zeros_like(xout_ref)
            mout_ref[...] = jnp.zeros_like(mout_ref)   # explicit init of block (0,0)

        # on-the-fly one-hot masks from int32 edge indices; fused [2*TE, N] gather
        node_iota = jax.lax.broadcasted_iota(jnp.int32, (te, n_pad), 1)
        mask_i = (ii_col_ref[...] == node_iota).astype(f32)          # [TE, Npad]
        mask_j = (jj_col_ref[...] == node_iota).astype(f32)          # [TE, Npad]
        gmask = jnp.concatenate([mask_i, mask_j], axis=0)            # [2TE, Npad]
        hx_g = jnp.dot(gmask, hx_ref[...], preferred_element_type=f32)
        hxi = hx_g[:te]                                              # [TE, PACK]
        hxj = hx_g[te:]
        xi = hxi[:, :4]
        xj = hxj[:, :4]

        # Minkowski edge features
        x_diff = xi - xj
        dsq = x_diff * x_diff
        norms = _psi(2.0 * dsq[:, 0:1] - jnp.sum(dsq, axis=1, keepdims=True))
        pq = xi * xj
        dots = _psi(2.0 * pq[:, 0:1] - jnp.sum(pq, axis=1, keepdims=True))

        # phi_e first linear (bias-free); h-part weights absorbed into the
        # packed-slab layout, so hxi/hxj are used whole (no lane slicing).
        we1_nd = we1_nd_ref[...]
        z = (jnp.dot(hxi, we1_i_ref[...], preferred_element_type=f32)
             + jnp.dot(hxj, we1_j_ref[...], preferred_element_type=f32)
             + norms * we1_nd[0:1, :]
             + dots * we1_nd[1:2, :])                                # [TE, Hpad]

        # cache for pass 1 (no recompute), accumulate exact BN statistics
        zc_ref[e] = z
        xdc_ref[e] = x_diff
        sum_ref[...] += jnp.sum(z, axis=0, keepdims=True)
        sq_ref[...] += jnp.sum(z * z, axis=0, keepdims=True)

        @pl.when(e == n_tiles - 1)
        def _finalize_bn():
            mean = sum_ref[...] * inv_num_edges
            var = jnp.maximum(sq_ref[...] * inv_num_edges - mean * mean, 0.0)
            sum_ref[...] = mean
            sq_ref[...] = jax.lax.rsqrt(var + 1e-5)

    # ============ pass 1: BN/ReLU, lin2, gate, phi_x, scatter, node update ====
    @pl.when(p == 1)
    def _pass1():
        z = zc_ref[e]
        x_diff = xdc_ref[e]
        mean = sum_ref[...]
        rstd = sq_ref[...]

        zb = jnp.maximum((z - mean) * rstd * bne_g_ref[...] + bne_b_ref[...], 0.0)
        m0 = jnp.maximum(
            jnp.dot(zb, we2_ref[...], preferred_element_type=f32) + be2_ref[...],
            0.0)                                                     # [TE, Hpad]

        # phi_m gate: VPU multiply + lane reduce (no 1-wide MXU output);
        # EUP approx reciprocal + one Newton step for near-exact sigmoid.
        gate_lin = jnp.sum(m0 * wm_ref[...], axis=1, keepdims=True) + bm_ref[...]
        denom = 1.0 + jnp.exp(-gate_lin)
        r = pl.reciprocal(denom, approx=True)
        gate = r * (2.0 - denom * r)                                 # [TE, 1]
        m = m0 * gate
        mout_ref[...] = m

        # phi_x -> per-edge coordinate update (second linear via VPU reduce)
        px = jnp.maximum(
            jnp.dot(m, wx1_ref[...], preferred_element_type=f32) + bx1_ref[...],
            0.0)
        px = jnp.sum(px * wx2_ref[...], axis=1, keepdims=True)       # [TE, 1]
        trans = jnp.clip(x_diff * px, -100.0, 100.0)                 # [TE, 4]

        # fused segment-sum scatter: pre-transposed mask, one MXU matmul
        node_iota_t = jax.lax.broadcasted_iota(jnp.int32, (n_pad, te), 0)
        smask = (node_iota_t == ii_row_ref[...]).astype(f32)         # [Npad, TE]
        md = jnp.concatenate([m, trans], axis=1)                     # [TE, Hpad+4]
        scat = jnp.dot(smask, md, preferred_element_type=f32)        # [Npad, Hpad+4]
        aggm_ref[...] += scat[:, :h_pad]
        aggx_ref[...] += scat[:, h_pad:]

        @pl.when(e == n_tiles - 1)
        def _node_update():
            hx = hx_ref[...]                                         # [Npad, PACK]
            x_nodes = hx[:, :4]

            # x_model: segment mean via precomputed 1/clamp(deg,1)
            xout_ref[...] = x_nodes + (aggx_ref[...] * invdeg_ref[...]) * c_weight

            # h_model: Linear -> BN (real-node batch stats) -> ReLU -> Linear, residual
            y = (jnp.dot(hx, wh1_h_ref[...], preferred_element_type=f32)
                 + jnp.dot(aggm_ref[...], wh1_agg_ref[...], preferred_element_type=f32)
                 + jnp.dot(nattr_ref[...], wh1_attr_ref[...], preferred_element_type=f32)
                 + bh1_ref[...])                                     # [Npad, Hpad]
            valid = (jax.lax.broadcasted_iota(jnp.int32, (n_pad, 1), 0)
                     < n_nodes_real).astype(f32)
            nmean = jnp.sum(y * valid, axis=0, keepdims=True) * inv_num_nodes
            nvar = jnp.maximum(
                jnp.sum(((y - nmean) ** 2) * valid, axis=0, keepdims=True)
                * inv_num_nodes, 0.0)
            yb = jnp.maximum((y - nmean) * jax.lax.rsqrt(nvar + 1e-5)
                             * bnh_g_ref[...] + bnh_b_ref[...], 0.0)
            dh = jnp.dot(yb, wh2_ref[...], preferred_element_type=f32) + bh2_ref[...]
            hout_ref[...] = hx[:, 4:4 + n_input] + dh


# ---------------------------------------------------------------------------
# Parameters (deterministic, shapes match the PyTorch module __init__)
# ---------------------------------------------------------------------------
def init_lgeb_params(key, n_input, n_output, n_hidden, n_node_attr):
    ks = jax.random.split(key, 10)

    def lin(k, fan_in, fan_out):
        return (jax.random.normal(k, (fan_out, fan_in), jnp.float32)
                / jnp.sqrt(jnp.float32(fan_in)))

    n_edge_attr = 2
    p = {}
    # phi_e: Linear(2*ni+2 -> H, no bias), BN(H), ReLU, Linear(H -> H), ReLU
    p["We1"] = lin(ks[0], 2 * n_input + n_edge_attr, n_hidden)
    p["bne_g"] = jnp.ones((n_hidden,), jnp.float32)
    p["bne_b"] = jnp.zeros((n_hidden,), jnp.float32)
    p["We2"] = lin(ks[1], n_hidden, n_hidden)
    p["be2"] = 0.01 * jax.random.normal(ks[2], (n_hidden,), jnp.float32)
    # phi_m: Linear(H -> 1), Sigmoid
    p["Wm"] = lin(ks[3], n_hidden, 1)
    p["bm"] = jnp.zeros((1,), jnp.float32)
    # phi_x: Linear(H -> H), ReLU, Linear(H -> 1, no bias, xavier gain=0.001)
    p["Wx1"] = lin(ks[4], n_hidden, n_hidden)
    p["bx1"] = 0.01 * jax.random.normal(ks[5], (n_hidden,), jnp.float32)
    p["Wx2"] = 0.001 * lin(ks[6], n_hidden, 1)
    # phi_h: Linear(H+ni+na -> H), BN(H), ReLU, Linear(H -> n_output)
    p["Wh1"] = lin(ks[7], n_hidden + n_input + n_node_attr, n_hidden)
    p["bh1"] = 0.01 * jax.random.normal(ks[8], (n_hidden,), jnp.float32)
    p["bnh_g"] = jnp.ones((n_hidden,), jnp.float32)
    p["bnh_b"] = jnp.zeros((n_hidden,), jnp.float32)
    p["Wh2"] = lin(ks[9], n_hidden, n_output)
    p["bh2"] = jnp.zeros((n_output,), jnp.float32)
    return p


# ---------------------------------------------------------------------------
# Per-generation VMEM limit (v5e/v6e: 128 MiB physical, v7x: 64 MiB)
# ---------------------------------------------------------------------------
def _pick_vmem_limit_bytes():
    cap = 0
    try:
        get_info = getattr(pltpu, "get_tpu_info", None)
        if get_info is not None:
            cap = int(getattr(get_info(), "vmem_capacity_bytes", 0) or 0)
    except Exception:
        cap = 0
    if cap <= 0:
        kind = ""
        try:
            kind = jax.devices()[0].device_kind.lower()
        except Exception:
            pass
        if "v5e" in kind or "v5 lite" in kind or "v6" in kind:
            cap = 128 * 1024 * 1024
        else:
            cap = 64 * 1024 * 1024          # conservative (covers v7x's 64 MiB)
    return int(max(32 * 1024 * 1024, min(int(cap * 0.8), 100 * 1024 * 1024)))


# ---------------------------------------------------------------------------
# Wrapper: lane padding / index packing / weight slicing in JAX, hot loop in Pallas.
# ---------------------------------------------------------------------------
def lgeb_forward(h, x, edges, node_attr, params, *, c_weight=1.0, edge_tile=256):
    h = jnp.asarray(h, jnp.float32)
    x = jnp.asarray(x, jnp.float32)
    node_attr = jnp.asarray(node_attr, jnp.float32)

    N, ni = h.shape
    na = node_attr.shape[1]
    H = params["We2"].shape[0]
    no = params["Wh2"].shape[0]
    assert no == ni, "residual h + phi_h(...) requires n_output == n_input"

    i_idx = jnp.asarray(edges[0], jnp.int32)
    j_idx = jnp.asarray(edges[1], jnp.int32)
    E = int(i_idx.shape[0])

    LANE = 128
    H_PAD = _round_up(H, LANE)
    PACK = 4 + ni                               # packed [x | h] node slab width
    PACK_PAD = _round_up(PACK, LANE)
    N_PAD = _round_up(N, 8)

    # Edge tiling: TE a multiple of 128 (>=128), default 256.
    TE = max(LANE, _round_up(int(edge_tile), LANE))
    TE = min(TE, _round_up(max(E, 1), LANE))
    E_PAD = _round_up(E, TE)
    n_tiles = E_PAD // TE

    # Edge index arrays; padded edges use index N_PAD (matches no node at all).
    pad_e = E_PAD - E
    fill = jnp.full((pad_e,), N_PAD, jnp.int32)
    ii_flat = jnp.concatenate([i_idx, fill])
    jj_flat = jnp.concatenate([j_idx, fill])
    ii_col = ii_flat.reshape(E_PAD, 1)
    jj_col = jj_flat.reshape(E_PAD, 1)
    ii_row = ii_flat.reshape(1, E_PAD)          # row form for the transposed scatter mask

    # Node-resident data (lane/sublane padded; padded rows/cols are zero).
    hx = jnp.zeros((N_PAD, PACK_PAD), jnp.float32)
    hx = hx.at[:N, :4].set(x).at[:N, 4:4 + ni].set(h)
    nattr = jnp.zeros((N_PAD, na), jnp.float32).at[:N].set(node_attr)
    deg = jnp.zeros((N_PAD,), jnp.float32).at[i_idx].add(1.0)
    invdeg = (1.0 / jnp.maximum(deg, 1.0)).reshape(N_PAD, 1)

    # Weights: pre-transposed to [in, out] layout, zero-padded to lane multiples.
    z2 = lambda r, c: jnp.zeros((r, c), jnp.float32)
    row = lambda v: z2(1, H_PAD).at[:, :H].set(jnp.reshape(v, (1, -1)))
    We1, We2, Wh1, Wh2 = params["We1"], params["We2"], params["Wh1"], params["Wh2"]

    we1_i = z2(PACK_PAD, H_PAD).at[4:4 + ni, :H].set(We1[:, :ni].T)
    we1_j = z2(PACK_PAD, H_PAD).at[4:4 + ni, :H].set(We1[:, ni:2 * ni].T)
    we1_nd = z2(2, H_PAD).at[:, :H].set(We1[:, 2 * ni:2 * ni + 2].T)
    bne_g = row(params["bne_g"])
    bne_b = row(params["bne_b"])
    we2 = z2(H_PAD, H_PAD).at[:H, :H].set(We2.T)
    be2 = row(params["be2"])
    wm_row = row(params["Wm"])
    bm = jnp.reshape(params["bm"], (1, 1)).astype(jnp.float32)
    wx1 = z2(H_PAD, H_PAD).at[:H, :H].set(params["Wx1"].T)
    bx1 = row(params["bx1"])
    wx2_row = row(params["Wx2"])
    wh1_h = z2(PACK_PAD, H_PAD).at[4:4 + ni, :H].set(Wh1[:, :ni].T)
    wh1_agg = z2(H_PAD, H_PAD).at[:H, :H].set(Wh1[:, ni:ni + H].T)
    wh1_attr = z2(na, H_PAD).at[:, :H].set(Wh1[:, ni + H:].T)
    bh1 = row(params["bh1"])
    bnh_g = row(params["bnh_g"])
    bnh_b = row(params["bnh_b"])
    wh2 = z2(H_PAD, no).at[:H, :].set(Wh2.T)
    bh2 = jnp.reshape(params["bh2"], (1, no)).astype(jnp.float32)

    inputs = (
        ii_col, jj_col, ii_row, hx, nattr, invdeg,
        we1_i, we1_j, we1_nd, bne_g, bne_b, we2, be2,
        wm_row, bm, wx1, bx1, wx2_row,
        wh1_h, wh1_agg, wh1_attr, bh1, bnh_g, bnh_b, wh2, bh2,
    )

    col_spec = pl.BlockSpec((TE, 1), lambda p, e: (e, 0))
    row_spec = pl.BlockSpec((1, TE), lambda p, e: (0, e))

    def const_spec(a):
        return pl.BlockSpec(a.shape, lambda p, e: (0, 0))

    in_specs = [col_spec, col_spec, row_spec] + [const_spec(a) for a in inputs[3:]]

    out_specs = (
        pl.BlockSpec((N_PAD, no), lambda p, e: (0, 0)),       # h_new (resident)
        pl.BlockSpec((N_PAD, 4), lambda p, e: (0, 0)),        # x_new (resident)
        pl.BlockSpec((TE, H_PAD), lambda p, e: (e * p, 0)),   # m (written in pass 1)
    )
    out_shape = (
        jax.ShapeDtypeStruct((N_PAD, no), jnp.float32),
        jax.ShapeDtypeStruct((N_PAD, 4), jnp.float32),
        jax.ShapeDtypeStruct((E_PAD, H_PAD), jnp.float32),
    )
    scratch = [
        pltpu.VMEM((1, H_PAD), jnp.float32),                  # BN sum -> mean
        pltpu.VMEM((1, H_PAD), jnp.float32),                  # BN sumsq -> rstd
        pltpu.VMEM((N_PAD, H_PAD), jnp.float32),              # agg_m accumulator
        pltpu.VMEM((N_PAD, 4), jnp.float32),                  # agg_x accumulator
        pltpu.VMEM((n_tiles, TE, H_PAD), jnp.float32),        # z cache (pass0 -> pass1)
        pltpu.VMEM((n_tiles, TE, 4), jnp.float32),            # x_diff cache
    ]
    # NOTE: for very large edge counts (or on v7x) route the z / x_diff caches
    # through HBM (pass-0 output re-read in pass 1) instead of VMEM scratch.

    grid_spec = pltpu.PrefetchScalarGridSpec(
        num_scalar_prefetch=0,
        grid=(2, n_tiles),
        in_specs=in_specs,
        out_specs=out_specs,
        scratch_shapes=scratch,
    )

    flops = int(
        2 * 2 * E_PAD * N_PAD * PACK_PAD                      # fused gather
        + 2 * 2 * E_PAD * PACK_PAD * H_PAD                    # phi_e lin1 (both ends)
        + 2 * 2 * E_PAD * H_PAD * H_PAD                       # phi_e lin2 + phi_x lin1
        + 2 * E_PAD * N_PAD * (H_PAD + 4)                     # fused scatter
        + 2 * N_PAD * H_PAD * (PACK_PAD + H_PAD + na + no))   # phi_h
    bytes_accessed = int(sum(int(a.size) * a.dtype.itemsize for a in inputs)
                         + 4 * (N_PAD * (no + 4) + E_PAD * H_PAD))
    cost = pl.CostEstimate(flops=flops, transcendentals=int(4 * E_PAD),
                           bytes_accessed=bytes_accessed)

    kernel = functools.partial(
        _lgeb_kernel,
        float(c_weight), 1.0 / float(E), 1.0 / float(N), int(N), int(ni))

    hout, xout, mout = pl.pallas_call(
        kernel,
        out_shape=out_shape,
        grid_spec=grid_spec,
        compiler_params=pltpu.CompilerParams(
            dimension_semantics=("arbitrary", "arbitrary"),
            vmem_limit_bytes=_pick_vmem_limit_bytes()),
        cost_estimate=cost,
    )(*inputs)
    return hout[:N], xout[:N], mout[:E, :H]


# ---------------------------------------------------------------------------
# Pure-JAX reference (mirrors the PyTorch module in training mode)
# ---------------------------------------------------------------------------
def lgeb_reference(h, x, edges, node_attr, params, *, c_weight=1.0):
    i, j = edges
    N = h.shape[0]

    def bn(z, g, b, eps=1e-5):
        mu = z.mean(0, keepdims=True)
        var = ((z - mu) ** 2).mean(0, keepdims=True)
        return (z - mu) * jax.lax.rsqrt(var + eps) * g + b

    x_diff = x[i] - x[j]
    dsq = x_diff * x_diff
    norms = _psi(2.0 * dsq[:, 0] - dsq.sum(-1))[:, None]
    pq = x[i] * x[j]
    dots = _psi(2.0 * pq[:, 0] - pq.sum(-1))[:, None]

    feat = jnp.concatenate([h[i], h[j], norms, dots], axis=1)
    z = feat @ params["We1"].T
    z = jax.nn.relu(bn(z, params["bne_g"], params["bne_b"]))
    z = jax.nn.relu(z @ params["We2"].T + params["be2"])
    w = jax.nn.sigmoid(z @ params["Wm"].T + params["bm"])
    m = z * w

    px = jax.nn.relu(m @ params["Wx1"].T + params["bx1"]) @ params["Wx2"].T
    trans = jnp.clip(x_diff * px, -100.0, 100.0)
    agg_x = jax.ops.segment_sum(trans, i, num_segments=N)
    cnt = jax.ops.segment_sum(jnp.ones_like(trans), i, num_segments=N)
    x_new = x + (agg_x / jnp.maximum(cnt, 1.0)) * c_weight

    agg_m = jax.ops.segment_sum(m, i, num_segments=N)
    feat_h = jnp.concatenate([h, agg_m, node_attr], axis=1)
    y = feat_h @ params["Wh1"].T + params["bh1"]
    y = jax.nn.relu(bn(y, params["bnh_g"], params["bnh_b"]))
    y = y @ params["Wh2"].T + params["bh2"]
    return h + y, x_new, m


# ---------------------------------------------------------------------------
if __name__ == "__main__":
    N, E = 24, 300
    n_input = 16
    n_hidden = 32
    n_output = 16        # must equal n_input for the residual h + phi_h(...)
    n_node_attr = 2
    c_weight = 1.0

    key = jax.random.PRNGKey(0)
    k_h, k_x, k_i, k_j, k_attr, k_par = jax.random.split(key, 6)

    h = jax.random.normal(k_h, (N, n_input), jnp.float32)
    x = jax.random.normal(k_x, (N, 4), jnp.float32)
    edges_i = jax.random.randint(k_i, (E,), 0, N)
    edges_j = jax.random.randint(k_j, (E,), 0, N)
    node_attr = jax.random.normal(k_attr, (N, n_node_attr), jnp.float32)

    params = init_lgeb_params(k_par, n_input, n_output, n_hidden, n_node_attr)

    # edge_tile=256 with E=300 -> two edge tiles: exercises the two-pass BN,
    # the z/x_diff cache and the cross-tile accumulators.
    h_new, x_new, m = lgeb_forward(
        h, x, (edges_i, edges_j), node_attr, params,
        c_weight=c_weight, edge_tile=256)
    jax.block_until_ready((h_new, x_new, m))

    assert h_new.shape == (N, n_output)
    assert x_new.shape == (N, 4)
    assert m.shape == (E, n_hidden)

    h_ref, x_ref, m_ref = lgeb_reference(
        h, x, (edges_i, edges_j), node_attr, params, c_weight=c_weight)
    for name, got, ref in (("h", h_new, h_ref), ("x", x_new, x_ref), ("m", m, m_ref)):
        err = float(jnp.max(jnp.abs(got - ref)))
        assert err < 1e-2, f"{name}: kernel/reference mismatch, max abs err {err}"

    print("KERNEL_OK")
</pallas_src>

<mosaic_0001>
module attributes {stable_mosaic.version = 11 : i64} {
  func.func @_lgeb_kernel(%arg0: i32, %arg1: i32, %arg2: memref<256x1xi32, #tpu.memory_space<vmem>>, %arg3: memref<256x1xi32, #tpu.memory_space<vmem>>, %arg4: memref<1x256xi32, #tpu.memory_space<vmem>>, %arg5: memref<24x128xf32, #tpu.memory_space<vmem>>, %arg6: memref<24x2xf32, #tpu.memory_space<vmem>>, %arg7: memref<24x1xf32, #tpu.memory_space<vmem>>, %arg8: memref<128x128xf32, #tpu.memory_space<vmem>>, %arg9: memref<128x128xf32, #tpu.memory_space<vmem>>, %arg10: memref<2x128xf32, #tpu.memory_space<vmem>>, %arg11: memref<1x128xf32, #tpu.memory_space<vmem>>, %arg12: memref<1x128xf32, #tpu.memory_space<vmem>>, %arg13: memref<128x128xf32, #tpu.memory_space<vmem>>, %arg14: memref<1x128xf32, #tpu.memory_space<vmem>>, %arg15: memref<1x128xf32, #tpu.memory_space<vmem>>, %arg16: memref<1x1xf32, #tpu.memory_space<vmem>>, %arg17: memref<128x128xf32, #tpu.memory_space<vmem>>, %arg18: memref<1x128xf32, #tpu.memory_space<vmem>>, %arg19: memref<1x128xf32, #tpu.memory_space<vmem>>, %arg20: memref<128x128xf32, #tpu.memory_space<vmem>>, %arg21: memref<128x128xf32, #tpu.memory_space<vmem>>, %arg22: memref<2x128xf32, #tpu.memory_space<vmem>>, %arg23: memref<1x128xf32, #tpu.memory_space<vmem>>, %arg24: memref<1x128xf32, #tpu.memory_space<vmem>>, %arg25: memref<1x128xf32, #tpu.memory_space<vmem>>, %arg26: memref<128x16xf32, #tpu.memory_space<vmem>>, %arg27: memref<1x16xf32, #tpu.memory_space<vmem>>, %arg28: memref<24x16xf32, #tpu.memory_space<vmem>>, %arg29: memref<24x4xf32, #tpu.memory_space<vmem>>, %arg30: memref<256x128xf32, #tpu.memory_space<vmem>>, %arg31: memref<1x128xf32, #tpu.memory_space<vmem>>, %arg32: memref<1x128xf32, #tpu.memory_space<vmem>>, %arg33: memref<24x128xf32, #tpu.memory_space<vmem>>, %arg34: memref<24x4xf32, #tpu.memory_space<vmem>>, %arg35: memref<2x256x128xf32, #tpu.memory_space<vmem>>, %arg36: memref<2x256x4xf32, #tpu.memory_space<vmem>>) attributes {dimension_semantics = [#tpu.dimension_semantics<arbitrary>, #tpu.dimension_semantics<arbitrary>], iteration_bounds = array<i64: 2, 2>, scalar_prefetch = 0 : i64, scratch_operands = 6 : i64, tpu.core_type = #tpu.core_type<tc>, window_params = [{transform_indices = @transform_0, window_bounds = array<i64: 256, 1>}, {transform_indices = @transform_1, window_bounds = array<i64: 256, 1>}, {transform_indices = @transform_2, window_bounds = array<i64: 1, 256>}, {pipeline_mode = #tpu.pipeline_mode<synchronous>, transform_indices = @transform_3, window_bounds = array<i64: 24, 128>}, {pipeline_mode = #tpu.pipeline_mode<synchronous>, transform_indices = @transform_4, window_bounds = array<i64: 24, 2>}, {pipeline_mode = #tpu.pipeline_mode<synchronous>, transform_indices = @transform_5, window_bounds = array<i64: 24, 1>}, {pipeline_mode = #tpu.pipeline_mode<synchronous>, transform_indices = @transform_6, window_bounds = array<i64: 128, 128>}, {pipeline_mode = #tpu.pipeline_mode<synchronous>, transform_indices = @transform_7, window_bounds = array<i64: 128, 128>}, {pipeline_mode = #tpu.pipeline_mode<synchronous>, transform_indices = @transform_8, window_bounds = array<i64: 2, 128>}, {pipeline_mode = #tpu.pipeline_mode<synchronous>, transform_indices = @transform_9, window_bounds = array<i64: 1, 128>}, {pipeline_mode = #tpu.pipeline_mode<synchronous>, transform_indices = @transform_10, window_bounds = array<i64: 1, 128>}, {pipeline_mode = #tpu.pipeline_mode<synchronous>, transform_indices = @transform_11, window_bounds = array<i64: 128, 128>}, {pipeline_mode = #tpu.pipeline_mode<synchronous>, transform_indices = @transform_12, window_bounds = array<i64: 1, 128>}, {pipeline_mode = #tpu.pipeline_mode<synchronous>, transform_indices = @transform_13, window_bounds = array<i64: 1, 128>}, {pipeline_mode = #tpu.pipeline_mode<synchronous>, transform_indices = @transform_14, window_bounds = array<i64: 1, 1>}, {pipeline_mode = #tpu.pipeline_mode<synchronous>, transform_indices = @transform_15, window_bounds = array<i64: 128, 128>}, {pipeline_mode = #tpu.pipeline_mode<synchronous>, transform_indices = @transform_16, window_bounds = array<i64: 1, 128>}, {pipeline_mode = #tpu.pipeline_mode<synchronous>, transform_indices = @transform_17, window_bounds = array<i64: 1, 128>}, {pipeline_mode = #tpu.pipeline_mode<synchronous>, transform_indices = @transform_18, window_bounds = array<i64: 128, 128>}, {pipeline_mode = #tpu.pipeline_mode<synchronous>, transform_indices = @transform_19, window_bounds = array<i64: 128, 128>}, {pipeline_mode = #tpu.pipeline_mode<synchronous>, transform_indices = @transform_20, window_bounds = array<i64: 2, 128>}, {pipeline_mode = #tpu.pipeline_mode<synchronous>, transform_indices = @transform_21, window_bounds = array<i64: 1, 128>}, {pipeline_mode = #tpu.pipeline_mode<synchronous>, transform_indices = @transform_22, window_bounds = array<i64: 1, 128>}, {pipeline_mode = #tpu.pipeline_mode<synchronous>, transform_indices = @transform_23, window_bounds = array<i64: 1, 128>}, {pipeline_mode = #tpu.pipeline_mode<synchronous>, transform_indices = @transform_24, window_bounds = array<i64: 128, 16>}, {pipeline_mode = #tpu.pipeline_mode<synchronous>, transform_indices = @transform_25, window_bounds = array<i64: 1, 16>}, {pipeline_mode = #tpu.pipeline_mode<synchronous>, transform_indices = @transform_26, window_bounds = array<i64: 24, 16>}, {pipeline_mode = #tpu.pipeline_mode<synchronous>, transform_indices = @transform_27, window_bounds = array<i64: 24, 4>}, {transform_indices = @transform_28, window_bounds = array<i64: 256, 128>}]} {
    %c0_i32 = arith.constant 0 : i32
    %0 = arith.cmpi eq, %arg0, %c0_i32 : i32
    %1 = arith.extui %0 : i1 to i32
    %c0_i32_0 = arith.constant 0 : i32
    %2 = arith.cmpi ne, %1, %c0_i32_0 : i32
    scf.if %2 {
      %c0_i32_2 = arith.constant 0 : i32
      %6 = arith.cmpi eq, %arg1, %c0_i32_2 : i32
      %7 = arith.extui %6 : i1 to i32
      %c0_i32_3 = arith.constant 0 : i32
      %8 = arith.cmpi ne, %7, %c0_i32_3 : i32
      scf.if %8 {
        %cst_49 = arith.constant 0.000000e+00 : f32
        %108 = vector.broadcast %cst_49 : f32 to vector<1x128xf32>
        %c0_50 = arith.constant 0 : index
        %c0_51 = arith.constant 0 : index
        %109 = vector.load %arg31[%c0_50, %c0_51] : memref<1x128xf32, #tpu.memory_space<vmem>>, vector<1x128xf32>
        tpu.vector_store %arg31[%c0_50, %c0_51], %108 {strides = array<i32>} : memref<1x128xf32, #tpu.memory_space<vmem>>, vector<1x128xf32>,
        %cst_52 = arith.constant 0.000000e+00 : f32
        %110 = vector.broadcast %cst_52 : f32 to vector<1x128xf32>
        %c0_53 = arith.constant 0 : index
        %c0_54 = arith.constant 0 : index
        %111 = vector.load %arg32[%c0_53, %c0_54] : memref<1x128xf32, #tpu.memory_space<vmem>>, vector<1x128xf32>
        tpu.vector_store %arg32[%c0_53, %c0_54], %110 {strides = array<i32>} : memref<1x128xf32, #tpu.memory_space<vmem>>, vector<1x128xf32>,
        %cst_55 = arith.constant 0.000000e+00 : f32
        %112 = vector.broadcast %cst_55 : f32 to vector<24x128xf32>
        %c0_56 = arith.constant 0 : index
        %c0_57 = arith.constant 0 : index
        %113 = vector.load %arg33[%c0_56, %c0_57] : memref<24x128xf32, #tpu.memory_space<vmem>>, vector<24x128xf32>
        tpu.vector_store %arg33[%c0_56, %c0_57], %112 {strides = array<i32>} : memref<24x128xf32, #tpu.memory_space<vmem>>, vector<24x128xf32>,
        %cst_58 = arith.constant 0.000000e+00 : f32
        %114 = vector.broadcast %cst_58 : f32 to vector<24x4xf32>
        %c0_59 = arith.constant 0 : index
        %c0_60 = arith.constant 0 : index
        %115 = vector.load %arg34[%c0_59, %c0_60] : memref<24x4xf32, #tpu.memory_space<vmem>>, vector<24x4xf32>
        tpu.vector_store %arg34[%c0_59, %c0_60], %114 {strides = array<i32>} : memref<24x4xf32, #tpu.memory_space<vmem>>, vector<24x4xf32>,
        %cst_61 = arith.constant 0.000000e+00 : f32
        %116 = vector.broadcast %cst_61 : f32 to vector<24x16xf32>
        %c0_62 = arith.constant 0 : index
        %c0_63 = arith.constant 0 : index
        %117 = vector.load %arg28[%c0_62, %c0_63] : memref<24x16xf32, #tpu.memory_space<vmem>>, vector<24x16xf32>
        tpu.vector_store %arg28[%c0_62, %c0_63], %116 {strides = array<i32>} : memref<24x16xf32, #tpu.memory_space<vmem>>, vector<24x16xf32>,
        %cst_64 = arith.constant 0.000000e+00 : f32
        %118 = vector.broadcast %cst_64 : f32 to vector<24x4xf32>
        %c0_65 = arith.constant 0 : index
        %c0_66 = arith.constant 0 : index
        %119 = vector.load %arg29[%c0_65, %c0_66] : memref<24x4xf32, #tpu.memory_space<vmem>>, vector<24x4xf32>
        tpu.vector_store %arg29[%c0_65, %c0_66], %118 {strides = array<i32>} : memref<24x4xf32, #tpu.memory_space<vmem>>, vector<24x4xf32>,
        %cst_67 = arith.constant 0.000000e+00 : f32
        %120 = vector.broadcast %cst_67 : f32 to vector<256x128xf32>
        %c0_68 = arith.constant 0 : index
        %c0_69 = arith.constant 0 : index
        %121 = vector.load %arg30[%c0_68, %c0_69] : memref<256x128xf32, #tpu.memory_space<vmem>>, vector<256x128xf32>
        tpu.vector_store %arg30[%c0_68, %c0_69], %120 {strides = array<i32>} : memref<256x128xf32, #tpu.memory_space<vmem>>, vector<256x128xf32>,
      } else {
      }
      %9 = tpu.iota {dimensions = array<i32: 1>} : vector<256x24xi32>
      %c0 = arith.constant 0 : index
      %c0_4 = arith.constant 0 : index
      %10 = vector.load %arg2[%c0, %c0_4] : memref<256x1xi32, #tpu.memory_space<vmem>>, vector<256x1xi32>
      %11 = vector.broadcast %10 : vector<256x1xi32> to vector<256x24xi32>
      %12 = arith.cmpi eq, %11, %9 : vector<256x24xi32>
      %13 = arith.extui %12 : vector<256x24xi1> to vector<256x24xi32>
      %14 = arith.sitofp %13 : vector<256x24xi32> to vector<256x24xf32>
      %c0_5 = arith.constant 0 : index
      %c0_6 = arith.constant 0 : index
      %15 = vector.load %arg3[%c0_5, %c0_6] : memref<256x1xi32, #tpu.memory_space<vmem>>, vector<256x1xi32>
      %16 = vector.broadcast %15 : vector<256x1xi32> to vector<256x24xi32>
      %17 = arith.cmpi eq, %16, %9 : vector<256x24xi32>
      %18 = arith.extui %17 : vector<256x24xi1> to vector<256x24xi32>
      %19 = arith.sitofp %18 : vector<256x24xi32> to vector<256x24xf32>
      %20 = tpu.concatenate %14, %19 in 0 : vector<256x24xf32>, vector<256x24xf32> -> vector<512x24xf32>
      %c0_7 = arith.constant 0 : index
      %c0_8 = arith.constant 0 : index
      %21 = vector.load %arg5[%c0_7, %c0_8] : memref<24x128xf32, #tpu.memory_space<vmem>>, vector<24x128xf32>
      %cst = arith.constant dense<0.000000e+00> : vector<512x128xf32>
      %22 = tpu.matmul %20, %21, %cst {dimension_numbers = #tpu.dot_dimension_numbers<[1], [0], [0], [1], [0, 0, 1, 1], [], []>} : vector<512x24xf32>, vector<24x128xf32>, vector<512x128xf32> -> vector<512x128xf32>
      %23 = vector.extract_strided_slice %22 {offsets = [0, 0], sizes = [256, 128], strides = [1, 1]} : vector<512x128xf32> to vector<256x128xf32>
      %24 = vector.extract_strided_slice %22 {offsets = [256, 0], sizes = [256, 128], strides = [1, 1]} : vector<512x128xf32> to vector<256x128xf32>
      %25 = vector.extract_strided_slice %23 {offsets = [0, 0], sizes = [256, 4], strides = [1, 1]} : vector<256x128xf32> to vector<256x4xf32>
      %26 = vector.extract_strided_slice %24 {offsets = [0, 0], sizes = [256, 4], strides = [1, 1]} : vector<256x128xf32> to vector<256x4xf32>
      %27 = arith.subf %25, %26 : vector<256x4xf32>
      %28 = arith.mulf %27, %27 : vector<256x4xf32>
      %29 = vector.extract_strided_slice %28 {offsets = [0, 0], sizes = [256, 1], strides = [1, 1]} : vector<256x4xf32> to vector<256x1xf32>
      %cst_9 = arith.constant 2.000000e+00 : f32
      %30 = vector.broadcast %cst_9 : f32 to vector<256x1xf32>
      %31 = arith.mulf %30, %29 : vector<256x1xf32>
      %cst_10 = arith.constant dense<0.000000e+00> : vector<256xf32>
      %32 = vector.multi_reduction <add>, %28, %cst_10 [1] : vector<256x4xf32> to vector<256xf32>
      %33 = vector.shape_cast %32 : vector<256xf32> to vector<256x1xf32>
      %34 = arith.subf %31, %33 : vector<256x1xf32>
      %cst_11 = arith.constant 0.000000e+00 : f32
      %35 = vector.broadcast %cst_11 : f32 to vector<256x1xf32>
      %36 = arith.cmpf ogt, %34, %35 : vector<256x1xf32>
      %cst_12 = arith.constant 0.000000e+00 : f32
      %37 = vector.broadcast %cst_12 : f32 to vector<256x1xf32>
      %38 = arith.cmpf olt, %34, %37 : vector<256x1xf32>
      %cst_13 = arith.constant -1.000000e+00 : f32
      %cst_14 = arith.constant 0.000000e+00 : f32
      %39 = vector.broadcast %cst_13 : f32 to vector<256x1xf32>
      %40 = vector.broadcast %cst_14 : f32 to vector<256x1xf32>
      %41 = arith.select %38, %39, %40 : vector<256x1xi1>, vector<256x1xf32>
      %cst_15 = arith.constant 1.000000e+00 : f32
      %42 = vector.broadcast %cst_15 : f32 to vector<256x1xf32>
      %43 = arith.select %36, %42, %41 : vector<256x1xi1>, vector<256x1xf32>
      %44 = math.absf %34 : vector<256x1xf32>
      %cst_16 = arith.constant 1.000000e+00 : f32
      %45 = vector.broadcast %cst_16 : f32 to vector<256x1xf32>
      %46 = arith.addf %44, %45 : vector<256x1xf32>
      %47 = math.log %46 : vector<256x1xf32>
      %48 = arith.mulf %43, %47 : vector<256x1xf32>
      %49 = arith.mulf %25, %26 : vector<256x4xf32>
      %50 = vector.extract_strided_slice %49 {offsets = [0, 0], sizes = [256, 1], strides = [1, 1]} : vector<256x4xf32> to vector<256x1xf32>
      %cst_17 = arith.constant 2.000000e+00 : f32
      %51 = vector.broadcast %cst_17 : f32 to vector<256x1xf32>
      %52 = arith.mulf %51, %50 : vector<256x1xf32>
      %cst_18 = arith.constant dense<0.000000e+00> : vector<256xf32>
      %53 = vector.multi_reduction <add>, %49, %cst_18 [1] : vector<256x4xf32> to vector<256xf32>
      %54 = vector.shape_cast %53 : vector<256xf32> to vector<256x1xf32>
      %55 = arith.subf %52, %54 : vector<256x1xf32>
      %cst_19 = arith.constant 0.000000e+00 : f32
      %56 = vector.broadcast %cst_19 : f32 to vector<256x1xf32>
      %57 = arith.cmpf ogt, %55, %56 : vector<256x1xf32>
      %cst_20 = arith.constant 0.000000e+00 : f32
      %58 = vector.broadcast %cst_20 : f32 to vector<256x1xf32>
      %59 = arith.cmpf olt, %55, %58 : vector<256x1xf32>
      %cst_21 = arith.constant -1.000000e+00 : f32
      %cst_22 = arith.constant 0.000000e+00 : f32
      %60 = vector.broadcast %cst_21 : f32 to vector<256x1xf32>
      %61 = vector.broadcast %cst_22 : f32 to vector<256x1xf32>
      %62 = arith.select %59, %60, %61 : vector<256x1xi1>, vector<256x1xf32>
      %cst_23 = arith.constant 1.000000e+00 : f32
      %63 = vector.broadcast %cst_23 : f32 to vector<256x1xf32>
      %64 = arith.select %57, %63, %62 : vector<256x1xi1>, vector<256x1xf32>
      %65 = math.absf %55 : vector<256x1xf32>
      %cst_24 = arith.constant 1.000000e+00 : f32
      %66 = vector.broadcast %cst_24 : f32 to vector<256x1xf32>
      %67 = arith.addf %65, %66 : vector<256x1xf32>
      %68 = math.log %67 : vector<256x1xf32>
      %69 = arith.mulf %64, %68 : vector<256x1xf32>
      %c0_25 = arith.constant 0 : index
      %c0_26 = arith.constant 0 : index
      %70 = vector.load %arg10[%c0_25, %c0_26] : memref<2x128xf32, #tpu.memory_space<vmem>>, vector<2x128xf32>
      %c0_27 = arith.constant 0 : index
      %c0_28 = arith.constant 0 : index
      %71 = vector.load %arg8[%c0_27, %c0_28] : memref<128x128xf32, #tpu.memory_space<vmem>>, vector<128x128xf32>
      %cst_29 = arith.constant dense<0.000000e+00> : vector<256x128xf32>
      %72 = tpu.matmul %23, %71, %cst_29 {dimension_numbers = #tpu.dot_dimension_numbers<[1], [0], [0], [1], [0, 0, 1, 1], [], []>} : vector<256x128xf32>, vector<128x128xf32>, vector<256x128xf32> -> vector<256x128xf32>
      %c0_30 = arith.constant 0 : index
      %c0_31 = arith.constant 0 : index
      %73 = vector.load %arg9[%c0_30, %c0_31] : memref<128x128xf32, #tpu.memory_space<vmem>>, vector<128x128xf32>
      %cst_32 = arith.constant dense<0.000000e+00> : vector<256x128xf32>
      %74 = tpu.matmul %24, %73, %cst_32 {dimension_numbers = #tpu.dot_dimension_numbers<[1], [0], [0], [1], [0, 0, 1, 1], [], []>} : vector<256x128xf32>, vector<128x128xf32>, vector<256x128xf32> -> vector<256x128xf32>
      %75 = arith.addf %72, %74 : vector<256x128xf32>
      %76 = vector.extract_strided_slice %70 {offsets = [0, 0], sizes = [1, 128], strides = [1, 1]} : vector<2x128xf32> to vector<1x128xf32>
      %77 = vector.broadcast %48 : vector<256x1xf32> to vector<256x128xf32>
      %78 = vector.broadcast %76 : vector<1x128xf32> to vector<256x128xf32>
      %79 = arith.mulf %77, %78 : vector<256x128xf32>
      %80 = arith.addf %75, %79 : vector<256x128xf32>
      %81 = vector.extract_strided_slice %70 {offsets = [1, 0], sizes = [1, 128], strides = [1, 1]} : vector<2x128xf32> to vector<1x128xf32>
      %82 = vector.broadcast %69 : vector<256x1xf32> to vector<256x128xf32>
      %83 = vector.broadcast %81 : vector<1x128xf32> to vector<256x128xf32>
      %84 = arith.mulf %82, %83 : vector<256x128xf32>
      %85 = arith.addf %80, %84 : vector<256x128xf32>
      %86 = arith.index_cast %arg1 : i32 to index
      %c0_33 = arith.constant 0 : index
      %c0_34 = arith.constant 0 : index
      %87 = vector.load %arg35[%86, %c0_33, %c0_34] : memref<2x256x128xf32, #tpu.memory_space<vmem>>, vector<1x256x128xf32>
      %88 = vector.shape_cast %87 : vector<1x256x128xf32> to vector<256x128xf32>
      %89 = vector.shape_cast %85 : vector<256x128xf32> to vector<1x256x128xf32>
      tpu.vector_store %arg35[%86, %c0_33, %c0_34], %89 {strides = array<i32>} : memref<2x256x128xf32, #tpu.memory_space<vmem>>, vector<1x256x128xf32>,
      %90 = arith.index_cast %arg1 : i32 to index
      %c0_35 = arith.constant 0 : index
      %c0_36 = arith.constant 0 : index
      %91 = vector.load %arg36[%90, %c0_35, %c0_36] : memref<2x256x4xf32, #tpu.memory_space<vmem>>, vector<1x256x4xf32>
      %92 = vector.shape_cast %91 : vector<1x256x4xf32> to vector<256x4xf32>
      %93 = vector.shape_cast %27 : vector<256x4xf32> to vector<1x256x4xf32>
      tpu.vector_store %arg36[%90, %c0_35, %c0_36], %93 {strides = array<i32>} : memref<2x256x4xf32, #tpu.memory_space<vmem>>, vector<1x256x4xf32>,
      %c0_37 = arith.constant 0 : index
      %c0_38 = arith.constant 0 : index
      %94 = vector.load %arg31[%c0_37, %c0_38] : memref<1x128xf32, #tpu.memory_space<vmem>>, vector<1x128xf32>
      %cst_39 = arith.constant dense<0.000000e+00> : vector<128xf32>
      %95 = vector.multi_reduction <add>, %85, %cst_39 [0] : vector<256x128xf32> to vector<128xf32>
      %96 = vector.shape_cast %95 : vector<128xf32> to vector<1x128xf32>
      %97 = arith.addf %94, %96 : vector<1x128xf32>
      %c0_40 = arith.constant 0 : index
      %c0_41 = arith.constant 0 : index
      %98 = vector.load %arg31[%c0_40, %c0_41] : memref<1x128xf32, #tpu.memory_space<vmem>>, vector<1x128xf32>
      tpu.vector_store %arg31[%c0_40, %c0_41], %97 {strides = array<i32>} : memref<1x128xf32, #tpu.memory_space<vmem>>, vector<1x128xf32>,
      %c0_42 = arith.constant 0 : index
      %c0_43 = arith.constant 0 : index
      %99 = vector.load %arg32[%c0_42, %c0_43] : memref<1x128xf32, #tpu.memory_space<vmem>>, vector<1x128xf32>
      %100 = arith.mulf %85, %85 : vector<256x128xf32>
      %cst_44 = arith.constant dense<0.000000e+00> : vector<128xf32>
      %101 = vector.multi_reduction <add>, %100, %cst_44 [0] : vector<256x128xf32> to vector<128xf32>
      %102 = vector.shape_cast %101 : vector<128xf32> to vector<1x128xf32>
      %103 = arith.addf %99, %102 : vector<1x128xf32>
      %c0_45 = arith.constant 0 : index
      %c0_46 = arith.constant 0 : index
      %104 = vector.load %arg32[%c0_45, %c0_46] : memref<1x128xf32, #tpu.memory_space<vmem>>, vector<1x128xf32>
      tpu.vector_store %arg32[%c0_45, %c0_46], %103 {strides = array<i32>} : memref<1x128xf32, #tpu.memory_space<vmem>>, vector<1x128xf32>,
      %c1_i32_47 = arith.constant 1 : i32
      %105 = arith.cmpi eq, %arg1, %c1_i32_47 : i32
      %106 = arith.extui %105 : i1 to i32
      %c0_i32_48 = arith.constant 0 : i32
      %107 = arith.cmpi ne, %106, %c0_i32_48 : i32
      scf.if %107 {
        %c0_49 = arith.constant 0 : index
        %c0_50 = arith.constant 0 : index
        %108 = vector.load %arg31[%c0_49, %c0_50] : memref<1x128xf32, #tpu.memory_space<vmem>>, vector<1x128xf32>
        %cst_51 = arith.constant 0.00333333341 : f32
        %109 = vector.broadcast %cst_51 : f32 to vector<1x128xf32>
        %110 = arith.mulf %108, %109 : vector<1x128xf32>
        %c0_52 = arith.constant 0 : index
        %c0_53 = arith.constant 0 : index
        %111 = vector.load %arg32[%c0_52, %c0_53] : memref<1x128xf32, #tpu.memory_space<vmem>>, vector<1x128xf32>
        %cst_54 = arith.constant 0.00333333341 : f32
        %112 = vector.broadcast %cst_54 : f32 to vector<1x128xf32>
        %113 = arith.mulf %111, %112 : vector<1x128xf32>
        %114 = arith.mulf %110, %110 : vector<1x128xf32>
        %115 = arith.subf %113, %114 : vector<1x128xf32>
        %cst_55 = arith.constant 0.000000e+00 : f32
        %116 = vector.broadcast %cst_55 : f32 to vector<1x128xf32>
        %117 = arith.maximumf %115, %116 : vector<1x128xf32>
        %c0_56 = arith.constant 0 : index
        %c0_57 = arith.constant 0 : index
        %118 = vector.load %arg31[%c0_56, %c0_57] : memref<1x128xf32, #tpu.memory_space<vmem>>, vector<1x128xf32>
        tpu.vector_store %arg31[%c0_56, %c0_57], %110 {strides = array<i32>} : memref<1x128xf32, #tpu.memory_space<vmem>>, vector<1x128xf32>,
        %cst_58 = arith.constant 9.99999974E-6 : f32
        %119 = vector.broadcast %cst_58 : f32 to vector<1x128xf32>
        %120 = arith.addf %117, %119 : vector<1x128xf32>
        %121 = math.rsqrt %120 : vector<1x128xf32>
        %c0_59 = arith.constant 0 : index
        %c0_60 = arith.constant 0 : index
        %122 = vector.load %arg32[%c0_59, %c0_60] : memref<1x128xf32, #tpu.memory_space<vmem>>, vector<1x128xf32>
        tpu.vector_store %arg32[%c0_59, %c0_60], %121 {strides = array<i32>} : memref<1x128xf32, #tpu.memory_space<vmem>>, vector<1x128xf32>,
      } else {
      }
    } else {
    }
    %c1_i32 = arith.constant 1 : i32
    %3 = arith.cmpi eq, %arg0, %c1_i32 : i32
    %4 = arith.extui %3 : i1 to i32
    %c0_i32_1 = arith.constant 0 : i32
    %5 = arith.cmpi ne, %4, %c0_i32_1 : i32
    scf.if %5 {
      %6 = arith.index_cast %arg1 : i32 to index
      %c0 = arith.constant 0 : index
      %c0_2 = arith.constant 0 : index
      %7 = vector.load %arg35[%6, %c0, %c0_2] : memref<2x256x128xf32, #tpu.memory_space<vmem>>, vector<1x256x128xf32>
      %8 = vector.shape_cast %7 : vector<1x256x128xf32> to vector<256x128xf32>
      %9 = arith.index_cast %arg1 : i32 to index
      %c0_3 = arith.constant 0 : index
      %c0_4 = arith.constant 0 : index
      %10 = vector.load %arg36[%9, %c0_3, %c0_4] : memref<2x256x4xf32, #tpu.memory_space<vmem>>, vector<1x256x4xf32>
      %11 = vector.shape_cast %10 : vector<1x256x4xf32> to vector<256x4xf32>
      %c0_5 = arith.constant 0 : index
      %c0_6 = arith.constant 0 : index
      %12 = vector.load %arg31[%c0_5, %c0_6] : memref<1x128xf32, #tpu.memory_space<vmem>>, vector<1x128xf32>
      %c0_7 = arith.constant 0 : index
      %c0_8 = arith.constant 0 : index
      %13 = vector.load %arg32[%c0_7, %c0_8] : memref<1x128xf32, #tpu.memory_space<vmem>>, vector<1x128xf32>
      %14 = vector.broadcast %12 : vector<1x128xf32> to vector<256x128xf32>
      %15 = arith.subf %8, %14 : vector<256x128xf32>
      %16 = vector.broadcast %13 : vector<1x128xf32> to vector<256x128xf32>
      %17 = arith.mulf %15, %16 : vector<256x128xf32>
      %c0_9 = arith.constant 0 : index
      %c0_10 = arith.constant 0 : index
      %18 = vector.load %arg11[%c0_9, %c0_10] : memref<1x128xf32, #tpu.memory_space<vmem>>, vector<1x128xf32>
      %19 = vector.broadcast %18 : vector<1x128xf32> to vector<256x128xf32>
      %20 = arith.mulf %17, %19 : vector<256x128xf32>
      %c0_11 = arith.constant 0 : index
      %c0_12 = arith.constant 0 : index
      %21 = vector.load %arg12[%c0_11, %c0_12] : memref<1x128xf32, #tpu.memory_space<vmem>>, vector<1x128xf32>
      %22 = vector.broadcast %21 : vector<1x128xf32> to vector<256x128xf32>
      %23 = arith.addf %20, %22 : vector<256x128xf32>
      %cst = arith.constant 0.000000e+00 : f32
      %24 = vector.broadcast %cst : f32 to vector<256x128xf32>
      %25 = arith.maximumf %23, %24 : vector<256x128xf32>
      %c0_13 = arith.constant 0 : index
      %c0_14 = arith.constant 0 : index
      %26 = vector.load %arg13[%c0_13, %c0_14] : memref<128x128xf32, #tpu.memory_space<vmem>>, vector<128x128xf32>
      %cst_15 = arith.constant dense<0.000000e+00> : vector<256x128xf32>
      %27 = tpu.matmul %25, %26, %cst_15 {dimension_numbers = #tpu.dot_dimension_numbers<[1], [0], [0], [1], [0, 0, 1, 1], [], []>} : vector<256x128xf32>, vector<128x128xf32>, vector<256x128xf32> -> vector<256x128xf32>
      %c0_16 = arith.constant 0 : index
      %c0_17 = arith.constant 0 : index
      %28 = vector.load %arg14[%c0_16, %c0_17] : memref<1x128xf32, #tpu.memory_space<vmem>>, vector<1x128xf32>
      %29 = vector.broadcast %28 : vector<1x128xf32> to vector<256x128xf32>
      %30 = arith.addf %27, %29 : vector<256x128xf32>
      %cst_18 = arith.constant 0.000000e+00 : f32
      %31 = vector.broadcast %cst_18 : f32 to vector<256x128xf32>
      %32 = arith.maximumf %30, %31 : vector<256x128xf32>
      %c0_19 = arith.constant 0 : index
      %c0_20 = arith.constant 0 : index
      %33 = vector.load %arg15[%c0_19, %c0_20] : memref<1x128xf32, #tpu.memory_space<vmem>>, vector<1x128xf32>
      %34 = vector.broadcast %33 : vector<1x128xf32> to vector<256x128xf32>
      %35 = arith.mulf %32, %34 : vector<256x128xf32>
      %cst_21 = arith.constant dense<0.000000e+00> : vector<256xf32>
      %36 = vector.multi_reduction <add>, %35, %cst_21 [1] : vector<256x128xf32> to vector<256xf32>
      %37 = vector.shape_cast %36 : vector<256xf32> to vector<256x1xf32>
      %c0_22 = arith.constant 0 : index
      %c0_23 = arith.constant 0 : index
      %38 = vector.load %arg16[%c0_22, %c0_23] : memref<1x1xf32, #tpu.memory_space<vmem>>, vector<1x1xf32>
      %39 = vector.broadcast %38 : vector<1x1xf32> to vector<256x1xf32>
      %40 = arith.addf %37, %39 : vector<256x1xf32>
      %cst_24 = arith.constant 0.000000e+00 : f32
      %41 = vector.broadcast %cst_24 : f32 to vector<256x1xf32>
      %42 = arith.subf %41, %40 : vector<256x1xf32>
      %43 = math.exp %42 : vector<256x1xf32>
      %cst_25 = arith.constant 1.000000e+00 : f32
      %44 = vector.broadcast %cst_25 : f32 to vector<256x1xf32>
      %45 = arith.addf %44, %43 : vector<256x1xf32>
      %46 = tpu.reciprocal %45 {approx = true} : vector<256x1xf32> -> vector<256x1xf32>
      %47 = arith.mulf %45, %46 : vector<256x1xf32>
      %cst_26 = arith.constant 2.000000e+00 : f32
      %48 = vector.broadcast %cst_26 : f32 to vector<256x1xf32>
      %49 = arith.subf %48, %47 : vector<256x1xf32>
      %50 = arith.mulf %46, %49 : vector<256x1xf32>
      %51 = vector.broadcast %50 : vector<256x1xf32> to vector<256x128xf32>
      %52 = arith.mulf %32, %51 : vector<256x128xf32>
      %c0_27 = arith.constant 0 : index
      %c0_28 = arith.constant 0 : index
      %53 = vector.load %arg30[%c0_27, %c0_28] : memref<256x128xf32, #tpu.memory_space<vmem>>, vector<256x128xf32>
      tpu.vector_store %arg30[%c0_27, %c0_28], %52 {strides = array<i32>} : memref<256x128xf32, #tpu.memory_space<vmem>>, vector<256x128xf32>,
      %c0_29 = arith.constant 0 : index
      %c0_30 = arith.constant 0 : index
      %54 = vector.load %arg17[%c0_29, %c0_30] : memref<128x128xf32, #tpu.memory_space<vmem>>, vector<128x128xf32>
      %cst_31 = arith.constant dense<0.000000e+00> : vector<256x128xf32>
      %55 = tpu.matmul %52, %54, %cst_31 {dimension_numbers = #tpu.dot_dimension_numbers<[1], [0], [0], [1], [0, 0, 1, 1], [], []>} : vector<256x128xf32>, vector<128x128xf32>, vector<256x128xf32> -> vector<256x128xf32>
      %c0_32 = arith.constant 0 : index
      %c0_33 = arith.constant 0 : index
      %56 = vector.load %arg18[%c0_32, %c0_33] : memref<1x128xf32, #tpu.memory_space<vmem>>, vector<1x128xf32>
      %57 = vector.broadcast %56 : vector<1x128xf32> to vector<256x128xf32>
      %58 = arith.addf %55, %57 : vector<256x128xf32>
      %cst_34 = arith.constant 0.000000e+00 : f32
      %59 = vector.broadcast %cst_34 : f32 to vector<256x128xf32>
      %60 = arith.maximumf %58, %59 : vector<256x128xf32>
      %c0_35 = arith.constant 0 : index
      %c0_36 = arith.constant 0 : index
      %61 = vector.load %arg19[%c0_35, %c0_36] : memref<1x128xf32, #tpu.memory_space<vmem>>, vector<1x128xf32>
      %62 = vector.broadcast %61 : vector<1x128xf32> to vector<256x128xf32>
      %63 = arith.mulf %60, %62 : vector<256x128xf32>
      %cst_37 = arith.constant dense<0.000000e+00> : vector<256xf32>
      %64 = vector.multi_reduction <add>, %63, %cst_37 [1] : vector<256x128xf32> to vector<256xf32>
      %65 = vector.shape_cast %64 : vector<256xf32> to vector<256x1xf32>
      %66 = vector.broadcast %65 : vector<256x1xf32> to vector<256x4xf32>
      %67 = arith.mulf %11, %66 : vector<256x4xf32>
      %cst_38 = arith.constant -1.000000e+02 : f32
      %cst_39 = arith.constant 1.000000e+02 : f32
      %68 = vector.broadcast %cst_38 : f32 to vector<256x4xf32>
      %69 = arith.maximumf %68, %67 : vector<256x4xf32>
      %70 = vector.broadcast %cst_39 : f32 to vector<256x4xf32>
      %71 = arith.minimumf %70, %69 : vector<256x4xf32>
      %72 = tpu.iota {dimensions = array<i32: 0>} : vector<24x256xi32>
      %c0_40 = arith.constant 0 : index
      %c0_41 = arith.constant 0 : index
      %73 = vector.load %arg4[%c0_40, %c0_41] : memref<1x256xi32, #tpu.memory_space<vmem>>, vector<1x256xi32>
      %74 = vector.broadcast %73 : vector<1x256xi32> to vector<24x256xi32>
      %75 = arith.cmpi eq, %72, %74 : vector<24x256xi32>
      %76 = arith.extui %75 : vector<24x256xi1> to vector<24x256xi32>
      %77 = arith.sitofp %76 : vector<24x256xi32> to vector<24x256xf32>
      %78 = tpu.concatenate %52, %71 in 1 : vector<256x128xf32>, vector<256x4xf32> -> vector<256x132xf32>
      %cst_42 = arith.constant dense<0.000000e+00> : vector<24x132xf32>
      %79 = tpu.matmul %77, %78, %cst_42 {dimension_numbers = #tpu.dot_dimension_numbers<[1], [0], [0], [1], [0, 0, 1, 1], [], []>} : vector<24x256xf32>, vector<256x132xf32>, vector<24x132xf32> -> vector<24x132xf32>
      %c0_43 = arith.constant 0 : index
      %c0_44 = arith.constant 0 : index
      %80 = vector.load %arg33[%c0_43, %c0_44] : memref<24x128xf32, #tpu.memory_space<vmem>>, vector<24x128xf32>
      %81 = vector.extract_strided_slice %79 {offsets = [0, 0], sizes = [24, 128], strides = [1, 1]} : vector<24x132xf32> to vector<24x128xf32>
      %82 = arith.addf %80, %81 : vector<24x128xf32>
      %c0_45 = arith.constant 0 : index
      %c0_46 = arith.constant 0 : index
      %83 = vector.load %arg33[%c0_45, %c0_46] : memref<24x128xf32, #tpu.memory_space<vmem>>, vector<24x128xf32>
      tpu.vector_store %arg33[%c0_45, %c0_46], %82 {strides = array<i32>} : memref<24x128xf32, #tpu.memory_space<vmem>>, vector<24x128xf32>,
      %c0_47 = arith.constant 0 : index
      %c0_48 = arith.constant 0 : index
      %84 = vector.load %arg34[%c0_47, %c0_48] : memref<24x4xf32, #tpu.memory_space<vmem>>, vector<24x4xf32>
      %85 = vector.extract_strided_slice %79 {offsets = [0, 128], sizes = [24, 4], strides = [1, 1]} : vector<24x132xf32> to vector<24x4xf32>
      %86 = arith.addf %84, %85 : vector<24x4xf32>
      %c0_49 = arith.constant 0 : index
      %c0_50 = arith.constant 0 : index
      %87 = vector.load %arg34[%c0_49, %c0_50] : memref<24x4xf32, #tpu.memory_space<vmem>>, vector<24x4xf32>
      tpu.vector_store %arg34[%c0_49, %c0_50], %86 {strides = array<i32>} : memref<24x4xf32, #tpu.memory_space<vmem>>, vector<24x4xf32>,
      %c1_i32_51 = arith.constant 1 : i32
      %88 = arith.cmpi eq, %arg1, %c1_i32_51 : i32
      %89 = arith.extui %88 : i1 to i32
      %c0_i32_52 = arith.constant 0 : i32
      %90 = arith.cmpi ne, %89, %c0_i32_52 : i32
      scf.if %90 {
        %c0_53 = arith.constant 0 : index
        %c0_54 = arith.constant 0 : index
        %91 = vector.load %arg5[%c0_53, %c0_54] : memref<24x128xf32, #tpu.memory_space<vmem>>, vector<24x128xf32>
        %92 = vector.extract_strided_slice %91 {offsets = [0, 0], sizes = [24, 4], strides = [1, 1]} : vector<24x128xf32> to vector<24x4xf32>
        %c0_55 = arith.constant 0 : index
        %c0_56 = arith.constant 0 : index
        %93 = vector.load %arg34[%c0_55, %c0_56] : memref<24x4xf32, #tpu.memory_space<vmem>>, vector<24x4xf32>
        %c0_57 = arith.constant 0 : index
        %c0_58 = arith.constant 0 : index
        %94 = vector.load %arg7[%c0_57, %c0_58] : memref<24x1xf32, #tpu.memory_space<vmem>>, vector<24x1xf32>
        %95 = vector.broadcast %94 : vector<24x1xf32> to vector<24x4xf32>
        %96 = arith.mulf %93, %95 : vector<24x4xf32>
        %cst_59 = arith.constant 1.000000e+00 : f32
        %97 = vector.broadcast %cst_59 : f32 to vector<24x4xf32>
        %98 = arith.mulf %96, %97 : vector<24x4xf32>
        %99 = arith.addf %92, %98 : vector<24x4xf32>
        %c0_60 = arith.constant 0 : index
        %c0_61 = arith.constant 0 : index
        %100 = vector.load %arg29[%c0_60, %c0_61] : memref<24x4xf32, #tpu.memory_space<vmem>>, vector<24x4xf32>
        tpu.vector_store %arg29[%c0_60, %c0_61], %99 {strides = array<i32>} : memref<24x4xf32, #tpu.memory_space<vmem>>, vector<24x4xf32>,
        %c0_62 = arith.constant 0 : index
        %c0_63 = arith.constant 0 : index
        %101 = vector.load %arg20[%c0_62, %c0_63] : memref<128x128xf32, #tpu.memory_space<vmem>>, vector<128x128xf32>
        %cst_64 = arith.constant dense<0.000000e+00> : vector<24x128xf32>
        %102 = tpu.matmul %91, %101, %cst_64 {dimension_numbers = #tpu.dot_dimension_numbers<[1], [0], [0], [1], [0, 0, 1, 1], [], []>} : vector<24x128xf32>, vector<128x128xf32>, vector<24x128xf32> -> vector<24x128xf32>
        %c0_65 = arith.constant 0 : index
        %c0_66 = arith.constant 0 : index
        %103 = vector.load %arg33[%c0_65, %c0_66] : memref<24x128xf32, #tpu.memory_space<vmem>>, vector<24x128xf32>
        %c0_67 = arith.constant 0 : index
        %c0_68 = arith.constant 0 : index
        %104 = vector.load %arg21[%c0_67, %c0_68] : memref<128x128xf32, #tpu.memory_space<vmem>>, vector<128x128xf32>
        %cst_69 = arith.constant dense<0.000000e+00> : vector<24x128xf32>
        %105 = tpu.matmul %103, %104, %cst_69 {dimension_numbers = #tpu.dot_dimension_numbers<[1], [0], [0], [1], [0, 0, 1, 1], [], []>} : vector<24x128xf32>, vector<128x128xf32>, vector<24x128xf32> -> vector<24x128xf32>
        %106 = arith.addf %102, %105 : vector<24x128xf32>
        %c0_70 = arith.constant 0 : index
        %c0_71 = arith.constant 0 : index
        %107 = vector.load %arg6[%c0_70, %c0_71] : memref<24x2xf32, #tpu.memory_space<vmem>>, vector<24x2xf32>
        %c0_72 = arith.constant 0 : index
        %c0_73 = arith.constant 0 : index
        %108 = vector.load %arg22[%c0_72, %c0_73] : memref<2x128xf32, #tpu.memory_space<vmem>>, vector<2x128xf32>
        %cst_74 = arith.constant dense<0.000000e+00> : vector<24x128xf32>
        %109 = tpu.matmul %107, %108, %cst_74 {dimension_numbers = #tpu.dot_dimension_numbers<[1], [0], [0], [1], [0, 0, 1, 1], [], []>} : vector<24x2xf32>, vector<2x128xf32>, vector<24x128xf32> -> vector<24x128xf32>
        %110 = arith.addf %106, %109 : vector<24x128xf32>
        %c0_75 = arith.constant 0 : index
        %c0_76 = arith.constant 0 : index
        %111 = vector.load %arg23[%c0_75, %c0_76] : memref<1x128xf32, #tpu.memory_space<vmem>>, vector<1x128xf32>
        %112 = vector.broadcast %111 : vector<1x128xf32> to vector<24x128xf32>
        %113 = arith.addf %110, %112 : vector<24x128xf32>
        %114 = tpu.iota {dimensions = array<i32: 0>} : vector<24x1xi32>
        %c24_i32 = arith.constant 24 : i32
        %115 = vector.broadcast %c24_i32 : i32 to vector<24x1xi32>
        %116 = arith.cmpi slt, %114, %115 : vector<24x1xi32>
        %117 = arith.extui %116 : vector<24x1xi1> to vector<24x1xi32>
        %118 = arith.sitofp %117 : vector<24x1xi32> to vector<24x1xf32>
        %119 = vector.broadcast %118 : vector<24x1xf32> to vector<24x128xf32>
        %120 = arith.mulf %113, %119 : vector<24x128xf32>
        %cst_77 = arith.constant dense<0.000000e+00> : vector<128xf32>
        %121 = vector.multi_reduction <add>, %120, %cst_77 [0] : vector<24x128xf32> to vector<128xf32>
        %122 = vector.shape_cast %121 : vector<128xf32> to vector<1x128xf32>
        %cst_78 = arith.constant 0.0416666679 : f32
        %123 = vector.broadcast %cst_78 : f32 to vector<1x128xf32>
        %124 = arith.mulf %122, %123 : vector<1x128xf32>
        %125 = vector.broadcast %124 : vector<1x128xf32> to vector<24x128xf32>
        %126 = arith.subf %113, %125 : vector<24x128xf32>
        %127 = arith.mulf %126, %126 : vector<24x128xf32>
        %128 = vector.broadcast %118 : vector<24x1xf32> to vector<24x128xf32>
        %129 = arith.mulf %127, %128 : vector<24x128xf32>
        %cst_79 = arith.constant dense<0.000000e+00> : vector<128xf32>
        %130 = vector.multi_reduction <add>, %129, %cst_79 [0] : vector<24x128xf32> to vector<128xf32>
        %131 = vector.shape_cast %130 : vector<128xf32> to vector<1x128xf32>
        %cst_80 = arith.constant 0.0416666679 : f32
        %132 = vector.broadcast %cst_80 : f32 to vector<1x128xf32>
        %133 = arith.mulf %131, %132 : vector<1x128xf32>
        %cst_81 = arith.constant 0.000000e+00 : f32
        %134 = vector.broadcast %cst_81 : f32 to vector<1x128xf32>
        %135 = arith.maximumf %133, %134 : vector<1x128xf32>
        %136 = vector.broadcast %124 : vector<1x128xf32> to vector<24x128xf32>
        %137 = arith.subf %113, %136 : vector<24x128xf32>
        %cst_82 = arith.constant 9.99999974E-6 : f32
        %138 = vector.broadcast %cst_82 : f32 to vector<1x128xf32>
        %139 = arith.addf %135, %138 : vector<1x128xf32>
        %140 = math.rsqrt %139 : vector<1x128xf32>
        %141 = vector.broadcast %140 : vector<1x128xf32> to vector<24x128xf32>
        %142 = arith.mulf %137, %141 : vector<24x128xf32>
        %c0_83 = arith.constant 0 : index
        %c0_84 = arith.constant 0 : index
        %143 = vector.load %arg24[%c0_83, %c0_84] : memref<1x128xf32, #tpu.memory_space<vmem>>, vector<1x128xf32>
        %144 = vector.broadcast %143 : vector<1x128xf32> to vector<24x128xf32>
        %145 = arith.mulf %142, %144 : vector<24x128xf32>
        %c0_85 = arith.constant 0 : index
        %c0_86 = arith.constant 0 : index
        %146 = vector.load %arg25[%c0_85, %c0_86] : memref<1x128xf32, #tpu.memory_space<vmem>>, vector<1x128xf32>
        %147 = vector.broadcast %146 : vector<1x128xf32> to vector<24x128xf32>
        %148 = arith.addf %145, %147 : vector<24x128xf32>
        %cst_87 = arith.constant 0.000000e+00 : f32
        %149 = vector.broadcast %cst_87 : f32 to vector<24x128xf32>
        %150 = arith.maximumf %148, %149 : vector<24x128xf32>
        %c0_88 = arith.constant 0 : index
        %c0_89 = arith.constant 0 : index
        %151 = vector.load %arg26[%c0_88, %c0_89] : memref<128x16xf32, #tpu.memory_space<vmem>>, vector<128x16xf32>
        %cst_90 = arith.constant dense<0.000000e+00> : vector<24x16xf32>
        %152 = tpu.matmul %150, %151, %cst_90 {dimension_numbers = #tpu.dot_dimension_numbers<[1], [0], [0], [1], [0, 0, 1, 1], [], []>} : vector<24x128xf32>, vector<128x16xf32>, vector<24x16xf32> -> vector<24x16xf32>
        %c0_91 = arith.constant 0 : index
        %c0_92 = arith.constant 0 : index
        %153 = vector.load %arg27[%c0_91, %c0_92] : memref<1x16xf32, #tpu.memory_space<vmem>>, vector<1x16xf32>
        %154 = vector.broadcast %153 : vector<1x16xf32> to vector<24x16xf32>
        %155 = arith.addf %152, %154 : vector<24x16xf32>
        %156 = vector.extract_strided_slice %91 {offsets = [0, 4], sizes = [24, 16], strides = [1, 1]} : vector<24x128xf32> to vector<24x16xf32>
        %157 = arith.addf %156, %155 : vector<24x16xf32>
        %c0_93 = arith.constant 0 : index
        %c0_94 = arith.constant 0 : index
        %158 = vector.load %arg28[%c0_93, %c0_94] : memref<24x16xf32, #tpu.memory_space<vmem>>, vector<24x16xf32>
        tpu.vector_store %arg28[%c0_93, %c0_94], %157 {strides = array<i32>} : memref<24x16xf32, #tpu.memory_space<vmem>>, vector<24x16xf32>,
      } else {
      }
    } else {
    }
    return
  }
  func.func @transform_0(%arg0: i32, %arg1: i32) -> (i32, i32) {
    %c0_i32 = arith.constant 0 : i32
    %c0_i32_0 = arith.constant 0 : i32
    return %arg1, %c0_i32 : i32, i32
  }
  func.func @transform_1(%arg0: i32, %arg1: i32) -> (i32, i32) {
    %c0_i32 = arith.constant 0 : i32
    %c0_i32_0 = arith.constant 0 : i32
    return %arg1, %c0_i32 : i32, i32
  }
  func.func @transform_2(%arg0: i32, %arg1: i32) -> (i32, i32) {
    %c0_i32 = arith.constant 0 : i32
    %c0_i32_0 = arith.constant 0 : i32
    return %c0_i32, %arg1 : i32, i32
  }
  func.func @transform_3(%arg0: i32, %arg1: i32) -> (i32, i32) {
    %c0_i32 = arith.constant 0 : i32
    %c0_i32_0 = arith.constant 0 : i32
    %c0_i32_1 = arith.constant 0 : i32
    return %c0_i32, %c0_i32_0 : i32, i32
  }
  func.func @transform_4(%arg0: i32, %arg1: i32) -> (i32, i32) {
    %c0_i32 = arith.constant 0 : i32
    %c0_i32_0 = arith.constant 0 : i32
    %c0_i32_1 = arith.constant 0 : i32
    return %c0_i32, %c0_i32_0 : i32, i32
  }
  func.func @transform_5(%arg0: i32, %arg1: i32) -> (i32, i32) {
    %c0_i32 = arith.constant 0 : i32
    %c0_i32_0 = arith.constant 0 : i32
    %c0_i32_1 = arith.constant 0 : i32
    return %c0_i32, %c0_i32_0 : i32, i32
  }
  func.func @transform_6(%arg0: i32, %arg1: i32) -> (i32, i32) {
    %c0_i32 = arith.constant 0 : i32
    %c0_i32_0 = arith.constant 0 : i32
    %c0_i32_1 = arith.constant 0 : i32
    return %c0_i32, %c0_i32_0 : i32, i32
  }
  func.func @transform_7(%arg0: i32, %arg1: i32) -> (i32, i32) {
    %c0_i32 = arith.constant 0 : i32
    %c0_i32_0 = arith.constant 0 : i32
    %c0_i32_1 = arith.constant 0 : i32
    return %c0_i32, %c0_i32_0 : i32, i32
  }
  func.func @transform_8(%arg0: i32, %arg1: i32) -> (i32, i32) {
    %c0_i32 = arith.constant 0 : i32
    %c0_i32_0 = arith.constant 0 : i32
    %c0_i32_1 = arith.constant 0 : i32
    return %c0_i32, %c0_i32_0 : i32, i32
  }
  func.func @transform_9(%arg0: i32, %arg1: i32) -> (i32, i32) {
    %c0_i32 = arith.constant 0 : i32
    %c0_i32_0 = arith.constant 0 : i32
    %c0_i32_1 = arith.constant 0 : i32
    return %c0_i32, %c0_i32_0 : i32, i32
  }
  func.func @transform_10(%arg0: i32, %arg1: i32) -> (i32, i32) {
    %c0_i32 = arith.constant 0 : i32
    %c0_i32_0 = arith.constant 0 : i32
    %c0_i32_1 = arith.constant 0 : i32
    return %c0_i32, %c0_i32_0 : i32, i32
  }
  func.func @transform_11(%arg0: i32, %arg1: i32) -> (i32, i32) {
    %c0_i32 = arith.constant 0 : i32
    %c0_i32_0 = arith.constant 0 : i32
    %c0_i32_1 = arith.constant 0 : i32
    return %c0_i32, %c0_i32_0 : i32, i32
  }
  func.func @transform_12(%arg0: i32, %arg1: i32) -> (i32, i32) {
    %c0_i32 = arith.constant 0 : i32
    %c0_i32_0 = arith.constant 0 : i32
    %c0_i32_1 = arith.constant 0 : i32
    return %c0_i32, %c0_i32_0 : i32, i32
  }
  func.func @transform_13(%arg0: i32, %arg1: i32) -> (i32, i32) {
    %c0_i32 = arith.constant 0 : i32
    %c0_i32_0 = arith.constant 0 : i32
    %c0_i32_1 = arith.constant 0 : i32
    return %c0_i32, %c0_i32_0 : i32, i32
  }
  func.func @transform_14(%arg0: i32, %arg1: i32) -> (i32, i32) {
    %c0_i32 = arith.constant 0 : i32
    %c0_i32_0 = arith.constant 0 : i32
    %c0_i32_1 = arith.constant 0 : i32
    return %c0_i32, %c0_i32_0 : i32, i32
  }
  func.func @transform_15(%arg0: i32, %arg1: i32) -> (i32, i32) {
    %c0_i32 = arith.constant 0 : i32
    %c0_i32_0 = arith.constant 0 : i32
    %c0_i32_1 = arith.constant 0 : i32
    return %c0_i32, %c0_i32_0 : i32, i32
  }
  func.func @transform_16(%arg0: i32, %arg1: i32) -> (i32, i32) {
    %c0_i32 = arith.constant 0 : i32
    %c0_i32_0 = arith.constant 0 : i32
    %c0_i32_1 = arith.constant 0 : i32
    return %c0_i32, %c0_i32_0 : i32, i32
  }
  func.func @transform_17(%arg0: i32, %arg1: i32) -> (i32, i32) {
    %c0_i32 = arith.constant 0 : i32
    %c0_i32_0 = arith.constant 0 : i32
    %c0_i32_1 = arith.constant 0 : i32
    return %c0_i32, %c0_i32_0 : i32, i32
  }
  func.func @transform_18(%arg0: i32, %arg1: i32) -> (i32, i32) {
    %c0_i32 = arith.constant 0 : i32
    %c0_i32_0 = arith.constant 0 : i32
    %c0_i32_1 = arith.constant 0 : i32
    return %c0_i32, %c0_i32_0 : i32, i32
  }
  func.func @transform_19(%arg0: i32, %arg1: i32) -> (i32, i32) {
    %c0_i32 = arith.constant 0 : i32
    %c0_i32_0 = arith.constant 0 : i32
    %c0_i32_1 = arith.constant 0 : i32
    return %c0_i32, %c0_i32_0 : i32, i32
  }
  func.func @transform_20(%arg0: i32, %arg1: i32) -> (i32, i32) {
    %c0_i32 = arith.constant 0 : i32
    %c0_i32_0 = arith.constant 0 : i32
    %c0_i32_1 = arith.constant 0 : i32
    return %c0_i32, %c0_i32_0 : i32, i32
  }
  func.func @transform_21(%arg0: i32, %arg1: i32) -> (i32, i32) {
    %c0_i32 = arith.constant 0 : i32
    %c0_i32_0 = arith.constant 0 : i32
    %c0_i32_1 = arith.constant 0 : i32
    return %c0_i32, %c0_i32_0 : i32, i32
  }
  func.func @transform_22(%arg0: i32, %arg1: i32) -> (i32, i32) {
    %c0_i32 = arith.constant 0 : i32
    %c0_i32_0 = arith.constant 0 : i32
    %c0_i32_1 = arith.constant 0 : i32
    return %c0_i32, %c0_i32_0 : i32, i32
  }
  func.func @transform_23(%arg0: i32, %arg1: i32) -> (i32, i32) {
    %c0_i32 = arith.constant 0 : i32
    %c0_i32_0 = arith.constant 0 : i32
    %c0_i32_1 = arith.constant 0 : i32
    return %c0_i32, %c0_i32_0 : i32, i32
  }
  func.func @transform_24(%arg0: i32, %arg1: i32) -> (i32, i32) {
    %c0_i32 = arith.constant 0 : i32
    %c0_i32_0 = arith.constant 0 : i32
    %c0_i32_1 = arith.constant 0 : i32
    return %c0_i32, %c0_i32_0 : i32, i32
  }
  func.func @transform_25(%arg0: i32, %arg1: i32) -> (i32, i32) {
    %c0_i32 = arith.constant 0 : i32
    %c0_i32_0 = arith.constant 0 : i32
    %c0_i32_1 = arith.constant 0 : i32
    return %c0_i32, %c0_i32_0 : i32, i32
  }
  func.func @transform_26(%arg0: i32, %arg1: i32) -> (i32, i32) {
    %c0_i32 = arith.constant 0 : i32
    %c0_i32_0 = arith.constant 0 : i32
    %c0_i32_1 = arith.constant 0 : i32
    return %c0_i32, %c0_i32_0 : i32, i32
  }
  func.func @transform_27(%arg0: i32, %arg1: i32) -> (i32, i32) {
    %c0_i32 = arith.constant 0 : i32
    %c0_i32_0 = arith.constant 0 : i32
    %c0_i32_1 = arith.constant 0 : i32
    return %c0_i32, %c0_i32_0 : i32, i32
  }
  func.func @transform_28(%arg0: i32, %arg1: i32) -> (i32, i32) {
    %0 = arith.muli %arg1, %arg0 : i32
    %c0_i32 = arith.constant 0 : i32
    %c0_i32_0 = arith.constant 0 : i32
    return %0, %c0_i32 : i32, i32
  }
}

</mosaic_0001>

<bundles_post_ra>
// kernel: tpu_custom_call.1
= control target key start
LH: loop header
LB: loop body
LE: loop exit
PB: predicated region body
PF: predicated region fallthrough
CT: control target
= control target key end

     0   :  { %s9993_s0 = inlined_call_operand.vmem [shape: s32[512,1], index: 0, kind: input, shape index: {}]   ;;  %s9994_s1 = inlined_call_operand.vmem [shape: s32[512,1], index: 1, kind: input, shape index: {}]   ;;  %s9995_s2 = inlined_call_operand.vmem [shape: s32[1,512], index: 2, kind: input, shape index: {}]   ;;  %s9996_s3 = inlined_call_operand.vmem [shape: f32[24,128], index: 3, kind: input, shape index: {}]   ;;  %s9997_s4 = inlined_call_operand.vmem [shape: f32[24,2], index: 4, kind: input, shape index: {}]   ;;  %s9998_s5 = inlined_call_operand.vmem [shape: f32[24,1], index: 5, kind: input, shape index: {}]   ;;  %s9999_s6 = inlined_call_operand.vmem [shape: f32[128,128], index: 6, kind: input, shape index: {}]   ;;  %s10000_s7 = inlined_call_operand.vmem [shape: f32[128,128], index: 7, kind: input, shape index: {}]   ;;  %s10001_s8 = inlined_call_operand.vmem [shape: f32[2,128], index: 8, kind: input, shape index: {}]   ;;  %s10002_s9 = inlined_call_operand.vmem [shape: f32[1,128], index: 9, kind: input, shape index: {}]   ;;  %s10003_s10 = inlined_call_operand.vmem [shape: f32[1,128], index: 10, kind: input, shape index: {}]   ;;  %s10004_s11 = inlined_call_operand.vmem [shape: f32[128,128], index: 11, kind: input, shape index: {}]   ;;  %s10005_s12 = inlined_call_operand.vmem [shape: f32[1,128], index: 12, kind: input, shape index: {}]   ;;  %s10006_s13 = inlined_call_operand.vmem [shape: f32[1,128], index: 13, kind: input, shape index: {}]   ;;  %s10007_s14 = inlined_call_operand.<no memory space> [shape: f32[1,1], index: 14, kind: input, shape index: {}]   ;;  %s10008_s15 = inlined_call_operand.vmem [shape: f32[128,128], index: 15, kind: input, shape index: {}]   ;;  %s10009_s16 = inlined_call_operand.vmem [shape: f32[1,128], index: 16, kind: input, shape index: {}]   ;;  %s10010_s17 = inlined_call_operand.vmem [shape: f32[1,128], index: 17, kind: input, shape index: {}]   ;;  %s10011_s18 = inlined_call_operand.vmem [shape: f32[128,128], index: 18, kind: input, shape index: {}]   ;;  %s10012_s19 = inlined_call_operand.vmem [shape: f32[128,128], index: 19, kind: input, shape index: {}]   ;;  %s10013_s20 = inlined_call_operand.vmem [shape: f32[2,128], index: 20, kind: input, shape index: {}]   ;;  %s10014_s21 = inlined_call_operand.vmem [shape: f32[1,128], index: 21, kind: input, shape index: {}]   ;;  %s10015_s22 = inlined_call_operand.vmem [shape: f32[1,128], index: 22, kind: input, shape index: {}]   ;;  %s10016_s23 = inlined_call_operand.vmem [shape: f32[1,128], index: 23, kind: input, shape index: {}]   ;;  %s10017_s24 = inlined_call_operand.vmem [shape: f32[128,16], index: 24, kind: input, shape index: {}]   ;;  %s10018_s25 = inlined_call_operand.vmem [shape: f32[1,16], index: 25, kind: input, shape index: {}]   ;;  %s10019_s26 = inlined_call_operand.vmem [shape: f32[24,16], index: 26, kind: output, shape index: {0}]   ;;  %s10020_s27 = inlined_call_operand.vmem [shape: f32[24,4], index: 27, kind: output, shape index: {1}]   ;;  %s10021_s28 = inlined_call_operand.hbm [shape: f32[512,128], index: 28, kind: output, shape index: {2}]  }
   0x1   :  { %10127 = sst [smem:[#allocation73_spill]] %s9993_s0  ;;  %v34_v0 = vstv %s10007_s14 }
   0x2   :  { %10128 = sst [smem:[#allocation74_spill]] %s9994_s1  ;;  %35 = vst [vmem:[#allocation8] sm:$0x1] %v34_v0 }
   0x3   :  { %10129 = sst [smem:[#allocation75_spill]] %s9995_s2 }
   0x4   :  { %10130 = sst [smem:[#allocation76_spill]] %s9996_s3 }
   0x5   :  { %10131 = sst [smem:[#allocation77_spill]] %s9997_s4 }
   0x6   :  { %10132 = sst [smem:[#allocation78_spill]] %s9998_s5 }
   0x7   :  { %10133 = sst [smem:[#allocation79_spill]] %s9999_s6 }
   0x8   :  { %10134 = sst [smem:[#allocation80_spill]] %s10000_s7 }
   0x9   :  { %10135 = sst [smem:[#allocation81_spill]] %s10001_s8 }
   0xa   :  { %10136 = sst [smem:[#allocation82_spill]] %s10002_s9 }
   0xb   :  { %10137 = sst [smem:[#allocation83_spill]] %s10003_s10 }
   0xc   :  { %10138 = sst [smem:[#allocation84_spill]] %s10004_s11 }
   0xd   :  { %10139 = sst [smem:[#allocation85_spill]] %s10005_s12 }
   0xe   :  { %10140 = sst [smem:[#allocation86_spill]] %s10016_s23 }
   0xf   :  { %10141 = sst [smem:[#allocation87_spill]] %s10018_s25 }
  0x10   :  { %10142 = sst [smem:[#allocation88_spill]] %s10021_s28 }
  0x11   :  { %36 = vsyncpa [#allocation10], 0 }
  0x12   :  { %38 = vsyncpa [#allocation10 + $0x1], 0  ;;  %s6593_s9 = smov 0   ;;  %s6595_s30 = smov 0  }
  0x13   :  { %s6597_s3 = smov 0   ;;  %s6599_s6 = smov 0  }
  0x14   :  { %s6601_s10 = smov 0   ;;  %s6603_s0 = smov 0  }
  0x15   :  { %s6605_s11 = smov 0   ;;  %s6607_s29 = smov 0  }
  0x16 LB: > { %10143 = sst [smem:[#allocation12_spill]] %s6405_s9  ;;  %s5710_s14 = sadd.s32 4294967295, %s6433_s29   ;;  %s6433_s29 = sphi %s6607_s29, %s44_s29   ;;  %s6429_s11 = sphi %s6605_s11, %s10363_s11   ;;  %s6425_s0 = sphi %s6603_s0, %s10362_s0   ;;  %s6421_s10 = sphi %s6601_s10, %s10361_s10   ;;  %s6417_s6 = sphi %s6599_s6, %s10360_s6   ;;  %s6413_s3 = sphi %s6597_s3, %s10359_s3   ;;  %s6409_s30 = sphi %s6595_s30, %s10358_s30   ;;  %s6405_s9 = sphi %s6593_s9, %s10357_s9  }
  0x17   : > { %10144 = sst [smem:[#allocation13_spill]] %s6409_s30  ;;  %s5711_s2 = sadd.s32 4294967294, %s6433_s29  }
  0x18   : > { %10145 = sst [smem:[#allocation14_spill]] %s6413_s3  ;;  %s53_s7 = sadd.s32 1, %s6425_s0 }
  0x19   : > { %10146 = sst [smem:[#allocation15_spill]] %s6425_s0  ;;  %p54_p0 = scmp.ge.s32.totalorder %s53_s7, 2 }
  0x1a   : > { %10147 = sst [smem:[#allocation16_spill]] %s6429_s11  ;;  %s56_s12 = sadd.s32 1, %s6429_s11 }
  0x1b   : > { %10148 = sst [smem:[#allocation17_spill]] %s6433_s29  ;;  %s663_s1 = smul.u32 %s6425_s0, %s6429_s11 }
  0x1c   : > { %p678_p1 = scmp.ne.s32.totalorder %s6413_s3, %s6409_s30  ;;  %s10365_s7 = smov (%p54_p0, %s53_s7), 0 }
  0x1d   : > { %10149 = sst [smem:[#allocation18_spill]] %s10365_s7  ;;  %s10367_s12 = smov (!%p54_p0, %s56_s12), %s6429_s11 }
  0x1e   : > { %p679_p2 = scmp.eq.s32.totalorder %s5710_s14, 3  ;;  %p684_p3 = scmp.ne.s32.totalorder %s6409_s30, %s6405_s9 }
  0x1f   : > { %p58_p4 = scmp.ge.s32.totalorder %s10367_s12, 2  ;;  %p685_p5 = scmp.eq.s32.totalorder %s5711_s2, 3 }
  0x20   : > { %p6646_p6 = por %p679_p2, %p678_p1  ;;  %p5714_p7 = scmp.ge.s32.totalorder %s6433_s29, 1 }
  0x21   : > { %s10369_s12 = smov (%p58_p4, %s10367_s12), 0  ;;  %p6653_p8 = por %p685_p5, %p684_p3 }
  0x22   : > { %s10150_s4 = scalar_select %p6646_p6, 1, 0 }
  0x23   : > { %10152 = sst [smem:[#allocation20_spill]] %s10369_s12  ;;  %p798_p9 = scmp.lt.s32.totalorder %s6433_s29, 5 }
  0x24   : > { %10151 = sst [smem:[#allocation19_spill]] %s10150_s4  ;;  %s664_s5 = smul.u32 %s10369_s12, %s10365_s7 }
  0x25   : > { %s10153_s8 = scalar_select %p6653_p8, 1, 0 }
  0x26   : > { %p799_p10 = pnand %p5714_p7, %p798_p9  ;;  %s665_s11 = ssub.s32 %s663_s1, %s664_s5 }
  0x27   : > { %10154 = sst [smem:[#allocation21_spill]] %s10153_s8  ;;  %s668_s14 = sadd.s32 1, %s6413_s3 }
  0x28   : > { %p666_p11 = scmp.eq.s32.totalorder %s665_s11, 0  ;;  %802 = sbr.rel (%p799_p10) target bundleno = 3229 (0xc9d), region = 124 }
  0x29   : > { %s10041_s2 = sand.u32 (!%p799_p10), 1, %s6409_s30   ;;  %s5716_s9 = sshll.u32 (!%p799_p10), %s6417_s6, 5 }
  0x2a   : > { %s6662_s0 = scalar_select %p666_p11, %s6413_s3, %s668_s14  }
  0x2b   : > { %s5715_s28 = sshll.u32 (!%p799_p10), %s10041_s2, 8  ;;  %p882_p12 = scmp.lt.s32.totalorder (!%p799_p10), %s5716_s9, 63 }
  0x2c   : > { %10155 = sst [smem:[#allocation22_spill]] %s6662_s0  ;;  %s5720_s4 = sshll.u32 (!%p799_p10), %s6417_s6, 1 }
  0x2d   : > { %s10371_s9 = smov (!%p882_p12, %s5716_s9), 63  ;;  %p894_p13 = scmp.lt.s32.totalorder %s5720_s4, 3 }
  0x2e   : > { %s5717_s12 = sshll.u32 %s10371_s9, 3  ;;  %s10156_s5 = sld [smem:[#allocation73_spill]] }
  0x2f   : > { %s10157_s3 = sld [smem:[#allocation74_spill]]  ;;  %s10373_s4 = smov (!%p894_p13, %s5720_s4), 3 }
  0x30   : > { %s10158_s30 = sld [smem:[#allocation75_spill]]  ;;  %s6685_s23 = scalar_lea.vmem [#allocation9], %s5715_s28 }
  0x31   : > { %p5721_p0 = scmp.ne.s32.totalorder %s6421_s10, 0 }
  0x33   : > { %903 = sbr.rel (%p5721_p0) target bundleno = 1472 (0x5c0), region = 128 }
  0x34   : > { %s6672_s11 = scalar_lea.vmem %s10156_s5, %s5717_s12 }
  0x35   : > { %s6677_s8 = scalar_lea.vmem %s10157_s3, %s5717_s12 }
  0x36   : > { %s896_s25 = scalar_lea.vmem %s10158_s30, %s10373_s4 }
  0x38   : > { %p5722_p1 = scmp.ne.s32.totalorder %s6417_s6, 0 }
  0x3a   : > { %907 = sbr.rel (%p5722_p1) target bundleno = 110 (0x6e), region = 132 }
  0x3f   : > { %v6435_v1 = vmov 0.0   ;;  %vm913_vm0 = vcmask 31744   ;;  %vm917_vm1 = vcmask 130048  }
  0x40   : > { %908 = vst [vmem:[#allocation2] sm:$0x1] %v6435_v1 }
  0x41   : > { %909 = vst [vmem:[#allocation3] sm:$0x1] %v6435_v1 }
  0x42   : > { %910 = vst [vmem:[#allocation4 + $0x10] sm:$0xff] %v6435_v1 }
  0x43   : > { %911 = vst [vmem:[#allocation4] sm:$0xff] %v6435_v1 }
  0x44   : > { %912 = vst [vmem:[#allocation4 + $0x8] sm:$0xff] %v6435_v1 }
  0x45   : > { %924 = vst [vmem:[%s6685_s23] sm:$0xff] %v6435_v1 }
  0x46   : > { %925 = vst [vmem:[%s6685_s23 + $0x8] sm:$0xff] %v6435_v1 }
  0x47   : > { %926 = vst [vmem:[%s6685_s23 + $0x10] sm:$0xff] %v6435_v1 }
  0x48   : > { %927 = vst [vmem:[%s6685_s23 + $0x18] sm:$0xff] %v6435_v1 }
  0x49   : > { %928 = vst [vmem:[%s6685_s23 + $0x20] sm:$0xff] %v6435_v1 }
  0x4a   : > { %929 = vst [vmem:[%s6685_s23 + $0x28] sm:$0xff] %v6435_v1 }
  0x4b   : > { %930 = vst [vmem:[%s6685_s23 + $0x30] sm:$0xff] %v6435_v1 }
  0x4c   : > { %931 = vst [vmem:[%s6685_s23 + $0x38] sm:$0xff] %v6435_v1 }
  0x4d   : > { %932 = vst [vmem:[%s6685_s23 + $0x40] sm:$0xff] %v6435_v1 }
  0x4e   : > { %933 = vst [vmem:[%s6685_s23 + $0x48] sm:$0xff] %v6435_v1 }
  0x4f   : > { %934 = vst [vmem:[%s6685_s23 + $0x50] sm:$0xff] %v6435_v1 }
  0x50   : > { %935 = vst [vmem:[%s6685_s23 + $0x58] sm:$0xff] %v6435_v1 }
  0x51   : > { %936 = vst [vmem:[%s6685_s23 + $0x60] sm:$0xff] %v6435_v1 }
  0x52   : > { %937 = vst [vmem:[%s6685_s23 + $0x68] sm:$0xff] %v6435_v1 }
  0x53   : > { %938 = vst [vmem:[%s6685_s23 + $0x70] sm:$0xff] %v6435_v1 }
  0x54   : > { %939 = vst [vmem:[%s6685_s23 + $0x78] sm:$0xff] %v6435_v1 }
  0x55   : > { %940 = vst [vmem:[%s6685_s23 + $0x80] sm:$0xff] %v6435_v1 }
  0x56   : > { %941 = vst [vmem:[%s6685_s23 + $0x88] sm:$0xff] %v6435_v1 }
  0x57   : > { %942 = vst [vmem:[%s6685_s23 + $0x90] sm:$0xff] %v6435_v1 }
  0x58   : > { %943 = vst [vmem:[%s6685_s23 + $0x98] sm:$0xff] %v6435_v1 }
  0x59   : > { %944 = vst [vmem:[%s6685_s23 + $0xa0] sm:$0xff] %v6435_v1 }
  0x5a   : > { %945 = vst [vmem:[%s6685_s23 + $0xa8] sm:$0xff] %v6435_v1 }
  0x5b   : > { %946 = vst [vmem:[%s6685_s23 + $0xb0] sm:$0xff] %v6435_v1 }
  0x5c   : > { %947 = vst [vmem:[%s6685_s23 + $0xb8] sm:$0xff] %v6435_v1 }
  0x5d   : > { %948 = vst [vmem:[%s6685_s23 + $0xc0] sm:$0xff] %v6435_v1 }
  0x5e   : > { %949 = vst [vmem:[%s6685_s23 + $0xc8] sm:$0xff] %v6435_v1 }
  0x5f   : > { %950 = vst [vmem:[%s6685_s23 + $0xd0] sm:$0xff] %v6435_v1 }
  0x60   : > { %951 = vst [vmem:[%s6685_s23 + $0xd8] sm:$0xff] %v6435_v1 }
  0x61   : > { %952 = vst [vmem:[%s6685_s23 + $0xe0] sm:$0xff] %v6435_v1 }
  0x62   : > { %953 = vst [vmem:[%s6685_s23 + $0xe8] sm:$0xff] %v6435_v1 }
  0x63   : > { %954 = vst [vmem:[%s6685_s23 + $0xf0] sm:$0xff] %v6435_v1 }
  0x64   : > { %955 = vst [vmem:[%s6685_s23 + $0xf8] sm:$0xff] %v6435_v1 }
  0x65   : > { %914 = vst.msk [vmem:[#allocation5] sm:$0xff] %vm913_vm0, %v6435_v1 }
  0x66   : > { %915 = vst.msk [vmem:[#allocation5 + $0x8] sm:$0xff] %vm913_vm0, %v6435_v1 }
  0x67   : > { %916 = vst.msk [vmem:[#allocation5 + $0x10] sm:$0xff] %vm913_vm0, %v6435_v1 }
  0x68   : > { %921 = vst.msk [vmem:[%s10020_s27] sm:$0xff] %vm913_vm0, %v6435_v1 }
  0x69   : > { %922 = vst.msk [vmem:[%s10020_s27 + $0x8] sm:$0xff] %vm913_vm0, %v6435_v1 }
  0x6a   : > { %923 = vst.msk [vmem:[%s10020_s27 + $0x10] sm:$0xff] %vm913_vm0, %v6435_v1 }
  0x6b   : > { %918 = vst.msk [vmem:[%s10019_s26] sm:$0xff] %vm917_vm1, %v6435_v1 }
  0x6c   : > { %919 = vst.msk [vmem:[%s10019_s26 + $0x8] sm:$0xff] %vm917_vm1, %v6435_v1 }
  0x6d   : > { %920 = vst.msk [vmem:[%s10019_s26 + $0x10] sm:$0xff] %vm917_vm1, %v6435_v1 }
  0x6e PF: > { %v962_v2 = vld [vmem:[%s6672_s11 + $0x20] sm:$0xff]  ;;  %v960_v3 = vld [vmem:[%s6672_s11 + $0x10] sm:$0xff]  ;;  %v6436_v5 = vmov 0   ;;  %v963_v6 = vld [vmem:[%s6672_s11 + $0x28] sm:$0xff]  ;;  %s10159_s30 = sld [smem:[#allocation76_spill]]  ;;  %v956_v50 = vlaneseq  ;;  %vm1409_vm2 = vcmask 195584  }
  0x6f   : > { %v958_v4 = vld [vmem:[%s6672_s11] sm:$0xff]  ;;  %6050 = vset.pattern.permute.xlu2 %v6436_v5  ;;  %6049 = vset.pattern.permute.xlu1 %v6436_v5  ;;  %v961_v7 = vld [vmem:[%s6672_s11 + $0x18] sm:$0xff]  ;;  %v959_v8 = vld [vmem:[%s6672_s11 + $0x8] sm:$0xff]  ;;  %v10043_v58 = vmov 0.0   ;;  %s10160_s12 = sld [smem:[#allocation79_spill]]  ;;  %s5851_s28 = sshll.u32 %s6417_s6, 8 }
  0x70   : > { %6048 = vset.pattern.permute.xlu0 %v6436_v5  ;;  %1003 = vperm.xlu2 %6050, %v962_v2   ;;  %v966_v9 = vld [vmem:[%s6672_s11 + $0x40] sm:$0xff]  ;;  %v965_v10 = vld [vmem:[%s6672_s11 + $0x38] sm:$0xff]  ;;  %v964_v11 = vld [vmem:[%s6672_s11 + $0x30] sm:$0xff]  ;;  %v6797_v54 = vand.u32 127, %v956_v50  ;;  %s7131_s9 = scalar_lea.vmem [#allocation7], %s5851_s28  ;;  %s10175_s0 = sld [smem:[#allocation80_spill]] }
  0x71   : > { %997 = vperm.xlu1 %6049, %v960_v3   ;;  %991 = vperm.xlu0 %6048, %v958_v4   ;;  %v969_v12 = vld [vmem:[%s6672_s11 + $0x58] sm:$0xff]  ;;  %v968_v13 = vld [vmem:[%s6672_s11 + $0x50] sm:$0xff]  ;;  %v967_v14 = vld [vmem:[%s6672_s11 + $0x48] sm:$0xff]  ;;  %p5852_p2 = scmp.ne.s32.totalorder %s6417_s6, 1 }
  0x72   : > { %v972_v15 = vld [vmem:[%s6672_s11 + $0x70] sm:$0xff]  ;;  %v971_v16 = vld [vmem:[%s6672_s11 + $0x68] sm:$0xff]  ;;  %v970_v17 = vld [vmem:[%s6672_s11 + $0x60] sm:$0xff] }
  0x73   : > { %v975_v18 = vld [vmem:[%s6672_s11 + $0x88] sm:$0xff]  ;;  %v974_v19 = vld [vmem:[%s6672_s11 + $0x80] sm:$0xff]  ;;  %v973_v20 = vld [vmem:[%s6672_s11 + $0x78] sm:$0xff] }
  0x74   : > { %v978_v21 = vld [vmem:[%s6672_s11 + $0xa0] sm:$0xff]  ;;  %v977_v22 = vld [vmem:[%s6672_s11 + $0x98] sm:$0xff]  ;;  %v976_v23 = vld [vmem:[%s6672_s11 + $0x90] sm:$0xff] }
  0x75   : > { %v981_v24 = vld [vmem:[%s6672_s11 + $0xb8] sm:$0xff]  ;;  %v980_v25 = vld [vmem:[%s6672_s11 + $0xb0] sm:$0xff]  ;;  %v979_v26 = vld [vmem:[%s6672_s11 + $0xa8] sm:$0xff] }
  0x76   : > { %v984_v27 = vld [vmem:[%s6672_s11 + $0xd0] sm:$0xff]  ;;  %v983_v28 = vld [vmem:[%s6672_s11 + $0xc8] sm:$0xff]  ;;  %v982_v29 = vld [vmem:[%s6672_s11 + $0xc0] sm:$0xff]  ;;  %s10176_s7 = smov %s10175_s0 }
  0x77   : > { %v987_v30 = vld [vmem:[%s6672_s11 + $0xe8] sm:$0xff]  ;;  %v986_v31 = vld [vmem:[%s6672_s11 + $0xe0] sm:$0xff]  ;;  %v985_v32 = vld [vmem:[%s6672_s11 + $0xd8] sm:$0xff] }
  0x78   : > { %1006 = vperm.xlu2 %6050, %v963_v6   ;;  %v1408_v33 = vld [vmem:[%s10159_s30 + $0x10] sm:$0xff]  ;;  %v1182_v34 = vld [vmem:[%s6677_s8] sm:$0xff]  ;;  %v989_v35 = vld [vmem:[%s6672_s11 + $0xf8] sm:$0xff] }
  0x79   : > { %1000 = vperm.xlu1 %6049, %v961_v7   ;;  %994 = vperm.xlu0 %6048, %v959_v8   ;;  %v988_v36 = vld [vmem:[%s6672_s11 + $0xf0] sm:$0xff]  ;;  %v1407_v37 = vld [vmem:[%s10159_s30 + $0x8] sm:$0xff]  ;;  %v1406_v38 = vld [vmem:[%s10159_s30] sm:$0xff]  ;;  %s7950_s11 = scalar_lea.vmem [#allocation6], %s5851_s28 }
  0x7a   : > { %1615 = vmatpush.msra.mxu0 %v1408_v33  ;;  %5916 = vmatpush.msra.mxu3 %v1408_v33  ;;  %v1185_v39 = vld [vmem:[%s6677_s8 + $0x18] sm:$0xff]  ;;  %v1184_v40 = vld [vmem:[%s6677_s8 + $0x10] sm:$0xff]  ;;  %v1183_v41 = vld [vmem:[%s6677_s8 + $0x8] sm:$0xff] }
  0x7b   : > { %v1188_v42 = vld [vmem:[%s6677_s8 + $0x30] sm:$0xff]  ;;  %v1187_v43 = vld [vmem:[%s6677_s8 + $0x28] sm:$0xff]  ;;  %v1186_v44 = vld [vmem:[%s6677_s8 + $0x20] sm:$0xff] }
  0x7c   : > { %1616 = vmatpush.msra.mxu0 %v1407_v37  ;;  %5917 = vmatpush.msra.mxu3 %v1407_v37  ;;  %v1191_v46 = vld [vmem:[%s6677_s8 + $0x48] sm:$0xff]  ;;  %v1190_v47 = vld [vmem:[%s6677_s8 + $0x40] sm:$0xff]  ;;  %v1189_v48 = vld [vmem:[%s6677_s8 + $0x38] sm:$0xff] }
  0x7d   : > { %v1194_v51 = vld [vmem:[%s6677_s8 + $0x60] sm:$0xff]  ;;  %v1193_v52 = vld [vmem:[%s6677_s8 + $0x58] sm:$0xff]  ;;  %v1192_v53 = vld [vmem:[%s6677_s8 + $0x50] sm:$0xff] }
  0x7e   : > { %1617 = vmatpush.msra.mxu0 %v1406_v38  ;;  %5918 = vmatpush.msra.mxu3 %v1406_v38  ;;  %v1197_v60 = vld [vmem:[%s6677_s8 + $0x78] sm:$0xff]  ;;  %v1196_v61 = vld [vmem:[%s6677_s8 + $0x70] sm:$0xff]  ;;  %v1195_v62 = vld [vmem:[%s6677_s8 + $0x68] sm:$0xff] }
  0x7f   : > { %v1200_v2 = vld [vmem:[%s6677_s8 + $0x90] sm:$0xff]  ;;  %v1199_v4 = vld [vmem:[%s6677_s8 + $0x88] sm:$0xff]  ;;  %v1198_v5 = vld [vmem:[%s6677_s8 + $0x80] sm:$0xff] }
  0x80   : > { %1015 = vperm.xlu2 %6050, %v966_v9   ;;  %v1203_v9 = vld [vmem:[%s6677_s8 + $0xa8] sm:$0xff]  ;;  %v1213_v37 = vld [vmem:[%s6677_s8 + $0xf8] sm:$0xff] }
  0x81   : > { %1012 = vperm.xlu1 %6049, %v965_v10   ;;  %1009 = vperm.xlu0 %6048, %v964_v11   ;;  %v1202_v10 = vld [vmem:[%s6677_s8 + $0xa0] sm:$0xff]  ;;  %v1201_v11 = vld [vmem:[%s6677_s8 + $0x98] sm:$0xff] }
  0x88   : > { %1024 = vperm.xlu2 %6050, %v969_v12  }
  0x89   : > { %1021 = vperm.xlu1 %6049, %v968_v13   ;;  %1018 = vperm.xlu0 %6048, %v967_v14  }
  0x90   : > { %1033 = vperm.xlu2 %6050, %v972_v15  }
  0x91   : > { %1030 = vperm.xlu1 %6049, %v971_v16   ;;  %1027 = vperm.xlu0 %6048, %v970_v17   ;;  %v1206_v16 = vld [vmem:[%s6677_s8 + $0xc0] sm:$0xff]  ;;  %v1205_v17 = vld [vmem:[%s6677_s8 + $0xb8] sm:$0xff] }
  0x98   : > { %1042 = vperm.xlu2 %6050, %v975_v18   ;;  %v1204_v18 = vld [vmem:[%s6677_s8 + $0xb0] sm:$0xff] }
  0x99   : > { %1039 = vperm.xlu1 %6049, %v974_v19   ;;  %1036 = vperm.xlu0 %6048, %v973_v20  }
  0xa0   : > { %1051 = vperm.xlu2 %6050, %v978_v21  }
  0xa1   : > { %1048 = vperm.xlu1 %6049, %v977_v22   ;;  %1045 = vperm.xlu0 %6048, %v976_v23   ;;  %v1209_v23 = vld [vmem:[%s6677_s8 + $0xd8] sm:$0xff] }
  0xa8   : > { %1060 = vperm.xlu2 %6050, %v981_v24   ;;  %v1208_v24 = vld [vmem:[%s6677_s8 + $0xd0] sm:$0xff] }
  0xa9   : > { %1057 = vperm.xlu1 %6049, %v980_v25   ;;  %1054 = vperm.xlu0 %6048, %v979_v26   ;;  %v1207_v25 = vld [vmem:[%s6677_s8 + $0xc8] sm:$0xff] }
  0xb0   : > { %1069 = vperm.xlu2 %6050, %v984_v27  }
  0xb1   : > { %1066 = vperm.xlu1 %6049, %v983_v28   ;;  %1063 = vperm.xlu0 %6048, %v982_v29  }
  0xb8   : > { %1078 = vperm.xlu2 %6050, %v987_v30   ;;  %v1212_v30 = vld [vmem:[%s6677_s8 + $0xf0] sm:$0xff] }
  0xb9   : > { %1075 = vperm.xlu1 %6049, %v986_v31   ;;  %1072 = vperm.xlu0 %6048, %v985_v32   ;;  %v1211_v31 = vld [vmem:[%s6677_s8 + $0xe8] sm:$0xff]  ;;  %v1210_v32 = vld [vmem:[%s6677_s8 + $0xe0] sm:$0xff]  ;;  %s10247_s8 = sld [smem:[#allocation81_spill]] }
  0xc0   : > { %1215 = vperm.xlu2 %6050, %v1182_v34  }
  0xc1   : > { %1084 = vperm.xlu1 %6049, %v989_v35   ;;  %1081 = vperm.xlu0 %6048, %v988_v36  }
  0xc8   : > { %1224 = vperm.xlu2 %6050, %v1185_v39  }
  0xc9   : > { %1221 = vperm.xlu1 %6049, %v1184_v40   ;;  %1218 = vperm.xlu0 %6048, %v1183_v41  }
  0xca   : > { %v6787_v45 = vpop.permute.xlu2 %1003 }
  0xcb   : > { %vm1090_vm7 = vcmp.eq.s32.totalorder %v6787_v45, %v6797_v54 }
  0xcc   : > { %v5727_v22 = vsel %vm1090_vm7, 1.0, %v10043_v58 }
  0xd0   : > { %1233 = vperm.xlu2 %6050, %v1188_v42  }
  0xd1   : > { %1230 = vperm.xlu1 %6049, %v1187_v43   ;;  %1227 = vperm.xlu0 %6048, %v1186_v44   ;;  %v2820_v44 = vld [vmem:[%s10160_s12 + $0x78] sm:$0xff] }
  0xd2   : > { %v6792_v49 = vpop.permute.xlu2 %1006  ;;  %2950 = vmatpush.msra.mxu2 %v2820_v44 }
  0xd3   : > { %vm1091_vm8 = vcmp.eq.s32.totalorder %v6792_v49, %v6797_v54 }
  0xd4   : > { %v5728_v29 = vsel %vm1091_vm8, 1.0, %v10043_v58 }
  0xd8   : > { %1242 = vperm.xlu2 %6050, %v1191_v46   ;;  %v2819_v46 = vld [vmem:[%s10160_s12 + $0x70] sm:$0xff] }
  0xd9   : > { %1239 = vperm.xlu1 %6049, %v1190_v47   ;;  %1236 = vperm.xlu0 %6048, %v1189_v48   ;;  %v2818_v47 = vld [vmem:[%s10160_s12 + $0x68] sm:$0xff]  ;;  %v2817_v48 = vld [vmem:[%s10160_s12 + $0x60] sm:$0xff] }
  0xda   : > { %v6799_v57 = vpop.permute.xlu2 %1015  ;;  %2951 = vmatpush.msra.mxu2 %v2819_v46 }
  0xdb   : > { %vm1094_vm11 = vcmp.eq.s32.totalorder %v6799_v57, %v6797_v54  ;;  %v2813_v57 = vld [vmem:[%s10160_s12 + $0x40] sm:$0xff] }
  0xdc   : > { %v5731_v45 = vsel %vm1094_vm11, 1.0, %v10043_v58  ;;  %2952 = vmatpush.msra.mxu2 %v2818_v47 }
  0xde   : > { %2953 = vmatpush.msra.mxu2 %v2817_v48 }
  0xe0   : > { %1251 = vperm.xlu2 %6050, %v1194_v51  }
  0xe1   : > { %1248 = vperm.xlu1 %6049, %v1193_v52   ;;  %1245 = vperm.xlu0 %6048, %v1192_v53   ;;  %v2816_v52 = vld [vmem:[%s10160_s12 + $0x58] sm:$0xff] }
  0xe2   : > { %v6810_v3 = vpop.permute.xlu2 %1024  ;;  %2954 = vmatpush.msra.mxu2 %v2816_v52 }
  0xe3   : > { %v998_v55 = vpop.permute.xlu1 %997  ;;  %v992_v56 = vpop.permute.xlu0 %991  ;;  %vm1097_vm14 = vcmp.eq.s32.totalorder %v6810_v3, %v6797_v54  ;;  %v2807_v3 = vld [vmem:[%s10160_s12 + $0x10] sm:$0xff] }
  0xe4   : > { %vm1086_vm3 = vcmp.eq.s32.totalorder %v992_v56, %v6797_v54  ;;  %vm1088_vm5 = vcmp.eq.s32.totalorder %v998_v55, %v6797_v54  ;;  %v2815_v55 = vld [vmem:[%s10160_s12 + $0x50] sm:$0xff]  ;;  %v2814_v56 = vld [vmem:[%s10160_s12 + $0x48] sm:$0xff] }
  0xe5   : > { %v5723_v59 = vsel %vm1086_vm3, 1.0, %v10043_v58  ;;  %v5725_v8 = vsel %vm1088_vm5, 1.0, %v10043_v58  ;;  %2955 = vmatpush.msra.mxu2 %v2815_v55 }
  0xe6   : > { %5787 = vmatmul.msk.f32.vlgmr.msra.gmra.mxu0 %vm1409_vm2, %v5723_v59 }
  0xe7   : > { %2956 = vmatpush.msra.mxu2 %v2814_v56 }
  0xe8   : > { %1260 = vperm.xlu2 %6050, %v1197_v60  }
  0xe9   : > { %1257 = vperm.xlu1 %6049, %v1196_v61   ;;  %1254 = vperm.xlu0 %6048, %v1195_v62   ;;  %v2812_v61 = vld [vmem:[%s10160_s12 + $0x38] sm:$0xff] }
  0xea   : > { %v6821_v12 = vpop.permute.xlu2 %1033  ;;  %2957 = vmatpush.msra.mxu2 %v2813_v57 }
  0xeb   : > { %v1001_v63 = vpop.permute.xlu1 %1000  ;;  %v995_v0 = vpop.permute.xlu0 %994  ;;  %vm1100_vm5 = vcmp.eq.s32.totalorder %v6821_v12, %v6797_v54 }
  0xec   : > { %vm1087_vm4 = vcmp.eq.s32.totalorder %v995_v0, %v6797_v54  ;;  %vm1089_vm6 = vcmp.eq.s32.totalorder %v1001_v63, %v6797_v54  ;;  %2958 = vmatpush.msra.mxu2 %v2812_v61  ;;  %v2811_v0 = vld [vmem:[%s10160_s12 + $0x30] sm:$0xff] }
  0xed   : > { %v5724_v1 = vsel %vm1087_vm4, 1.0, %v10043_v58  ;;  %v5726_v15 = vsel %vm1089_vm6, 1.0, %v10043_v58 }
  0xee   : > { %5788 = vmatmul.msk.f32.gmra.mxu0 %vm1409_vm2, %v5724_v1  ;;  %v2810_v1 = vld [vmem:[%s10160_s12 + $0x28] sm:$0xff]  ;;  %2959 = vmatpush.msra.mxu2 %v2811_v0 }
  0xf0   : > { %1269 = vperm.xlu2 %6050, %v1200_v2   ;;  %v2809_v2 = vld [vmem:[%s10160_s12 + $0x20] sm:$0xff]  ;;  %2960 = vmatpush.msra.mxu2 %v2810_v1 }
  0xf1   : > { %1266 = vperm.xlu1 %6049, %v1199_v4   ;;  %1263 = vperm.xlu0 %6048, %v1198_v5   ;;  %v2808_v5 = vld [vmem:[%s10160_s12 + $0x18] sm:$0xff] }
  0xf2   : > { %v6835_v19 = vpop.permute.xlu2 %1042  ;;  %2961 = vmatpush.msra.mxu2 %v2809_v2 }
  0xf3   : > { %v1013_v6 = vpop.permute.xlu1 %1012  ;;  %v1010_v7 = vpop.permute.xlu0 %1009  ;;  %vm1103_vm11 = vcmp.eq.s32.totalorder %v6835_v19, %v6797_v54 }
  0xf4   : > { %vm1092_vm9 = vcmp.eq.s32.totalorder %v1010_v7, %v6797_v54  ;;  %vm1093_vm10 = vcmp.eq.s32.totalorder %v1013_v6, %v6797_v54  ;;  %v5734_v7 = vsel %vm1097_vm14, 1.0, %v10043_v58  ;;  %2962 = vmatpush.msra.mxu2 %v2808_v5 }
  0xf5   : > { %v5729_v35 = vsel %vm1092_vm9, 1.0, %v10043_v58  ;;  %v5730_v40 = vsel %vm1093_vm10, 1.0, %v10043_v58 }
  0xf6   : > { %5789 = vmatmul.msk.f32.gmra.mxu0 %vm1409_vm2, %v5725_v8  ;;  %2963 = vmatpush.msra.mxu2 %v2807_v3 }
  0xf8   : > { %1278 = vperm.xlu2 %6050, %v1203_v9   ;;  %v2806_v9 = vld [vmem:[%s10160_s12 + $0x8] sm:$0xff] }
  0xf9   : > { %1275 = vperm.xlu1 %6049, %v1202_v10   ;;  %1272 = vperm.xlu0 %6048, %v1201_v11   ;;  %v2805_v11 = vld [vmem:[%s10160_s12] sm:$0xff] }
  0xfa   : > { %v6852_v28 = vpop.permute.xlu2 %1051  ;;  %2964 = vmatpush.msra.mxu2 %v2806_v9 }
  0xfb   : > { %v6824_v13 = vpop.permute.xlu1 %1021  ;;  %v6826_v14 = vpop.permute.xlu0 %1018 }
  0xfc   : > { %vm1095_vm12 = vcmp.eq.s32.totalorder %v6826_v14, %v6797_v54  ;;  %vm1096_vm13 = vcmp.eq.s32.totalorder %v6824_v13, %v6797_v54  ;;  %2965 = vmatpush.msra.mxu2 %v2805_v11 }
  0xfd   : > { %v5732_v53 = vsel %vm1095_vm12, 1.0, %v10043_v58  ;;  %v5733_v63 = vsel %vm1096_vm13, 1.0, %v10043_v58 }
  0xfe   : > { %5790 = vmatmul.msk.f32.gmra.mxu0 %vm1409_vm2, %v5726_v15 }
 0x100   : > { %1287 = vperm.xlu2 %6050, %v1206_v16  }
 0x101   : > { %1284 = vperm.xlu1 %6049, %v1205_v17   ;;  %1281 = vperm.xlu0 %6048, %v1204_v18  }
 0x102   : > { %v6865_v36 = vpop.permute.xlu2 %1060 }
 0x103   : > { %v6837_v20 = vpop.permute.xlu1 %1030  ;;  %v6839_v21 = vpop.permute.xlu0 %1027 }
 0x104   : > { %vm1098_vm0 = vcmp.eq.s32.totalorder %v6839_v21, %v6797_v54  ;;  %vm1099_vm3 = vcmp.eq.s32.totalorder %v6837_v20, %v6797_v54  ;;  %v5737_v21 = vsel %vm1100_vm5, 1.0, %v10043_v58 }
 0x105   : > { %v5735_v13 = vsel %vm1098_vm0, 1.0, %v10043_v58  ;;  %v5736_v16 = vsel %vm1099_vm3, 1.0, %v10043_v58 }
 0x106   : > { %5791 = vmatmul.msk.f32.gmra.mxu0 %vm1409_vm2, %v5727_v22 }
 0x108   : > { %1296 = vperm.xlu2 %6050, %v1209_v23  }
 0x109   : > { %1293 = vperm.xlu1 %6049, %v1208_v24   ;;  %1290 = vperm.xlu0 %6048, %v1207_v25  }
 0x10a   : > { %v6876_v41 = vpop.permute.xlu2 %1069 }
 0x10b   : > { %v6848_v26 = vpop.permute.xlu1 %1039  ;;  %v6850_v27 = vpop.permute.xlu0 %1036 }
 0x10c   : > { %vm1101_vm7 = vcmp.eq.s32.totalorder %v6850_v27, %v6797_v54  ;;  %vm1102_vm9 = vcmp.eq.s32.totalorder %v6848_v26, %v6797_v54 }
 0x10d   : > { %v5738_v23 = vsel %vm1101_vm7, 1.0, %v10043_v58  ;;  %v5739_v27 = vsel %vm1102_vm9, 1.0, %v10043_v58 }
 0x10e   : > { %5792 = vmatmul.msk.f32.gmra.mxu0 %vm1409_vm2, %v5728_v29 }
 0x110   : > { %1305 = vperm.xlu2 %6050, %v1212_v30  }
 0x111   : > { %1302 = vperm.xlu1 %6049, %v1211_v31   ;;  %1299 = vperm.xlu0 %6048, %v1210_v32   ;;  %v5740_v31 = vsel %vm1103_vm11, 1.0, %v10043_v58 }
 0x112   : > { %v6900_v49 = vpop.permute.xlu2 %1078 }
 0x113   : > { %v6860_v33 = vpop.permute.xlu1 %1048  ;;  %v6862_v34 = vpop.permute.xlu0 %1045 }
 0x114   : > { %vm1104_vm13 = vcmp.eq.s32.totalorder %v6862_v34, %v6797_v54 }
 0x116   : > { %5793 = vmatmul.msk.f32.gmra.mxu0 %vm1409_vm2, %v5729_v35 }
 0x119   : > { %1308 = vperm.xlu0 %6048, %v1213_v37   ;;  %v5741_v37 = vsel %vm1104_vm13, 1.0, %v10043_v58 }
 0x11a   : > { %v6929_v62 = vpop.permute.xlu2 %1215 }
 0x11b   : > { %v6870_v38 = vpop.permute.xlu1 %1057  ;;  %v6872_v39 = vpop.permute.xlu0 %1054 }
 0x11e   : > { %5794 = vmatmul.msk.f32.gmra.mxu0 %vm1409_vm2, %v5730_v40 }
 0x122   : > { %v1225_v10 = vpop.permute.xlu2 %1224 }
 0x123   : > { %v6880_v42 = vpop.permute.xlu1 %1066  ;;  %v6882_v43 = vpop.permute.xlu0 %1063  ;;  %vm1313_vm1 = vcmp.eq.s32.totalorder %v1225_v10, %v6797_v54 }
 0x124   : > { %v5758_v14 = vsel %vm1313_vm1, 1.0, %v10043_v58  ;;  %vm1106_vm1 = vcmp.eq.s32.totalorder %v6852_v28, %v6797_v54 }
 0x125   : > { %v5743_v48 = vsel %vm1106_vm1, 1.0, %v10043_v58 }
 0x126   : > { %5795 = vmatmul.msk.f32.gmra.mxu0 %vm1409_vm2, %v5731_v45 }
 0x12a   : > { %v1234_v22 = vpop.permute.xlu2 %1233 }
 0x12b   : > { %v6902_v50 = vpop.permute.xlu1 %1075  ;;  %v6904_v51 = vpop.permute.xlu0 %1072  ;;  %vm1316_vm8 = vcmp.eq.s32.totalorder %v1234_v22, %v6797_v54 }
 0x12c   : > { %v5761_v12 = vsel %vm1316_vm8, 1.0, %v10043_v58  ;;  %vm1109_vm8 = vcmp.eq.s32.totalorder %v6865_v36, %v6797_v54 }
 0x12d   : > { %v5746_v2 = vsel %vm1109_vm8, 1.0, %v10043_v58 }
 0x12e   : > { %5796 = vmatmul.msk.f32.gmra.mxu0 %vm1409_vm2, %v5732_v53 }
 0x132   : > { %v1243_v35 = vpop.permute.xlu2 %1242 }
 0x133   : > { %v6922_v59 = vpop.permute.xlu1 %1084  ;;  %v6924_v60 = vpop.permute.xlu0 %1081  ;;  %vm1319_vm14 = vcmp.eq.s32.totalorder %v1243_v35, %v6797_v54 }
 0x134   : > { %v5764_v40 = vsel %vm1319_vm14, 1.0, %v10043_v58  ;;  %vm1112_vm14 = vcmp.eq.s32.totalorder %v6876_v41, %v6797_v54  ;;  %vm1116_vm8 = vcmp.eq.s32.totalorder %v6924_v60, %v6797_v54 }
 0x135   : > { %v5749_v11 = vsel %vm1112_vm14, 1.0, %v10043_v58  ;;  %v5753_v60 = vsel %vm1116_vm8, 1.0, %v10043_v58 }
 0x136   : > { %5797 = vmatmul.msk.f32.gmra.mxu0 %vm1409_vm2, %v5733_v63 }
 0x13a   : > { %v1252_v53 = vpop.permute.xlu2 %1251 }
 0x13b   : > { %v1222_v4 = vpop.permute.xlu1 %1221  ;;  %v6948_v6 = vpop.permute.xlu0 %1218  ;;  %vm1322_vm5 = vcmp.eq.s32.totalorder %v1252_v53, %v6797_v54 }
 0x13c   : > { %vm1312_vm15 = vcmp.eq.s32.totalorder %v1222_v4, %v6797_v54  ;;  %v5767_v56 = vsel %vm1322_vm5, 1.0, %v10043_v58  ;;  %vm1311_vm14 = vcmp.eq.s32.totalorder %v6948_v6, %v6797_v54 }
 0x13d   : > { %v5757_v8 = vsel %vm1312_vm15, 1.0, %v10043_v58  ;;  %vm1105_vm15 = vcmp.eq.s32.totalorder %v6860_v33, %v6797_v54 }
 0x13e   : > { %5798 = vmatmul.msk.f32.gmra.mxu0 %vm1409_vm2, %v5734_v7  ;;  %5821 = vmatmul.msk.f32.vlgmr.msra.gmra.mxu3 %vm1409_vm2, %v5757_v8  ;;  %v5742_v45 = vsel %vm1105_vm15, 1.0, %v10043_v58 }
 0x142   : > { %v1261_v4 = vpop.permute.xlu2 %1260 }
 0x143   : > { %v1228_v15 = vpop.permute.xlu0 %1227  ;;  %v1231_v18 = vpop.permute.xlu1 %1230  ;;  %vm1325_vm11 = vcmp.eq.s32.totalorder %v1261_v4, %v6797_v54 }
 0x144   : > { %vm1314_vm4 = vcmp.eq.s32.totalorder %v1228_v15, %v6797_v54  ;;  %vm1315_vm6 = vcmp.eq.s32.totalorder %v1231_v18, %v6797_v54  ;;  %v5770_v7 = vsel %vm1325_vm11, 1.0, %v10043_v58 }
 0x145   : > { %v5759_v17 = vsel %vm1314_vm4, 1.0, %v10043_v58  ;;  %v5760_v20 = vsel %vm1315_vm6, 1.0, %v10043_v58  ;;  %vm1107_vm4 = vcmp.eq.s32.totalorder %v6872_v39, %v6797_v54  ;;  %vm1108_vm6 = vcmp.eq.s32.totalorder %v6870_v38, %v6797_v54 }
 0x146   : > { %5799 = vmatmul.msk.f32.gmra.mxu0 %vm1409_vm2, %v5735_v13  ;;  %5822 = vmatmul.msk.f32.gmra.mxu3 %vm1409_vm2, %v5758_v14  ;;  %v5744_v55 = vsel %vm1107_vm4, 1.0, %v10043_v58  ;;  %v5745_v63 = vsel %vm1108_vm6, 1.0, %v10043_v58  ;;  %vm1114_vm4 = vcmp.eq.s32.totalorder %v6902_v50, %v6797_v54  ;;  %vm1115_vm6 = vcmp.eq.s32.totalorder %v6900_v49, %v6797_v54 }
 0x147   : > { %v5751_v50 = vsel %vm1114_vm4, 1.0, %v10043_v58 }
 0x14a   : > { %v1270_v14 = vpop.permute.xlu2 %1269 }
 0x14b   : > { %v1237_v24 = vpop.permute.xlu0 %1236  ;;  %v1240_v30 = vpop.permute.xlu1 %1239  ;;  %vm1328_vm1 = vcmp.eq.s32.totalorder %v1270_v14, %v6797_v54 }
 0x14c   : > { %vm1317_vm10 = vcmp.eq.s32.totalorder %v1237_v24, %v6797_v54  ;;  %vm1318_vm12 = vcmp.eq.s32.totalorder %v1240_v30, %v6797_v54 }
 0x14d   : > { %v5762_v29 = vsel %vm1317_vm10, 1.0, %v10043_v58  ;;  %v5763_v32 = vsel %vm1318_vm12, 1.0, %v10043_v58  ;;  %vm1110_vm10 = vcmp.eq.s32.totalorder %v6882_v43, %v6797_v54  ;;  %vm1111_vm12 = vcmp.eq.s32.totalorder %v6880_v42, %v6797_v54 }
 0x14e   : > { %5800 = vmatmul.msk.f32.gmra.mxu0 %vm1409_vm2, %v5736_v16  ;;  %5823 = vmatmul.msk.f32.gmra.mxu3 %vm1409_vm2, %v5759_v17  ;;  %v5747_v5 = vsel %vm1110_vm10, 1.0, %v10043_v58  ;;  %v5748_v3 = vsel %vm1111_vm12, 1.0, %v10043_v58  ;;  %v5773_v16 = vsel %vm1328_vm1, 1.0, %v10043_v58  ;;  %vm1117_vm10 = vcmp.eq.s32.totalorder %v6922_v59, %v6797_v54 }
 0x14f   : > { %vm1310_vm12 = vcmp.eq.s32.totalorder %v6929_v62, %v6797_v54 }
 0x153   : > { %v1246_v44 = vpop.permute.xlu0 %1245  ;;  %v1249_v47 = vpop.permute.xlu1 %1248 }
 0x154   : > { %vm1320_vm0 = vcmp.eq.s32.totalorder %v1246_v44, %v6797_v54  ;;  %vm1321_vm3 = vcmp.eq.s32.totalorder %v1249_v47, %v6797_v54 }
 0x155   : > { %v5765_v46 = vsel %vm1320_vm0, 1.0, %v10043_v58  ;;  %v5766_v52 = vsel %vm1321_vm3, 1.0, %v10043_v58  ;;  %vm1113_vm0 = vcmp.eq.s32.totalorder %v6904_v51, %v6797_v54  ;;  %vm1907_vm3 = vcmask 31744  }
 0x156   : > { %5801 = vmatmul.msk.f32.gmra.mxu0 %vm1409_vm2, %v5737_v21  ;;  %5824 = vmatmul.msk.f32.gmra.mxu3 %vm1409_vm2, %v5760_v20  ;;  %v5750_v15 = vsel %vm1113_vm0, 1.0, %v10043_v58 }
 0x15b   : > { %v1255_v57 = vpop.permute.xlu0 %1254  ;;  %v1258_v0 = vpop.permute.xlu1 %1257 }
 0x15c   : > { %vm1323_vm7 = vcmp.eq.s32.totalorder %v1255_v57, %v6797_v54  ;;  %vm1324_vm9 = vcmp.eq.s32.totalorder %v1258_v0, %v6797_v54 }
 0x15d   : > { %v5768_v61 = vsel %vm1323_vm7, 1.0, %v10043_v58  ;;  %v5769_v1 = vsel %vm1324_vm9, 1.0, %v10043_v58 }
 0x15e   : > { %5802 = vmatmul.msk.f32.gmra.mxu0 %vm1409_vm2, %v5738_v23  ;;  %5825 = vmatmul.msk.f32.gmra.mxu3 %vm1409_vm2, %v5761_v12 }
 0x163   : > { %v6994_v25 = vpop.f32.mrf.mxu0  ;;  %v1264_v8 = vpop.permute.xlu0 %1263 }
 0x164   : > { %10161 = vst [vmem:[#allocation23_spill] sm:$0xff] %v6994_v25  ;;  %2966 = vmatmul.f32.vlgmr.msra.gmra.mxu2 %v6994_v25  ;;  %vm1326_vm13 = vcmp.eq.s32.totalorder %v1264_v8, %v6797_v54  ;;  %v1267_v10 = vpop.permute.xlu1 %1266 }
 0x165   : > { %v5771_v9 = vsel %vm1326_vm13, 1.0, %v10043_v58  ;;  %vm1327_vm15 = vcmp.eq.s32.totalorder %v1267_v10, %v6797_v54  ;;  %v5755_v10 = vsel %vm1310_vm12, 1.0, %v10043_v58 }
 0x166   : > { %5803 = vmatmul.msk.f32.gmra.mxu0 %vm1409_vm2, %v5739_v27  ;;  %5826 = vmatmul.msk.f32.gmra.mxu3 %vm1409_vm2, %v5762_v29  ;;  %v5772_v13 = vsel %vm1327_vm15, 1.0, %v10043_v58 }
 0x16b   : > { %v7004_v26 = vpop.f32.mrf.mxu0  ;;  %v1273_v17 = vpop.permute.xlu0 %1272 }
 0x16c   : > { %10162 = vst [vmem:[#allocation24_spill] sm:$0xff] %v7004_v26  ;;  %2969 = vmatmul.f32.gmra.mxu2 %v7004_v26  ;;  %vm1329_vm5 = vcmp.eq.s32.totalorder %v1273_v17, %v6797_v54  ;;  %v1276_v27 = vpop.permute.xlu1 %1275 }
 0x16d   : > { %v5774_v12 = vsel %vm1329_vm5, 1.0, %v10043_v58  ;;  %vm1330_vm7 = vcmp.eq.s32.totalorder %v1276_v27, %v6797_v54 }
 0x16e   : > { %5804 = vmatmul.msk.f32.gmra.mxu0 %vm1409_vm2, %v5740_v31  ;;  %5827 = vmatmul.msk.f32.gmra.mxu3 %vm1409_vm2, %v5763_v32  ;;  %v5775_v49 = vsel %vm1330_vm7, 1.0, %v10043_v58 }
 0x173   : > { %v7014_v19 = vpop.f32.mrf.mxu0 }
 0x174   : > { %2972 = vmatmul.f32.gmra.mxu2 %v7014_v19  ;;  %v1285_v4 = vpop.permute.xlu1 %1284 }
 0x175   : > { %vm1333_vm13 = vcmp.eq.s32.totalorder %v1285_v4, %v6797_v54 }
 0x176   : > { %5805 = vmatmul.msk.f32.gmra.mxu0 %vm1409_vm2, %v5741_v37  ;;  %5828 = vmatmul.msk.f32.gmra.mxu3 %vm1409_vm2, %v5764_v40  ;;  %v1279_v37 = vpop.permute.xlu2 %1278  ;;  %v5778_v62 = vsel %vm1333_vm13, 1.0, %v10043_v58 }
 0x177   : > { %vm1331_vm9 = vcmp.eq.s32.totalorder %v1279_v37, %v6797_v54 }
 0x17b   : > { %v7024_v34 = vpop.f32.mrf.mxu0 }
 0x17c   : > { %2975 = vmatmul.f32.gmra.mxu2 %v7024_v34 }
 0x17e   : > { %5806 = vmatmul.msk.f32.gmra.mxu0 %vm1409_vm2, %v5742_v45  ;;  %5829 = vmatmul.msk.f32.gmra.mxu3 %vm1409_vm2, %v5765_v46 }
 0x183   : > { %v7034_v33 = vpop.f32.mrf.mxu0 }
 0x184   : > { %2978 = vmatmul.f32.gmra.mxu2 %v7034_v33 }
 0x186   : > { %5807 = vmatmul.msk.f32.gmra.mxu0 %vm1409_vm2, %v5743_v48  ;;  %5830 = vmatmul.msk.f32.gmra.mxu3 %vm1409_vm2, %v5766_v52 }
 0x18b   : > { %v7044_v28 = vpop.f32.mrf.mxu0 }
 0x18c   : > { %2981 = vmatmul.f32.gmra.mxu2 %v7044_v28 }
 0x18e   : > { %5808 = vmatmul.msk.f32.gmra.mxu0 %vm1409_vm2, %v5744_v55  ;;  %5831 = vmatmul.msk.f32.gmra.mxu3 %vm1409_vm2, %v5767_v56  ;;  %v1282_v55 = vpop.permute.xlu0 %1281 }
 0x18f   : > { %vm1332_vm11 = vcmp.eq.s32.totalorder %v1282_v55, %v6797_v54 }
 0x190   : > { %v5777_v59 = vsel %vm1332_vm11, 1.0, %v10043_v58 }
 0x193   : > { %v7054_v39 = vpop.f32.mrf.mxu0 }
 0x194   : > { %2984 = vmatmul.f32.gmra.mxu2 %v7054_v39 }
 0x196   : > { %5809 = vmatmul.msk.f32.gmra.mxu0 %vm1409_vm2, %v5745_v63  ;;  %5832 = vmatmul.msk.f32.gmra.mxu3 %vm1409_vm2, %v5768_v61 }
 0x19b   : > { %v7064_v38 = vpop.f32.mrf.mxu0 }
 0x19c   : > { %2987 = vmatmul.f32.gmra.mxu2 %v7064_v38 }
 0x19e   : > { %5810 = vmatmul.msk.f32.gmra.mxu0 %vm1409_vm2, %v5746_v2  ;;  %5833 = vmatmul.msk.f32.gmra.mxu3 %vm1409_vm2, %v5769_v1  ;;  %v5754_v1 = vsel %vm1117_vm10, 1.0, %v10043_v58 }
 0x1a3   : > { %v7074_v36 = vpop.f32.mrf.mxu0 }
 0x1a4   : > { %2990 = vmatmul.f32.gmra.mxu2 %v7074_v36 }
 0x1a6   : > { %5811 = vmatmul.msk.f32.gmra.mxu0 %vm1409_vm2, %v5747_v5  ;;  %5834 = vmatmul.msk.f32.gmra.mxu3 %vm1409_vm2, %v5770_v7 }
 0x1ab   : > { %v7084_v43 = vpop.f32.mrf.mxu0 }
 0x1ac   : > { %2993 = vmatmul.f32.gmra.mxu2 %v7084_v43 }
 0x1ae   : > { %5812 = vmatmul.msk.f32.gmra.mxu0 %vm1409_vm2, %v5748_v3  ;;  %5835 = vmatmul.msk.f32.gmra.mxu3 %vm1409_vm2, %v5771_v9 }
 0x1b3   : > { %v7094_v42 = vpop.f32.mrf.mxu0 }
 0x1b4   : > { %2996 = vmatmul.f32.gmra.mxu2 %v7094_v42 }
 0x1b6   : > { %5813 = vmatmul.msk.f32.gmra.mxu0 %vm1409_vm2, %v5749_v11  ;;  %5836 = vmatmul.msk.f32.gmra.mxu3 %vm1409_vm2, %v5772_v13  ;;  %v1288_v13 = vpop.permute.xlu2 %1287 }
 0x1b7   : > { %vm1334_vm15 = vcmp.eq.s32.totalorder %v1288_v13, %v6797_v54 }
 0x1b8   : > { %v5779_v6 = vsel %vm1334_vm15, 1.0, %v10043_v58 }
 0x1bb   : > { %v7104_v41 = vpop.f32.mrf.mxu0 }
 0x1bc   : > { %2999 = vmatmul.f32.gmra.mxu2 %v7104_v41 }
 0x1be   : > { %5814 = vmatmul.msk.f32.gmra.mxu0 %vm1409_vm2, %v5750_v15  ;;  %5837 = vmatmul.msk.f32.gmra.mxu3 %vm1409_vm2, %v5773_v16 }
 0x1c1   : > { %v7112_v18 = vpop.f32.mrf.mxu3 }
 0x1c2   : > { %v7119_v51 = vmul.f32 %v7112_v18, %v7014_v19  ;;  %v1813_v21 = vsub.f32 %v7014_v19, %v7112_v18  ;;  %v5752_v19 = vsel %vm1115_vm6, 1.0, %v10043_v58 }
 0x1c3   : > { %v7123_v20 = vpop.f32.mrf.mxu0 }
 0x1c4   : > { %v2394_v22 = vsel %vm1907_vm3, %v7119_v51, 0.0  ;;  %v7127_v23 = vmul.f32 %v1813_v21, %v1813_v21  ;;  %3550 = vst.msk [vmem:[%s7131_s9 + $0x10] sm:$0xff] %vm1907_vm3, %v1813_v21  ;;  %3002 = vmatmul.f32.gmra.mxu2 %v7123_v20 }
 0x1c5   : > { %2395 = vadd.xlane.f32.xlu1 %v2394_v22  ;;  %v5756_v22 = vsel %vm1311_vm14, 1.0, %v10043_v58 }
 0x1c6   : > { %5815 = vmatmul.msk.f32.gmra.mxu0 %vm1409_vm2, %v5751_v50  ;;  %5838 = vmatmul.msk.f32.gmra.mxu3 %vm1409_vm2, %v5774_v12  ;;  %v1914_v24 = vsel %vm1907_vm3, %v7127_v23, 0.0  ;;  %v1291_v12 = vpop.permute.xlu0 %1290 }
 0x1c7   : > { %1915 = vadd.xlane.f32.xlu0 %v1914_v24  ;;  %vm1335_vm0 = vcmp.eq.s32.totalorder %v1291_v12, %v6797_v54 }
 0x1c9   : > { %v7142_v29 = vpop.f32.mrf.mxu3 }
 0x1ca   : > { %v7149_v30 = vmul.f32 %v7142_v29, %v7024_v34  ;;  %v1814_v31 = vsub.f32 %v7024_v34, %v7142_v29 }
 0x1cb   : > { %v7153_v32 = vpop.f32.mrf.mxu0 }
 0x1cc   : > { %v2397_v35 = vsel %vm1907_vm3, %v7149_v30, 0.0  ;;  %3551 = vst.msk [vmem:[%s7131_s9 + $0x18] sm:$0xff] %vm1907_vm3, %v1814_v31  ;;  %3005 = vmatmul.f32.gmra.mxu2 %v7153_v32  ;;  %v7164_v40 = vmul.f32 %v1814_v31, %v1814_v31 }
 0x1cd   : > { %2398 = vadd.xlane.f32.xlu2 %v2397_v35 }
 0x1ce   : > { %5816 = vmatmul.msk.f32.gmra.mxu0 %vm1409_vm2, %v5752_v19  ;;  %5839 = vmatmul.msk.f32.gmra.mxu3 %vm1409_vm2, %v5775_v49  ;;  %v1917_v47 = vsel %vm1907_vm3, %v7164_v40, 0.0  ;;  %v5780_v49 = vsel %vm1335_vm0, 1.0, %v10043_v58 }
 0x1d1   : > { %v7166_v44 = vpop.f32.mrf.mxu3 }
 0x1d2   : > { %v7172_v34 = vmul.f32 %v7166_v44, %v7034_v33  ;;  %v1815_v45 = vsub.f32 %v7034_v33, %v7166_v44  ;;  %v5776_v33 = vsel %vm1331_vm9, 1.0, %v10043_v58 }
 0x1d3   : > { %v7177_v46 = vpop.f32.mrf.mxu0 }
 0x1d4   : > { %v2400_v48 = vsel %vm1907_vm3, %v7172_v34, 0.0  ;;  %v7183_v52 = vmul.f32 %v1815_v45, %v1815_v45  ;;  %3552 = vst.msk [vmem:[%s7131_s9 + $0x20] sm:$0xff] %vm1907_vm3, %v1815_v45  ;;  %3008 = vmatmul.f32.gmra.mxu2 %v7177_v46  ;;  %v1294_v45 = vpop.permute.xlu1 %1293 }
 0x1d5   : > { %1918 = vadd.xlane.f32.xlu2 %v1917_v47  ;;  %2401 = vadd.xlane.f32.xlu0 %v2400_v48  ;;  %vm1336_vm1 = vcmp.eq.s32.totalorder %v1294_v45, %v6797_v54 }
 0x1d6   : > { %5817 = vmatmul.msk.f32.gmra.mxu0 %vm1409_vm2, %v5753_v60  ;;  %v1920_v53 = vsel %vm1907_vm3, %v7183_v52, 0.0  ;;  %5840 = vmatmul.msk.f32.gmra.mxu3 %vm1409_vm2, %v5776_v33  ;;  %v5781_v55 = vsel %vm1336_vm1, 1.0, %v10043_v58 }
 0x1d7   : > { %1921 = vadd.xlane.f32.xlu1 %v1920_v53 }
 0x1d9   : > { %v7194_v56 = vpop.f32.mrf.mxu3 }
 0x1da   : > { %v7200_v57 = vmul.f32 %v7194_v56, %v7044_v28  ;;  %v1816_v61 = vsub.f32 %v7044_v28, %v7194_v56 }
 0x1db   : > { %v7205_v63 = vpop.f32.mrf.mxu0 }
 0x1dc   : > { %10163 = vst [vmem:[#allocation25_spill] sm:$0xff] %v7200_v57  ;;  %v7207_v0 = vmul.f32 %v1816_v61, %v1816_v61  ;;  %3011 = vmatmul.f32.gmra.mxu2 %v7205_v63  ;;  %v2403_v28 = vsel %vm1907_vm3, %v7200_v57, 0.0  ;;  %v1303_v12 = vpop.permute.xlu1 %1302 }
 0x1dd   : > { %3553 = vst.msk [vmem:[%s7131_s9 + $0x28] sm:$0xff] %vm1907_vm3, %v1816_v61  ;;  %vm1339_vm6 = vcmp.eq.s32.totalorder %v1303_v12, %v6797_v54 }
 0x1de   : > { %5818 = vmatmul.msk.f32.gmra.mxu0 %vm1409_vm2, %v5754_v1  ;;  %v1923_v2 = vsel %vm1907_vm3, %v7207_v0, 0.0  ;;  %5841 = vmatmul.msk.f32.gmra.mxu3 %vm1409_vm2, %v5777_v59  ;;  %v1297_v1 = vpop.permute.xlu2 %1296 }
 0x1df   : > { %2404 = vadd.xlane.f32.xlu1 %v2403_v28  ;;  %1924 = vadd.xlane.f32.xlu2 %v1923_v2  ;;  %vm1337_vm4 = vcmp.eq.s32.totalorder %v1297_v1, %v6797_v54 }
 0x1e1   : > { %v7220_v5 = vpop.f32.mrf.mxu3 }
 0x1e2   : > { %v1817_v7 = vsub.f32 %v7054_v39, %v7220_v5  ;;  %v7229_v8 = vmul.f32 %v7220_v5, %v7054_v39 }
 0x1e3   : > { %v7231_v3 = vpop.f32.mrf.mxu0 }
 0x1e4   : > { %v7233_v9 = vmul.f32 %v1817_v7, %v1817_v7  ;;  %3554 = vst.msk [vmem:[%s7131_s9 + $0x30] sm:$0xff] %vm1907_vm3, %v1817_v7  ;;  %3014 = vmatmul.f32.gmra.mxu2 %v7231_v3  ;;  %v2406_v39 = vsel %vm1907_vm3, %v7229_v8, 0.0 }
 0x1e6   : > { %10164 = vst [vmem:[#allocation26_spill] sm:$0xff] %v7233_v9  ;;  %5819 = vmatmul.msk.f32.gmra.mxu0 %vm1409_vm2, %v5755_v10  ;;  %v1926_v11 = vsel %vm1907_vm3, %v7233_v9, 0.0  ;;  %5842 = vmatmul.msk.f32.gmra.mxu3 %vm1409_vm2, %v5778_v62  ;;  %v5782_v10 = vsel %vm1337_vm4, 1.0, %v10043_v58 }
 0x1e7   : > { %1927 = vadd.xlane.f32.xlu0 %v1926_v11  ;;  %2407 = vadd.xlane.f32.xlu2 %v2406_v39  ;;  %v1300_v11 = vpop.permute.xlu0 %1299 }
 0x1e8   : > { %vm1338_vm5 = vcmp.eq.s32.totalorder %v1300_v11, %v6797_v54 }
 0x1e9   : > { %v7246_v14 = vpop.f32.mrf.mxu3 }
 0x1ea   : > { %v7252_v15 = vmul.f32 %v7246_v14, %v7064_v38  ;;  %v1818_v16 = vsub.f32 %v7064_v38, %v7246_v14 }
 0x1eb   : > { %v7257_v17 = vpop.f32.mrf.mxu0 }
 0x1ec   : > { %v7259_v21 = vmul.f32 %v1818_v16, %v1818_v16  ;;  %3555 = vst.msk [vmem:[%s7131_s9 + $0x38] sm:$0xff] %vm1907_vm3, %v1818_v16  ;;  %3017 = vmatmul.f32.gmra.mxu2 %v7257_v17  ;;  %v2409_v38 = vsel %vm1907_vm3, %v7252_v15, 0.0 }
 0x1ee   : > { %5820 = vmatmul.msk.f32.gmra.mxu0 %vm1409_vm2, %v5756_v22  ;;  %v1929_v50 = vsel %vm1907_vm3, %v7259_v21, 0.0  ;;  %5843 = vmatmul.msk.f32.gmra.mxu3 %vm1409_vm2, %v5779_v6 }
 0x1ef   : > { %2410 = vadd.xlane.f32.xlu0 %v2409_v38  ;;  %1930 = vadd.xlane.f32.xlu1 %v1929_v50  ;;  %v5783_v38 = vsel %vm1338_vm5, 1.0, %v10043_v58 }
 0x1f1   : > { %v7272_v24 = vpop.f32.mrf.mxu3 }
 0x1f2   : > { %10165 = vst [vmem:[#allocation27_spill] sm:$0xff] %v7272_v24  ;;  %v1819_v27 = vsub.f32 %v7074_v36, %v7272_v24  ;;  %v7279_v31 = vmul.f32 %v7272_v24, %v7074_v36 }
 0x1f3   : > { %v7281_v35 = vpop.f32.mrf.mxu0 }
 0x1f4   : > { %v7283_v19 = vmul.f32 %v1819_v27, %v1819_v27  ;;  %3556 = vst.msk [vmem:[%s7131_s9 + $0x40] sm:$0xff] %vm1907_vm3, %v1819_v27  ;;  %3020 = vmatmul.f32.gmra.mxu2 %v7281_v35  ;;  %v2412_v36 = vsel %vm1907_vm3, %v7279_v31, 0.0 }
 0x1f6   : > { %10166 = vst [vmem:[#allocation28_spill] sm:$0xff] %v7283_v19  ;;  %v1932_v37 = vsel %vm1907_vm3, %v7283_v19, 0.0  ;;  %5844 = vmatmul.msk.f32.gmra.mxu3 %vm1409_vm2, %v5780_v49 }
 0x1f7   : > { %1933 = vadd.xlane.f32.xlu2 %v1932_v37  ;;  %2413 = vadd.xlane.f32.xlu1 %v2412_v36 }
 0x1f9   : > { %v7294_v47 = vpop.f32.mrf.mxu3 }
 0x1fa   : > { %10167 = vst [vmem:[#allocation29_spill] sm:$0xff] %v7294_v47  ;;  %v1820_v48 = vsub.f32 %v7084_v43, %v7294_v47  ;;  %v7300_v60 = vmul.f32 %v7294_v47, %v7084_v43 }
 0x1fb   : > { %v7305_v33 = vpop.f32.mrf.mxu0 }
 0x1fc   : > { %3557 = vst.msk [vmem:[%s7131_s9 + $0x48] sm:$0xff] %vm1907_vm3, %v1820_v48  ;;  %v7307_v53 = vmul.f32 %v1820_v48, %v1820_v48  ;;  %3023 = vmatmul.f32.gmra.mxu2 %v7305_v33  ;;  %v2415_v61 = vsel %vm1907_vm3, %v7300_v60, 0.0  ;;  %v5784_v48 = vsel %vm1339_vm6, 1.0, %v10043_v58 }
 0x1fe   : > { %v1935_v43 = vsel %vm1907_vm3, %v7307_v53, 0.0  ;;  %5845 = vmatmul.msk.f32.gmra.mxu3 %vm1409_vm2, %v5781_v55 }
 0x1ff   : > { %2416 = vadd.xlane.f32.xlu2 %v2415_v61  ;;  %1936 = vadd.xlane.f32.xlu0 %v1935_v43  ;;  %v7379_v61 = vpop.f32.mrf.mxu2  ;;  %v1306_v43 = vpop.permute.xlu2 %1305 }
 0x200   : > { %10171 = vst [vmem:[#allocation33_spill] sm:$0xff] %v7379_v61  ;;  %vm1340_vm7 = vcmp.eq.s32.totalorder %v1306_v43, %v6797_v54 }
 0x201   : > { %v7316_v59 = vpop.f32.mrf.mxu3  ;;  %v5785_v11 = vsel %vm1340_vm7, 1.0, %v10043_v58 }
 0x202   : > { %10168 = vst [vmem:[#allocation30_spill] sm:$0xff] %v7316_v59  ;;  %v1821_v28 = vsub.f32 %v7094_v42, %v7316_v59  ;;  %v7323_v2 = vmul.f32 %v7316_v59, %v7094_v42 }
 0x203   : > { %v7327_v4 = vpop.f32.mrf.mxu0 }
 0x204   : > { %3558 = vst.msk [vmem:[%s7131_s9 + $0x50] sm:$0xff] %vm1907_vm3, %v1821_v28  ;;  %v7329_v7 = vmul.f32 %v1821_v28, %v1821_v28  ;;  %3026 = vmatmul.f32.gmra.mxu2 %v7327_v4  ;;  %v2418_v42 = vsel %vm1907_vm3, %v7323_v2, 0.0 }
 0x206   : > { %v1938_v62 = vsel %vm1907_vm3, %v7329_v7, 0.0  ;;  %5846 = vmatmul.msk.f32.gmra.mxu3 %vm1409_vm2, %v5782_v10 }
 0x207   : > { %1939 = vadd.xlane.f32.xlu1 %v1938_v62  ;;  %2419 = vadd.xlane.f32.xlu0 %v2418_v42 }
 0x209   : > { %v7338_v39 = vpop.f32.mrf.mxu3 }
 0x20a   : > { %10169 = vst [vmem:[#allocation31_spill] sm:$0xff] %v7338_v39  ;;  %v1822_v13 = vsub.f32 %v7104_v41, %v7338_v39  ;;  %v7344_v16 = vmul.f32 %v7338_v39, %v7104_v41 }
 0x20b   : > { %v7349_v22 = vpop.f32.mrf.mxu0 }
 0x20c   : > { %3559 = vst.msk [vmem:[%s7131_s9 + $0x58] sm:$0xff] %vm1907_vm3, %v1822_v13  ;;  %v7351_v6 = vmul.f32 %v1822_v13, %v1822_v13  ;;  %3029 = vmatmul.f32.gmra.mxu2 %v7349_v22  ;;  %v2421_v50 = vsel %vm1907_vm3, %v7344_v16, 0.0 }
 0x20e   : > { %v1941_v41 = vsel %vm1907_vm3, %v7351_v6, 0.0  ;;  %5847 = vmatmul.msk.f32.gmra.mxu3 %vm1409_vm2, %v5783_v38  ;;  %v1309_v38 = vpop.permute.xlu0 %1308 }
 0x20f   : > { %2422 = vadd.xlane.f32.xlu1 %v2421_v50  ;;  %1942 = vadd.xlane.f32.xlu2 %v1941_v41  ;;  %v7406_v50 = vpop.f32.mrf.mxu2  ;;  %vm1341_vm8 = vcmp.eq.s32.totalorder %v1309_v38, %v6797_v54 }
 0x210   : > { %10173 = vst [vmem:[#allocation35_spill] sm:$0xff] %v7406_v50  ;;  %v5786_v43 = vsel %vm1341_vm8, 1.0, %v10043_v58 }
 0x211   : > { %v7360_v27 = vpop.f32.mrf.mxu3 }
 0x212   : > { %10170 = vst [vmem:[#allocation32_spill] sm:$0xff] %v7360_v27  ;;  %v1823_v49 = vsub.f32 %v7123_v20, %v7360_v27  ;;  %v7367_v37 = vmul.f32 %v7360_v27, %v7123_v20 }
 0x213   : > { %v7371_v36 = vpop.f32.mrf.mxu0 }
 0x214   : > { %3560 = vst.msk [vmem:[%s7131_s9 + $0x60] sm:$0xff] %vm1907_vm3, %v1823_v49  ;;  %v7373_v45 = vmul.f32 %v1823_v49, %v1823_v49  ;;  %3032 = vmatmul.f32.gmra.mxu2 %v7371_v36  ;;  %v2424_v20 = vsel %vm1907_vm3, %v7367_v37, 0.0 }
 0x216   : > { %v1944_v55 = vsel %vm1907_vm3, %v7373_v45, 0.0  ;;  %5848 = vmatmul.msk.f32.gmra.mxu3 %vm1409_vm2, %v5784_v48 }
 0x217   : > { %1945 = vadd.xlane.f32.xlu0 %v1944_v55  ;;  %2425 = vadd.xlane.f32.xlu2 %v2424_v20  ;;  %v2836_v20 = vld [vmem:[%s10175_s0 + $0x78] sm:$0xff] }
 0x218   : > { %2837 = vmatpush.msra.mxu1 %v2836_v20  ;;  %5919 = vmatpush.msrb.mxu3 %v2836_v20  ;;  %v2833_v20 = vld [vmem:[%s10176_s7 + $0x60] sm:$0xff] }
 0x219   : > { %v7384_v1 = vpop.f32.mrf.mxu3 }
 0x21a   : > { %10172 = vst [vmem:[#allocation34_spill] sm:$0xff] %v7384_v1  ;;  %v1824_v28 = vsub.f32 %v7153_v32, %v7384_v1  ;;  %v7390_v10 = vmul.f32 %v7384_v1, %v7153_v32 }
 0x21b   : > { %v7395_v62 = vpop.f32.mrf.mxu0 }
 0x21c   : > { %3561 = vst.msk [vmem:[%s7131_s9 + $0x68] sm:$0xff] %vm1907_vm3, %v1824_v28  ;;  %v7397_v42 = vmul.f32 %v1824_v28, %v1824_v28  ;;  %3035 = vmatmul.f32.gmra.mxu2 %v7395_v62  ;;  %v2427_v13 = vsel %vm1907_vm3, %v7390_v10, 0.0  ;;  %v2835_v28 = vld [vmem:[%s10176_s7 + $0x70] sm:$0xff] }
 0x21d   : > { %2838 = vmatpush.msra.mxu1 %v2835_v28  ;;  %5920 = vmatpush.msrb.mxu3 %v2835_v28 }
 0x21e   : > { %v1947_v32 = vsel %vm1907_vm3, %v7397_v42, 0.0  ;;  %5849 = vmatmul.msk.f32.gmra.mxu3 %vm1409_vm2, %v5785_v11 }
 0x21f   : > { %2428 = vadd.xlane.f32.xlu0 %v2427_v13  ;;  %1948 = vadd.xlane.f32.xlu1 %v1947_v32  ;;  %v2834_v13 = vld [vmem:[%s10176_s7 + $0x68] sm:$0xff] }
 0x220   : > { %2839 = vmatpush.msra.mxu1 %v2834_v13  ;;  %5921 = vmatpush.msrb.mxu3 %v2834_v13  ;;  %v2831_v13 = vld [vmem:[%s10176_s7 + $0x50] sm:$0xff] }
 0x221   : > { %v7408_v41 = vpop.f32.mrf.mxu3 }
 0x222   : > { %10174 = vst [vmem:[#allocation36_spill] sm:$0xff] %v7408_v41  ;;  %v1825_v12 = vsub.f32 %v7177_v46, %v7408_v41  ;;  %v7415_v49 = vmul.f32 %v7408_v41, %v7177_v46  ;;  %2840 = vmatpush.msra.mxu1 %v2833_v20  ;;  %5922 = vmatpush.msrb.mxu3 %v2833_v20  ;;  %v2830_v20 = vld [vmem:[%s10176_s7 + $0x48] sm:$0xff] }
 0x223   : > { %v7419_v48 = vpop.f32.mrf.mxu0 }
 0x224   : > { %3562 = vst.msk [vmem:[%s7131_s9 + $0x70] sm:$0xff] %vm1907_vm3, %v1825_v12  ;;  %v7421_v55 = vmul.f32 %v1825_v12, %v1825_v12  ;;  %3038 = vmatmul.f32.gmra.mxu2 %v7419_v48  ;;  %v2430_v46 = vsel %vm1907_vm3, %v7415_v49, 0.0  ;;  %v7447_v12 = vpop.f32.mrf.mxu2 }
 0x225   : > { %10178 = vst [vmem:[#allocation38_spill] sm:$0xff] %v7447_v12 }
 0x226   : > { %v1950_v54 = vsel %vm1907_vm3, %v7421_v55, 0.0  ;;  %5850 = vmatmul.msk.f32.gmra.mxu3 %vm1409_vm2, %v5786_v43 }
 0x227   : > { %1951 = vadd.xlane.f32.xlu2 %v1950_v54  ;;  %2431 = vadd.xlane.f32.xlu1 %v2430_v46 }
 0x229   : > { %v7436_v11 = vpop.f32.mrf.mxu3 }
 0x22a   : > { %10177 = vst [vmem:[#allocation37_spill] sm:$0xff] %v7436_v11  ;;  %v1826_v32 = vsub.f32 %v7205_v63, %v7436_v11  ;;  %v7445_v38 = vmul.f32 %v7436_v11, %v7205_v63  ;;  %v2832_v63 = vld [vmem:[%s10176_s7 + $0x58] sm:$0xff] }
 0x22b   : > { %v7454_v43 = vpop.f32.mrf.mxu0  ;;  %2841 = vmatpush.msra.mxu1 %v2832_v63  ;;  %5923 = vmatpush.msrb.mxu3 %v2832_v63 }
 0x22c   : > { %3563 = vst.msk [vmem:[%s7131_s9 + $0x78] sm:$0xff] %vm1907_vm3, %v1826_v32  ;;  %v7456_v54 = vmul.f32 %v1826_v32, %v1826_v32  ;;  %3041 = vmatmul.f32.gmra.mxu2 %v7454_v43  ;;  %v2433_v46 = vsel %vm1907_vm3, %v7445_v38, 0.0  ;;  %v7489_v61 = vpop.f32.mrf.mxu2 }
 0x22d   : > { %2842 = vmatpush.msra.mxu1 %v2831_v13  ;;  %5924 = vmatpush.msrb.mxu3 %v2831_v13  ;;  %10182 = vst [vmem:[#allocation42_spill] sm:$0xff] %v7489_v61  ;;  %v2826_v61 = vld [vmem:[%s10176_s7 + $0x28] sm:$0xff] }
 0x22e   : > { %v1953_v28 = vsel %vm1907_vm3, %v7456_v54, 0.0 }
 0x22f   : > { %2434 = vadd.xlane.f32.xlu2 %v2433_v46  ;;  %1954 = vadd.xlane.f32.xlu0 %v1953_v28  ;;  %v2829_v46 = vld [vmem:[%s10176_s7 + $0x40] sm:$0xff] }
 0x230   : > { %2843 = vmatpush.msra.mxu1 %v2830_v20  ;;  %5925 = vmatpush.msrb.mxu3 %v2830_v20 }
 0x231   : > { %v7469_v32 = vpop.f32.mrf.mxu3 }
 0x232   : > { %10179 = vst [vmem:[#allocation39_spill] sm:$0xff] %v7469_v32  ;;  %v1827_v58 = vsub.f32 %v7231_v3, %v7469_v32  ;;  %v7478_v50 = vmul.f32 %v7469_v32, %v7231_v3  ;;  %2844 = vmatpush.msra.mxu1 %v2829_v46  ;;  %v2828_v3 = vld [vmem:[%s10176_s7 + $0x38] sm:$0xff]  ;;  %5926 = vmatpush.msrb.mxu3 %v2829_v46 }
 0x233   : > { %v7485_v63 = vpop.f32.mrf.mxu0 }
 0x234   : > { %10180 = vst [vmem:[#allocation40_spill] sm:$0xff] %v7478_v50  ;;  %v7487_v28 = vmul.f32 %v1827_v58, %v1827_v58  ;;  %3044 = vmatmul.f32.gmra.mxu2 %v7485_v63  ;;  %v2436_v13 = vsel %vm1907_vm3, %v7478_v50, 0.0  ;;  %2845 = vmatpush.msra.mxu1 %v2828_v3 }
 0x235   : > { %3564 = vst.msk [vmem:[%s7131_s9 + $0x80] sm:$0xff] %vm1907_vm3, %v1827_v58  ;;  %v2827_v58 = vld [vmem:[%s10176_s7 + $0x30] sm:$0xff]  ;;  %5927 = vmatpush.msrb.mxu3 %v2828_v3 }
 0x236   : > { %10181 = vst [vmem:[#allocation41_spill] sm:$0xff] %v7487_v28  ;;  %v1956_v12 = vsel %vm1907_vm3, %v7487_v28, 0.0  ;;  %2846 = vmatpush.msra.mxu1 %v2827_v58 }
 0x237   : > { %2437 = vadd.xlane.f32.xlu0 %v2436_v13  ;;  %1957 = vadd.xlane.f32.xlu1 %v1956_v12  ;;  %v2825_v12 = vld [vmem:[%s10176_s7 + $0x20] sm:$0xff] }
 0x238   : > { %2847 = vmatpush.msra.mxu1 %v2826_v61  ;;  %5928 = vmatpush.msrb.mxu3 %v2827_v58  ;;  %v2396_v11 = vpop.xlane.xlu1 %2395  ;;  %v2358_v58 = vmul.f32 2.0, %v7119_v51 }
 0x239   : > { %v7502_v20 = vpop.f32.mrf.mxu3 }
 0x23a   : > { %10183 = vst [vmem:[#allocation43_spill] sm:$0xff] %v7502_v20  ;;  %v1828_v32 = vsub.f32 %v7257_v17, %v7502_v20  ;;  %v7511_v46 = vmul.f32 %v7502_v20, %v7257_v17  ;;  %2848 = vmatpush.msra.mxu1 %v2825_v12  ;;  %5929 = vmatpush.msrb.mxu3 %v2826_v61  ;;  %v2824_v17 = vld [vmem:[%s10176_s7 + $0x18] sm:$0xff]  ;;  %v2823_v61 = vld [vmem:[%s10176_s7 + $0x10] sm:$0xff] }
 0x23b   : > { %v7518_v3 = vpop.f32.mrf.mxu0  ;;  %v7536_v41 = vsub.f32 %v2358_v58, %v2396_v11  ;;  %v2821_v11 = vld [vmem:[%s10176_s7] sm:$0xff] }
 0x23c   : > { %10184 = vst [vmem:[#allocation44_spill] sm:$0xff] %v7511_v46  ;;  %v7520_v13 = vmul.f32 %v1828_v32, %v1828_v32  ;;  %3047 = vmatmul.f32.gmra.mxu2 %v7518_v3  ;;  %v2439_v20 = vsel %vm1907_vm3, %v7511_v46, 0.0  ;;  %2849 = vmatpush.msra.mxu1 %v2824_v17 }
 0x23d   : > { %3565 = vst.msk [vmem:[%s7131_s9 + $0x88] sm:$0xff] %vm1907_vm3, %v1828_v32  ;;  %5930 = vmatpush.msrb.mxu3 %v2825_v12  ;;  %v7531_v32 = vpop.f32.mrf.mxu2  ;;  %v2822_v12 = vld [vmem:[%s10176_s7 + $0x8] sm:$0xff]  ;;  %vm2550_vm2 = vcmp.lt.f32.partialorder %v7536_v41, 0.0  ;;  %vm2518_vm9 = vcmp.gt.f32.partialorder %v7536_v41, 0.0 }
 0x23e   : > { %10185 = vst [vmem:[#allocation45_spill] sm:$0xff] %v7520_v13  ;;  %v1959_v19 = vsel %vm1907_vm3, %v7520_v13, 0.0  ;;  %2850 = vmatpush.msra.mxu1 %v2823_v61 }
 0x23f   : > { %10186 = vst [vmem:[#allocation46_spill] sm:$0xff] %v7531_v32  ;;  %2440 = vadd.xlane.f32.xlu1 %v2439_v20  ;;  %1960 = vadd.xlane.f32.xlu2 %v1959_v19  ;;  %v2359_v32 = vmul.f32 2.0, %v7149_v30 }
 0x240   : > { %v2399_v51 = vpop.xlane.xlu2 %2398  ;;  %5931 = vmatpush.msrb.mxu3 %v2824_v17  ;;  %2851 = vmatpush.msra.mxu1 %v2822_v12  ;;  %v2646_v17 = vand.u32 2147483647, %v7536_v41 }
 0x241   : > { %v7538_v9 = vpop.f32.mrf.mxu3  ;;  %v7554_v58 = vsub.f32 %v2359_v32, %v2399_v51 }
 0x242   : > { %10187 = vst [vmem:[#allocation47_spill] sm:$0xff] %v7538_v9  ;;  %v1829_v19 = vsub.f32 %v7281_v35, %v7538_v9  ;;  %v7548_v20 = vmul.f32 %v7538_v9, %v7281_v35  ;;  %5932 = vmatpush.msrb.mxu3 %v2823_v61  ;;  %2852 = vmatpush.msra.mxu1 %v2821_v11  ;;  %v1916_v35 = vpop.xlane.xlu0 %1915  ;;  %v1877_v61 = vmul.f32 2.0, %v7127_v23  ;;  %v2678_v51 = vadd.f32 1.0, %v2646_v17 }
 0x243   : > { %v7558_v30 = vpop.f32.mrf.mxu0  ;;  %vm2551_vm10 = vcmp.lt.f32.partialorder %v7554_v58, 0.0  ;;  %vm2519_vm11 = vcmp.gt.f32.partialorder %v7554_v58, 0.0 }
 0x244   : > { %10188 = vst [vmem:[#allocation48_spill] sm:$0xff] %v7548_v20  ;;  %v7560_v1 = vmul.f32 %v1829_v19, %v1829_v19  ;;  %5933 = vmatpush.msrb.mxu3 %v2822_v12  ;;  %3050 = vmatmul.f32.gmra.mxu2 %v7558_v30  ;;  %v2442_v9 = vsel %vm1907_vm3, %v7548_v20, 0.0  ;;  %v2647_v12 = vand.u32 2147483647, %v7554_v58  ;;  %v1878_v20 = vmul.f32 2.0, %v7164_v40 }
 0x245   : > { %3566 = vst.msk [vmem:[%s7131_s9 + $0x90] sm:$0xff] %vm1907_vm3, %v1829_v19  ;;  %v7568_v19 = vsub.f32 %v1877_v61, %v1916_v35  ;;  %v7571_v27 = vpop.f32.mrf.mxu2  ;;  %6051 = vlog2.f32 %v2678_v51 }
 0x246   : > { %10189 = vst [vmem:[#allocation49_spill] sm:$0xff] %v7560_v1  ;;  %v1962_v32 = vsel %vm1907_vm3, %v7560_v1, 0.0  ;;  %5934 = vmatpush.msrb.mxu3 %v2821_v11 }
 0x247   : > { %2443 = vadd.xlane.f32.xlu2 %v2442_v9  ;;  %1963 = vadd.xlane.f32.xlu0 %v1962_v32  ;;  %10190 = vst [vmem:[#allocation50_spill] sm:$0xff] %v7571_v27  ;;  %v2166_v11 = vand.u32 2147483647, %v7568_v19  ;;  %v2679_v9 = vadd.f32 1.0, %v2647_v12  ;;  %vm2070_vm12 = vcmp.lt.f32.partialorder %v7568_v19, 0.0  ;;  %vm2038_vm13 = vcmp.gt.f32.partialorder %v7568_v19, 0.0 }
 0x248   : > { %v1919_v23 = vpop.xlane.xlu2 %1918 }
 0x249   : > { %v7573_v57 = vpop.f32.mrf.mxu3  ;;  %v7585_v61 = vsub.f32 %v1878_v20, %v1919_v23  ;;  %v2198_v40 = vadd.f32 1.0, %v2166_v11  ;;  %6053 = vlog2.f32 %v2679_v9 }
 0x24a   : > { %v1830_v39 = vsub.f32 %v7305_v33, %v7573_v57  ;;  %v7591_v12 = vpop.xlane.xlu1 %1921 }
 0x24b   : > { %v7581_v17 = vpop.f32.mrf.mxu0  ;;  %v2167_v51 = vand.u32 2147483647, %v7585_v61  ;;  %v6052_v1 = vpop.eup %6051  ;;  %6055 = vlog2.f32 %v2198_v40  ;;  %vm2071_vm14 = vcmp.lt.f32.partialorder %v7585_v61, 0.0  ;;  %vm2039_vm15 = vcmp.gt.f32.partialorder %v7585_v61, 0.0 }
 0x24c   : > { %3567 = vst.msk [vmem:[%s7131_s9 + $0x98] sm:$0xff] %vm1907_vm3, %v1830_v39  ;;  %v7583_v35 = vmul.f32 %v1830_v39, %v1830_v39  ;;  %3053 = vmatmul.f32.gmra.mxu2 %v7581_v17  ;;  %v7596_v39 = vpop.xlane.xlu0 %2401  ;;  %v2713_v59 = vmul.f32 0.6931472, %v6052_v1 }
 0x24d   : > { %10191 = vst [vmem:[#allocation51_spill] sm:$0xff] %v7581_v17  ;;  %v7602_v23 = vpop.f32.mrf.mxu2  ;;  %v2199_v9 = vadd.f32 1.0, %v2167_v51 }
 0x24e   : > { %10192 = vst [vmem:[#allocation52_spill] sm:$0xff] %v7583_v35  ;;  %v1965_v32 = vsel %vm1907_vm3, %v7583_v35, 0.0 }
 0x24f   : > { %1966 = vadd.xlane.f32.xlu1 %v1965_v32  ;;  %10193 = vst [vmem:[#allocation53_spill] sm:$0xff] %v7602_v23  ;;  %v10194_v32 = vmov 0.0   ;;  %v6054_v13 = vpop.eup %6053  ;;  %6057 = vlog2.f32 %v2199_v9 }
 0x250   : > { %v2582_v35 = vsel %vm2550_vm2, -1.0, %v10194_v32  ;;  %v2583_v47 = vsel %vm2551_vm10, -1.0, %v10194_v32  ;;  %v2715_v41 = vmul.f32 0.6931472, %v6054_v13  ;;  %v2102_v9 = vsel %vm2070_vm12, -1.0, %v10194_v32 }
 0x251   : > { %v7593_v27 = vpop.f32.mrf.mxu3  ;;  %v2614_v40 = vsel %vm2518_vm9, 1.0, %v2582_v35  ;;  %v6056_v51 = vpop.eup %6055 }
 0x252   : > { %v7600_v20 = vsub.f32 %v7327_v4, %v7593_v27  ;;  %v7613_v46 = vpop.xlane.xlu2 %1924  ;;  %v2774_v23 = vmul.f32 %v2713_v59, %v2614_v40  ;;  %v7622_v50 = vpop.xlane.xlu1 %2404  ;;  %v2615_v59 = vsel %vm2519_vm11, 1.0, %v2583_v47  ;;  %v2233_v40 = vmul.f32 0.6931472, %v6056_v51 }
 0x253   : > { %v7607_v11 = vpop.f32.mrf.mxu0  ;;  %10196 = vst [vmem:[#allocation55_spill] sm:$0xff] %v7622_v50  ;;  %v2775_v13 = vmul.f32 %v2715_v41, %v2615_v59  ;;  %v1882_v59 = vmul.f32 2.0, %v7259_v21  ;;  %v2103_v51 = vsel %vm2071_vm14, -1.0, %v10194_v32 }
 0x254   : > { %3568 = vst.msk [vmem:[%s7131_s9 + $0xa0] sm:$0xff] %vm1907_vm3, %v7600_v20  ;;  %3056 = vmatmul.f32.gmra.mxu2 %v7607_v11 }
 0x255   : > { %v7630_v35 = vpop.f32.mrf.mxu2 }
 0x256   : > { %10199 = vst [vmem:[#allocation58_spill] sm:$0xff] %v7630_v35  ;;  %v2363_v35 = vmul.f32 2.0, %v7252_v15 }
 0x259   : > { %v7618_v28 = vpop.f32.mrf.mxu3 }
 0x25a   : > { %v7620_v1 = vpop.xlane.xlu0 %1927  ;;  %v7626_v24 = vsub.f32 %v7349_v22, %v7618_v28  ;;  %v7639_v47 = vpop.xlane.xlu2 %2407 }
 0x25b   : > { %10195 = vst [vmem:[#allocation54_spill] sm:$0xff] %v7620_v1  ;;  %3300 = vperm.xlu0 %6048, %v2774_v23   ;;  %v7628_v58 = vpop.f32.mrf.mxu0  ;;  %v6058_v1 = vpop.eup %6057  ;;  %v2134_v23 = vsel %vm2038_vm13, 1.0, %v2102_v9 }
 0x25c   : > { %10197 = vst [vmem:[#allocation56_spill] sm:$0xff] %v7626_v24  ;;  %3059 = vmatmul.f32.gmra.mxu2 %v7628_v58  ;;  %v2294_v19 = vmul.f32 %v2233_v40, %v2134_v23  ;;  %v2235_v50 = vmul.f32 0.6931472, %v6058_v1  ;;  %v2135_v1 = vsel %vm2039_vm15, 1.0, %v2103_v51  ;;  %v2364_v40 = vmul.f32 2.0, %v7279_v31 }
 0x25d   : > { %10198 = vst [vmem:[#allocation57_spill] sm:$0xff] %v7628_v58  ;;  %v2365_v31 = vmul.f32 2.0, %v7300_v60  ;;  %v1885_v60 = vmul.f32 2.0, %v7329_v7 }
 0x25e   : > { %3569 = vst.msk [vmem:[%s7131_s9 + $0xa8] sm:$0xff] %vm1907_vm3, %v7626_v24 }
 0x25f   : > { %3305 = vperm.xlu2 %6050, %v2775_v13  }
 0x261   : > { %v7643_v24 = vpop.f32.mrf.mxu3 }
 0x262   : > { %v2411_v41 = vpop.xlane.xlu0 %2410  ;;  %v7649_v13 = vsub.f32 %v7371_v36, %v7643_v24  ;;  %v1931_v58 = vpop.xlane.xlu1 %1930 }
 0x263   : > { %v7651_v9 = vsub.f32 %v2363_v35, %v2411_v41  ;;  %3075 = vperm.xlu0 %6048, %v2294_v19   ;;  %v7653_v15 = vsub.f32 %v1882_v59, %v1931_v58  ;;  %v7655_v61 = vpop.f32.mrf.mxu0  ;;  %v2295_v35 = vmul.f32 %v2235_v50, %v2135_v1 }
 0x264   : > { %10200 = vst [vmem:[#allocation59_spill] sm:$0xff] %v7655_v61  ;;  %v7662_v21 = vsub.f32 %v6994_v25, %v7655_v61  ;;  %2853 = vmatmul.f32.vlgmr.msra.gmra.mxu1 %v7655_v61 }
 0x265   : > { %3570 = vst.msk [vmem:[%s7131_s9 + $0xb0] sm:$0xff] %vm1907_vm3, %v7649_v13  ;;  %vm2075_vm15 = vcmp.lt.f32.partialorder %v7653_v15, 0.0 }
 0x266   : > { %10201 = vst [vmem:[#allocation60_spill] sm:$0xff] %v7662_v21 }
 0x267   : > { %3548 = vst.msk [vmem:[%s7131_s9] sm:$0xff] %vm1907_vm3, %v7662_v21 }
 0x268   : > { %3080 = vperm.xlu1 %6049, %v2295_v35  }
 0x269   : > { %v7668_v58 = vpop.f32.mrf.mxu3 }
 0x26a   : > { %v7671_v23 = vpop.xlane.xlu2 %1933  ;;  %v7675_v19 = vsub.f32 %v7395_v62, %v7668_v58  ;;  %v2414_v41 = vpop.xlane.xlu1 %2413 }
 0x26b   : > { %v7677_v59 = vsub.f32 %v2364_v40, %v2414_v41  ;;  %v7679_v51 = vpop.f32.mrf.mxu0  ;;  %v1884_v40 = vmul.f32 2.0, %v7307_v53  ;;  %v2366_v53 = vmul.f32 2.0, %v7323_v2 }
 0x26c   : > { %10202 = vst [vmem:[#allocation61_spill] sm:$0xff] %v7679_v51  ;;  %v7686_v50 = vsub.f32 %v7004_v26, %v7679_v51  ;;  %2856 = vmatmul.f32.gmra.mxu1 %v7679_v51 }
 0x26d   : > { %3571 = vst.msk [vmem:[%s7131_s9 + $0xb8] sm:$0xff] %vm1907_vm3, %v7675_v19 }
 0x26e   : > { %10203 = vst [vmem:[#allocation62_spill] sm:$0xff] %v7686_v50 }
 0x26f   : > { %3549 = vst.msk [vmem:[%s7131_s9 + $0x8] sm:$0xff] %vm1907_vm3, %v7686_v50 }
 0x271   : > { %v7693_v1 = vpop.f32.mrf.mxu3 }
 0x272   : > { %v2417_v35 = vpop.xlane.xlu2 %2416  ;;  %v7698_v41 = vsub.f32 %v7419_v48, %v7693_v1  ;;  %v1937_v26 = vpop.xlane.xlu0 %1936 }
 0x273   : > { %v7700_v21 = vsub.f32 %v2365_v31, %v2417_v35  ;;  %v7702_v61 = vsub.f32 %v1884_v40, %v1937_v26  ;;  %v1886_v40 = vmul.f32 2.0, %v7351_v6 }
 0x274   : > { %3572 = vst.msk [vmem:[%s7131_s9 + $0xc0] sm:$0xff] %vm1907_vm3, %v7698_v41  ;;  %2859 = vmatmul.f32.gmra.mxu1 %v7112_v18  ;;  %v2367_v18 = vmul.f32 2.0, %v7344_v16 }
 0x275   : > { %10204 = vst [vmem:[#allocation63_spill] sm:$0xff] %v7700_v21 }
 0x279   : > { %v7709_v51 = vpop.f32.mrf.mxu3 }
 0x27a   : > { %v1940_v50 = vpop.xlane.xlu1 %1939  ;;  %v7714_v25 = vsub.f32 %v7454_v43, %v7709_v51  ;;  %v2420_v31 = vpop.xlane.xlu0 %2419 }
 0x27b   : > { %v7716_v26 = vsub.f32 %v1885_v60, %v1940_v50  ;;  %v7718_v35 = vsub.f32 %v2366_v53, %v2420_v31  ;;  %v7736_v53 = vmul.f32 %v7600_v20, %v7600_v20  ;;  %v7752_v20 = vmul.f32 %v7573_v57, %v7305_v33 }
 0x27c   : > { %3573 = vst.msk [vmem:[%s7131_s9 + $0xc8] sm:$0xff] %vm1907_vm3, %v7714_v25  ;;  %2862 = vmatmul.f32.gmra.mxu1 %v7142_v29  ;;  %v1879_v29 = vmul.f32 2.0, %v7183_v52  ;;  %v1887_v52 = vmul.f32 2.0, %v7373_v45  ;;  %v7768_v33 = vmul.f32 %v7618_v28, %v7349_v22 }
 0x27d   : > { %10205 = vst [vmem:[#allocation64_spill] sm:$0xff] %v7718_v35  ;;  %v1968_v6 = vsel %vm1907_vm3, %v7736_v53, 0.0  ;;  %v2445_v35 = vsel %vm1907_vm3, %v7752_v20, 0.0 }
 0x27e   : > { %v7746_v16 = vsub.f32 %v1879_v29, %v7591_v12  ;;  %v1880_v12 = vmul.f32 2.0, %v7207_v0  ;;  %v7783_v0 = vmul.f32 %v7593_v27, %v7327_v4 }
 0x280   : > { %vm2072_vm0 = vcmp.lt.f32.partialorder %v7746_v16, 0.0  ;;  %vm2040_vm1 = vcmp.gt.f32.partialorder %v7746_v16, 0.0 }
 0x281   : > { %v7725_v7 = vpop.f32.mrf.mxu3 }
 0x282   : > { %v2423_v2 = vpop.xlane.xlu1 %2422  ;;  %v7730_v21 = vsub.f32 %v7485_v63, %v7725_v7  ;;  %v1943_v60 = vpop.xlane.xlu2 %1942 }
 0x283   : > { %v7732_v50 = vsub.f32 %v2367_v18, %v2423_v2  ;;  %v7739_v31 = vsub.f32 %v1886_v40, %v1943_v60  ;;  %v2168_v18 = vand.u32 2147483647, %v7746_v16 }
 0x284   : > { %3574 = vst.msk [vmem:[%s7131_s9 + $0xd0] sm:$0xff] %vm1907_vm3, %v7730_v21  ;;  %2865 = vmatmul.f32.gmra.mxu1 %v7166_v44  ;;  %v2368_v44 = vmul.f32 2.0, %v7367_v37  ;;  %v7775_v37 = vsub.f32 %v1880_v12, %v7613_v46  ;;  %v2362_v12 = vmul.f32 2.0, %v7229_v8 }
 0x285   : > { %10206 = vst [vmem:[#allocation65_spill] sm:$0xff] %v7732_v50  ;;  %v2200_v22 = vadd.f32 1.0, %v2168_v18 }
 0x286   : > { %v7809_v50 = vsub.f32 %v2362_v12, %v7639_v47  ;;  %v2370_v47 = vmul.f32 2.0, %v7415_v49  ;;  %vm2073_vm4 = vcmp.lt.f32.partialorder %v7775_v37, 0.0  ;;  %vm2041_vm5 = vcmp.gt.f32.partialorder %v7775_v37, 0.0 }
 0x287   : > { %6059 = vlog2.f32 %v2200_v22 }
 0x288   : > { %1969 = vadd.xlane.f32.xlu2 %v1968_v6  ;;  %vm2554_vm8 = vcmp.lt.f32.partialorder %v7809_v50, 0.0  ;;  %vm2522_vm2 = vcmp.gt.f32.partialorder %v7809_v50, 0.0 }
 0x289   : > { %v7756_v2 = vpop.f32.mrf.mxu3 }
 0x28a   : > { %v1946_v40 = vpop.xlane.xlu0 %1945  ;;  %v7762_v60 = vsub.f32 %v7518_v3, %v7756_v2  ;;  %v2426_v29 = vpop.xlane.xlu2 %2425 }
 0x28b   : > { %v7764_v6 = vsub.f32 %v1887_v52, %v1946_v40  ;;  %v7770_v45 = vsub.f32 %v2368_v44, %v2426_v29  ;;  %v2360_v52 = vmul.f32 2.0, %v7172_v34  ;;  %v2451_v44 = vsel %vm1907_vm3, %v7768_v33, 0.0 }
 0x28c   : > { %3575 = vst.msk [vmem:[%s7131_s9 + $0xd8] sm:$0xff] %vm1907_vm3, %v7762_v60  ;;  %2868 = vmatmul.f32.gmra.mxu1 %v7194_v56  ;;  %v2169_v40 = vand.u32 2147483647, %v7775_v37  ;;  %v2369_v56 = vmul.f32 2.0, %v7390_v10  ;;  %v1888_v34 = vmul.f32 2.0, %v7397_v42  ;;  %v10213_v37 = vld [vmem:[#allocation27_spill] sm:$0xff] }
 0x28d   : > { %10207 = vst [vmem:[#allocation66_spill] sm:$0xff] %v7770_v45  ;;  %2446 = vadd.xlane.f32.xlu0 %v2445_v35  ;;  %v7789_v46 = vsub.f32 %v2360_v52, %v7596_v39  ;;  %v2448_v35 = vsel %vm1907_vm3, %v7783_v0, 0.0  ;;  %v6060_v8 = vpop.eup %6059  ;;  %v10223_v45 = vld [vmem:[#allocation45_spill] sm:$0xff] }
 0x28e   : > { %v2201_v22 = vadd.f32 1.0, %v2169_v40 }
 0x28f   : > { %vm2552_vm6 = vcmp.lt.f32.partialorder %v7789_v46, 0.0  ;;  %vm2520_vm7 = vcmp.gt.f32.partialorder %v7789_v46, 0.0 }
 0x290   : > { %2452 = vadd.xlane.f32.xlu2 %v2451_v44  ;;  %v2648_v44 = vand.u32 2147483647, %v7789_v46  ;;  %6061 = vlog2.f32 %v2201_v22 }
 0x291   : > { %v7795_v4 = vpop.f32.mrf.mxu3 }
 0x292   : > { %v2429_v18 = vpop.xlane.xlu0 %2428  ;;  %2449 = vadd.xlane.f32.xlu1 %v2448_v35  ;;  %v7801_v39 = vsub.f32 %v7558_v30, %v7795_v4  ;;  %v1949_v52 = vpop.xlane.xlu1 %1948  ;;  %v2680_v42 = vadd.f32 1.0, %v2648_v44  ;;  %v1889_v35 = vmul.f32 2.0, %v7421_v55  ;;  %v2237_v44 = vmul.f32 0.6931472, %v6060_v8 }
 0x293   : > { %v7803_v29 = vsub.f32 %v2369_v56, %v2429_v18  ;;  %v7805_v10 = vsub.f32 %v1888_v34, %v1949_v52  ;;  %v2650_v56 = vand.u32 2147483647, %v7809_v50  ;;  %v2104_v52 = vsel %vm2072_vm0, -1.0, %v10194_v32  ;;  %v10221_v50 = vld [vmem:[#allocation29_spill] sm:$0xff] }
 0x294   : > { %3576 = vst.msk [vmem:[%s7131_s9 + $0xe0] sm:$0xff] %vm1907_vm3, %v7801_v39  ;;  %2871 = vmatmul.f32.gmra.mxu1 %v7220_v5  ;;  %6063 = vlog2.f32 %v2680_v42  ;;  %v2136_v49 = vsel %vm2040_vm1, 1.0, %v2104_v52  ;;  %vm2043_vm0 = vcmp.gt.f32.partialorder %v7653_v15, 0.0  ;;  %vm2555_vm1 = vcmp.lt.f32.partialorder %v7651_v9, 0.0 }
 0x295   : > { %10208 = vst [vmem:[#allocation67_spill] sm:$0xff] %v7803_v29  ;;  %v2682_v55 = vadd.f32 1.0, %v2650_v56  ;;  %v2296_v29 = vmul.f32 %v2237_v44, %v2136_v49  ;;  %v1890_v56 = vmul.f32 2.0, %v7456_v54 }
 0x296   : > { %v6062_v16 = vpop.eup %6061 }
 0x297   : > { %6065 = vlog2.f32 %v2682_v55  ;;  %v2584_v55 = vsel %vm2552_vm6, -1.0, %v10194_v32  ;;  %vm2047_vm6 = vcmp.gt.f32.partialorder %v7739_v31, 0.0 }
 0x299   : > { %v7819_v40 = vpop.f32.mrf.mxu3 }
 0x29a   : > { %v1952_v18 = vpop.xlane.xlu2 %1951  ;;  %v7824_v5 = vsub.f32 %v7581_v17, %v7819_v40  ;;  %v2432_v34 = vpop.xlane.xlu1 %2431 }
 0x29b   : > { %v7826_v12 = vsub.f32 %v1889_v35, %v1952_v18  ;;  %v7829_v22 = vsub.f32 %v2370_v47, %v2432_v34  ;;  %v2371_v35 = vmul.f32 2.0, %v7445_v38  ;;  %v2105_v47 = vsel %vm2073_vm4, -1.0, %v10194_v32  ;;  %v6064_v18 = vpop.eup %6063 }
 0x29c   : > { %3577 = vst.msk [vmem:[%s7131_s9 + $0xe8] sm:$0xff] %vm1907_vm3, %v7824_v5  ;;  %2874 = vmatmul.f32.gmra.mxu1 %v7246_v14  ;;  %v2239_v14 = vmul.f32 0.6931472, %v6062_v16  ;;  %v2137_v54 = vsel %vm2041_vm5, 1.0, %v2105_v47  ;;  %v2717_v49 = vmul.f32 0.6931472, %v6064_v18 }
 0x29d   : > { %10209 = vst [vmem:[#allocation68_spill] sm:$0xff] %v7829_v22  ;;  %v6066_v16 = vpop.eup %6065  ;;  %v2616_v22 = vsel %vm2520_vm7, 1.0, %v2584_v55  ;;  %v10217_v18 = vld [vmem:[#allocation57_spill] sm:$0xff]  ;;  %vm2523_vm4 = vcmp.gt.f32.partialorder %v7651_v9, 0.0  ;;  %vm2079_vm5 = vcmp.lt.f32.partialorder %v7739_v31, 0.0  ;;  %vm2556_vm7 = vcmp.lt.f32.partialorder %v7677_v59, 0.0 }
 0x29e   : > { %v2297_v44 = vmul.f32 %v2239_v14, %v2137_v54  ;;  %v2776_v46 = vmul.f32 %v2717_v49, %v2616_v22  ;;  %v2586_v14 = vsel %vm2554_vm8, -1.0, %v10194_v32  ;;  %v2721_v54 = vmul.f32 0.6931472, %v6066_v16  ;;  %v10222_v49 = vld [vmem:[#allocation44_spill] sm:$0xff] }
 0x29f   : > { %v2618_v22 = vsel %vm2522_vm2, 1.0, %v2586_v14  ;;  %v2373_v16 = vmul.f32 2.0, %v10222_v49  ;;  %vm2524_vm8 = vcmp.gt.f32.partialorder %v7677_v59, 0.0  ;;  %vm2077_vm2 = vcmp.lt.f32.partialorder %v7702_v61, 0.0 }
 0x2a0   : > { %v2778_v55 = vmul.f32 %v2721_v54, %v2618_v22 }
 0x2a1   : > { %3085 = vperm.xlu0 %6048, %v2296_v29   ;;  %v7838_v8 = vpop.f32.mrf.mxu3 }
 0x2a2   : > { %v2435_v42 = vpop.xlane.xlu2 %2434  ;;  %v7845_v34 = vsub.f32 %v7607_v11, %v7838_v8  ;;  %v1955_v38 = vpop.xlane.xlu0 %1954 }
 0x2a3   : > { %v7847_v29 = vsub.f32 %v2371_v35, %v2435_v42  ;;  %v7849_v52 = vsub.f32 %v1890_v56, %v1955_v38  ;;  %v10214_v35 = vld [vmem:[#allocation40_spill] sm:$0xff]  ;;  %v10215_v56 = vld [vmem:[#allocation41_spill] sm:$0xff] }
 0x2a4   : > { %10210 = vst [vmem:[#allocation69_spill] sm:$0xff] %v7845_v34  ;;  %2877 = vmatmul.f32.gmra.mxu1 %v10213_v37  ;;  %v2372_v42 = vmul.f32 2.0, %v10214_v35  ;;  %v1891_v38 = vmul.f32 2.0, %v10215_v56 }
 0x2a5   : > { %10211 = vst [vmem:[#allocation70_spill] sm:$0xff] %v7847_v29 }
 0x2a6   : > { %10212 = vst [vmem:[#allocation71_spill] sm:$0xff] %v7849_v52 }
 0x2a7   : > { %3578 = vst.msk [vmem:[%s7131_s9 + $0xf0] sm:$0xff] %vm1907_vm3, %v7845_v34 }
 0x2a8   : > { %3090 = vperm.xlu2 %6050, %v2297_v44  }
 0x2a9   : > { %v7861_v37 = vpop.f32.mrf.mxu3 }
 0x2aa   : > { %10216 = vst [vmem:[#allocation27_spill] sm:$0xff] %v7861_v37  ;;  %v1958_v47 = vpop.xlane.xlu1 %1957  ;;  %v7866_v29 = vsub.f32 %v10217_v18, %v7861_v37  ;;  %2946 = vmatmul.f32.vlgmr.msrb.gmra.mxu3 %v7861_v37  ;;  %v2438_v44 = vpop.xlane.xlu0 %2437  ;;  %v1892_v18 = vmul.f32 2.0, %v10223_v45  ;;  %v10231_v45 = vld [vmem:[#allocation52_spill] sm:$0xff] }
 0x2ab   : > { %v7869_v35 = vsub.f32 %v1891_v38, %v1958_v47  ;;  %v7871_v56 = vsub.f32 %v2372_v42, %v2438_v44  ;;  %3310 = vperm.xlu1 %6049, %v2776_v46   ;;  %v10225_v42 = vld [vmem:[#allocation30_spill] sm:$0xff]  ;;  %v10226_v47 = vld [vmem:[#allocation48_spill] sm:$0xff]  ;;  %v10227_v44 = vld [vmem:[#allocation49_spill] sm:$0xff]  ;;  %v1894_v49 = vmul.f32 2.0, %v10231_v45 }
 0x2ac   : > { %10218 = vst [vmem:[#allocation40_spill] sm:$0xff] %v7866_v29  ;;  %2880 = vmatmul.f32.gmra.mxu1 %v10221_v50  ;;  %v2374_v46 = vmul.f32 2.0, %v10226_v47  ;;  %v10235_v47 = vld [vmem:[#allocation32_spill] sm:$0xff]  ;;  %v10238_v45 = vld [vmem:[#allocation26_spill] sm:$0xff] }
 0x2ad   : > { %10219 = vst [vmem:[#allocation41_spill] sm:$0xff] %v7869_v35 }
 0x2ae   : > { %10220 = vst [vmem:[#allocation72_spill] sm:$0xff] %v7871_v56  ;;  %v1893_v56 = vmul.f32 2.0, %v10227_v44  ;;  %v10236_v44 = vld [vmem:[#allocation56_spill] sm:$0xff] }
 0x2af   : > { %3579 = vst.msk [vmem:[%s7131_s9 + $0xf8] sm:$0xff] %vm1907_vm3, %v7866_v29  ;;  %v7899_v35 = vmul.f32 %v10236_v44, %v10236_v44 }
 0x2b0   : > { %3320 = vperm.xlu2 %6050, %v2778_v55   ;;  %v10230_v55 = vld [vmem:[#allocation31_spill] sm:$0xff] }
 0x2b2   : > { %v2441_v34 = vpop.xlane.xlu1 %2440  ;;  %v1961_v37 = vpop.xlane.xlu2 %1960 }
 0x2b3   : > { %v7879_v52 = vsub.f32 %v2373_v16, %v2441_v34  ;;  %v7881_v38 = vsub.f32 %v1892_v18, %v1961_v37  ;;  %v10232_v34 = vld [vmem:[#allocation25_spill] sm:$0xff] }
 0x2b4   : > { %2883 = vmatmul.f32.gmra.mxu1 %v10225_v42  ;;  %v2361_v16 = vmul.f32 2.0, %v10232_v34  ;;  %v10234_v42 = vld [vmem:[#allocation55_spill] sm:$0xff]  ;;  %v10239_v34 = vld [vmem:[#allocation54_spill] sm:$0xff] }
 0x2b5   : > { %10224 = vst [vmem:[#allocation29_spill] sm:$0xff] %v7879_v52 }
 0x2b6   : > { %v2489_v52 = vsub.f32 %v2361_v16, %v10234_v42  ;;  %v10240_v42 = vld [vmem:[#allocation36_spill] sm:$0xff] }
 0x2b8   : > { %vm2553_vm9 = vcmp.lt.f32.partialorder %v2489_v52, 0.0  ;;  %vm2521_vm10 = vcmp.gt.f32.partialorder %v2489_v52, 0.0 }
 0x2ba   : > { %v2444_v50 = vpop.xlane.xlu2 %2443  ;;  %v1964_v14 = vpop.xlane.xlu0 %1963 }
 0x2bb   : > { %v7886_v54 = vsub.f32 %v2374_v46, %v2444_v50  ;;  %v7888_v22 = vsub.f32 %v1893_v56, %v1964_v14  ;;  %v2649_v46 = vand.u32 2147483647, %v2489_v52  ;;  %v1971_v56 = vsel %vm1907_vm3, %v7899_v35, 0.0  ;;  %v10237_v14 = vld [vmem:[#allocation34_spill] sm:$0xff] }
 0x2bc   : > { %2886 = vmatmul.f32.gmra.mxu1 %v10230_v55  ;;  %v7906_v55 = vmul.f32 %v7649_v13, %v7649_v13 }
 0x2bd   : > { %10228 = vst [vmem:[#allocation44_spill] sm:$0xff] %v7886_v54  ;;  %v2681_v50 = vadd.f32 1.0, %v2649_v46 }
 0x2be   : > { %10229 = vst [vmem:[#allocation45_spill] sm:$0xff] %v7888_v22  ;;  %v10249_v22 = vld [vmem:[#allocation47_spill] sm:$0xff] }
 0x2bf   : > { %6067 = vlog2.f32 %v2681_v50 }
 0x2c2   : > { %v1967_v37 = vpop.xlane.xlu1 %1966 }
 0x2c3   : > { %v7893_v18 = vsub.f32 %v1894_v49, %v1967_v37  ;;  %v1881_v49 = vmul.f32 2.0, %v10238_v45  ;;  %v7912_v37 = vmul.f32 %v7675_v19, %v7675_v19  ;;  %v10241_v19 = vld [vmem:[#allocation28_spill] sm:$0xff] }
 0x2c4   : > { %2889 = vmatmul.f32.gmra.mxu1 %v10235_v47  ;;  %v1974_v47 = vsel %vm1907_vm3, %v7906_v55, 0.0  ;;  %v1883_v45 = vmul.f32 2.0, %v10241_v19 }
 0x2c5   : > { %10233 = vst [vmem:[#allocation30_spill] sm:$0xff] %v7893_v18  ;;  %v2010_v16 = vsub.f32 %v1881_v49, %v10239_v34  ;;  %v6068_v44 = vpop.eup %6067  ;;  %v1977_v13 = vsel %vm1907_vm3, %v7912_v37, 0.0  ;;  %v7923_v34 = vmul.f32 %v7693_v1, %v7419_v48 }
 0x2c6   : > { %v2719_v50 = vmul.f32 0.6931472, %v6068_v44  ;;  %v2012_v18 = vsub.f32 %v1883_v45, %v7671_v23  ;;  %v10246_v45 = vld [vmem:[#allocation43_spill] sm:$0xff] }
 0x2c7   : > { %v2170_v46 = vand.u32 2147483647, %v2010_v16  ;;  %v2460_v52 = vsel %vm1907_vm3, %v7923_v34, 0.0  ;;  %vm2074_vm11 = vcmp.lt.f32.partialorder %v2010_v16, 0.0  ;;  %vm2042_vm12 = vcmp.gt.f32.partialorder %v2010_v16, 0.0 }
 0x2c8   : > { %v2172_v44 = vand.u32 2147483647, %v2012_v18  ;;  %vm2076_vm13 = vcmp.lt.f32.partialorder %v2012_v18, 0.0  ;;  %vm2044_vm14 = vcmp.gt.f32.partialorder %v2012_v18, 0.0 }
 0x2ca   : > { %v2204_v48 = vadd.f32 1.0, %v2172_v44 }
 0x2cb   : > { %1972 = vadd.xlane.f32.xlu0 %v1971_v56  ;;  %v2585_v56 = vsel %vm2553_vm9, -1.0, %v10194_v32  ;;  %vm2045_vm9 = vcmp.gt.f32.partialorder %v7702_v61, 0.0 }
 0x2cc   : > { %2892 = vmatmul.f32.gmra.mxu1 %v10237_v14  ;;  %v2202_v14 = vadd.f32 1.0, %v2170_v46  ;;  %v2617_v49 = vsel %vm2521_vm10, 1.0, %v2585_v56  ;;  %vm2082_vm10 = vcmp.lt.f32.partialorder %v7826_v12, 0.0 }
 0x2cd   : > { %v3301_v19 = vpop.permute.xlu0 %3300 }
 0x2ce   : > { %6069 = vlog2.f32 %v2202_v14 }
 0x2cf   : > { %6071 = vlog2.f32 %v2204_v48 }
 0x2d4   : > { %2895 = vmatmul.f32.gmra.mxu1 %v10240_v42  ;;  %v10242_v42 = vld [vmem:[#allocation37_spill] sm:$0xff]  ;;  %v6070_v56 = vpop.eup %6069 }
 0x2d5   : > { %1975 = vadd.xlane.f32.xlu1 %v1974_v47  ;;  %v2777_v47 = vmul.f32 %v2719_v50, %v2617_v49  ;;  %v2106_v50 = vsel %vm2074_vm11, -1.0, %v10194_v32  ;;  %v2241_v49 = vmul.f32 0.6931472, %v6070_v56  ;;  %v6072_v44 = vpop.eup %6071  ;;  %v3076_v16 = vpop.permute.xlu0 %3075  ;;  %v2108_v56 = vsel %vm2076_vm13, -1.0, %v10194_v32 }
 0x2d6   : > { %v2138_v14 = vsel %vm2042_vm12, 1.0, %v2106_v50  ;;  %v3306_v50 = vpop.permute.xlu2 %3305  ;;  %vm2050_vm11 = vcmp.gt.f32.partialorder %v7826_v12, 0.0  ;;  %vm2078_vm12 = vcmp.lt.f32.partialorder %v7716_v26, 0.0  ;;  %vm2046_vm13 = vcmp.gt.f32.partialorder %v7716_v26, 0.0 }
 0x2d9   : > { %1978 = vadd.xlane.f32.xlu2 %v1977_v13  ;;  %v10244_v13 = vld [vmem:[#allocation39_spill] sm:$0xff] }
 0x2da   : > { %v3081_v18 = vpop.permute.xlu1 %3080 }
 0x2dc   : > { %2898 = vmatmul.f32.gmra.mxu1 %v10242_v42  ;;  %v2298_v42 = vmul.f32 %v2241_v49, %v2138_v14  ;;  %v10248_v14 = vld [vmem:[#allocation38_spill] sm:$0xff] }
 0x2df   : > { %3315 = vperm.xlu0 %6048, %v2777_v47   ;;  %v2804_v47 = vld [vmem:[%s10247_s8] sm:$0x3] }
 0x2e0   : > { %v7942_v48 = vperm.slane %v2804_v47, 1 }
 0x2e1   : > { %2461 = vadd.xlane.f32.xlu2 %v2460_v52  ;;  %v7929_v46 = vpop.f32.mrf.mxu1  ;;  %v7939_v52 = vperm.slane %v2804_v47, 0 }
 0x2e2   : > { %10243 = vst [vmem:[#allocation48_spill] sm:$0xff] %v7929_v46  ;;  %v3451_v46 = vmul.f32 %v7942_v48, %v3301_v19  ;;  %v10250_v19 = vld [vmem:[#allocation42_spill] sm:$0xff] }
 0x2e3   : > { %v3226_v49 = vmul.f32 %v7939_v52, %v3076_v16  ;;  %v1895_v16 = vmul.f32 2.0, %v7736_v53  ;;  %v2377_v53 = vmul.f32 2.0, %v7768_v33 }
 0x2e4   : > { %2901 = vmatmul.f32.gmra.mxu1 %v10244_v13 }
 0x2e9   : > { %v7933_v23 = vpop.f32.mrf.mxu1 }
 0x2ea   : > { %10245 = vst [vmem:[#allocation49_spill] sm:$0xff] %v7933_v23  ;;  %v2245_v23 = vmul.f32 0.6931472, %v6072_v44  ;;  %v3227_v44 = vmul.f32 %v7939_v52, %v3081_v18 }
 0x2ec   : > { %2904 = vmatmul.f32.gmra.mxu1 %v10246_v45 }
 0x2ee   : > { %3095 = vperm.xlu1 %6049, %v2298_v42   ;;  %v2140_v42 = vsel %vm2044_vm14, 1.0, %v2108_v56  ;;  %v2375_v56 = vmul.f32 2.0, %v7752_v20  ;;  %v2171_v20 = vand.u32 2147483647, %v7653_v15  ;;  %v7995_v15 = vmul.f32 %v7730_v21, %v7730_v21 }
 0x2ef   : > { %v2300_v17 = vmul.f32 %v2245_v23, %v2140_v42  ;;  %v2376_v42 = vmul.f32 2.0, %v7783_v0  ;;  %vm2080_vm14 = vcmp.lt.f32.partialorder %v7764_v6, 0.0 }
 0x2f0   : > { %v2203_v33 = vadd.f32 1.0, %v2171_v20  ;;  %v2175_v20 = vand.u32 2147483647, %v7739_v31 }
 0x2f1   : > { %v2860_v13 = vpop.f32.mrf.mxu1 }
 0x2f2   : > { %v2974_v45 = vadd.f32 %v10248_v14, %v2860_v13  ;;  %6073 = vlog2.f32 %v2203_v33 }
 0x2f4   : > { %v3258_v54 = vadd.f32 %v3226_v49, %v2974_v45  ;;  %2907 = vmatmul.f32.gmra.mxu1 %v10249_v22 }
 0x2f6   : > { %v3483_v29 = vadd.f32 %v3451_v46, %v3258_v54  ;;  %v3452_v54 = vmul.f32 %v7942_v48, %v3306_v50  ;;  %v7970_v50 = vmul.f32 %v7643_v24, %v7371_v36  ;;  %v7982_v36 = vmul.f32 %v7668_v58, %v7395_v62 }
 0x2f8   : > { %3517 = vst [vmem:[%s7950_s11 + $0x10] sm:$0xff] %v3483_v29  ;;  %v6074_v0 = vpop.eup %6073 }
 0x2f9   : > { %3105 = vperm.xlu2 %6050, %v2300_v17   ;;  %v2863_v47 = vpop.f32.mrf.mxu1 }
 0x2fa   : > { %v2977_v13 = vadd.f32 %v10250_v19, %v2863_v47  ;;  %v2454_v47 = vsel %vm1907_vm3, %v7970_v50, 0.0  ;;  %v2457_v19 = vsel %vm1907_vm3, %v7982_v36, 0.0 }
 0x2fb   : > { %v1970_v49 = vpop.xlane.xlu2 %1969 }
 0x2fc   : > { %v7956_v22 = vsub.f32 %v1895_v16, %v1970_v49  ;;  %v3259_v46 = vadd.f32 %v3227_v44, %v2977_v13  ;;  %2910 = vmatmul.f32.gmra.mxu1 %v7573_v57  ;;  %v2243_v16 = vmul.f32 0.6931472, %v6074_v0  ;;  %v2651_v49 = vand.u32 2147483647, %v7651_v9 }
 0x2fd   : > { %v2111_v9 = vsel %vm2079_vm5, -1.0, %v10194_v32  ;;  %vm2081_vm5 = vcmp.lt.f32.partialorder %v7805_v10, 0.0 }
 0x2fe   : > { %v3484_v23 = vadd.f32 %v3452_v54, %v3259_v46  ;;  %v10252_v46 = vld [vmem:[#allocation46_spill] sm:$0xff] }
 0x300   : > { %v2447_v29 = vpop.xlane.xlu0 %2446  ;;  %3518 = vst [vmem:[%s7950_s11 + $0x18] sm:$0xff] %v3484_v23 }
 0x301   : > { %v7962_v17 = vsub.f32 %v2375_v56, %v2447_v29  ;;  %v2683_v56 = vadd.f32 1.0, %v2651_v49  ;;  %v2143_v49 = vsel %vm2047_vm6, 1.0, %v2111_v9  ;;  %v8048_v9 = vmul.f32 %v7714_v25, %v7714_v25 }
 0x302   : > { %vm2056_vm6 = vcmp.gt.f32.partialorder %v7956_v22, 0.0 }
 0x303   : > { %10251 = vst [vmem:[#allocation31_spill] sm:$0xff] %v7962_v17  ;;  %v2453_v14 = vpop.xlane.xlu2 %2452  ;;  %6075 = vlog2.f32 %v2683_v56 }
 0x304   : > { %v7965_v45 = vsub.f32 %v2377_v53, %v2453_v14  ;;  %2913 = vmatmul.f32.gmra.mxu1 %v7593_v27  ;;  %v2107_v27 = vsel %vm2075_vm15, -1.0, %v10194_v32  ;;  %vm2048_vm15 = vcmp.gt.f32.partialorder %v7764_v6, 0.0 }
 0x305   : > { %v2450_v57 = vpop.xlane.xlu1 %2449  ;;  %v2139_v13 = vsel %vm2043_vm0, 1.0, %v2107_v27  ;;  %vm2085_vm0 = vcmp.lt.f32.partialorder %v7881_v38, 0.0 }
 0x306   : > { %v7974_v18 = vsub.f32 %v2376_v42, %v2450_v57  ;;  %v2299_v54 = vmul.f32 %v2243_v16, %v2139_v13  ;;  %v1986_v42 = vsel %vm1907_vm3, %v7995_v15, 0.0 }
 0x309   : > { %2455 = vadd.xlane.f32.xlu0 %v2454_v47  ;;  %v6076_v21 = vpop.eup %6075  ;;  %v2587_v47 = vsel %vm2555_vm1, -1.0, %v10194_v32  ;;  %vm2053_vm1 = vcmp.gt.f32.partialorder %v7881_v38, 0.0 }
 0x30a   : > { %v2723_v33 = vmul.f32 0.6931472, %v6076_v21  ;;  %v2619_v0 = vsel %vm2523_vm4, 1.0, %v2587_v47  ;;  %v2380_v47 = vmul.f32 2.0, %v7923_v34  ;;  %vm2088_vm4 = vcmp.lt.f32.partialorder %v7956_v22, 0.0 }
 0x30b   : > { %v3091_v16 = vpop.permute.xlu2 %3090 }
 0x30c   : > { %2916 = vmatmul.f32.gmra.mxu1 %v7618_v28  ;;  %v2866_v28 = vpop.f32.mrf.mxu1 }
 0x313   : > { %v3086_v44 = vpop.permute.xlu0 %3085  ;;  %v3321_v31 = vpop.permute.xlu2 %3320 }
 0x314   : > { %2919 = vmatmul.f32.gmra.mxu1 %v7643_v24  ;;  %v3228_v62 = vmul.f32 %v7939_v52, %v3086_v44  ;;  %v2980_v24 = vadd.f32 %v10252_v46, %v2866_v28  ;;  %v2652_v46 = vand.u32 2147483647, %v7677_v59  ;;  %v1983_v59 = vsel %vm1907_vm3, %v8048_v9, 0.0 }
 0x316   : > { %v3260_v29 = vadd.f32 %v3228_v62, %v2980_v24  ;;  %v1897_v24 = vmul.f32 2.0, %v7906_v55 }
 0x318   : > { %2458 = vadd.xlane.f32.xlu1 %v2457_v19  ;;  %v1896_v19 = vmul.f32 2.0, %v7899_v35  ;;  %v2684_v35 = vadd.f32 1.0, %v2652_v46 }
 0x31c   : > { %2922 = vmatmul.f32.gmra.mxu1 %v7668_v58  ;;  %v8004_v58 = vmul.f32 %v7756_v2, %v7518_v3  ;;  %v2779_v3 = vmul.f32 %v2723_v33, %v2619_v0 }
 0x31d   : > { %3100 = vperm.xlu0 %6048, %v2299_v54   ;;  %v3311_v23 = vpop.permute.xlu1 %3310  ;;  %v8023_v54 = vmul.f32 %v7698_v41, %v7698_v41  ;;  %v3229_v41 = vmul.f32 %v7939_v52, %v3091_v16 }
 0x31e   : > { %v3453_v53 = vmul.f32 %v7942_v48, %v3311_v23  ;;  %v2469_v57 = vsel %vm1907_vm3, %v8004_v58, 0.0 }
 0x320   : > { %v3485_v14 = vadd.f32 %v3453_v53, %v3260_v29  ;;  %v2869_v29 = vpop.f32.mrf.mxu1 }
 0x322   : > { %1987 = vadd.xlane.f32.xlu2 %v1986_v42  ;;  %3519 = vst [vmem:[%s7950_s11 + $0x20] sm:$0xff] %v3485_v14  ;;  %v10253_v14 = vld [vmem:[#allocation50_spill] sm:$0xff] }
 0x323   : > { %v2983_v42 = vadd.f32 %v10253_v14, %v2869_v29  ;;  %v8066_v14 = vmul.f32 %v7838_v8, %v7607_v11 }
 0x324   : > { %2925 = vmatmul.f32.gmra.mxu1 %v7693_v1  ;;  %v2207_v1 = vadd.f32 1.0, %v2175_v20 }
 0x325   : > { %v3261_v20 = vadd.f32 %v3229_v41, %v2983_v42 }
 0x326   : > { %6077 = vlog2.f32 %v2207_v1 }
 0x327   : > { %6079 = vlog2.f32 %v2684_v35  ;;  %v3455_v35 = vmul.f32 %v7942_v48, %v3321_v31  ;;  %v2109_v31 = vsel %vm2077_vm2, -1.0, %v10194_v32 }
 0x328   : > { %v2872_v0 = vpop.f32.mrf.mxu1 }
 0x32a   : > { %2470 = vadd.xlane.f32.xlu2 %v2469_v57 }
 0x32c   : > { %2928 = vmatmul.f32.gmra.mxu1 %v7709_v51  ;;  %v6078_v27 = vpop.eup %6077 }
 0x32d   : > { %v2251_v44 = vmul.f32 0.6931472, %v6078_v27  ;;  %v6080_v57 = vpop.eup %6079  ;;  %v2588_v27 = vsel %vm2556_vm7, -1.0, %v10194_v32  ;;  %vm2049_vm7 = vcmp.gt.f32.partialorder %v7805_v10, 0.0 }
 0x32e   : > { %v2725_v16 = vmul.f32 0.6931472, %v6080_v57 }
 0x32f   : > { %v2303_v62 = vmul.f32 %v2251_v44, %v2143_v49  ;;  %v2620_v44 = vsel %vm2524_vm8, 1.0, %v2588_v27 }
 0x330   : > { %v2780_v34 = vmul.f32 %v2725_v16, %v2620_v44 }
 0x331   : > { %3325 = vperm.xlu1 %6049, %v2779_v3  }
 0x334   : > { %2931 = vmatmul.f32.gmra.mxu1 %v7725_v7 }
 0x33c   : > { %2934 = vmatmul.f32.gmra.mxu1 %v7756_v2  ;;  %v1980_v2 = vsel %vm1907_vm3, %v8023_v54, 0.0 }
 0x33e   : > { %v1973_v28 = vpop.xlane.xlu0 %1972 }
 0x33f   : > { %v8019_v13 = vsub.f32 %v1896_v19, %v1973_v28  ;;  %v2173_v19 = vand.u32 2147483647, %v7702_v61  ;;  %v8078_v61 = vmul.f32 %v7709_v51, %v7454_v43 }
 0x341   : > { %v2205_v49 = vadd.f32 1.0, %v2173_v19  ;;  %v2463_v27 = vsel %vm1907_vm3, %v8078_v61, 0.0  ;;  %v2379_v19 = vmul.f32 2.0, %v7982_v36 }
 0x342   : > { %3120 = vperm.xlu2 %6050, %v2303_v62   ;;  %v10254_v62 = vld [vmem:[#allocation53_spill] sm:$0xff] }
 0x343   : > { %v2986_v46 = vadd.f32 %v10254_v62, %v2872_v0  ;;  %6081 = vlog2.f32 %v2205_v49  ;;  %v2174_v0 = vand.u32 2147483647, %v7716_v26 }
 0x344   : > { %2937 = vmatmul.f32.gmra.mxu1 %v7795_v4 }
 0x347   : > { %1981 = vadd.xlane.f32.xlu0 %v1980_v2 }
 0x348   : > { %v1976_v23 = vpop.xlane.xlu1 %1975 }
 0x349   : > { %v8030_v56 = vsub.f32 %v1897_v24, %v1976_v23  ;;  %v8058_v23 = vmul.f32 %v7824_v5, %v7824_v5  ;;  %v6082_v41 = vpop.eup %6081  ;;  %v2478_v5 = vsel %vm1907_vm3, %v8066_v14, 0.0 }
 0x34a   : > { %v2247_v42 = vmul.f32 0.6931472, %v6082_v41 }
 0x34b   : > { %v1995_v29 = vsel %vm1907_vm3, %v8058_v23, 0.0 }
 0x34c   : > { %v8032_v53 = vpop.xlane.xlu2 %1978  ;;  %2940 = vmatmul.f32.gmra.mxu1 %v7819_v40 }
 0x351   : > { %v3316_v21 = vpop.permute.xlu0 %3315 }
 0x352   : > { %v3454_v55 = vmul.f32 %v7942_v48, %v3316_v21  ;;  %v2141_v21 = vsel %vm2045_vm9, 1.0, %v2109_v31  ;;  %v8108_v31 = vmul.f32 %v7725_v7, %v7485_v63  ;;  %v10256_v63 = vld [vmem:[#allocation58_spill] sm:$0xff] }
 0x353   : > { %v2301_v57 = vmul.f32 %v2247_v42, %v2141_v21 }
 0x354   : > { %v3486_v33 = vadd.f32 %v3454_v55, %v3261_v20  ;;  %v2462_v1 = vpop.xlane.xlu2 %2461  ;;  %2943 = vmatmul.f32.gmra.mxu1 %v7838_v8  ;;  %v2178_v20 = vand.u32 2147483647, %v7826_v12 }
 0x355   : > { %v8041_v3 = vsub.f32 %v2380_v47, %v2462_v1  ;;  %v2875_v47 = vpop.f32.mrf.mxu1 }
 0x356   : > { %3520 = vst [vmem:[%s7950_s11 + $0x28] sm:$0xff] %v3486_v33  ;;  %v2210_v55 = vadd.f32 1.0, %v2178_v20  ;;  %v2378_v33 = vmul.f32 2.0, %v7970_v50  ;;  %v2114_v50 = vsel %vm2082_vm10, -1.0, %v10194_v32  ;;  %v2466_v20 = vsel %vm1907_vm3, %v8108_v31, 0.0 }
 0x357   : > { %v2146_v43 = vsel %vm2050_vm11, 1.0, %v2114_v50  ;;  %v2989_v7 = vadd.f32 %v10256_v63, %v2875_v47 }
 0x358   : > { %6083 = vlog2.f32 %v2210_v55 }
 0x35b   : > { %3330 = vperm.xlu0 %6048, %v2780_v34   ;;  %1984 = vadd.xlane.f32.xlu1 %v1983_v59  ;;  %v2206_v34 = vadd.f32 1.0, %v2174_v0  ;;  %v8088_v59 = vpop.f32.mrf.mxu2 }
 0x35c   : > { %v8091_v49 = vpop.permute.xlu2 %3105 }
 0x35d   : > { %v8085_v16 = vpop.f32.mrf.mxu1  ;;  %6085 = vlog2.f32 %v2206_v34 }
 0x35e   : > { %v6084_v1 = vpop.eup %6083 }
 0x35f   : > { %v2257_v44 = vmul.f32 0.6931472, %v6084_v1 }
 0x360   : > { %v3096_v28 = vpop.permute.xlu1 %3095 }
 0x361   : > { %v3230_v2 = vmul.f32 %v7939_v52, %v3096_v28  ;;  %v2306_v51 = vmul.f32 %v2257_v44, %v2146_v43 }
 0x363   : > { %v3262_v25 = vadd.f32 %v3230_v2, %v2986_v46  ;;  %v6086_v46 = vpop.eup %6085  ;;  %v8098_v2 = vpop.f32.mrf.mxu2 }
 0x365   : > { %v3487_v24 = vadd.f32 %v3455_v35, %v3262_v25  ;;  %v8095_v12 = vpop.f32.mrf.mxu1  ;;  %v2110_v35 = vsel %vm2078_vm12, -1.0, %v10194_v32  ;;  %v2249_v25 = vmul.f32 0.6931472, %v6086_v46  ;;  %v10259_v46 = vld [vmem:[#allocation59_spill] sm:$0xff] }
 0x366   : > { %v2142_v36 = vsel %vm2046_vm13, 1.0, %v2110_v35 }
 0x367   : > { %3521 = vst [vmem:[%s7950_s11 + $0x30] sm:$0xff] %v3487_v24 }
 0x36b   : > { %1996 = vadd.xlane.f32.xlu2 %v1995_v29  ;;  %v2302_v29 = vmul.f32 %v2249_v25, %v2142_v36  ;;  %v8110_v42 = vpop.f32.mrf.mxu2 }
 0x36d   : > { %v8104_v41 = vpop.f32.mrf.mxu1 }
 0x373   : > { %2479 = vadd.xlane.f32.xlu2 %v2478_v5  ;;  %v2383_v5 = vmul.f32 2.0, %v8004_v58  ;;  %v3000_v58 = vpop.f32.mrf.mxu2 }
 0x374   : > { %3110 = vperm.xlu1 %6049, %v2301_v57  }
 0x37c   : > { %v2456_v11 = vpop.xlane.xlu0 %2455 }
 0x37d   : > { %v8074_v8 = vsub.f32 %v2378_v33, %v2456_v11  ;;  %v8120_v33 = vmul.f32 %v7801_v39, %v7801_v39  ;;  %v2887_v11 = vpop.f32.mrf.mxu1  ;;  %v2176_v39 = vand.u32 2147483647, %v7764_v6 }
 0x37e   : > { %v3001_v44 = vadd.f32 %v3000_v58, %v2887_v11  ;;  %v2181_v11 = vand.u32 2147483647, %v7881_v38 }
 0x37f   : > { %10255 = vst [vmem:[#allocation52_spill] sm:$0xff] %v8074_v8  ;;  %v1992_v43 = vsel %vm1907_vm3, %v8120_v33, 0.0  ;;  %v2208_v47 = vadd.f32 1.0, %v2176_v39 }
 0x380   : > { %v2213_v6 = vadd.f32 1.0, %v2181_v11 }
 0x381   : > { %6087 = vlog2.f32 %v2208_v47  ;;  %v3232_v47 = vmul.f32 %v7939_v52, %v8091_v49 }
 0x382   : > { %6089 = vlog2.f32 %v2213_v6 }
 0x385   : > { %2464 = vadd.xlane.f32.xlu0 %v2463_v27 }
 0x387   : > { %v6088_v36 = vpop.eup %6087 }
 0x38b   : > { %3135 = vperm.xlu2 %6050, %v2306_v51   ;;  %v2459_v28 = vpop.xlane.xlu1 %2458 }
 0x38c   : > { %v8093_v62 = vsub.f32 %v2379_v19, %v2459_v28  ;;  %v10258_v28 = vld [vmem:[#allocation23_spill] sm:$0xff] }
 0x38d   : > { %v8133_v35 = vmul.f32 %v10259_v46, %v10258_v28  ;;  %v6090_v46 = vpop.eup %6089 }
 0x38f   : > { %v3101_v26 = vpop.permute.xlu0 %3100  ;;  %v2388_v25 = vsel %vm1907_vm3, %v8133_v35, 0.0 }
 0x390   : > { %v3231_v55 = vmul.f32 %v7939_v52, %v3101_v26 }
 0x392   : > { %v3263_v0 = vadd.f32 %v3231_v55, %v2989_v7  ;;  %v2253_v55 = vmul.f32 0.6931472, %v6088_v36  ;;  %v2117_v36 = vsel %vm2085_vm0, -1.0, %v10194_v32 }
 0x395   : > { %v8102_v24 = vpop.xlane.xlu2 %1987 }
 0x399   : > { %3115 = vperm.xlu0 %6048, %v2302_v29   ;;  %v10260_v29 = vld [vmem:[#allocation62_spill] sm:$0xff] }
 0x39d   : > { %v2471_v21 = vpop.xlane.xlu2 %2470 }
 0x39e   : > { %v8113_v57 = vsub.f32 %v2383_v5, %v2471_v21  ;;  %2467 = vadd.xlane.f32.xlu1 %v2466_v20  ;;  %v8140_v5 = vmul.f32 %v10260_v29, %v10260_v29  ;;  %v1899_v21 = vmul.f32 2.0, %v8023_v54  ;;  %v2112_v20 = vsel %vm2080_vm14, -1.0, %v10194_v32  ;;  %v8154_v54 = vpop.f32.mrf.mxu1 }
 0x39f   : > { %v2263_v29 = vmul.f32 0.6931472, %v6090_v46 }
 0x3a0   : > { %v1911_v7 = vsel %vm1907_vm3, %v8140_v5, 0.0 }
 0x3a3   : > { %v3326_v1 = vpop.permute.xlu1 %3325 }
 0x3a4   : > { %v3456_v27 = vmul.f32 %v7942_v48, %v3326_v1  ;;  %v2144_v1 = vsel %vm2048_vm15, 1.0, %v2112_v20  ;;  %v1901_v20 = vmul.f32 2.0, %v7995_v15  ;;  %v2120_v15 = vsel %vm2088_vm4, -1.0, %v10194_v32 }
 0x3a5   : > { %v3121_v50 = vpop.permute.xlu2 %3120  ;;  %v2304_v58 = vmul.f32 %v2253_v55, %v2144_v1 }
 0x3a6   : > { %v3235_v34 = vmul.f32 %v7939_v52, %v3121_v50  ;;  %v3488_v51 = vadd.f32 %v3456_v27, %v3263_v0  ;;  %1993 = vadd.xlane.f32.xlu1 %v1992_v43  ;;  %v8152_v0 = vmul.f32 %v7762_v60, %v7762_v60  ;;  %v8158_v50 = vpop.f32.mrf.mxu2  ;;  %v1898_v60 = vmul.f32 2.0, %v7912_v37 }
 0x3a7   : > { %v2177_v43 = vand.u32 2147483647, %v7805_v10 }
 0x3a8   : > { %v8127_v19 = vadd.f32 %v3235_v34, %v3001_v44  ;;  %3522 = vst [vmem:[%s7950_s11 + $0x38] sm:$0xff] %v3488_v51  ;;  %v1989_v27 = vsel %vm1907_vm3, %v8152_v0, 0.0  ;;  %v2184_v44 = vand.u32 2147483647, %v7956_v22  ;;  %v8163_v34 = vmul.f32 %v7795_v4, %v7558_v30 }
 0x3a9   : > { %v2027_v39 = vsub.f32 %v1898_v60, %v8032_v53  ;;  %v2209_v30 = vadd.f32 1.0, %v2177_v43  ;;  %v2992_v4 = vadd.f32 %v8088_v59, %v8085_v16  ;;  %v2030_v59 = vsub.f32 %v1901_v20, %v8102_v24 }
 0x3aa   : > { %10257 = vst [vmem:[#allocation25_spill] sm:$0xff] %v8127_v19  ;;  %v2216_v51 = vadd.f32 1.0, %v2184_v44  ;;  %v2472_v28 = vsel %vm1907_vm3, %v8163_v34, 0.0  ;;  %v2152_v24 = vsel %vm2056_vm6, 1.0, %v2120_v15  ;;  %v2113_v43 = vsel %vm2081_vm5, -1.0, %v10194_v32 }
 0x3ab   : > { %v2187_v53 = vand.u32 2147483647, %v2027_v39  ;;  %vm2091_vm8 = vcmp.lt.f32.partialorder %v2027_v39, 0.0  ;;  %v2145_v46 = vsel %vm2049_vm7, 1.0, %v2113_v43  ;;  %vm2059_vm2 = vcmp.gt.f32.partialorder %v2027_v39, 0.0 }
 0x3ac   : > { %6091 = vlog2.f32 %v2216_v51  ;;  %vm2094_vm9 = vcmp.lt.f32.partialorder %v2030_v59, 0.0  ;;  %v2386_v39 = vmul.f32 2.0, %v8066_v14  ;;  %vm2062_vm10 = vcmp.gt.f32.partialorder %v2030_v59, 0.0 }
 0x3ad   : > { %6093 = vlog2.f32 %v2209_v30  ;;  %v2219_v16 = vadd.f32 1.0, %v2187_v53  ;;  %v1904_v30 = vmul.f32 2.0, %v8058_v23 }
 0x3ae   : > { %v8177_v37 = vpop.f32.mrf.mxu2 }
 0x3af   : > { %6095 = vlog2.f32 %v2219_v16  ;;  %v10261_v16 = vld [vmem:[#allocation51_spill] sm:$0xff] }
 0x3b2   : > { %v6092_v38 = vpop.eup %6091 }
 0x3b3   : > { %v6094_v6 = vpop.eup %6093 }
 0x3b4   : > { %2389 = vadd.xlane.f32.xlu2 %v2388_v25  ;;  %v8173_v25 = vpop.f32.mrf.mxu1  ;;  %v2255_v51 = vmul.f32 0.6931472, %v6094_v6 }
 0x3b6   : > { %v3009_v44 = vpop.f32.mrf.mxu2  ;;  %v2305_v22 = vmul.f32 %v2255_v51, %v2145_v46  ;;  %v10262_v46 = vld [vmem:[#allocation40_spill] sm:$0xff] }
 0x3ba   : > { %v1982_v26 = vpop.xlane.xlu0 %1981 }
 0x3bb   : > { %v8145_v63 = vsub.f32 %v1899_v21, %v1982_v26  ;;  %v3264_v21 = vadd.f32 %v3232_v47, %v2992_v4  ;;  %v2123_v4 = vsel %vm2091_vm8, -1.0, %v10194_v32 }
 0x3bc   : > { %1912 = vadd.xlane.f32.xlu2 %v1911_v7  ;;  %v2149_v7 = vsel %vm2053_vm1, 1.0, %v2117_v36  ;;  %v8186_v1 = vpop.f32.mrf.mxu1 }
 0x3bd   : > { %v2309_v11 = vmul.f32 %v2263_v29, %v2149_v7 }
 0x3bf   : > { %3125 = vperm.xlu1 %6049, %v2304_v58   ;;  %v2190_v58 = vand.u32 2147483647, %v2030_v59 }
 0x3c1   : > { %v2222_v60 = vadd.f32 1.0, %v2190_v58 }
 0x3c3   : > { %1990 = vadd.xlane.f32.xlu0 %v1989_v27  ;;  %v2269_v27 = vmul.f32 0.6931472, %v6092_v38  ;;  %6097 = vlog2.f32 %v2222_v60  ;;  %v2126_v38 = vsel %vm2094_vm9, -1.0, %v10194_v32 }
 0x3c4   : > { %v8195_v10 = vpop.f32.mrf.mxu1  ;;  %v2158_v14 = vsel %vm2062_vm10, 1.0, %v2126_v38 }
 0x3c5   : > { %v2312_v47 = vmul.f32 %v2269_v27, %v2152_v24  ;;  %v2995_v24 = vadd.f32 %v8098_v2, %v8095_v12  ;;  %v8222_v12 = vmul.f32 %v10262_v46, %v10262_v46 }
 0x3cb   : > { %2473 = vadd.xlane.f32.xlu0 %v2472_v28  ;;  %v6096_v28 = vpop.eup %6095 }
 0x3cc   : > { %v2275_v53 = vmul.f32 0.6931472, %v6096_v28  ;;  %v6098_v7 = vpop.eup %6097  ;;  %v8212_v43 = vpop.f32.mrf.mxu1 }
 0x3cd   : > { %v3331_v49 = vpop.permute.xlu0 %3330  ;;  %v2281_v58 = vmul.f32 0.6931472, %v6098_v7 }
 0x3ce   : > { %v3457_v26 = vmul.f32 %v7942_v48, %v3331_v49  ;;  %v8197_v36 = vpop.xlane.xlu1 %1984 }
 0x3cf   : > { %v2318_v51 = vmul.f32 %v2281_v58, %v2158_v14 }
 0x3d0   : > { %v3489_v55 = vadd.f32 %v3457_v26, %v3264_v21  ;;  %v8199_v21 = vpop.f32.mrf.mxu2  ;;  %v2155_v26 = vsel %vm2059_vm2, 1.0, %v2123_v4  ;;  %v3010_v4 = vadd.f32 %v3009_v44, %v8186_v1 }
 0x3d2   : > { %3523 = vst [vmem:[%s7950_s11 + $0x40] sm:$0xff] %v3489_v55  ;;  %v2315_v55 = vmul.f32 %v2275_v53, %v2155_v26 }
 0x3d4   : > { %3150 = vperm.xlu2 %6050, %v2309_v11   ;;  %v8204_v11 = vmul.f32 %v7819_v40, %v10261_v16  ;;  %v8231_v7 = vpop.f32.mrf.mxu1  ;;  %v2381_v16 = vmul.f32 2.0, %v8078_v61 }
 0x3d6   : > { %v2475_v40 = vsel %vm1907_vm3, %v8204_v11, 0.0 }
 0x3d8   : > { %v8218_v28 = vpop.f32.mrf.mxu2 }
 0x3dc   : > { %3165 = vperm.xlu2 %6050, %v2312_v47   ;;  %v8239_v58 = vpop.f32.mrf.mxu1 }
 0x3de   : > { %v1997_v49 = vpop.xlane.xlu2 %1996 }
 0x3df   : > { %v2033_v29 = vsub.f32 %v1904_v30, %v1997_v49  ;;  %3130 = vperm.xlu0 %6048, %v2305_v22  }
 0x3e1   : > { %v2193_v20 = vand.u32 2147483647, %v2033_v29  ;;  %vm2097_vm11 = vcmp.lt.f32.partialorder %v2033_v29, 0.0  ;;  %vm2065_vm12 = vcmp.gt.f32.partialorder %v2033_v29, 0.0 }
 0x3e2   : > { %v2129_v2 = vsel %vm2097_vm11, -1.0, %v10194_v32 }
 0x3e3   : > { %v2225_v23 = vadd.f32 1.0, %v2193_v20  ;;  %v2161_v49 = vsel %vm2065_vm12, 1.0, %v2129_v2  ;;  %v2001_v20 = vsel %vm1907_vm3, %v8222_v12, 0.0  ;;  %vm2089_vm12 = vcmp.lt.f32.partialorder %v8019_v13, 0.0 }
 0x3e4   : > { %3180 = vperm.xlu2 %6050, %v2315_v55  }
 0x3e5   : > { %6099 = vlog2.f32 %v2225_v23  ;;  %v10264_v23 = vld [vmem:[#allocation71_spill] sm:$0xff] }
 0x3e6   : > { %v2480_v6 = vpop.xlane.xlu2 %2479  ;;  %v3111_v15 = vpop.permute.xlu1 %3110  ;;  %v2179_v29 = vand.u32 2147483647, %v10264_v23  ;;  %vm2083_vm13 = vcmp.lt.f32.partialorder %v10264_v23, 0.0  ;;  %vm2051_vm14 = vcmp.gt.f32.partialorder %v10264_v23, 0.0 }
 0x3e7   : > { %v8207_v27 = vsub.f32 %v2386_v39, %v2480_v6  ;;  %v3233_v60 = vmul.f32 %v7939_v52, %v3111_v15  ;;  %v8234_v39 = vpop.f32.mrf.mxu2  ;;  %v2115_v61 = vsel %vm2083_vm13, -1.0, %v10194_v32 }
 0x3e8   : > { %v2211_v1 = vadd.f32 1.0, %v2179_v29 }
 0x3e9   : > { %v8216_v59 = vadd.f32 %v3233_v60, %v2995_v24  ;;  %2476 = vadd.xlane.f32.xlu1 %v2475_v40  ;;  %v10266_v24 = vld [vmem:[#allocation69_spill] sm:$0xff]  ;;  %v8250_v40 = vpop.f32.mrf.mxu1 }
 0x3ea   : > { %6101 = vlog2.f32 %v2211_v1  ;;  %v8246_v60 = vmul.f32 %v10266_v24, %v10266_v24 }
 0x3eb   : > { %v6100_v47 = vpop.eup %6099 }
 0x3ec   : > { %3195 = vperm.xlu2 %6050, %v2318_v51   ;;  %v2287_v30 = vmul.f32 0.6931472, %v6100_v47  ;;  %v1998_v51 = vsel %vm1907_vm3, %v8246_v60, 0.0  ;;  %v2147_v47 = vsel %vm2051_vm14, 1.0, %v2115_v61  ;;  %vm2057_vm14 = vcmp.gt.f32.partialorder %v8019_v13, 0.0 }
 0x3ee   : > { %v3136_v22 = vpop.permute.xlu2 %3135  ;;  %v2321_v55 = vmul.f32 %v2287_v30, %v2161_v49  ;;  %v2998_v49 = vadd.f32 %v8110_v42, %v8104_v41 }
 0x3ef   : > { %v3238_v53 = vmul.f32 %v7939_v52, %v3136_v22  ;;  %v8241_v6 = vpop.f32.mrf.mxu2  ;;  %v10268_v22 = vld [vmem:[#allocation57_spill] sm:$0xff] }
 0x3f0   : > { %v6102_v15 = vpop.eup %6101 }
 0x3f1   : > { %v8227_v26 = vadd.f32 %v3238_v53, %v3010_v4  ;;  %2002 = vadd.xlane.f32.xlu1 %v2001_v20  ;;  %v2259_v14 = vmul.f32 0.6931472, %v6102_v15  ;;  %v10269_v4 = vld [vmem:[#allocation27_spill] sm:$0xff]  ;;  %v8268_v1 = vpop.f32.mrf.mxu1 }
 0x3f2   : > { %v8258_v53 = vmul.f32 %v10269_v4, %v10268_v22  ;;  %v2356_v4 = vmul.f32 2.0, %v8133_v35  ;;  %v10275_v35 = vld [vmem:[#allocation63_spill] sm:$0xff] }
 0x3f3   : > { %10263 = vst [vmem:[#allocation55_spill] sm:$0xff] %v8227_v26  ;;  %v2307_v2 = vmul.f32 %v2259_v14, %v2147_v47  ;;  %vm2557_vm7 = vcmp.lt.f32.partialorder %v10275_v35, 0.0  ;;  %vm2525_vm8 = vcmp.gt.f32.partialorder %v10275_v35, 0.0 }
 0x3f4   : > { %3210 = vperm.xlu2 %6050, %v2321_v55   ;;  %v10270_v55 = vld [vmem:[#allocation41_spill] sm:$0xff] }
 0x3f5   : > { %v2180_v23 = vand.u32 2147483647, %v10270_v55  ;;  %vm2084_vm15 = vcmp.lt.f32.partialorder %v10270_v55, 0.0  ;;  %vm2052_vm0 = vcmp.gt.f32.partialorder %v10270_v55, 0.0  ;;  %v1876_v55 = vmul.f32 2.0, %v8140_v5 }
 0x3f6   : > { %v2116_v47 = vsel %vm2084_vm15, -1.0, %v10194_v32 }
 0x3f7   : > { %v8254_v46 = vpop.f32.mrf.mxu2  ;;  %v2212_v15 = vadd.f32 1.0, %v2180_v23 }
 0x3f8   : > { %v2465_v44 = vpop.xlane.xlu0 %2464  ;;  %10267 = vst [vmem:[#allocation56_spill] sm:$0xff] %v8254_v46 }
 0x3f9   : > { %v8237_v38 = vsub.f32 %v2381_v16, %v2465_v44  ;;  %v2481_v16 = vsel %vm1907_vm3, %v8258_v53, 0.0  ;;  %v2382_v44 = vmul.f32 2.0, %v8108_v31  ;;  %6103 = vlog2.f32 %v2212_v15  ;;  %v8275_v41 = vpop.f32.mrf.mxu1 }
 0x3fb   : > { %10265 = vst [vmem:[#allocation32_spill] sm:$0xff] %v8237_v38 }
 0x3ff   : > { %v8271_v61 = vpop.f32.mrf.mxu2  ;;  %v6104_v42 = vpop.eup %6103 }
 0x400   : > { %v2261_v31 = vmul.f32 0.6931472, %v6104_v42 }
 0x401   : > { %v8282_v22 = vpop.f32.mrf.mxu1 }
 0x402   : > { %10272 = vst [vmem:[#allocation26_spill] sm:$0xff] %v8282_v22 }
 0x409   : > { %1999 = vadd.xlane.f32.xlu0 %v1998_v51  ;;  %v8278_v51 = vpop.f32.mrf.mxu2 }
 0x40a   : > { %3140 = vperm.xlu1 %6049, %v2307_v2   ;;  %v2148_v2 = vsel %vm2052_vm0, 1.0, %v2116_v47 }
 0x40b   : > { %v3116_v30 = vpop.permute.xlu0 %3115 }
 0x40c   : > { %v3234_v20 = vmul.f32 %v7939_v52, %v3116_v30  ;;  %v2308_v30 = vmul.f32 %v2261_v31, %v2148_v2  ;;  %v10274_v31 = vld [vmem:[#allocation60_spill] sm:$0xff] }
 0x40d   : > { %v8294_v2 = vmul.f32 %v10274_v31, %v10274_v31 }
 0x40e   : > { %v8264_v29 = vadd.f32 %v3234_v20, %v2998_v49 }
 0x410   : > { %10271 = vst [vmem:[#allocation34_spill] sm:$0xff] %v8264_v29 }
 0x411   : > { %2482 = vadd.xlane.f32.xlu0 %v2481_v16  ;;  %v2468_v24 = vpop.xlane.xlu1 %2467  ;;  %v8285_v49 = vpop.f32.mrf.mxu2 }
 0x412   : > { %v8273_v14 = vsub.f32 %v2382_v44, %v2468_v24  ;;  %10273 = vst [vmem:[#allocation54_spill] sm:$0xff] %v8285_v49  ;;  %v8290_v24 = vpop.f32.mrf.mxu1 }
 0x419   : > { %v8287_v16 = vpop.xlane.xlu1 %1993  ;;  %v8297_v29 = vpop.f32.mrf.mxu2 }
 0x425   : > { %3145 = vperm.xlu0 %6048, %v2308_v30   ;;  %v2653_v30 = vand.u32 2147483647, %v10275_v35 }
 0x427   : > { %v2390_v20 = vpop.xlane.xlu2 %2389  ;;  %v2685_v31 = vadd.f32 1.0, %v2653_v30  ;;  %v10277_v30 = vld [vmem:[#allocation66_spill] sm:$0xff] }
 0x428   : > { %v2484_v23 = vsub.f32 %v2356_v4, %v2390_v20  ;;  %vm2560_vm9 = vcmp.lt.f32.partialorder %v10277_v30, 0.0  ;;  %vm2528_vm11 = vcmp.gt.f32.partialorder %v10277_v30, 0.0 }
 0x42a   : > { %v2644_v44 = vand.u32 2147483647, %v2484_v23  ;;  %vm2548_vm1 = vcmp.lt.f32.partialorder %v2484_v23, 0.0  ;;  %vm2516_vm4 = vcmp.gt.f32.partialorder %v2484_v23, 0.0 }
 0x42b   : > { %v2580_v5 = vsel %vm2548_vm1, -1.0, %v10194_v32  ;;  %vm2060_vm1 = vcmp.gt.f32.partialorder %v8145_v63, 0.0 }
 0x42c   : > { %v2676_v15 = vadd.f32 1.0, %v2644_v44  ;;  %v3004_v44 = vadd.f32 %v8158_v50, %v8154_v54  ;;  %v2612_v8 = vsel %vm2516_vm4, 1.0, %v2580_v5  ;;  %v10276_v54 = vld [vmem:[#allocation45_spill] sm:$0xff] }
 0x42d   : > { %v2182_v50 = vand.u32 2147483647, %v10276_v54  ;;  %vm2086_vm2 = vcmp.lt.f32.partialorder %v10276_v54, 0.0  ;;  %vm2054_vm10 = vcmp.gt.f32.partialorder %v10276_v54, 0.0 }
 0x42e   : > { %6105 = vlog2.f32 %v2676_v15 }
 0x42f   : > { %v1913_v42 = vpop.xlane.xlu2 %1912 }
 0x430   : > { %v2005_v47 = vsub.f32 %v1876_v55, %v1913_v42  ;;  %v1908_v42 = vsel %vm1907_vm3, %v8294_v2, 0.0 }
 0x431   : > { %v3126_v20 = vpop.permute.xlu1 %3125 }
 0x432   : > { %v2165_v4 = vand.u32 2147483647, %v2005_v47  ;;  %v3236_v15 = vmul.f32 %v7939_v52, %v3126_v20  ;;  %v3019_v20 = vadd.f32 %v8234_v39, %v8231_v7  ;;  %vm2069_vm5 = vcmp.lt.f32.partialorder %v2005_v47, 0.0 }
 0x433   : > { %vm2037_vm6 = vcmp.gt.f32.partialorder %v2005_v47, 0.0  ;;  %v2384_v39 = vmul.f32 2.0, %v8163_v34  ;;  %v3028_v47 = vadd.f32 %v8271_v61, %v8268_v1  ;;  %v2589_v34 = vsel %vm2557_vm7, -1.0, %v10194_v32 }
 0x434   : > { %v6106_v26 = vpop.eup %6105  ;;  %v2197_v55 = vadd.f32 1.0, %v2165_v4  ;;  %v8305_v38 = vadd.f32 %v3236_v15, %v3004_v44  ;;  %1909 = vadd.xlane.f32.xlu1 %v1908_v42  ;;  %v8314_v44 = vpop.f32.mrf.mxu1 }
 0x435   : > { %v2709_v19 = vmul.f32 0.6931472, %v6106_v26  ;;  %v2656_v26 = vand.u32 2147483647, %v10277_v30  ;;  %v8318_v15 = vpop.f32.mrf.mxu2 }
 0x436   : > { %6107 = vlog2.f32 %v2197_v55  ;;  %v8307_v49 = vpop.xlane.xlu0 %1990  ;;  %v2214_v55 = vadd.f32 1.0, %v2182_v50 }
 0x437   : > { %v2772_v23 = vmul.f32 %v2709_v19, %v2612_v8  ;;  %v3151_v22 = vpop.permute.xlu2 %3150  ;;  %6109 = vlog2.f32 %v2685_v31  ;;  %v2101_v8 = vsel %vm2069_vm5, -1.0, %v10194_v32  ;;  %v2688_v42 = vadd.f32 1.0, %v2656_v26 }
 0x438   : > { %v3241_v4 = vmul.f32 %v7939_v52, %v3151_v22  ;;  %v2133_v22 = vsel %vm2037_vm6, 1.0, %v2101_v8  ;;  %6111 = vlog2.f32 %v2214_v55 }
 0x439   : > { %3290 = vperm.xlu2 %6050, %v2772_v23   ;;  %v2185_v23 = vand.u32 2147483647, %v8019_v13  ;;  %6113 = vlog2.f32 %v2688_v42 }
 0x43a   : > { %v8316_v5 = vadd.f32 %v3241_v4, %v3019_v20 }
 0x43c   : > { %10278 = vst [vmem:[#allocation36_spill] sm:$0xff] %v8316_v5  ;;  %v6108_v19 = vpop.eup %6107 }
 0x43d   : > { %v2231_v7 = vmul.f32 0.6931472, %v6108_v19  ;;  %v6110_v17 = vpop.eup %6109  ;;  %v10280_v19 = vld [vmem:[#allocation70_spill] sm:$0xff] }
 0x43e   : > { %v2474_v31 = vpop.xlane.xlu0 %2473  ;;  %v2727_v8 = vmul.f32 0.6931472, %v6110_v17  ;;  %v2659_v55 = vand.u32 2147483647, %v10280_v19  ;;  %v2188_v17 = vand.u32 2147483647, %v8145_v63 }
 0x43f   : > { %v2293_v20 = vmul.f32 %v2231_v7, %v2133_v22  ;;  %v8324_v4 = vsub.f32 %v2384_v39, %v2474_v31  ;;  %v3166_v50 = vpop.permute.xlu2 %3165  ;;  %v2217_v7 = vadd.f32 1.0, %v2185_v23  ;;  %v8334_v39 = vpop.f32.mrf.mxu1  ;;  %v2621_v31 = vsel %vm2525_vm8, 1.0, %v2589_v34  ;;  %v10285_v34 = vld [vmem:[#allocation61_spill] sm:$0xff] }
 0x440   : > { %v3244_v26 = vmul.f32 %v7939_v52, %v3166_v50  ;;  %10282 = vst [vmem:[#allocation39_spill] sm:$0xff] %v8334_v39  ;;  %v6112_v22 = vpop.eup %6111  ;;  %v2781_v1 = vmul.f32 %v2727_v8, %v2621_v31  ;;  %v2691_v61 = vadd.f32 1.0, %v2659_v55  ;;  %v2118_v23 = vsel %vm2086_vm2, -1.0, %v10194_v32  ;;  %v10286_v55 = vld [vmem:[#allocation44_spill] sm:$0xff] }
 0x441   : > { %10279 = vst [vmem:[#allocation28_spill] sm:$0xff] %v8324_v4  ;;  %3070 = vperm.xlu2 %6050, %v2293_v20   ;;  %v8336_v4 = vpop.f32.mrf.mxu2  ;;  %v6114_v35 = vpop.eup %6113  ;;  %6115 = vlog2.f32 %v2217_v7  ;;  %v2265_v20 = vmul.f32 0.6931472, %v6112_v22  ;;  %v3037_v50 = vadd.f32 %v8297_v29, %v8290_v24  ;;  %v2662_v31 = vand.u32 2147483647, %v10286_v55  ;;  %v10287_v24 = vld [vmem:[#allocation30_spill] sm:$0xff] }
 0x442   : > { %v8332_v5 = vadd.f32 %v3244_v26, %v3028_v47  ;;  %10283 = vst [vmem:[#allocation43_spill] sm:$0xff] %v8336_v4  ;;  %v10284_v26 = vld [vmem:[#allocation24_spill] sm:$0xff]  ;;  %v1902_v7 = vmul.f32 2.0, %v8152_v0  ;;  %v2733_v4 = vmul.f32 0.6931472, %v6114_v35  ;;  %6117 = vlog2.f32 %v2691_v61 }
 0x443   : > { %v8348_v8 = vmul.f32 %v10285_v34, %v10284_v26  ;;  %v2150_v29 = vsel %vm2054_vm10, 1.0, %v2118_v23  ;;  %v2220_v26 = vadd.f32 1.0, %v2188_v17  ;;  %v2694_v0 = vadd.f32 1.0, %v2662_v31 }
 0x444   : > { %10281 = vst [vmem:[#allocation37_spill] sm:$0xff] %v8332_v5  ;;  %v2592_v5 = vsel %vm2560_vm9, -1.0, %v10194_v32  ;;  %v8360_v34 = vsub.f32 %v1902_v7, %v8307_v49  ;;  %v2310_v30 = vmul.f32 %v2265_v20, %v2150_v29  ;;  %vm2563_vm13 = vcmp.lt.f32.partialorder %v10280_v19, 0.0 }
 0x445   : > { %v2624_v46 = vsel %vm2528_vm11, 1.0, %v2592_v5  ;;  %v2391_v54 = vsel %vm1907_vm3, %v8348_v8, 0.0  ;;  %6119 = vlog2.f32 %v2220_v26  ;;  %v2121_v20 = vsel %vm2089_vm12, -1.0, %v10194_v32 }
 0x446   : > { %v2784_v35 = vmul.f32 %v2733_v4, %v2624_v46  ;;  %v2191_v49 = vand.u32 2147483647, %v8360_v34  ;;  %vm2531_vm15 = vcmp.gt.f32.partialorder %v10280_v19, 0.0  ;;  %6121 = vlog2.f32 %v2694_v0 }
 0x447   : > { %v3181_v42 = vpop.permute.xlu2 %3180  ;;  %v6116_v39 = vpop.eup %6115  ;;  %v2665_v31 = vand.u32 2147483647, %v7965_v45  ;;  %v3007_v7 = vadd.f32 %v8177_v37, %v8173_v25  ;;  %vm2092_vm3 = vcmp.lt.f32.partialorder %v8145_v63, 0.0  ;;  %v1900_v37 = vmul.f32 2.0, %v8048_v9 }
 0x448   : > { %v3247_v47 = vmul.f32 %v7939_v52, %v3181_v42  ;;  %v2183_v42 = vand.u32 2147483647, %v10287_v24  ;;  %v6118_v17 = vpop.eup %6117  ;;  %v2223_v0 = vadd.f32 1.0, %v2191_v49  ;;  %vm2566_vm0 = vcmp.lt.f32.partialorder %v10286_v55, 0.0 }
 0x449   : > { %3335 = vperm.xlu2 %6050, %v2781_v1   ;;  %v2932_v1 = vpop.f32.mrf.mxu1  ;;  %v3045_v61 = vpop.f32.mrf.mxu2  ;;  %v2739_v26 = vmul.f32 0.6931472, %v6118_v17  ;;  %vm2087_vm4 = vcmp.lt.f32.partialorder %v10287_v24, 0.0  ;;  %vm2534_vm5 = vcmp.gt.f32.partialorder %v10286_v55, 0.0  ;;  %v2668_v19 = vand.u32 2147483647, %v8041_v3 }
 0x44a   : > { %v8354_v22 = vadd.f32 %v3247_v47, %v3037_v50  ;;  %v2215_v23 = vadd.f32 1.0, %v2183_v42  ;;  %v2271_v50 = vmul.f32 0.6931472, %v6116_v39  ;;  %v3046_v46 = vadd.f32 %v3045_v61, %v2932_v1 }
 0x44b   : > { %v2595_v39 = vsel %vm2563_vm13, -1.0, %v10194_v32  ;;  %v6120_v25 = vpop.eup %6119  ;;  %vm2055_vm6 = vcmp.gt.f32.partialorder %v10287_v24, 0.0  ;;  %vm2095_vm7 = vcmp.lt.f32.partialorder %v8360_v34, 0.0  ;;  %vm2569_vm8 = vcmp.lt.f32.partialorder %v7965_v45, 0.0 }
 0x44c   : > { %6123 = vlog2.f32 %v2215_v23  ;;  %v2627_v61 = vsel %vm2531_vm15, 1.0, %v2595_v39  ;;  %v6122_v17 = vpop.eup %6121  ;;  %v8391_v23 = vsub.f32 %v1900_v37, %v8197_v36  ;;  %v2598_v36 = vsel %vm2566_vm0, -1.0, %v10194_v32 }
 0x44d   : > { %3155 = vperm.xlu1 %6049, %v2310_v30   ;;  %v2153_v30 = vsel %vm2057_vm14, 1.0, %v2121_v20  ;;  %v2787_v13 = vmul.f32 %v2739_v26, %v2627_v61  ;;  %6125 = vlog2.f32 %v2223_v0  ;;  %v2124_v20 = vsel %vm2092_vm3, -1.0, %v10194_v32 }
 0x44e   : > { %v2313_v1 = vmul.f32 %v2271_v50, %v2153_v30  ;;  %v2277_v50 = vmul.f32 0.6931472, %v6120_v25  ;;  %v2189_v63 = vand.u32 2147483647, %v8391_v23  ;;  %v2700_v30 = vadd.f32 1.0, %v2668_v19 }
 0x44f   : > { %2392 = vadd.xlane.f32.xlu0 %v2391_v54  ;;  %v3196_v5 = vpop.permute.xlu2 %3195  ;;  %v1903_v0 = vmul.f32 2.0, %v8120_v33  ;;  %vm2063_vm2 = vcmp.gt.f32.partialorder %v8360_v34, 0.0  ;;  %v2127_v55 = vsel %vm2095_vm7, -1.0, %v10194_v32  ;;  %vm2090_vm9 = vcmp.lt.f32.partialorder %v8030_v56, 0.0 }
 0x450   : > { %v3250_v4 = vmul.f32 %v7939_v52, %v3196_v5  ;;  %v2697_v5 = vadd.f32 1.0, %v2665_v31  ;;  %v2119_v31 = vsel %vm2087_vm4, -1.0, %v10194_v32  ;;  %v2221_v25 = vadd.f32 1.0, %v2189_v63 }
 0x451   : > { %v3131_v47 = vpop.permute.xlu0 %3130  ;;  %3350 = vperm.xlu2 %6050, %v2784_v35   ;;  %v2186_v35 = vand.u32 2147483647, %v8030_v56  ;;  %v2151_v24 = vsel %vm2055_vm6, 1.0, %v2119_v31  ;;  %v8411_v61 = vsub.f32 %v1903_v0, %v8287_v16  ;;  %vm2537_vm10 = vcmp.gt.f32.partialorder %v7965_v45, 0.0 }
 0x452   : > { %v8374_v29 = vadd.f32 %v3250_v4, %v3046_v46  ;;  %v3237_v42 = vmul.f32 %v7939_v52, %v3131_v47  ;;  %v6124_v9 = vpop.eup %6123  ;;  %6127 = vlog2.f32 %v2697_v5  ;;  %v2385_v46 = vmul.f32 2.0, %v8204_v11 }
 0x453   : > { %v2218_v49 = vadd.f32 1.0, %v2186_v35  ;;  %v2745_v4 = vmul.f32 0.6931472, %v6122_v17  ;;  %v2156_v47 = vsel %vm2060_vm1, 1.0, %v2124_v20  ;;  %v2267_v39 = vmul.f32 0.6931472, %v6124_v9 }
 0x454   : > { %v8383_v54 = vadd.f32 %v3237_v42, %v3007_v7  ;;  %v2316_v7 = vmul.f32 %v2277_v50, %v2156_v47  ;;  %v6126_v42 = vpop.eup %6125  ;;  %v2630_v11 = vsel %vm2534_vm5, 1.0, %v2598_v36  ;;  %v2159_v16 = vsel %vm2063_vm2, 1.0, %v2127_v55 }
 0x455   : > { %3170 = vperm.xlu1 %6049, %v2313_v1   ;;  %6129 = vlog2.f32 %v2218_v49  ;;  %v2790_v35 = vmul.f32 %v2745_v4, %v2630_v11  ;;  %v2283_v5 = vmul.f32 0.6931472, %v6126_v42  ;;  %v2311_v17 = vmul.f32 %v2267_v39, %v2151_v24 }
 0x456   : > { %6131 = vlog2.f32 %v2700_v30  ;;  %v2601_v49 = vsel %vm2569_vm8, -1.0, %v10194_v32  ;;  %v2192_v34 = vand.u32 2147483647, %v8411_v61  ;;  %vm2058_vm11 = vcmp.gt.f32.partialorder %v8030_v56, 0.0 }
 0x457   : > { %6133 = vlog2.f32 %v2221_v25  ;;  %v2319_v50 = vmul.f32 %v2283_v5, %v2159_v16  ;;  %v2122_v9 = vsel %vm2090_vm9, -1.0, %v10194_v32  ;;  %v2633_v36 = vsel %vm2537_vm10, 1.0, %v2601_v49  ;;  %v10288_v49 = vld [vmem:[#allocation65_spill] sm:$0xff] }
 0x458   : > { %v6128_v37 = vpop.eup %6127  ;;  %v1906_v47 = vmul.f32 2.0, %v8222_v12  ;;  %v2154_v31 = vsel %vm2058_vm11, 1.0, %v2122_v9  ;;  %vm2572_vm12 = vcmp.lt.f32.partialorder %v8041_v3, 0.0  ;;  %vm2093_vm13 = vcmp.lt.f32.partialorder %v8391_v23, 0.0 }
 0x459   : > { %3365 = vperm.xlu2 %6050, %v2787_v13   ;;  %v2671_v13 = vand.u32 2147483647, %v8113_v57  ;;  %v2751_v20 = vmul.f32 0.6931472, %v6128_v37  ;;  %vm2540_vm14 = vcmp.gt.f32.partialorder %v8041_v3, 0.0  ;;  %v2604_v12 = vsel %vm2572_vm12, -1.0, %v10194_v32 }
 0x45a   : > { %vm2061_vm15 = vcmp.gt.f32.partialorder %v8391_v23, 0.0  ;;  %v2125_v0 = vsel %vm2093_vm13, -1.0, %v10194_v32  ;;  %v2636_v24 = vsel %vm2540_vm14, 1.0, %v2604_v12  ;;  %vm2575_vm3 = vcmp.lt.f32.partialorder %v8113_v57, 0.0 }
 0x45b   : > { %v6130_v33 = vpop.eup %6129  ;;  %v2703_v4 = vadd.f32 1.0, %v2671_v13  ;;  %v2793_v45 = vmul.f32 %v2751_v20, %v2633_v36  ;;  %v2157_v5 = vsel %vm2061_vm15, 1.0, %v2125_v0  ;;  %vm2096_vm0 = vcmp.lt.f32.partialorder %v8411_v61, 0.0 }
 0x45c   : > { %v2477_v26 = vpop.xlane.xlu1 %2476  ;;  %v2273_v19 = vmul.f32 0.6931472, %v6130_v33  ;;  %v6132_v63 = vpop.eup %6131  ;;  %vm2543_vm1 = vcmp.gt.f32.partialorder %v8113_v57, 0.0  ;;  %v2607_v23 = vsel %vm2575_vm3, -1.0, %v10194_v32  ;;  %v2655_v20 = vand.u32 2147483647, %v10288_v49 }
 0x45d   : > { %v8407_v1 = vsub.f32 %v2385_v46, %v2477_v26  ;;  %3185 = vperm.xlu1 %6049, %v2316_v7   ;;  %v2224_v7 = vadd.f32 1.0, %v2192_v34  ;;  %v6134_v56 = vpop.eup %6133  ;;  %6135 = vlog2.f32 %v2703_v4  ;;  %v2674_v26 = vand.u32 2147483647, %v8207_v27 }
 0x45e   : > { %v2314_v39 = vmul.f32 %v2273_v19, %v2154_v31  ;;  %v2757_v11 = vmul.f32 0.6931472, %v6132_v63  ;;  %vm2064_vm4 = vcmp.gt.f32.partialorder %v8411_v61, 0.0  ;;  %v2128_v16 = vsel %vm2096_vm0, -1.0, %v10194_v32  ;;  %v10289_v63 = vld [vmem:[#allocation68_spill] sm:$0xff] }
 0x45f   : > { %6137 = vlog2.f32 %v2224_v7  ;;  %v2706_v25 = vadd.f32 1.0, %v2674_v26  ;;  %vm2578_vm5 = vcmp.lt.f32.partialorder %v8207_v27, 0.0  ;;  %v2160_v36 = vsel %vm2064_vm4, 1.0, %v2128_v16 }
 0x460   : > { %v2796_v37 = vmul.f32 %v2757_v11, %v2636_v24  ;;  %vm2546_vm7 = vcmp.gt.f32.partialorder %v8207_v27, 0.0  ;;  %v2658_v31 = vand.u32 2147483647, %v10289_v63  ;;  %vm2559_vm2 = vcmp.lt.f32.partialorder %v10288_v49, 0.0 }
 0x461   : > { %3380 = vperm.xlu2 %6050, %v2790_v35   ;;  %v2279_v35 = vmul.f32 0.6931472, %v6134_v56  ;;  %6139 = vlog2.f32 %v2706_v25  ;;  %vm2527_vm9 = vcmp.gt.f32.partialorder %v10288_v49, 0.0  ;;  %vm2562_vm12 = vcmp.lt.f32.partialorder %v10289_v63, 0.0 }
 0x462   : > { %v2690_v27 = vadd.f32 1.0, %v2658_v31  ;;  %vm2530_vm13 = vcmp.gt.f32.partialorder %v10289_v63, 0.0  ;;  %v2667_v31 = vand.u32 2147483647, %v8093_v62  ;;  %vm2568_vm3 = vcmp.lt.f32.partialorder %v7974_v18, 0.0 }
 0x463   : > { %3160 = vperm.xlu0 %6048, %v2311_v17   ;;  %v6136_v55 = vpop.eup %6135  ;;  %v2317_v17 = vmul.f32 %v2279_v35, %v2157_v5  ;;  %v2591_v5 = vsel %vm2559_vm2, -1.0, %v10194_v32  ;;  %vm2536_vm0 = vcmp.gt.f32.partialorder %v7974_v18, 0.0  ;;  %vm2539_vm4 = vcmp.gt.f32.partialorder %v8093_v62, 0.0 }
 0x464   : > { %v2003_v46 = vpop.xlane.xlu1 %2002  ;;  %v2763_v13 = vmul.f32 0.6931472, %v6136_v55 }
 0x465   : > { %3200 = vperm.xlu1 %6049, %v2319_v50   ;;  %v8424_v42 = vsub.f32 %v1906_v47, %v2003_v46  ;;  %v6138_v33 = vpop.eup %6137  ;;  %v2639_v50 = vsel %vm2543_vm1, 1.0, %v2607_v23  ;;  %v2687_v46 = vadd.f32 1.0, %v2655_v20  ;;  %v2610_v47 = vsel %vm2578_vm5, -1.0, %v10194_v32 }
 0x466   : > { %v2285_v34 = vmul.f32 0.6931472, %v6138_v33  ;;  %v2799_v9 = vmul.f32 %v2763_v13, %v2639_v50  ;;  %v2642_v12 = vsel %vm2546_vm7, 1.0, %v2610_v47  ;;  %v2623_v33 = vsel %vm2527_vm9, 1.0, %v2591_v5 }
 0x467   : > { %v2195_v30 = vand.u32 2147483647, %v8424_v42  ;;  %v6140_v19 = vpop.eup %6139  ;;  %vm2099_vm6 = vcmp.lt.f32.partialorder %v8424_v42, 0.0  ;;  %vm2067_vm8 = vcmp.gt.f32.partialorder %v8424_v42, 0.0  ;;  %v10290_v42 = vld [vmem:[#allocation29_spill] sm:$0xff]  ;;  %vm2571_vm1 = vcmp.lt.f32.partialorder %v8093_v62, 0.0 }
 0x468   : > { %v2320_v57 = vmul.f32 %v2285_v34, %v2160_v36  ;;  %v2769_v61 = vmul.f32 0.6931472, %v6140_v19  ;;  %v8457_v34 = vpop.permute.xlu2 %3210  ;;  %vm2565_vm14 = vcmp.lt.f32.partialorder %v10290_v42, 0.0  ;;  %vm2533_vm15 = vcmp.gt.f32.partialorder %v10290_v42, 0.0 }
 0x469   : > { %3395 = vperm.xlu2 %6050, %v2793_v45   ;;  %v2227_v3 = vadd.f32 1.0, %v2195_v30  ;;  %v1905_v45 = vmul.f32 2.0, %v8246_v60  ;;  %v2387_v60 = vmul.f32 2.0, %v8258_v53  ;;  %v2597_v63 = vsel %vm2565_vm14, -1.0, %v10194_v32 }
 0x46a   : > { %v2802_v11 = vmul.f32 %v2769_v61, %v2642_v12  ;;  %v2699_v12 = vadd.f32 1.0, %v2667_v31  ;;  %vm2574_vm5 = vcmp.lt.f32.partialorder %v8273_v14, 0.0  ;;  %vm2545_vm9 = vcmp.gt.f32.partialorder %v8407_v1, 0.0 }
 0x46b   : > { %3175 = vperm.xlu0 %6048, %v2314_v39   ;;  %6141 = vlog2.f32 %v2227_v3  ;;  %v2131_v39 = vsel %vm2099_vm6, -1.0, %v10194_v32  ;;  %vm2542_vm6 = vcmp.gt.f32.partialorder %v8273_v14, 0.0 }
 0x46c   : > { %6143 = vlog2.f32 %v2687_v46  ;;  %v2163_v0 = vsel %vm2067_vm8, 1.0, %v2131_v39  ;;  %v2594_v46 = vsel %vm2562_vm12, -1.0, %v10194_v32  ;;  %vm2577_vm8 = vcmp.lt.f32.partialorder %v8407_v1, 0.0 }
 0x471   : > { %3410 = vperm.xlu2 %6050, %v2796_v37   ;;  %v6142_v4 = vpop.eup %6141  ;;  %v2661_v37 = vand.u32 2147483647, %v10290_v42 }
 0x472   : > { %v2291_v56 = vmul.f32 0.6931472, %v6142_v4  ;;  %v6144_v25 = vpop.eup %6143 }
 0x473   : > { %3190 = vperm.xlu0 %6048, %v2317_v17   ;;  %v2731_v3 = vmul.f32 0.6931472, %v6144_v25  ;;  %v2693_v23 = vadd.f32 1.0, %v2661_v37  ;;  %v2600_v25 = vsel %vm2568_vm3, -1.0, %v10194_v32 }
 0x474   : > { %v2323_v35 = vmul.f32 %v2291_v56, %v2163_v0  ;;  %v2629_v56 = vsel %vm2533_vm15, 1.0, %v2597_v63 }
 0x475   : > { %v2783_v16 = vmul.f32 %v2731_v3, %v2623_v33  ;;  %v2673_v3 = vand.u32 2147483647, %v8407_v1  ;;  %v3022_v1 = vadd.f32 %v8241_v6, %v8239_v58 }
 0x479   : > { %3425 = vperm.xlu2 %6050, %v2799_v9   ;;  %v2664_v9 = vand.u32 2147483647, %v7974_v18  ;;  %v2603_v18 = vsel %vm2571_vm1, -1.0, %v10194_v32 }
 0x47b   : > { %3205 = vperm.xlu0 %6048, %v2320_v57   ;;  %v2626_v57 = vsel %vm2530_vm13, 1.0, %v2594_v46  ;;  %v2696_v4 = vadd.f32 1.0, %v2664_v9 }
 0x47c   : > { %v2000_v7 = vpop.xlane.xlu0 %1999  ;;  %v3141_v42 = vpop.permute.xlu1 %3140 }
 0x47d   : > { %v2034_v26 = vsub.f32 %v1905_v45, %v2000_v7 }
 0x47f   : > { %v2194_v30 = vand.u32 2147483647, %v2034_v26  ;;  %vm2098_vm10 = vcmp.lt.f32.partialorder %v2034_v26, 0.0  ;;  %vm2066_vm11 = vcmp.gt.f32.partialorder %v2034_v26, 0.0  ;;  %v3016_v26 = vadd.f32 %v8218_v28, %v8212_v43 }
 0x480   : > { %v2130_v13 = vsel %vm2098_vm10, -1.0, %v10194_v32  ;;  %v2632_v28 = vsel %vm2536_vm0, 1.0, %v2600_v25 }
 0x481   : > { %v2226_v24 = vadd.f32 1.0, %v2194_v30  ;;  %3440 = vperm.xlu2 %6050, %v2802_v11   ;;  %v2162_v50 = vsel %vm2066_vm11, 1.0, %v2130_v13 }
 0x483   : > { %6145 = vlog2.f32 %v2226_v24  ;;  %3220 = vperm.xlu0 %6048, %v2323_v35   ;;  %v2670_v24 = vand.u32 2147483647, %v8273_v14 }
 0x484   : > { %6147 = vlog2.f32 %v2690_v27  ;;  %v2483_v55 = vpop.xlane.xlu0 %2482 }
 0x485   : > { %v8453_v17 = vsub.f32 %v2387_v60, %v2483_v55  ;;  %6149 = vlog2.f32 %v2693_v23  ;;  %v2702_v60 = vadd.f32 1.0, %v2670_v24 }
 0x486   : > { %6151 = vlog2.f32 %v2696_v4 }
 0x487   : > { %6153 = vlog2.f32 %v2699_v12  ;;  %v2609_v12 = vsel %vm2577_vm8, -1.0, %v10194_v32 }
 0x488   : > { %6155 = vlog2.f32 %v2702_v60 }
 0x489   : > { %v6146_v20 = vpop.eup %6145 }
 0x48a   : > { %v6148_v53 = vpop.eup %6147  ;;  %v2289_v49 = vmul.f32 0.6931472, %v6146_v20  ;;  %v1875_v20 = vmul.f32 2.0, %v8294_v2  ;;  %v2606_v2 = vsel %vm2574_vm5, -1.0, %v10194_v32 }
 0x48b   : > { %3345 = vperm.xlu0 %6048, %v2783_v16   ;;  %v2737_v36 = vmul.f32 0.6931472, %v6148_v53  ;;  %v6150_v61 = vpop.eup %6149  ;;  %v2635_v16 = vsel %vm2539_vm4, 1.0, %v2603_v18  ;;  %v2705_v53 = vadd.f32 1.0, %v2673_v3  ;;  %v10291_v18 = vld [vmem:[#allocation64_spill] sm:$0xff] }
 0x48c   : > { %v2322_v19 = vmul.f32 %v2289_v49, %v2162_v50  ;;  %v2743_v7 = vmul.f32 0.6931472, %v6150_v61  ;;  %v6152_v27 = vpop.eup %6151  ;;  %v3239_v61 = vmul.f32 %v7939_v52, %v3141_v42  ;;  %v2357_v42 = vmul.f32 2.0, %v8348_v8 }
 0x48d   : > { %v2786_v47 = vmul.f32 %v2737_v36, %v2626_v57  ;;  %v2749_v43 = vmul.f32 0.6931472, %v6152_v27  ;;  %v6154_v55 = vpop.eup %6153  ;;  %6157 = vlog2.f32 %v2705_v53  ;;  %v3031_v8 = vadd.f32 %v8278_v51, %v8275_v41 }
 0x48e   : > { %3215 = vperm.xlu1 %6049, %v2322_v19   ;;  %v2789_v30 = vmul.f32 %v2743_v7, %v2629_v56  ;;  %v2755_v23 = vmul.f32 0.6931472, %v6154_v55  ;;  %v6156_v19 = vpop.eup %6155  ;;  %v3013_v7 = vadd.f32 %v8199_v21, %v8195_v10  ;;  %v2641_v21 = vsel %vm2545_vm9, 1.0, %v2609_v12 }
 0x48f   : > { %v2792_v37 = vmul.f32 %v2749_v43, %v2632_v28  ;;  %v2761_v36 = vmul.f32 0.6931472, %v6156_v19  ;;  %v10292_v19 = vld [vmem:[#allocation67_spill] sm:$0xff]  ;;  %vm2558_vm12 = vcmp.lt.f32.partialorder %v10291_v18, 0.0  ;;  %vm2526_vm13 = vcmp.gt.f32.partialorder %v10291_v18, 0.0 }
 0x490   : > { %v2795_v50 = vmul.f32 %v2755_v23, %v2635_v16  ;;  %v2654_v23 = vand.u32 2147483647, %v10291_v18  ;;  %vm2561_vm14 = vcmp.lt.f32.partialorder %v10292_v19, 0.0  ;;  %vm2529_vm15 = vcmp.gt.f32.partialorder %v10292_v19, 0.0 }
 0x492   : > { %v2686_v6 = vadd.f32 1.0, %v2654_v23 }
 0x493   : > { %3360 = vperm.xlu0 %6048, %v2786_v47   ;;  %v8463_v45 = vpop.permute.xlu2 %3290  ;;  %v2638_v47 = vsel %vm2542_vm6, 1.0, %v2606_v2  ;;  %v6158_v63 = vpop.eup %6157 }
 0x494   : > { %v2798_v31 = vmul.f32 %v2761_v36, %v2638_v47  ;;  %v3040_v47 = vadd.f32 %v8318_v15, %v8314_v44  ;;  %v2590_v15 = vsel %vm2558_vm12, -1.0, %v10194_v32 }
 0x497   : > { %v3146_v39 = vpop.permute.xlu0 %3145 }
 0x498   : > { %v3240_v11 = vmul.f32 %v7939_v52, %v3146_v39  ;;  %v3271_v39 = vadd.f32 %v3239_v61, %v3013_v7 }
 0x49a   : > { %v8472_v0 = vadd.f32 %v3240_v11, %v3016_v26  ;;  %v2767_v11 = vmul.f32 0.6931472, %v6158_v63 }
 0x49b   : > { %3375 = vperm.xlu0 %6048, %v2789_v30   ;;  %v8474_v35 = vpop.permute.xlu2 %3070 }
 0x49c   : > { %v2801_v25 = vmul.f32 %v2767_v11, %v2641_v21  ;;  %v10294_v11 = vld [vmem:[#allocation56_spill] sm:$0xff] }
 0x4a3   : > { %3390 = vperm.xlu0 %6048, %v2792_v37   ;;  %v3336_v5 = vpop.permute.xlu2 %3335 }
 0x4a4   : > { %v3458_v33 = vmul.f32 %v7942_v48, %v3336_v5 }
 0x4a6   : > { %v8485_v13 = vadd.f32 %v3458_v33, %v8216_v59 }
 0x4a7   : > { %v1910_v49 = vpop.xlane.xlu1 %1909 }
 0x4a8   : > { %3524 = vst [vmem:[%s7950_s11 + $0x48] sm:$0xff] %v8485_v13  ;;  %v2004_v9 = vsub.f32 %v1875_v20, %v1910_v49 }
 0x4aa   : > { %v2164_v62 = vand.u32 2147483647, %v2004_v9  ;;  %vm2068_vm7 = vcmp.lt.f32.partialorder %v2004_v9, 0.0  ;;  %vm2036_vm2 = vcmp.gt.f32.partialorder %v2004_v9, 0.0 }
 0x4ab   : > { %3405 = vperm.xlu0 %6048, %v2795_v50   ;;  %v3351_v46 = vpop.permute.xlu2 %3350 }
 0x4ac   : > { %v3461_v59 = vmul.f32 %v7942_v48, %v3351_v46  ;;  %v2196_v57 = vadd.f32 1.0, %v2164_v62  ;;  %v2657_v62 = vand.u32 2147483647, %v10292_v19 }
 0x4ae   : > { %v8495_v4 = vadd.f32 %v3461_v59, %v8305_v38  ;;  %6159 = vlog2.f32 %v2196_v57  ;;  %v2100_v38 = vsel %vm2068_vm7, -1.0, %v10194_v32  ;;  %v2689_v57 = vadd.f32 1.0, %v2657_v62 }
 0x4af   : > { %v2132_v10 = vsel %vm2036_vm2, 1.0, %v2100_v38  ;;  %v10293_v38 = vld [vmem:[#allocation72_spill] sm:$0xff] }
 0x4b0   : > { %3527 = vst [vmem:[%s7950_s11 + $0x60] sm:$0xff] %v8495_v4  ;;  %vm2564_vm3 = vcmp.lt.f32.partialorder %v10293_v38, 0.0  ;;  %vm2532_vm0 = vcmp.gt.f32.partialorder %v10293_v38, 0.0 }
 0x4b3   : > { %3420 = vperm.xlu0 %6048, %v2798_v31   ;;  %v3366_v14 = vpop.permute.xlu2 %3365 }
 0x4b4   : > { %v3464_v56 = vmul.f32 %v7942_v48, %v3366_v14  ;;  %v6160_v26 = vpop.eup %6159 }
 0x4b5   : > { %v2229_v30 = vmul.f32 0.6931472, %v6160_v26 }
 0x4b6   : > { %v8507_v27 = vadd.f32 %v3464_v56, %v3271_v39  ;;  %v2660_v56 = vand.u32 2147483647, %v10293_v38 }
 0x4b7   : > { %v2292_v24 = vmul.f32 %v2229_v30, %v2132_v10  ;;  %v3025_v30 = vadd.f32 %v10294_v11, %v8250_v40  ;;  %v2935_v10 = vpop.f32.mrf.mxu1  ;;  %v10301_v11 = vld [vmem:[#allocation32_spill] sm:$0xff] }
 0x4b8   : > { %3530 = vst [vmem:[%s7950_s11 + $0x78] sm:$0xff] %v8507_v27  ;;  %vm2573_vm7 = vcmp.lt.f32.partialorder %v10301_v11, 0.0  ;;  %vm2541_vm8 = vcmp.gt.f32.partialorder %v10301_v11, 0.0 }
 0x4b9   : > { %3065 = vperm.xlu1 %6049, %v2292_v24   ;;  %v3048_v24 = vpop.f32.mrf.mxu2 }
 0x4bb   : > { %3435 = vperm.xlu0 %6048, %v2801_v25   ;;  %v3381_v43 = vpop.permute.xlu2 %3380 }
 0x4bc   : > { %v3467_v55 = vmul.f32 %v7942_v48, %v3381_v43 }
 0x4bf   : > { %v3156_v28 = vpop.permute.xlu1 %3155 }
 0x4c0   : > { %v3242_v60 = vmul.f32 %v7939_v52, %v3156_v28 }
 0x4c1   : > { %v3051_v38 = vpop.f32.mrf.mxu2 }
 0x4c2   : > { %v2393_v37 = vpop.xlane.xlu0 %2392  ;;  %v3274_v5 = vadd.f32 %v3242_v60, %v3022_v1  ;;  %v2622_v1 = vsel %vm2526_vm13, 1.0, %v2590_v15  ;;  %v2692_v60 = vadd.f32 1.0, %v2660_v56  ;;  %v2938_v15 = vpop.f32.mrf.mxu1 }
 0x4c3   : > { %v2485_v3 = vsub.f32 %v2357_v42, %v2393_v37  ;;  %v3396_v33 = vpop.permute.xlu2 %3395  ;;  %v3049_v42 = vadd.f32 %v3048_v24, %v2935_v10 }
 0x4c4   : > { %v8517_v20 = vadd.f32 %v3467_v55, %v3274_v5  ;;  %v3470_v50 = vmul.f32 %v7942_v48, %v3396_v33  ;;  %v10295_v33 = vld [vmem:[#allocation31_spill] sm:$0xff] }
 0x4c5   : > { %v2645_v16 = vand.u32 2147483647, %v2485_v3  ;;  %vm2549_vm10 = vcmp.lt.f32.partialorder %v2485_v3, 0.0  ;;  %vm2517_vm11 = vcmp.gt.f32.partialorder %v2485_v3, 0.0  ;;  %v2663_v18 = vand.u32 2147483647, %v10295_v33 }
 0x4c6   : > { %3533 = vst [vmem:[%s7950_s11 + $0x90] sm:$0xff] %v8517_v20  ;;  %v2581_v59 = vsel %vm2549_vm10, -1.0, %v10194_v32  ;;  %vm2567_vm1 = vcmp.lt.f32.partialorder %v10295_v33, 0.0  ;;  %vm2535_vm4 = vcmp.gt.f32.partialorder %v10295_v33, 0.0  ;;  %vm2579_vm10 = vcmp.lt.f32.partialorder %v8453_v17, 0.0 }
 0x4c7   : > { %v2677_v53 = vadd.f32 1.0, %v2645_v16  ;;  %v3171_v58 = vpop.permute.xlu1 %3170  ;;  %v2613_v61 = vsel %vm2517_vm11, 1.0, %v2581_v59  ;;  %v2695_v19 = vadd.f32 1.0, %v2663_v18  ;;  %vm2547_vm11 = vcmp.gt.f32.partialorder %v8453_v17, 0.0 }
 0x4c8   : > { %v3245_v49 = vmul.f32 %v7939_v52, %v3171_v58 }
 0x4c9   : > { %6161 = vlog2.f32 %v2677_v53  ;;  %v2593_v53 = vsel %vm2561_vm14, -1.0, %v10194_v32 }
 0x4ca   : > { %v3277_v9 = vadd.f32 %v3245_v49, %v3031_v8  ;;  %6163 = vlog2.f32 %v2686_v6  ;;  %v10296_v6 = vld [vmem:[#allocation26_spill] sm:$0xff]  ;;  %v2625_v62 = vsel %vm2529_vm15, 1.0, %v2593_v53 }
 0x4cb   : > { %v3411_v2 = vpop.permute.xlu2 %3410  ;;  %6165 = vlog2.f32 %v2689_v57  ;;  %v10297_v8 = vld [vmem:[#allocation54_spill] sm:$0xff]  ;;  %v2596_v57 = vsel %vm2564_vm3, -1.0, %v10194_v32 }
 0x4cc   : > { %v8526_v46 = vadd.f32 %v3470_v50, %v3277_v9  ;;  %v3473_v14 = vmul.f32 %v7942_v48, %v3411_v2  ;;  %6167 = vlog2.f32 %v2692_v60  ;;  %v3034_v49 = vadd.f32 %v10297_v8, %v10296_v6 }
 0x4cd   : > { %6169 = vlog2.f32 %v2695_v19 }
 0x4ce   : > { %3536 = vst [vmem:[%s7950_s11 + $0xa8] sm:$0xff] %v8526_v46 }
 0x4cf   : > { %v6162_v36 = vpop.eup %6161  ;;  %v3186_v51 = vpop.permute.xlu1 %3185 }
 0x4d0   : > { %v2711_v41 = vmul.f32 0.6931472, %v6162_v36  ;;  %v3248_v31 = vmul.f32 %v7939_v52, %v3186_v51  ;;  %v6164_v7 = vpop.eup %6163  ;;  %v10298_v36 = vld [vmem:[#allocation52_spill] sm:$0xff] }
 0x4d1   : > { %v2729_v12 = vmul.f32 0.6931472, %v6164_v7  ;;  %v6166_v5 = vpop.eup %6165  ;;  %vm2570_vm5 = vcmp.lt.f32.partialorder %v10298_v36, 0.0  ;;  %vm2538_vm6 = vcmp.gt.f32.partialorder %v10298_v36, 0.0 }
 0x4d2   : > { %v2773_v63 = vmul.f32 %v2711_v41, %v2613_v61  ;;  %v3280_v39 = vadd.f32 %v3248_v31, %v3040_v47  ;;  %v2735_v58 = vmul.f32 0.6931472, %v6166_v5  ;;  %v6168_v2 = vpop.eup %6167  ;;  %v2666_v41 = vand.u32 2147483647, %v10298_v36  ;;  %v10299_v61 = vld [vmem:[#allocation39_spill] sm:$0xff]  ;;  %v8580_v5 = vpop.f32.mrf.mxu1 }
 0x4d3   : > { %v3426_v25 = vpop.permute.xlu2 %3425  ;;  %v2782_v55 = vmul.f32 %v2729_v12, %v2622_v1  ;;  %v2741_v47 = vmul.f32 0.6931472, %v6168_v2  ;;  %v10300_v31 = vld [vmem:[#allocation43_spill] sm:$0xff]  ;;  %v6170_v12 = vpop.eup %6169 }
 0x4d4   : > { %3295 = vperm.xlu1 %6049, %v2773_v63   ;;  %v8538_v26 = vadd.f32 %v3473_v14, %v3280_v39  ;;  %v3476_v40 = vmul.f32 %v7942_v48, %v3426_v25  ;;  %v2785_v59 = vmul.f32 %v2735_v58, %v2625_v62  ;;  %v3043_v63 = vadd.f32 %v10300_v31, %v10299_v61 }
 0x4d5   : > { %v3161_v44 = vpop.permute.xlu0 %3160  ;;  %v2628_v39 = vsel %vm2532_vm0, 1.0, %v2596_v57  ;;  %v2698_v56 = vadd.f32 1.0, %v2666_v41  ;;  %v2747_v24 = vmul.f32 0.6931472, %v6170_v12  ;;  %v3052_v25 = vadd.f32 %v3051_v38, %v2938_v15  ;;  %v10303_v57 = vld [vmem:[#allocation25_spill] sm:$0xff] }
 0x4d6   : > { %v3243_v21 = vmul.f32 %v7939_v52, %v3161_v44  ;;  %3539 = vst [vmem:[%s7950_s11 + $0xc0] sm:$0xff] %v8538_v26  ;;  %v2788_v44 = vmul.f32 %v2741_v47, %v2628_v39 }
 0x4d7   : > { %v3201_v28 = vpop.permute.xlu1 %3200  ;;  %6171 = vlog2.f32 %v2698_v56 }
 0x4d8   : > { %v8546_v43 = vadd.f32 %v3243_v21, %v3025_v30  ;;  %v3251_v37 = vmul.f32 %v7939_v52, %v3201_v28  ;;  %v2669_v30 = vand.u32 2147483647, %v10301_v11  ;;  %v2599_v21 = vsel %vm2567_vm1, -1.0, %v10194_v32 }
 0x4d9   : > { %v2631_v60 = vsel %vm2535_vm4, 1.0, %v2599_v21 }
 0x4da   : > { %v3283_v3 = vadd.f32 %v3251_v37, %v3049_v42  ;;  %v2701_v42 = vadd.f32 1.0, %v2669_v30  ;;  %v2791_v37 = vmul.f32 %v2747_v24, %v2631_v60  ;;  %v2944_v19 = vpop.f32.mrf.mxu1  ;;  %v10304_v24 = vld [vmem:[#allocation55_spill] sm:$0xff] }
 0x4dc   : > { %3340 = vperm.xlu1 %6049, %v2782_v55   ;;  %v8553_v23 = vadd.f32 %v3476_v40, %v3283_v3  ;;  %v8582_v40 = vpop.f32.mrf.mxu2  ;;  %6173 = vlog2.f32 %v2701_v42  ;;  %v10302_v3 = vld [vmem:[#allocation28_spill] sm:$0xff] }
 0x4dd   : > { %v3176_v16 = vpop.permute.xlu0 %3175  ;;  %v6172_v55 = vpop.eup %6171  ;;  %v2672_v33 = vand.u32 2147483647, %v10302_v3  ;;  %vm2576_vm2 = vcmp.lt.f32.partialorder %v10302_v3, 0.0  ;;  %vm2544_vm9 = vcmp.gt.f32.partialorder %v10302_v3, 0.0 }
 0x4de   : > { %v3246_v50 = vmul.f32 %v7939_v52, %v3176_v16  ;;  %3542 = vst [vmem:[%s7950_s11 + $0xd8] sm:$0xff] %v8553_v23  ;;  %v2602_v16 = vsel %vm2570_vm5, -1.0, %v10194_v32  ;;  %v2753_v53 = vmul.f32 0.6931472, %v6172_v55  ;;  %v2608_v30 = vsel %vm2576_vm2, -1.0, %v10194_v32 }
 0x4df   : > { %v2634_v58 = vsel %vm2538_vm6, 1.0, %v2602_v16  ;;  %v2704_v6 = vadd.f32 1.0, %v2672_v33  ;;  %v2611_v55 = vsel %vm2579_vm10, -1.0, %v10194_v32  ;;  %v10305_v16 = vld [vmem:[#allocation36_spill] sm:$0xff] }
 0x4e0   : > { %v8561_v9 = vadd.f32 %v3246_v50, %v3034_v49  ;;  %v2794_v8 = vmul.f32 %v2753_v53, %v2634_v58  ;;  %v2675_v50 = vand.u32 2147483647, %v8453_v17  ;;  %v2643_v58 = vsel %vm2547_vm11, 1.0, %v2611_v55 }
 0x4e1   : > { %6175 = vlog2.f32 %v2704_v6 }
 0x4e2   : > { %v6174_v49 = vpop.eup %6173 }
 0x4e3   : > { %v2759_v2 = vmul.f32 0.6931472, %v6174_v49 }
 0x4e4   : > { %3355 = vperm.xlu1 %6049, %v2785_v59   ;;  %v2605_v59 = vsel %vm2573_vm7, -1.0, %v10194_v32  ;;  %v3057_v41 = vpop.f32.mrf.mxu2 }
 0x4e5   : > { %v3191_v51 = vpop.permute.xlu0 %3190  ;;  %v3058_v31 = vadd.f32 %v3057_v41, %v2944_v19  ;;  %v3253_v41 = vmul.f32 %v7939_v52, %v8457_v34 }
 0x4e6   : > { %v3249_v7 = vmul.f32 %v7939_v52, %v3191_v51  ;;  %v3441_v51 = vpop.permute.xlu2 %3440 }
 0x4e7   : > { %v3479_v15 = vmul.f32 %v7942_v48, %v3441_v51  ;;  %v3055_v51 = vadd.f32 %v8582_v40, %v8580_v5  ;;  %v3225_v5 = vmul.f32 %v7939_v52, %v8474_v35  ;;  %v10309_v40 = vld [vmem:[#allocation49_spill] sm:$0xff] }
 0x4e8   : > { %v8570_v14 = vadd.f32 %v3249_v7, %v3043_v63  ;;  %v2637_v63 = vsel %vm2541_vm8, 1.0, %v2605_v59  ;;  %v2707_v7 = vadd.f32 1.0, %v2675_v50  ;;  %v10306_v50 = vld [vmem:[#allocation37_spill] sm:$0xff] }
 0x4e9   : > { %v2797_v56 = vmul.f32 %v2759_v2, %v2637_v63 }
 0x4ea   : > { %6177 = vlog2.f32 %v2707_v7 }
 0x4ec   : > { %3370 = vperm.xlu1 %6049, %v2788_v44   ;;  %v6176_v44 = vpop.eup %6175 }
 0x4ed   : > { %v3206_v10 = vpop.permute.xlu0 %3205 }
 0x4ee   : > { %v3252_v28 = vmul.f32 %v7939_v52, %v3206_v10  ;;  %v2765_v10 = vmul.f32 0.6931472, %v6176_v44 }
 0x4f0   : > { %v8577_v1 = vadd.f32 %v3252_v28, %v3052_v25  ;;  %v2640_v28 = vsel %vm2544_vm9, 1.0, %v2608_v30  ;;  %v6178_v42 = vpop.eup %6177 }
 0x4f1   : > { %v2800_v60 = vmul.f32 %v2765_v10, %v2640_v28  ;;  %v2771_v3 = vmul.f32 0.6931472, %v6178_v42  ;;  %v6179_v42 = vld [vmem:[%s7950_s11 + $0x10] sm:$0xff] }
 0x4f3   : > { %v2803_v6 = vmul.f32 %v2771_v3, %v2643_v58 }
 0x4f4   : > { %3385 = vperm.xlu1 %6049, %v2791_v37  }
 0x4f5   : > { %v8585_v18 = vpop.permute.xlu0 %3220 }
 0x4fc   : > { %3400 = vperm.xlu1 %6049, %v2794_v8  }
 0x4fd   : > { %v3346_v62 = vpop.permute.xlu0 %3345 }
 0x4fe   : > { %v3460_v36 = vmul.f32 %v7942_v48, %v3346_v62 }
 0x500   : > { %v8595_v47 = vadd.f32 %v3460_v36, %v10303_v57  ;;  %v3216_v61 = vpop.permute.xlu1 %3215  ;;  %v10307_v57 = vld [vmem:[#allocation48_spill] sm:$0xff] }
 0x501   : > { %v3254_v39 = vmul.f32 %v7939_v52, %v3216_v61  ;;  %v10308_v61 = vld [vmem:[#allocation33_spill] sm:$0xff] }
 0x502   : > { %3526 = vst [vmem:[%s7950_s11 + $0x58] sm:$0xff] %v8595_v47 }
 0x503   : > { %v3286_v12 = vadd.f32 %v3254_v39, %v3058_v31  ;;  %v2968_v31 = vadd.f32 %v10308_v61, %v10307_v57  ;;  %v3285_v39 = vadd.f32 %v3253_v41, %v3055_v51  ;;  %v6182_v41 = vld [vmem:[%s7950_s11 + $0x28] sm:$0xff]  ;;  %v6183_v61 = vld [vmem:[%s7950_s11 + $0x30] sm:$0xff] }
 0x504   : > { %3415 = vperm.xlu1 %6049, %v2797_v56   ;;  %v3449_v56 = vmul.f32 %v7942_v48, %v8463_v45  ;;  %v3626_v51 = vmul.f32 %v6182_v41, %v6182_v41 }
 0x505   : > { %v8602_v38 = vadd.f32 %v3479_v15, %v3286_v12  ;;  %v3361_v11 = vpop.permute.xlu0 %3360  ;;  %v10310_v12 = vld [vmem:[#allocation35_spill] sm:$0xff] }
 0x506   : > { %v3463_v21 = vmul.f32 %v7942_v48, %v3361_v11  ;;  %v2971_v11 = vadd.f32 %v10310_v12, %v10309_v40  ;;  %v6185_v40 = vld [vmem:[%s7950_s11 + $0x40] sm:$0xff] }
 0x507   : > { %3545 = vst [vmem:[%s7950_s11 + $0xf0] sm:$0xff] %v8602_v38  ;;  %v3629_v12 = vmul.f32 %v6185_v40, %v6185_v40 }
 0x508   : > { %v8610_v25 = vadd.f32 %v3463_v21, %v10304_v24  ;;  %v3257_v10 = vadd.f32 %v3225_v5, %v2971_v11 }
 0x50a   : > { %3529 = vst [vmem:[%s7950_s11 + $0x70] sm:$0xff] %v8610_v25 }
 0x50c   : > { %3430 = vperm.xlu1 %6049, %v2800_v60  }
 0x50d   : > { %v3376_v37 = vpop.permute.xlu0 %3375 }
 0x50e   : > { %v3466_v33 = vmul.f32 %v7942_v48, %v3376_v37  ;;  %v3623_v37 = vmul.f32 %v6179_v42, %v6179_v42 }
 0x510   : > { %v8619_v53 = vadd.f32 %v3466_v33, %v10305_v16  ;;  %v6180_v33 = vld [vmem:[%s7950_s11 + $0x18] sm:$0xff] }
 0x511   : > { %v3624_v16 = vmul.f32 %v6180_v33, %v6180_v33 }
 0x512   : > { %3532 = vst [vmem:[%s7950_s11 + $0x88] sm:$0xff] %v8619_v53 }
 0x514   : > { %3445 = vperm.xlu1 %6049, %v2803_v6  }
 0x515   : > { %v3391_v8 = vpop.permute.xlu0 %3390 }
 0x516   : > { %v3469_v49 = vmul.f32 %v7942_v48, %v3391_v8 }
 0x518   : > { %v8625_v17 = vadd.f32 %v3469_v49, %v10306_v50  ;;  %v6181_v49 = vld [vmem:[%s7950_s11 + $0x20] sm:$0xff] }
 0x519   : > { %v3625_v50 = vmul.f32 %v6181_v49, %v6181_v49 }
 0x51a   : > { %3535 = vst [vmem:[%s7950_s11 + $0xa0] sm:$0xff] %v8625_v17 }
 0x51d   : > { %v3406_v32 = vpop.permute.xlu0 %3405 }
 0x51e   : > { %v3472_v62 = vmul.f32 %v7942_v48, %v3406_v32 }
 0x520   : > { %v8631_v19 = vadd.f32 %v3472_v62, %v8354_v22 }
 0x522   : > { %3538 = vst [vmem:[%s7950_s11 + $0xb8] sm:$0xff] %v8631_v19 }
 0x525   : > { %v3421_v59 = vpop.permute.xlu0 %3420 }
 0x526   : > { %v3475_v2 = vmul.f32 %v7942_v48, %v3421_v59  ;;  %v10311_v59 = vld [vmem:[#allocation34_spill] sm:$0xff] }
 0x528   : > { %v8637_v36 = vadd.f32 %v3475_v2, %v8374_v29 }
 0x52a   : > { %3541 = vst [vmem:[%s7950_s11 + $0xd0] sm:$0xff] %v8637_v36 }
 0x52b   : > { %v3066_v22 = vpop.permute.xlu1 %3065 }
 0x52c   : > { %v3224_v63 = vmul.f32 %v7939_v52, %v3066_v22 }
 0x52d   : > { %v3436_v7 = vpop.permute.xlu0 %3435 }
 0x52e   : > { %v3478_v29 = vmul.f32 %v7942_v48, %v3436_v7  ;;  %v3256_v34 = vadd.f32 %v3224_v63, %v2968_v31  ;;  %v3627_v31 = vmul.f32 %v6183_v61, %v6183_v61 }
 0x530   : > { %v8651_v44 = vadd.f32 %v3478_v29, %v3285_v39  ;;  %v3481_v15 = vadd.f32 %v3449_v56, %v3256_v34  ;;  %v6184_v29 = vld [vmem:[%s7950_s11 + $0x38] sm:$0xff] }
 0x531   : > { %v3628_v56 = vmul.f32 %v6184_v29, %v6184_v29 }
 0x532   : > { %3544 = vst [vmem:[%s7950_s11 + $0xe8] sm:$0xff] %v8651_v44  ;;  %v3621_v24 = vmul.f32 %v3481_v15, %v3481_v15 }
 0x533   : > { %3515 = vst [vmem:[%s7950_s11] sm:$0xff] %v3481_v15 }
 0x546   : > { %v3296_v30 = vpop.permute.xlu1 %3295 }
 0x547   : > { %v3450_v21 = vmul.f32 %v7942_v48, %v3296_v30 }
 0x549   : > { %v3482_v45 = vadd.f32 %v3450_v21, %v3257_v10  ;;  %v3630_v21 = vmul.f32 %v8485_v13, %v8485_v13 }
 0x54b   : > { %3516 = vst [vmem:[%s7950_s11 + $0x8] sm:$0xff] %v3482_v45  ;;  %v3581_v28 = vadd.f32 %v3482_v45, %v3481_v15  ;;  %v3622_v60 = vmul.f32 %v3482_v45, %v3482_v45 }
 0x54d   : > { %v3582_v55 = vadd.f32 %v6179_v42, %v3581_v28  ;;  %v3653_v3 = vadd.f32 %v3622_v60, %v3621_v24 }
 0x54e   : > { %v3341_v35 = vpop.permute.xlu1 %3340 }
 0x54f   : > { %v3583_v58 = vadd.f32 %v6180_v33, %v3582_v55  ;;  %v3654_v6 = vadd.f32 %v3653_v3, %v3623_v37  ;;  %v3459_v8 = vmul.f32 %v7942_v48, %v3341_v35  ;;  %v3632_v55 = vmul.f32 %v8595_v47, %v8595_v47 }
 0x550   : > { %v3633_v33 = vmul.f32 %v8495_v4, %v8495_v4 }
 0x551   : > { %v3584_v32 = vadd.f32 %v6181_v49, %v3583_v58  ;;  %v3655_v62 = vadd.f32 %v3654_v6, %v3624_v16  ;;  %v3491_v2 = vadd.f32 %v3459_v8, %v10311_v59  ;;  %v3636_v59 = vmul.f32 %v8507_v27, %v8507_v27 }
 0x553   : > { %v3585_v22 = vadd.f32 %v6182_v41, %v3584_v32  ;;  %v3656_v57 = vadd.f32 %v3655_v62, %v3625_v50  ;;  %3525 = vst [vmem:[%s7950_s11 + $0x50] sm:$0xff] %v3491_v2  ;;  %v3631_v60 = vmul.f32 %v3491_v2, %v3491_v2  ;;  %v3635_v50 = vmul.f32 %v8610_v25, %v8610_v25 }
 0x555   : > { %v3657_v63 = vadd.f32 %v3656_v57, %v3626_v51  ;;  %v3586_v7 = vadd.f32 %v6183_v61, %v3585_v22  ;;  %v3638_v61 = vmul.f32 %v8619_v53, %v8619_v53 }
 0x556   : > { %v3356_v39 = vpop.permute.xlu1 %3355 }
 0x557   : > { %v3587_v34 = vadd.f32 %v6184_v29, %v3586_v7  ;;  %v3658_v15 = vadd.f32 %v3657_v63, %v3627_v31  ;;  %v3462_v5 = vmul.f32 %v7942_v48, %v3356_v39  ;;  %v3639_v63 = vmul.f32 %v8517_v20, %v8517_v20 }
 0x559   : > { %v3588_v11 = vadd.f32 %v6185_v40, %v3587_v34  ;;  %v3659_v30 = vadd.f32 %v3658_v15, %v3628_v56  ;;  %v3494_v10 = vadd.f32 %v3462_v5, %v8383_v54  ;;  %v3641_v15 = vmul.f32 %v8625_v17, %v8625_v17 }
 0x55b   : > { %v3589_v45 = vadd.f32 %v3588_v11, %v8485_v13  ;;  %v3660_v24 = vadd.f32 %v3659_v30, %v3629_v12  ;;  %3528 = vst [vmem:[%s7950_s11 + $0x68] sm:$0xff] %v3494_v10  ;;  %v3634_v8 = vmul.f32 %v3494_v10, %v3494_v10  ;;  %v3642_v12 = vmul.f32 %v8526_v46, %v8526_v46 }
 0x55d   : > { %v3590_v28 = vadd.f32 %v3589_v45, %v3491_v2  ;;  %v3661_v42 = vadd.f32 %v3660_v24, %v3630_v21  ;;  %v3644_v24 = vmul.f32 %v8631_v19, %v8631_v19 }
 0x55e   : > { %v3371_v37 = vpop.permute.xlu1 %3370 }
 0x55f   : > { %v3591_v3 = vadd.f32 %v3590_v28, %v8595_v47  ;;  %v3662_v35 = vadd.f32 %v3661_v42, %v3631_v60  ;;  %v3465_v54 = vmul.f32 %v7942_v48, %v3371_v37  ;;  %v3645_v60 = vmul.f32 %v8538_v26, %v8538_v26 }
 0x561   : > { %v3663_v16 = vadd.f32 %v3662_v35, %v3632_v55  ;;  %v3592_v13 = vadd.f32 %v3591_v3, %v8495_v4  ;;  %v3497_v58 = vadd.f32 %v3465_v54, %v8472_v0  ;;  %v3647_v54 = vmul.f32 %v8637_v36, %v8637_v36 }
 0x563   : > { %v3593_v6 = vadd.f32 %v3592_v13, %v3494_v10  ;;  %v3664_v49 = vadd.f32 %v3663_v16, %v3633_v33  ;;  %3531 = vst [vmem:[%s7950_s11 + $0x80] sm:$0xff] %v3497_v58  ;;  %v3637_v51 = vmul.f32 %v3497_v58, %v3497_v58 }
 0x565   : > { %v3594_v47 = vadd.f32 %v3593_v6, %v8610_v25  ;;  %v3665_v32 = vadd.f32 %v3664_v49, %v3634_v8  ;;  %v2947_v8 = vpop.f32.mrf.mxu3  ;;  %v3255_v49 = vmul.f32 %v7939_v52, %v8585_v18  ;;  %v3651_v52 = vmul.f32 %v8602_v38, %v8602_v38 }
 0x566   : > { %v3386_v62 = vpop.permute.xlu1 %3385 }
 0x567   : > { %v3666_v2 = vadd.f32 %v3665_v32, %v3635_v50  ;;  %v3595_v4 = vadd.f32 %v3594_v47, %v8507_v27  ;;  %v3468_v0 = vmul.f32 %v7942_v48, %v3386_v62  ;;  %v3060_v32 = vpop.f32.mrf.mxu2 }
 0x568   : > { %v3061_v62 = vadd.f32 %v3060_v32, %v2947_v8 }
 0x569   : > { %v3596_v41 = vadd.f32 %v3595_v4, %v3497_v58  ;;  %v3667_v22 = vadd.f32 %v3666_v2, %v3636_v59  ;;  %v3500_v57 = vadd.f32 %v3468_v0, %v8546_v43  ;;  %v3650_v59 = vmul.f32 %v8651_v44, %v8651_v44 }
 0x56a   : > { %v3287_v0 = vadd.f32 %v3255_v49, %v3061_v62 }
 0x56b   : > { %v3597_v25 = vadd.f32 %v3596_v41, %v8619_v53  ;;  %v3668_v31 = vadd.f32 %v3667_v22, %v3637_v51  ;;  %3534 = vst [vmem:[%s7950_s11 + $0x98] sm:$0xff] %v3500_v57  ;;  %v3640_v56 = vmul.f32 %v3500_v57, %v3500_v57 }
 0x56d   : > { %v3669_v7 = vadd.f32 %v3668_v31, %v3638_v61  ;;  %v3598_v27 = vadd.f32 %v3597_v25, %v8517_v20 }
 0x56e   : > { %v3401_v39 = vpop.permute.xlu1 %3400 }
 0x56f   : > { %v3599_v29 = vadd.f32 %v3598_v27, %v3500_v57  ;;  %v3670_v34 = vadd.f32 %v3669_v7, %v3639_v63  ;;  %v3471_v43 = vmul.f32 %v7942_v48, %v3401_v39 }
 0x571   : > { %v3600_v53 = vadd.f32 %v3599_v29, %v8625_v17  ;;  %v3671_v5 = vadd.f32 %v3670_v34, %v3640_v56  ;;  %v3503_v40 = vadd.f32 %v3471_v43, %v8561_v9  ;;  %v3580_v34 = vld [vmem:[#allocation2] sm:$0x1] }
 0x573   : > { %v3672_v11 = vadd.f32 %v3671_v5, %v3641_v15  ;;  %3537 = vst [vmem:[%s7950_s11 + $0xb0] sm:$0xff] %v3503_v40  ;;  %v3601_v20 = vadd.f32 %v3600_v53, %v8526_v46  ;;  %v3643_v10 = vmul.f32 %v3503_v40, %v3503_v40  ;;  %v3620_v53 = vld [vmem:[#allocation3] sm:$0x1] }
 0x575   : > { %v3602_v30 = vadd.f32 %v3601_v20, %v3503_v40  ;;  %v3673_v21 = vadd.f32 %v3672_v11, %v3642_v12 }
 0x576   : > { %v3416_v45 = vpop.permute.xlu1 %3415 }
 0x577   : > { %v3603_v17 = vadd.f32 %v3602_v30, %v8631_v19  ;;  %v3674_v28 = vadd.f32 %v3673_v21, %v3643_v10  ;;  %v3474_v9 = vmul.f32 %v7942_v48, %v3416_v45 }
 0x579   : > { %v3675_v42 = vadd.f32 %v3674_v28, %v3644_v24  ;;  %v3506_v37 = vadd.f32 %v3474_v9, %v8570_v14  ;;  %v3604_v46 = vadd.f32 %v3603_v17, %v8538_v26  ;;  %v3648_v14 = vmul.f32 %v8553_v23, %v8553_v23 }
 0x57b   : > { %3540 = vst [vmem:[%s7950_s11 + $0xc8] sm:$0xff] %v3506_v37  ;;  %v3605_v55 = vadd.f32 %v3604_v46, %v3506_v37  ;;  %v3646_v3 = vmul.f32 %v3506_v37, %v3506_v37  ;;  %v3676_v35 = vadd.f32 %v3675_v42, %v3645_v60 }
 0x57d   : > { %v3606_v19 = vadd.f32 %v3605_v55, %v8637_v36  ;;  %v3677_v33 = vadd.f32 %v3676_v35, %v3646_v3 }
 0x57e   : > { %v3431_v16 = vpop.permute.xlu1 %3430 }
 0x57f   : > { %v3678_v13 = vadd.f32 %v3677_v33, %v3647_v54  ;;  %v3477_v58 = vmul.f32 %v7942_v48, %v3431_v16  ;;  %v3607_v6 = vadd.f32 %v3606_v19, %v8553_v23 }
 0x581   : > { %v3509_v26 = vadd.f32 %v3477_v58, %v8577_v1  ;;  %v3679_v47 = vadd.f32 %v3678_v13, %v3648_v14 }
 0x583   : > { %3543 = vst [vmem:[%s7950_s11 + $0xe0] sm:$0xff] %v3509_v26  ;;  %v3608_v50 = vadd.f32 %v3607_v6, %v3509_v26  ;;  %v3649_v36 = vmul.f32 %v3509_v26, %v3509_v26 }
 0x585   : > { %v3609_v2 = vadd.f32 %v3608_v50, %v8651_v44  ;;  %v3680_v4 = vadd.f32 %v3679_v47, %v3649_v36 }
 0x586   : > { %v3446_v1 = vpop.permute.xlu1 %3445 }
 0x587   : > { %v3681_v23 = vadd.f32 %v3680_v4, %v3650_v59  ;;  %v3480_v41 = vmul.f32 %v7942_v48, %v3446_v1  ;;  %v3610_v51 = vadd.f32 %v3609_v2, %v8602_v38 }
 0x589   : > { %v3512_v18 = vadd.f32 %v3480_v41, %v3287_v0  ;;  %v3682_v61 = vadd.f32 %v3681_v23, %v3651_v52 }
 0x58b   : > { %3546 = vst [vmem:[%s7950_s11 + $0xf8] sm:$0xff] %v3512_v18  ;;  %v3611_v22 = vadd.f32 %v3610_v51, %v3512_v18  ;;  %v3652_v57 = vmul.f32 %v3512_v18, %v3512_v18 }
 0x58d   : > { %v3612_v25 = vrot.slane %v3611_v22, 4  ;;  %v3683_v31 = vadd.f32 %v3682_v61, %v3652_v57 }
 0x58f   : > { %v3613_v63 = vadd.f32 %v3612_v25, %v3611_v22  ;;  %v3684_v44 = vrot.slane %v3683_v31, 4 }
 0x591   : > { %v3614_v7 = vrot.slane %v3613_v63, 2  ;;  %v3685_v27 = vadd.f32 %v3684_v44, %v3683_v31 }
 0x593   : > { %v3615_v39 = vadd.f32 %v3614_v7, %v3613_v63  ;;  %v3686_v29 = vrot.slane %v3685_v27, 2 }
 0x595   : > { %v3616_v56 = vrot.slane %v3615_v39, 1  ;;  %v3687_v48 = vadd.f32 %v3686_v29, %v3685_v27 }
 0x597   : > { %v3617_v43 = vadd.f32 %v3616_v56, %v3615_v39  ;;  %v3688_v15 = vrot.slane %v3687_v48, 1 }
 0x599   : > { %v3618_v5 = vadd.f32 %v3617_v43, %v3580_v34  ;;  %v3689_v38 = vadd.f32 %v3688_v15, %v3687_v48  ;;  %3695 = sbr.rel (%p5852_p2) target bundleno = 1472 (0x5c0), region = 136 }
 0x59b   : > { %3619 = vst [vmem:[#allocation2] sm:$0x1] %v3618_v5  ;;  %v3690_v40 = vadd.f32 %v3689_v38, %v3620_v53 }
 0x59d   : > { %3691 = vst [vmem:[#allocation3] sm:$0x1] %v3690_v40 }
 0x5a2   : > { %v3696_v12 = vld [vmem:[#allocation2] sm:$0x1] }
 0x5a3   : > { %v3697_v20 = vmul.f32 0.0033333334, %v3696_v12 }
 0x5a4   : > { %v3698_v11 = vld [vmem:[#allocation3] sm:$0x1] }
 0x5a5   : > { %v3699_v30 = vmul.f32 0.0033333334, %v3698_v11  ;;  %v3700_v10 = vmul.f32 %v3697_v20, %v3697_v20  ;;  %3703 = vst [vmem:[#allocation2] sm:$0x1] %v3697_v20 }
 0x5a7   : > { %v3701_v21 = vsub.f32 %v3699_v30, %v3700_v10 }
 0x5a9   : > { %v3702_v45 = vmax.f32 %v3701_v21, 0.0 }
 0x5ab   : > { %v3704_v24 = vadd.f32 1e-05, %v3702_v45 }
 0x5ad   : > { %6186 = vrsqrt.f32 %v3704_v24  ;;  %vm3711_vm12 = vweird.f32 %v3704_v24 }
 0x5b3   : > { %v6187_v17 = vpop.eup %6186 }
 0x5b4   : > { %v3706_v28 = vmul.f32 %v6187_v17, %v3704_v24  ;;  %vm3712_vm13 = vweird.f32 %v6187_v17 }
 0x5b5   : > { %vm3713_vm14 = vmor %vm3711_vm12, %vm3712_vm13 }
 0x5b6   : > { %v3707_v9 = vmul.f32 %v6187_v17, %v3706_v28 }
 0x5b8   : > { %v3708_v60 = vmul.f32 0.5, %v3707_v9 }
 0x5ba   : > { %v3709_v42 = vsub.f32 1.5, %v3708_v60 }
 0x5bc   : > { %v3710_v37 = vmul.f32 %v6187_v17, %v3709_v42 }
 0x5be   : > { %v3714_v46 = vsel %vm3713_vm14, %v6187_v17, %v3710_v37 }
 0x5bf   : > { %3715 = vst [vmem:[#allocation3] sm:$0x1] %v3714_v46 }
 0x5c0 PF: > { %p5853_p3 = scmp.ne.s32.totalorder %s6421_s10, 1 }
 0x5c1   : > { %s10312_s1 = sld [smem:[#allocation84_spill]] (!%p5853_p3)  ;;  %s5854_s0 = sshll.u32 (!%p5853_p3), %s6417_s6, 8 }
 0x5c2   : > { %3719 = sbr.rel (%p5853_p3) target bundleno = 3207 (0xc87), region = 140  ;;  %s8767_s30 = scalar_lea.vmem (!%p5853_p3), [#allocation6], %s5854_s0 }
 0x5c3   : > { %s10313_s14 = sld [smem:[#allocation82_spill]] (!%p5853_p3)  ;;  %s9611_s3 = scalar_lea.vmem (!%p5853_p3), [#allocation7], %s5854_s0 }
 0x5c4   : > { %s10314_s2 = sld [smem:[#allocation83_spill]] (!%p5853_p3)  ;;  %p5905_p4 = scmp.ne.s32.totalorder (!%p5853_p3), %s6417_s6, 1 }
 0x5c7   : > { %v3978_v55 = vld [vmem:[%s10312_s1 + $0x78] sm:$0xff]  ;;  %v3977_v3 = vld [vmem:[%s10312_s1 + $0x70] sm:$0xff]  ;;  %v3976_v35 = vld [vmem:[%s10312_s1 + $0x68] sm:$0xff]  ;;  %vm5249_vm6 = vcmask 31744   ;;  %s10343_s29 = sld [smem:[#allocation77_spill]] (!%p5905_p4)  ;;  %s6442_s0 = smov (!%p5905_p4), 124  }
 0x5c8   : > { %3983 = vmatpush.msra.mxu0 %v3978_v55  ;;  %5935 = vmatpush.msra.mxu2 %v3978_v55  ;;  %v3975_v54 = vld [vmem:[%s10312_s1 + $0x60] sm:$0xff]  ;;  %v3974_v19 = vld [vmem:[%s10312_s1 + $0x58] sm:$0xff]  ;;  %v3973_v33 = vld [vmem:[%s10312_s1 + $0x50] sm:$0xff]  ;;  %s10345_s4 = sld [smem:[#allocation76_spill]] (!%p5905_p4) }
 0x5c9   : > { %v8760_v16 = vld [vmem:[#allocation2] ss:$0 sm:$0xff]  ;;  %v3972_v13 = vld [vmem:[%s10312_s1 + $0x48] sm:$0xff]  ;;  %v8775_v8 = vld [vmem:[#allocation3] ss:$0 sm:$0xff]  ;;  %s10348_s11 = sld [smem:[#allocation78_spill]] (!%p5905_p4) }
 0x5ca   : > { %3984 = vmatpush.msra.mxu0 %v3977_v3  ;;  %5936 = vmatpush.msra.mxu2 %v3977_v3  ;;  %v3722_v58 = vld [vmem:[%s8767_s30] sm:$0xff]  ;;  %v3970_v50 = vld [vmem:[%s10312_s1 + $0x38] sm:$0xff]  ;;  %v3969_v36 = vld [vmem:[%s10312_s1 + $0x30] sm:$0xff] }
 0x5cb   : > { %v3742_v14 = vld [vmem:[%s8767_s30 + $0xa0] sm:$0xff]  ;;  %v3792_v6 = vsub.f32 %v3722_v58, %v8760_v16  ;;  %v3723_v59 = vld [vmem:[%s8767_s30 + $0x8] sm:$0xff]  ;;  %v3966_v51 = vld [vmem:[%s10312_s1 + $0x18] sm:$0xff] }
 0x5cc   : > { %3985 = vmatpush.msra.mxu0 %v3976_v35  ;;  %5937 = vmatpush.msra.mxu2 %v3976_v35  ;;  %v3971_v26 = vld [vmem:[%s10312_s1 + $0x40] sm:$0xff]  ;;  %v3812_v49 = vsub.f32 %v3742_v14, %v8760_v16  ;;  %v3743_v2 = vld [vmem:[%s8767_s30 + $0xa8] sm:$0xff]  ;;  %v3793_v52 = vsub.f32 %v3723_v59, %v8760_v16  ;;  %v3965_v22 = vld [vmem:[%s10312_s1 + $0x10] sm:$0xff] }
 0x5cd   : > { %v3827_v47 = vmul.f32 %v8775_v8, %v3792_v6  ;;  %v8788_v32 = vld [vmem:[%s10313_s14] ss:$0 sm:$0xff]  ;;  %v3968_v4 = vld [vmem:[%s10312_s1 + $0x28] sm:$0xff]  ;;  %v3813_v18 = vsub.f32 %v3743_v2, %v8760_v16  ;;  %v3724_v63 = vld [vmem:[%s8767_s30 + $0x10] sm:$0xff]  ;;  %s10315_s14 = sld [smem:[#allocation85_spill]]  ;;  %s10344_s8 = smov (!%p5905_p4), %s10343_s29 }
 0x5ce   : > { %3986 = vmatpush.msra.mxu0 %v3975_v54  ;;  %5938 = vmatpush.msra.mxu2 %v3975_v54  ;;  %v3847_v62 = vmul.f32 %v8775_v8, %v3812_v49  ;;  %v3967_v1 = vld [vmem:[%s10312_s1 + $0x20] sm:$0xff]  ;;  %v3828_v25 = vmul.f32 %v8775_v8, %v3793_v52  ;;  %v3744_v44 = vld [vmem:[%s8767_s30 + $0xb0] sm:$0xff]  ;;  %v3964_v7 = vld [vmem:[%s10312_s1 + $0x8] sm:$0xff]  ;;  %v3794_v27 = vsub.f32 %v3724_v63, %v8760_v16 }
 0x5cf   : > { %v3863_v0 = vmul.f32 %v8788_v32, %v3827_v47  ;;  %v8803_v23 = vld [vmem:[%s10314_s2] ss:$0 sm:$0xff]  ;;  %v3848_v31 = vmul.f32 %v8775_v8, %v3813_v18  ;;  %v3814_v39 = vsub.f32 %v3744_v44, %v8760_v16  ;;  %v3725_v40 = vld [vmem:[%s8767_s30 + $0x18] sm:$0xff]  ;;  %v3727_v14 = vld [vmem:[%s8767_s30 + $0x28] sm:$0xff]  ;;  %s10349_s28 = smov (!%p5905_p4), %s10348_s11 }
 0x5d0   : > { %3987 = vmatpush.msra.mxu0 %v3974_v19  ;;  %5939 = vmatpush.msra.mxu2 %v3974_v19  ;;  %v3883_v41 = vmul.f32 %v8788_v32, %v3847_v62  ;;  %v3963_v29 = vld [vmem:[%s10312_s1] sm:$0xff]  ;;  %v3864_v34 = vmul.f32 %v8788_v32, %v3828_v25  ;;  %v3829_v15 = vmul.f32 %v8775_v8, %v3794_v27  ;;  %v3745_v12 = vld [vmem:[%s8767_s30 + $0xb8] sm:$0xff] }
 0x5d1   : > { %v3899_v57 = vadd.f32 %v8803_v23, %v3863_v0  ;;  %v3884_v43 = vmul.f32 %v8788_v32, %v3848_v31  ;;  %v3849_v38 = vmul.f32 %v8775_v8, %v3814_v39  ;;  %v3795_v20 = vsub.f32 %v3725_v40, %v8760_v16  ;;  %v3726_v60 = vld [vmem:[%s8767_s30 + $0x20] sm:$0xff]  ;;  %v3728_v0 = vld [vmem:[%s8767_s30 + $0x30] sm:$0xff]  ;;  %v3749_v27 = vld [vmem:[%s8767_s30 + $0xd8] sm:$0xff] }
 0x5d2   : > { %3988 = vmatpush.msra.mxu0 %v3973_v33  ;;  %5940 = vmatpush.msra.mxu2 %v3973_v33  ;;  %v3919_v61 = vadd.f32 %v8803_v23, %v3883_v41  ;;  %v3900_v53 = vadd.f32 %v8803_v23, %v3864_v34  ;;  %v3865_v11 = vmul.f32 %v8788_v32, %v3829_v15  ;;  %v3746_v42 = vld [vmem:[%s8767_s30 + $0xc0] sm:$0xff]  ;;  %v3748_v41 = vld [vmem:[%s8767_s30 + $0xd0] sm:$0xff] }
 0x5d3   : > { %v3931_v56 = vmax.f32 %v3899_v57, 0.0  ;;  %v3920_v5 = vadd.f32 %v8803_v23, %v3884_v43  ;;  %v3885_v21 = vmul.f32 %v8788_v32, %v3849_v38  ;;  %v3815_v45 = vsub.f32 %v3745_v12, %v8760_v16  ;;  %v3730_v38 = vld [vmem:[%s8767_s30 + $0x40] sm:$0xff] }
 0x5d4   : > { %3989 = vmatpush.msra.mxu0 %v3972_v13  ;;  %5941 = vmatpush.msra.mxu2 %v3972_v13  ;;  %v3951_v48 = vmax.f32 %v3919_v61, 0.0  ;;  %v3932_v30 = vmax.f32 %v3900_v53, 0.0  ;;  %v3901_v24 = vadd.f32 %v8803_v23, %v3865_v11  ;;  %v3830_v17 = vmul.f32 %v8775_v8, %v3795_v20  ;;  %v3750_v12 = vld [vmem:[%s8767_s30 + $0xe0] sm:$0xff] }
 0x5d5   : > { %v3952_v10 = vmax.f32 %v3920_v5, 0.0  ;;  %v3921_v28 = vadd.f32 %v8803_v23, %v3885_v21  ;;  %v3850_v9 = vmul.f32 %v8775_v8, %v3815_v45  ;;  %v3796_v35 = vsub.f32 %v3726_v60, %v8760_v16 }
 0x5d6   : > { %3990 = vmatpush.msra.mxu0 %v3971_v26  ;;  %5942 = vmatpush.msra.mxu2 %v3971_v26  ;;  %v3933_v37 = vmax.f32 %v3901_v24, 0.0  ;;  %v3866_v46 = vmul.f32 %v8788_v32, %v3830_v17  ;;  %v3816_v54 = vsub.f32 %v3746_v42, %v8760_v16  ;;  %v3747_v26 = vld [vmem:[%s8767_s30 + $0xc8] sm:$0xff]  ;;  %v3797_v49 = vsub.f32 %v3727_v14, %v8760_v16  ;;  %v3732_v14 = vld [vmem:[%s8767_s30 + $0x50] sm:$0xff] }
 0x5d7   : > { %v3953_v55 = vmax.f32 %v3921_v28, 0.0  ;;  %v3886_v3 = vmul.f32 %v8788_v32, %v3850_v9  ;;  %v3831_v13 = vmul.f32 %v8775_v8, %v3796_v35  ;;  %v3817_v62 = vsub.f32 %v3747_v26, %v8760_v16  ;;  %v3731_v9 = vld [vmem:[%s8767_s30 + $0x48] sm:$0xff]  ;;  %v3752_v26 = vld [vmem:[%s8767_s30 + $0xf0] sm:$0xff] }
 0x5d8   : > { %3991 = vmatpush.msra.mxu0 %v3970_v50  ;;  %5943 = vmatpush.msra.mxu2 %v3970_v50  ;;  %v3902_v19 = vadd.f32 %v8803_v23, %v3866_v46  ;;  %v3851_v58 = vmul.f32 %v8775_v8, %v3816_v54  ;;  %v3832_v59 = vmul.f32 %v8775_v8, %v3797_v49  ;;  %v3751_v42 = vld [vmem:[%s8767_s30 + $0xe8] sm:$0xff] }
 0x5d9   : > { %v3922_v33 = vadd.f32 %v8803_v23, %v3886_v3  ;;  %v3798_v18 = vsub.f32 %v3728_v0, %v8760_v16  ;;  %v3818_v61 = vsub.f32 %v3748_v41, %v8760_v16  ;;  %v3819_v43 = vsub.f32 %v3749_v27, %v8760_v16  ;;  %v3733_v0 = vld [vmem:[%s8767_s30 + $0x58] sm:$0xff] }
 0x5da   : > { %3992 = vmatpush.msra.mxu0 %v3969_v36  ;;  %5944 = vmatpush.msra.mxu2 %v3969_v36  ;;  %v3934_v6 = vmax.f32 %v3902_v19, 0.0  ;;  %v3867_v36 = vmul.f32 %v8788_v32, %v3831_v13  ;;  %v3887_v47 = vmul.f32 %v8788_v32, %v3851_v58  ;;  %v3868_v52 = vmul.f32 %v8788_v32, %v3832_v59 }
 0x5db   : > { %v3954_v50 = vmax.f32 %v3922_v33, 0.0  ;;  %v3833_v31 = vmul.f32 %v8775_v8, %v3798_v18  ;;  %v3853_v44 = vmul.f32 %v8775_v8, %v3818_v61  ;;  %v3854_v40 = vmul.f32 %v8775_v8, %v3819_v43 }
 0x5dc   : > { %3993 = vmatpush.msra.mxu0 %v3968_v4  ;;  %5945 = vmatpush.msra.mxu2 %v3968_v4  ;;  %v3903_v2 = vadd.f32 %v8803_v23, %v3867_v36  ;;  %v3923_v4 = vadd.f32 %v8803_v23, %v3887_v47  ;;  %v3904_v25 = vadd.f32 %v8803_v23, %v3868_v52 }
 0x5dd   : > { %v3800_v20 = vsub.f32 %v3730_v38, %v8760_v16  ;;  %v3890_v21 = vmul.f32 %v8788_v32, %v3854_v40  ;;  %v3820_v45 = vsub.f32 %v3750_v12, %v8760_v16  ;;  %v3801_v46 = vsub.f32 %v3731_v9, %v8760_v16  ;;  %v3736_v12 = vld [vmem:[%s8767_s30 + $0x70] sm:$0xff] }
 0x5de   : > { %3994 = vmatpush.msra.mxu0 %v3967_v1  ;;  %5946 = vmatpush.msra.mxu2 %v3967_v1  ;;  %v3852_v1 = vmul.f32 %v8775_v8, %v3817_v62  ;;  %v3936_v39 = vmax.f32 %v3904_v25, 0.0  ;;  %v3821_v54 = vsub.f32 %v3751_v42, %v8760_v16  ;;  %v3802_v36 = vsub.f32 %v3732_v14, %v8760_v16 }
 0x5df   : > { %v3835_v24 = vmul.f32 %v8775_v8, %v3800_v20  ;;  %v3926_v28 = vadd.f32 %v8803_v23, %v3890_v21  ;;  %v3855_v60 = vmul.f32 %v8775_v8, %v3820_v45  ;;  %v3836_v33 = vmul.f32 %v8775_v8, %v3801_v46 }
 0x5e0   : > { %3995 = vmatpush.msra.mxu0 %v3966_v51  ;;  %5947 = vmatpush.msra.mxu2 %v3966_v51  ;;  %v3935_v51 = vmax.f32 %v3903_v2, 0.0  ;;  %v3888_v57 = vmul.f32 %v8788_v32, %v3852_v1  ;;  %v3856_v58 = vmul.f32 %v8775_v8, %v3821_v54  ;;  %v3822_v62 = vsub.f32 %v3752_v26, %v8760_v16  ;;  %v8956_v26 = vld [vmem:[%s10315_s14] ss:$0 sm:$0xff] }
 0x5e1   : > { %v3958_v3 = vmax.f32 %v3926_v28, 0.0  ;;  %v3891_v35 = vmul.f32 %v8788_v32, %v3855_v60  ;;  %v3872_v49 = vmul.f32 %v8788_v32, %v3836_v33  ;;  %v3837_v2 = vmul.f32 %v8775_v8, %v3802_v36  ;;  %v3737_v28 = vld [vmem:[%s8767_s30 + $0x78] sm:$0xff]  ;;  %v8964_v36 = vld [vmem:[%s10006_s13] ss:$0 sm:$0xff] }
 0x5e2   : > { %3996 = vmatpush.msra.mxu0 %v3965_v22  ;;  %5948 = vmatpush.msra.mxu2 %v3965_v22  ;;  %v3955_v22 = vmax.f32 %v3923_v4, 0.0  ;;  %v3924_v63 = vadd.f32 %v8803_v23, %v3888_v57  ;;  %v3892_v47 = vmul.f32 %v8788_v32, %v3856_v58  ;;  %v3857_v1 = vmul.f32 %v8775_v8, %v3822_v62 }
 0x5e3   : > { %v3927_v13 = vadd.f32 %v8803_v23, %v3891_v35  ;;  %v3908_v59 = vadd.f32 %v8803_v23, %v3872_v49  ;;  %v3873_v52 = vmul.f32 %v8788_v32, %v3837_v2  ;;  %v3806_v21 = vsub.f32 %v3736_v12, %v8760_v16 }
 0x5e4   : > { %3997 = vmatpush.msra.mxu0 %v3964_v7  ;;  %5949 = vmatpush.msra.mxu2 %v3964_v7  ;;  %v3729_v7 = vld [vmem:[%s8767_s30 + $0x38] sm:$0xff]  ;;  %v3928_v4 = vadd.f32 %v8803_v23, %v3892_v47  ;;  %v3807_v42 = vsub.f32 %v3737_v28, %v8760_v16 }
 0x5e5   : > { %v3799_v34 = vsub.f32 %v3729_v7, %v8760_v16  ;;  %v3940_v41 = vmax.f32 %v3908_v59, 0.0  ;;  %v3909_v57 = vadd.f32 %v8803_v23, %v3873_v52 }
 0x5e6   : > { %3998 = vmatpush.msra.mxu0 %v3963_v29  ;;  %5950 = vmatpush.msra.mxu2 %v3963_v29  ;;  %v3869_v29 = vmul.f32 %v8788_v32, %v3833_v31  ;;  %v3960_v18 = vmax.f32 %v3928_v4, 0.0  ;;  %v3734_v31 = vld [vmem:[%s8767_s30 + $0x60] sm:$0xff]  ;;  %v3842_v46 = vmul.f32 %v8775_v8, %v3807_v42 }
 0x5e7   : > { %3999 = vmatmul.f32.vlgmr.msra.gmra.mxu0 %v3931_v56  ;;  %4059 = vmatmul.f32.vlgmr.msra.gmra.mxu2 %v3951_v48  ;;  %v3956_v56 = vmax.f32 %v3924_v63, 0.0  ;;  %v3889_v48 = vmul.f32 %v8788_v32, %v3853_v44  ;;  %v3834_v5 = vmul.f32 %v8775_v8, %v3799_v34  ;;  %v3941_v63 = vmax.f32 %v3909_v57, 0.0 }
 0x5e8   : > { %v3905_v15 = vadd.f32 %v8803_v23, %v3869_v29  ;;  %v3804_v27 = vsub.f32 %v3734_v31, %v8760_v16  ;;  %v3878_v35 = vmul.f32 %v8788_v32, %v3842_v46  ;;  %v3739_v46 = vld [vmem:[%s8767_s30 + $0x88] sm:$0xff] }
 0x5e9   : > { %v3925_v53 = vadd.f32 %v8803_v23, %v3889_v48 }
 0x5ea   : > { %v3937_v11 = vmax.f32 %v3905_v15, 0.0  ;;  %v3839_v29 = vmul.f32 %v8775_v8, %v3804_v27  ;;  %v3753_v15 = vld [vmem:[%s8767_s30 + $0xf8] sm:$0xff] }
 0x5ec   : > { %v3875_v34 = vmul.f32 %v8788_v32, %v3839_v29 }
 0x5ee   : > { %v3911_v38 = vadd.f32 %v8803_v23, %v3875_v34 }
 0x5ef   : > { %4002 = vmatmul.f32.gmra.mxu0 %v3932_v30  ;;  %4062 = vmatmul.f32.gmra.mxu2 %v3952_v10  ;;  %v3957_v30 = vmax.f32 %v3925_v53, 0.0  ;;  %v3870_v10 = vmul.f32 %v8788_v32, %v3834_v5  ;;  %v3823_v53 = vsub.f32 %v3753_v15, %v8760_v16 }
 0x5f1   : > { %v3906_v17 = vadd.f32 %v8803_v23, %v3870_v10  ;;  %v3858_v5 = vmul.f32 %v8775_v8, %v3823_v53 }
 0x5f7   : > { %4005 = vmatmul.f32.gmra.mxu0 %v3933_v37  ;;  %4065 = vmatmul.f32.gmra.mxu2 %v3953_v55  ;;  %v3871_v37 = vmul.f32 %v8788_v32, %v3835_v24  ;;  %v3938_v55 = vmax.f32 %v3906_v17, 0.0  ;;  %v3841_v17 = vmul.f32 %v8775_v8, %v3806_v21 }
 0x5f9   : > { %v3907_v19 = vadd.f32 %v8803_v23, %v3871_v37  ;;  %v3877_v60 = vmul.f32 %v8788_v32, %v3841_v17 }
 0x5fb   : > { %v3913_v37 = vadd.f32 %v8803_v23, %v3877_v60 }
 0x5ff   : > { %4008 = vmatmul.f32.gmra.mxu0 %v3934_v6  ;;  %4068 = vmatmul.f32.gmra.mxu2 %v3954_v50  ;;  %v3939_v6 = vmax.f32 %v3907_v19, 0.0  ;;  %v3959_v50 = vmax.f32 %v3927_v13, 0.0  ;;  %v3914_v19 = vadd.f32 %v8803_v23, %v3878_v35  ;;  %v3809_v35 = vsub.f32 %v3739_v46, %v8760_v16 }
 0x601   : > { %v3946_v13 = vmax.f32 %v3914_v19, 0.0 }
 0x607   : > { %4011 = vmatmul.f32.gmra.mxu0 %v3935_v51  ;;  %4071 = vmatmul.f32.gmra.mxu2 %v3955_v22  ;;  %v3803_v51 = vsub.f32 %v3733_v0, %v8760_v16  ;;  %v3893_v22 = vmul.f32 %v8788_v32, %v3857_v1 }
 0x609   : > { %v3838_v61 = vmul.f32 %v8775_v8, %v3803_v51  ;;  %v3929_v25 = vadd.f32 %v8803_v23, %v3893_v22 }
 0x60b   : > { %v3874_v44 = vmul.f32 %v8788_v32, %v3838_v61  ;;  %v3961_v7 = vmax.f32 %v3929_v25, 0.0 }
 0x60f   : > { %4014 = vmatmul.f32.gmra.mxu0 %v3936_v39  ;;  %4074 = vmatmul.f32.gmra.mxu2 %v3956_v56  ;;  %v3910_v39 = vadd.f32 %v8803_v23, %v3874_v44  ;;  %v3735_v56 = vld [vmem:[%s8767_s30 + $0x68] sm:$0xff] }
 0x610   : > { %v3805_v43 = vsub.f32 %v3735_v56, %v8760_v16 }
 0x611   : > { %v3942_v48 = vmax.f32 %v3910_v39, 0.0 }
 0x612   : > { %v3840_v40 = vmul.f32 %v8775_v8, %v3805_v43 }
 0x614   : > { %v3876_v10 = vmul.f32 %v8788_v32, %v3840_v40 }
 0x616   : > { %v3912_v24 = vadd.f32 %v8803_v23, %v3876_v10 }
 0x617   : > { %4017 = vmatmul.f32.gmra.mxu0 %v3937_v11  ;;  %4077 = vmatmul.f32.gmra.mxu2 %v3957_v30  ;;  %v3894_v11 = vmul.f32 %v8788_v32, %v3858_v5  ;;  %v3943_v30 = vmax.f32 %v3911_v38, 0.0 }
 0x618   : > { %v3944_v9 = vmax.f32 %v3912_v24, 0.0 }
 0x619   : > { %v3930_v20 = vadd.f32 %v8803_v23, %v3894_v11 }
 0x61b   : > { %v3962_v45 = vmax.f32 %v3930_v20, 0.0 }
 0x61f   : > { %4020 = vmatmul.f32.gmra.mxu0 %v3938_v55  ;;  %4080 = vmatmul.f32.gmra.mxu2 %v3958_v3  ;;  %v3738_v55 = vld [vmem:[%s8767_s30 + $0x80] sm:$0xff]  ;;  %v3945_v3 = vmax.f32 %v3913_v37, 0.0 }
 0x620   : > { %v3808_v54 = vsub.f32 %v3738_v55, %v8760_v16 }
 0x622   : > { %v3843_v33 = vmul.f32 %v8775_v8, %v3808_v54 }
 0x624   : > { %v3879_v58 = vmul.f32 %v8788_v32, %v3843_v33  ;;  %v3844_v33 = vmul.f32 %v8775_v8, %v3809_v35  ;;  %v3741_v35 = vld [vmem:[%s8767_s30 + $0x98] sm:$0xff] }
 0x626   : > { %v3915_v14 = vadd.f32 %v8803_v23, %v3879_v58  ;;  %v3880_v58 = vmul.f32 %v8788_v32, %v3844_v33 }
 0x627   : > { %4023 = vmatmul.f32.gmra.mxu0 %v3939_v6  ;;  %4083 = vmatmul.f32.gmra.mxu2 %v3959_v50 }
 0x628   : > { %v3947_v6 = vmax.f32 %v3915_v14, 0.0 }
 0x62f   : > { %4026 = vmatmul.f32.gmra.mxu0 %v3940_v41  ;;  %4086 = vmatmul.f32.gmra.mxu2 %v3960_v18 }
 0x637   : > { %4029 = vmatmul.f32.gmra.mxu0 %v3941_v63  ;;  %4089 = vmatmul.f32.gmra.mxu2 %v3961_v7 }
 0x63f   : > { %4032 = vmatmul.f32.gmra.mxu0 %v3942_v48  ;;  %4092 = vmatmul.f32.gmra.mxu2 %v3962_v45 }
 0x647   : > { %4035 = vmatmul.f32.gmra.mxu0 %v3943_v30 }
 0x64f   : > { %4038 = vmatmul.f32.gmra.mxu0 %v3944_v9 }
 0x657   : > { %4041 = vmatmul.f32.gmra.mxu0 %v3945_v3 }
 0x65f   : > { %4044 = vmatmul.f32.gmra.mxu0 %v3946_v13 }
 0x664   : > { %v4000_v49 = vpop.f32.mrf.mxu0 }
 0x665   : > { %v8959_v50 = vadd.f32 %v8956_v26, %v4000_v49  ;;  %v3916_v49 = vadd.f32 %v8803_v23, %v3880_v58 }
 0x667   : > { %v4096_v47 = vmax.f32 %v8959_v50, 0.0  ;;  %4047 = vmatmul.f32.gmra.mxu0 %v3947_v6 }
 0x669   : > { %v4132_v62 = vmul.f32 %v8964_v36, %v4096_v47 }
 0x66a   : > { %v4060_v59 = vpop.f32.mrf.mxu2 }
 0x66b   : > { %v8971_v2 = vadd.f32 %v8956_v26, %v4060_v59  ;;  %4164 = vadd.xlane.f32.xlu0 %v4132_v62 }
 0x66c   : > { %v4003_v4 = vpop.f32.mrf.mxu0 }
 0x66d   : > { %v4116_v1 = vmax.f32 %v8971_v2, 0.0  ;;  %v8975_v0 = vadd.f32 %v8956_v26, %v4003_v4  ;;  %v3948_v4 = vmax.f32 %v3916_v49, 0.0 }
 0x66f   : > { %v4097_v41 = vmax.f32 %v8975_v0, 0.0  ;;  %v4152_v52 = vmul.f32 %v8964_v36, %v4116_v1  ;;  %4050 = vmatmul.f32.gmra.mxu0 %v3948_v4 }
 0x671   : > { %v4133_v18 = vmul.f32 %v8964_v36, %v4097_v41  ;;  %4204 = vadd.xlane.f32.xlu2 %v4152_v52 }
 0x672   : > { %v4063_v51 = vpop.f32.mrf.mxu2 }
 0x673   : > { %v8985_v22 = vadd.f32 %v8956_v26, %v4063_v51  ;;  %4166 = vadd.xlane.f32.xlu0 %v4133_v18 }
 0x674   : > { %v4006_v57 = vpop.f32.mrf.mxu0 }
 0x675   : > { %v10122_v61 = vmax.f32 %v8985_v22, 0.0  ;;  %v8989_v25 = vadd.f32 %v8956_v26, %v4006_v57 }
 0x677   : > { %v4153_v31 = vmul.f32 %v8964_v36, %v10122_v61  ;;  %v4098_v44 = vmax.f32 %v8989_v25, 0.0 }
 0x679   : > { %4206 = vadd.xlane.f32.xlu1 %v4153_v31  ;;  %v4134_v56 = vmul.f32 %v8964_v36, %v4098_v44 }
 0x67a   : > { %v4066_v63 = vpop.f32.mrf.mxu2 }
 0x67b   : > { %v8996_v7 = vadd.f32 %v8956_v26, %v4066_v63 }
 0x67c   : > { %v4009_v27 = vpop.f32.mrf.mxu0 }
 0x67d   : > { %v10119_v39 = vmax.f32 %v8996_v7, 0.0  ;;  %v9000_v29 = vadd.f32 %v8956_v26, %v4009_v27  ;;  %v3740_v27 = vld [vmem:[%s8767_s30 + $0x90] sm:$0xff]  ;;  %s10347_s30 = sld [smem:[#allocation87_spill]] (!%p5905_p4) }
 0x67f   : > { %v4154_v48 = vmul.f32 %v8964_v36, %v10119_v39  ;;  %v10116_v43 = vmax.f32 %v9000_v29, 0.0 }
 0x681   : > { %4168 = vadd.xlane.f32.xlu1 %v4134_v56  ;;  %4208 = vadd.xlane.f32.xlu0 %v4154_v48  ;;  %v4135_v12 = vmul.f32 %v8964_v36, %v10116_v43 }
 0x682   : > { %v4069_v34 = vpop.f32.mrf.mxu2 }
 0x683   : > { %v9010_v15 = vadd.f32 %v8956_v26, %v4069_v34 }
 0x684   : > { %v4012_v53 = vpop.f32.mrf.mxu0 }
 0x685   : > { %v10115_v5 = vmax.f32 %v9010_v15, 0.0  ;;  %v9014_v38 = vadd.f32 %v8956_v26, %v4012_v53  ;;  %v3810_v53 = vsub.f32 %v3740_v27, %v8760_v16 }
 0x687   : > { %v4155_v40 = vmul.f32 %v8964_v36, %v10115_v5  ;;  %v10121_v20 = vmax.f32 %v9014_v38, 0.0 }
 0x689   : > { %4210 = vadd.xlane.f32.xlu2 %v4155_v40  ;;  %4170 = vadd.xlane.f32.xlu1 %v4135_v12  ;;  %v4136_v17 = vmul.f32 %v8964_v36, %v10121_v20  ;;  %v3845_v12 = vmul.f32 %v8775_v8, %v3810_v53 }
 0x68a   : > { %v4072_v11 = vpop.f32.mrf.mxu2 }
 0x68b   : > { %v9024_v30 = vadd.f32 %v8956_v26, %v4072_v11 }
 0x68c   : > { %v4015_v10 = vpop.f32.mrf.mxu0 }
 0x68d   : > { %v10120_v21 = vmax.f32 %v9024_v30, 0.0  ;;  %v9028_v45 = vadd.f32 %v8956_v26, %v4015_v10 }
 0x68f   : > { %v10114_v24 = vmax.f32 %v9028_v45, 0.0  ;;  %v4156_v28 = vmul.f32 %v8964_v36, %v10120_v21 }
 0x691   : > { %4172 = vadd.xlane.f32.xlu2 %v4136_v17  ;;  %4212 = vadd.xlane.f32.xlu1 %v4156_v28  ;;  %v4137_v9 = vmul.f32 %v8964_v36, %v10114_v24  ;;  %v3881_v28 = vmul.f32 %v8788_v32, %v3845_v12 }
 0x692   : > { %v4075_v60 = vpop.f32.mrf.mxu2 }
 0x693   : > { %v9041_v42 = vadd.f32 %v8956_v26, %v4075_v60  ;;  %4174 = vadd.xlane.f32.xlu0 %v4137_v9  ;;  %v3917_v46 = vadd.f32 %v8803_v23, %v3881_v28 }
 0x694   : > { %v4018_v37 = vpop.f32.mrf.mxu0 }
 0x695   : > { %v10112_v55 = vmax.f32 %v9041_v42, 0.0  ;;  %v9046_v3 = vadd.f32 %v8956_v26, %v4018_v37 }
 0x697   : > { %v10117_v54 = vmax.f32 %v9046_v3, 0.0  ;;  %v4157_v19 = vmul.f32 %v8964_v36, %v10112_v55 }
 0x699   : > { %4214 = vadd.xlane.f32.xlu1 %v4157_v19  ;;  %v4138_v13 = vmul.f32 %v8964_v36, %v10117_v54 }
 0x69a   : > { %v4078_v14 = vpop.f32.mrf.mxu2 }
 0x69b   : > { %v9059_v6 = vadd.f32 %v8956_v26, %v4078_v14  ;;  %4176 = vadd.xlane.f32.xlu2 %v4138_v13  ;;  %v3949_v13 = vmax.f32 %v3917_v46, 0.0  ;;  %v3811_v14 = vsub.f32 %v3741_v35, %v8760_v16 }
 0x69c   : > { %v4021_v62 = vpop.f32.mrf.mxu0 }
 0x69d   : > { %v10111_v59 = vmax.f32 %v9059_v6, 0.0  ;;  %v9064_v52 = vadd.f32 %v8956_v26, %v4021_v62  ;;  %4053 = vmatmul.f32.gmra.mxu0 %v3949_v13  ;;  %v3846_v4 = vmul.f32 %v8775_v8, %v3811_v14 }
 0x69f   : > { %v4158_v18 = vmul.f32 %v8964_v36, %v10111_v59  ;;  %v10110_v57 = vmax.f32 %v9064_v52, 0.0 }
 0x6a1   : > { %4216 = vadd.xlane.f32.xlu1 %v4158_v18  ;;  %v4139_v48 = vmul.f32 %v8964_v36, %v10110_v57 }
 0x6a2   : > { %v4081_v51 = vpop.f32.mrf.mxu2 }
 0x6a3   : > { %v9079_v34 = vadd.f32 %v8956_v26, %v4081_v51 }
 0x6a4   : > { %v4024_v31 = vpop.f32.mrf.mxu0 }
 0x6a5   : > { %v9071_v63 = vadd.f32 %v8956_v26, %v4024_v31  ;;  %v10104_v10 = vmax.f32 %v9079_v34, 0.0  ;;  %v3882_v31 = vmul.f32 %v8788_v32, %v3846_v4 }
 0x6a7   : > { %v10108_v56 = vmax.f32 %v9071_v63, 0.0  ;;  %v4159_v58 = vmul.f32 %v8964_v36, %v10104_v10 }
 0x6a9   : > { %4178 = vadd.xlane.f32.xlu1 %v4139_v48  ;;  %v4140_v40 = vmul.f32 %v8964_v36, %v10108_v56  ;;  %4218 = vadd.xlane.f32.xlu2 %v4159_v58  ;;  %v3918_v48 = vadd.f32 %v8803_v23, %v3882_v31 }
 0x6aa   : > { %v4084_v11 = vpop.f32.mrf.mxu2 }
 0x6ab   : > { %4180 = vadd.xlane.f32.xlu0 %v4140_v40  ;;  %v9088_v17 = vadd.f32 %v8956_v26, %v4084_v11  ;;  %v3950_v40 = vmax.f32 %v3918_v48, 0.0 }
 0x6ac   : > { %v4027_v9 = vpop.f32.mrf.mxu0 }
 0x6ad   : > { %v9092_v60 = vadd.f32 %v8956_v26, %v4027_v9  ;;  %v10107_v37 = vmax.f32 %v9088_v17, 0.0  ;;  %4056 = vmatmul.f32.gmra.mxu0 %v3950_v40 }
 0x6af   : > { %v10113_v19 = vmax.f32 %v9092_v60, 0.0  ;;  %v4160_v33 = vmul.f32 %v8964_v36, %v10107_v37 }
 0x6b1   : > { %v4141_v49 = vmul.f32 %v8964_v36, %v10113_v19  ;;  %4220 = vadd.xlane.f32.xlu1 %v4160_v33 }
 0x6b2   : > { %v4087_v62 = vpop.f32.mrf.mxu2 }
 0x6b3   : > { %4182 = vadd.xlane.f32.xlu0 %v4141_v49  ;;  %v9110_v18 = vadd.f32 %v8956_v26, %v4087_v62 }
 0x6b4   : > { %v4030_v51 = vpop.f32.mrf.mxu0 }
 0x6b5   : > { %v9114_v27 = vadd.f32 %v8956_v26, %v4030_v51  ;;  %v10106_v16 = vmax.f32 %v9110_v18, 0.0 }
 0x6b7   : > { %v10103_v53 = vmax.f32 %v9114_v27, 0.0  ;;  %v4161_v8 = vmul.f32 %v8964_v36, %v10106_v16 }
 0x6b9   : > { %v4142_v12 = vmul.f32 %v8964_v36, %v10103_v53  ;;  %4222 = vadd.xlane.f32.xlu2 %v4161_v8 }
 0x6ba   : > { %v4090_v11 = vpop.f32.mrf.mxu2 }
 0x6bb   : > { %4184 = vadd.xlane.f32.xlu1 %v4142_v12  ;;  %v9126_v32 = vadd.f32 %v8956_v26, %v4090_v11 }
 0x6bc   : > { %v4033_v28 = vpop.f32.mrf.mxu0 }
 0x6bd   : > { %v10098_v23 = vmax.f32 %v9126_v32, 0.0  ;;  %v9130_v9 = vadd.f32 %v8956_v26, %v4033_v28 }
 0x6bf   : > { %v4162_v46 = vmul.f32 %v8964_v36, %v10098_v23  ;;  %v10101_v35 = vmax.f32 %v9130_v9, 0.0 }
 0x6c1   : > { %v4143_v14 = vmul.f32 %v8964_v36, %v10101_v35 }
 0x6c2   : > { %v4093_v62 = vpop.f32.mrf.mxu2 }
 0x6c3   : > { %4224 = vadd.xlane.f32.xlu1 %v4162_v46  ;;  %v9147_v4 = vadd.f32 %v8956_v26, %v4093_v62  ;;  %v6438_v62 = vmov 0  }
 0x6c4   : > { %v4036_v33 = vpop.f32.mrf.mxu0  ;;  %6188 = vset.pattern.permute.xlu2 %v6438_v62  ;;  %6189 = vset.pattern.permute.xlu0 %v6438_v62 }
 0x6c5   : > { %v9137_v13 = vadd.f32 %v8956_v26, %v4036_v33  ;;  %v10097_v31 = vmax.f32 %v9147_v4, 0.0  ;;  %6190 = vset.pattern.permute.xlu1 %v6438_v62 }
 0x6c7   : > { %v10100_v58 = vmax.f32 %v9137_v13, 0.0  ;;  %v4163_v40 = vmul.f32 %v8964_v36, %v10097_v31 }
 0x6c9   : > { %v4144_v49 = vmul.f32 %v8964_v36, %v10100_v58 }
 0x6cb   : > { %4186 = vadd.xlane.f32.xlu1 %v4143_v14  ;;  %4188 = vadd.xlane.f32.xlu0 %v4144_v49  ;;  %v9167_v14 = vld [vmem:[#allocation8] ss:$0 sm:$0xff] }
 0x6cc   : > { %v4039_v51 = vpop.f32.mrf.mxu0 }
 0x6cd   : > { %v9151_v48 = vadd.f32 %v8956_v26, %v4039_v51 }
 0x6cf   : > { %v10099_v8 = vmax.f32 %v9151_v48, 0.0 }
 0x6d1   : > { %v4145_v12 = vmul.f32 %v8964_v36, %v10099_v8 }
 0x6d3   : > { %4190 = vadd.xlane.f32.xlu0 %v4145_v12  ;;  %4226 = vadd.xlane.f32.xlu1 %v4163_v40 }
 0x6d4   : > { %v4042_v11 = vpop.f32.mrf.mxu0 }
 0x6d5   : > { %v9161_v28 = vadd.f32 %v8956_v26, %v4042_v11 }
 0x6d7   : > { %v10102_v46 = vmax.f32 %v9161_v28, 0.0 }
 0x6d9   : > { %v4146_v33 = vmul.f32 %v8964_v36, %v10102_v46 }
 0x6db   : > { %4192 = vadd.xlane.f32.xlu0 %v4146_v33 }
 0x6dc   : > { %v4045_v49 = vpop.f32.mrf.mxu0 }
 0x6dd   : > { %v9170_v51 = vadd.f32 %v8956_v26, %v4045_v49 }
 0x6de   : > { %v4165_v40 = vpop.xlane.xlu0 %4164 }
 0x6df   : > { %v10105_v12 = vmax.f32 %v9170_v51, 0.0  ;;  %v4232_v11 = vadd.f32 %v9167_v14, %v4165_v40 }
 0x6e1   : > { %v4264_v31 = vsub.f32 0.0, %v4232_v11  ;;  %v4147_v23 = vmul.f32 %v8964_v36, %v10105_v12 }
 0x6e3   : > { %v4296_v8 = vmul.f32 1.442695, %v4264_v31  ;;  %4194 = vadd.xlane.f32.xlu2 %v4147_v23 }
 0x6e4   : > { %v4205_v33 = vpop.xlane.xlu2 %4204  ;;  %v4048_v58 = vpop.f32.mrf.mxu0 }
 0x6e5   : > { %6200 = vpow2.f32 %v4296_v8  ;;  %v4252_v35 = vadd.f32 %v9167_v14, %v4205_v33  ;;  %v9179_v49 = vadd.f32 %v8956_v26, %v4048_v58 }
 0x6e6   : > { %v4167_v62 = vpop.xlane.xlu0 %4166 }
 0x6e7   : > { %v4233_v46 = vadd.f32 %v9167_v14, %v4167_v62  ;;  %v4284_v53 = vsub.f32 0.0, %v4252_v35  ;;  %v10109_v40 = vmax.f32 %v9179_v49, 0.0 }
 0x6e9   : > { %v4265_v11 = vsub.f32 0.0, %v4233_v46  ;;  %v4336_v10 = vmul.f32 1.442695, %v4284_v53  ;;  %v4148_v23 = vmul.f32 %v8964_v36, %v10109_v40 }
 0x6eb   : > { %v6201_v31 = vpop.eup %6200  ;;  %v4298_v12 = vmul.f32 1.442695, %v4265_v11  ;;  %6202 = vpow2.f32 %v4336_v10  ;;  %4196 = vadd.xlane.f32.xlu0 %v4148_v23 }
 0x6ec   : > { %v4360_v8 = vadd.f32 1.0, %v6201_v31  ;;  %v4207_v33 = vpop.xlane.xlu1 %4206 }
 0x6ed   : > { %6204 = vpow2.f32 %v4298_v12  ;;  %v4253_v58 = vadd.f32 %v9167_v14, %v4207_v33 }
 0x6ee   : > { %6206 = vrcp.f32 %v4360_v8 }
 0x6ef   : > { %v4285_v62 = vsub.f32 0.0, %v4253_v58 }
 0x6f1   : > { %v6203_v35 = vpop.eup %6202  ;;  %v4338_v16 = vmul.f32 1.442695, %v4285_v62 }
 0x6f2   : > { %v4380_v37 = vadd.f32 1.0, %v6203_v35 }
 0x6f3   : > { %v6205_v46 = vpop.eup %6204  ;;  %6208 = vpow2.f32 %v4338_v16 }
 0x6f4   : > { %v6207_v53 = vpop.eup %6206  ;;  %v4361_v56 = vadd.f32 1.0, %v6205_v46  ;;  %6210 = vrcp.f32 %v4380_v37  ;;  %v4169_v40 = vpop.xlane.xlu1 %4168 }
 0x6f5   : > { %v4209_v57 = vpop.xlane.xlu0 %4208  ;;  %v4424_v11 = vmul.f32 %v6207_v53, %v4360_v8  ;;  %v4234_v10 = vadd.f32 %v9167_v14, %v4169_v40 }
 0x6f6   : > { %v4254_v23 = vadd.f32 %v9167_v14, %v4209_v57  ;;  %6212 = vrcp.f32 %v4361_v56 }
 0x6f7   : > { %v4266_v12 = vsub.f32 0.0, %v4234_v10  ;;  %v4456_v33 = vsub.f32 2.0, %v4424_v11 }
 0x6f8   : > { %v4286_v31 = vsub.f32 0.0, %v4254_v23 }
 0x6f9   : > { %v6209_v58 = vpop.eup %6208  ;;  %v4300_v59 = vmul.f32 1.442695, %v4266_v12  ;;  %v4488_v35 = vmul.f32 %v6207_v53, %v4456_v33 }
 0x6fa   : > { %v4340_v62 = vmul.f32 1.442695, %v4286_v31  ;;  %v6211_v55 = vpop.eup %6210  ;;  %v4381_v16 = vadd.f32 1.0, %v6209_v58 }
 0x6fb   : > { %v4444_v19 = vmul.f32 %v6211_v55, %v4380_v37  ;;  %6214 = vpow2.f32 %v4300_v59  ;;  %4522 = vperm.xlu2 %6188, %v4488_v35  }
 0x6fc   : > { %v6213_v46 = vpop.eup %6212  ;;  %6216 = vrcp.f32 %v4381_v16  ;;  %v4211_v8 = vpop.xlane.xlu2 %4210 }
 0x6fd   : > { %v4171_v24 = vpop.xlane.xlu1 %4170  ;;  %v4425_v40 = vmul.f32 %v6213_v46, %v4361_v56  ;;  %6218 = vpow2.f32 %v4340_v62  ;;  %v4255_v57 = vadd.f32 %v9167_v14, %v4211_v8  ;;  %v4476_v11 = vsub.f32 2.0, %v4444_v19 }
 0x6fe   : > { %v4235_v10 = vadd.f32 %v9167_v14, %v4171_v24 }
 0x6ff   : > { %v4287_v23 = vsub.f32 0.0, %v4255_v57  ;;  %v4457_v31 = vsub.f32 2.0, %v4425_v40  ;;  %v4508_v53 = vmul.f32 %v6211_v55, %v4476_v11 }
 0x700   : > { %v4267_v12 = vsub.f32 0.0, %v4235_v10 }
 0x701   : > { %v6215_v33 = vpop.eup %6214  ;;  %v4342_v58 = vmul.f32 1.442695, %v4287_v23  ;;  %v4489_v59 = vmul.f32 %v6213_v46, %v4457_v31 }
 0x702   : > { %v4302_v37 = vmul.f32 1.442695, %v4267_v12  ;;  %v6217_v35 = vpop.eup %6216  ;;  %v4362_v5 = vadd.f32 1.0, %v6215_v33 }
 0x703   : > { %v6219_v43 = vpop.eup %6218  ;;  %v4445_v54 = vmul.f32 %v6217_v35, %v4381_v16  ;;  %6220 = vpow2.f32 %v4342_v58  ;;  %4527 = vperm.xlu0 %6189, %v4489_v59   ;;  %4622 = vperm.xlu2 %6188, %v4508_v53  }
 0x704   : > { %6222 = vrcp.f32 %v4362_v5  ;;  %v4382_v56 = vadd.f32 1.0, %v6219_v43  ;;  %v4173_v62 = vpop.xlane.xlu2 %4172 }
 0x705   : > { %v4213_v24 = vpop.xlane.xlu1 %4212  ;;  %6224 = vpow2.f32 %v4302_v37  ;;  %v4236_v19 = vadd.f32 %v9167_v14, %v4173_v62  ;;  %v4477_v8 = vsub.f32 2.0, %v4445_v54 }
 0x706   : > { %v4256_v55 = vadd.f32 %v9167_v14, %v4213_v24  ;;  %6226 = vrcp.f32 %v4382_v56  ;;  %v4175_v40 = vpop.xlane.xlu0 %4174 }
 0x707   : > { %v4268_v46 = vsub.f32 0.0, %v4236_v19  ;;  %v4237_v10 = vadd.f32 %v9167_v14, %v4175_v40  ;;  %v4509_v16 = vmul.f32 %v6217_v35, %v4477_v8 }
 0x708   : > { %v4288_v57 = vsub.f32 0.0, %v4256_v55 }
 0x709   : > { %v6221_v11 = vpop.eup %6220  ;;  %v4304_v23 = vmul.f32 1.442695, %v4268_v46  ;;  %v4269_v31 = vsub.f32 0.0, %v4237_v10  ;;  %4627 = vperm.xlu1 %6190, %v4509_v16  }
 0x70a   : > { %v4344_v12 = vmul.f32 1.442695, %v4288_v57  ;;  %v6223_v43 = vpop.eup %6222  ;;  %v4383_v53 = vadd.f32 1.0, %v6221_v11 }
 0x70b   : > { %v6225_v33 = vpop.eup %6224  ;;  %v4426_v58 = vmul.f32 %v6223_v43, %v4362_v5  ;;  %6228 = vpow2.f32 %v4304_v23  ;;  %v4306_v37 = vmul.f32 1.442695, %v4269_v31 }
 0x70c   : > { %v6227_v59 = vpop.eup %6226  ;;  %6230 = vrcp.f32 %v4383_v53  ;;  %v4363_v54 = vadd.f32 1.0, %v6225_v33 }
 0x70d   : > { %v4215_v62 = vpop.xlane.xlu1 %4214  ;;  %v4446_v24 = vmul.f32 %v6227_v59, %v4382_v56  ;;  %6232 = vpow2.f32 %v4344_v12  ;;  %v4458_v35 = vsub.f32 2.0, %v4426_v58 }
 0x70e   : > { %v4257_v19 = vadd.f32 %v9167_v14, %v4215_v62  ;;  %6234 = vrcp.f32 %v4363_v54  ;;  %v4177_v55 = vpop.xlane.xlu2 %4176 }
 0x70f   : > { %6236 = vpow2.f32 %v4306_v37  ;;  %v4238_v40 = vadd.f32 %v9167_v14, %v4177_v55  ;;  %v4490_v46 = vmul.f32 %v6223_v43, %v4458_v35  ;;  %v4478_v57 = vsub.f32 2.0, %v4446_v24 }
 0x710   : > { %v4289_v8 = vsub.f32 0.0, %v4257_v19 }
 0x711   : > { %v6229_v5 = vpop.eup %6228  ;;  %v4270_v16 = vsub.f32 0.0, %v4238_v40  ;;  %4532 = vperm.xlu2 %6188, %v4490_v46   ;;  %v4510_v31 = vmul.f32 %v6227_v59, %v4478_v57 }
 0x712   : > { %v4346_v10 = vmul.f32 1.442695, %v4289_v8  ;;  %v6231_v11 = vpop.eup %6230  ;;  %v4364_v23 = vadd.f32 1.0, %v6229_v5 }
 0x713   : > { %v6233_v56 = vpop.eup %6232  ;;  %v4447_v12 = vmul.f32 %v6231_v11, %v4383_v53  ;;  %v4308_v33 = vmul.f32 1.442695, %v4270_v16  ;;  %4632 = vperm.xlu0 %6189, %v4510_v31  }
 0x714   : > { %6238 = vpow2.f32 %v4346_v10  ;;  %v6235_v58 = vpop.eup %6234  ;;  %v4384_v62 = vadd.f32 1.0, %v6233_v56 }
 0x715   : > { %6240 = vrcp.f32 %v4364_v23  ;;  %v4217_v37 = vpop.xlane.xlu1 %4216  ;;  %v6237_v19 = vpop.eup %6236  ;;  %v4427_v55 = vmul.f32 %v6235_v58, %v4363_v54  ;;  %v4479_v24 = vsub.f32 2.0, %v4447_v12 }
 0x716   : > { %6242 = vpow2.f32 %v4308_v33  ;;  %v4258_v43 = vadd.f32 %v9167_v14, %v4217_v37  ;;  %v4365_v35 = vadd.f32 1.0, %v6237_v19 }
 0x717   : > { %6244 = vrcp.f32 %v4384_v62  ;;  %v4459_v40 = vsub.f32 2.0, %v4427_v55  ;;  %v4511_v59 = vmul.f32 %v6231_v11, %v4479_v24 }
 0x718   : > { %v4290_v8 = vsub.f32 0.0, %v4258_v43  ;;  %6246 = vrcp.f32 %v4365_v35 }
 0x719   : > { %v4491_v57 = vmul.f32 %v6235_v58, %v4459_v40 }
 0x71a   : > { %v6239_v53 = vpop.eup %6238  ;;  %v4348_v46 = vmul.f32 1.442695, %v4290_v8 }
 0x71b   : > { %v6241_v5 = vpop.eup %6240  ;;  %v4385_v10 = vadd.f32 1.0, %v6239_v53  ;;  %4537 = vperm.xlu1 %6190, %v4491_v57   ;;  %4637 = vperm.xlu0 %6189, %v4511_v59  }
 0x71c   : > { %v6243_v16 = vpop.eup %6242  ;;  %v4428_v31 = vmul.f32 %v6241_v5, %v4364_v23  ;;  %6248 = vpow2.f32 %v4348_v46 }
 0x71d   : > { %v6245_v54 = vpop.eup %6244  ;;  %6250 = vrcp.f32 %v4385_v10  ;;  %v4366_v56 = vadd.f32 1.0, %v6243_v16 }
 0x71e   : > { %v4448_v12 = vmul.f32 %v6245_v54, %v4384_v62  ;;  %v4460_v33 = vsub.f32 2.0, %v4428_v31  ;;  %v6247_v37 = vpop.eup %6246  ;;  %v9197_v19 = vpop.xlane.xlu0 %4180  ;;  %v4759_v62 = vld [vmem:[%s10008_s15 + $0x78] sm:$0xff]  ;;  %v4757_v31 = vld [vmem:[%s10008_s15 + $0x68] sm:$0xff] }
 0x71f   : > { %6252 = vrcp.f32 %v4366_v56  ;;  %v4429_v11 = vmul.f32 %v6247_v37, %v4365_v35  ;;  %4764 = vmatpush.msra.mxu1 %v4759_v62  ;;  %5951 = vmatpush.msra.mxu3 %v4759_v62 }
 0x720   : > { %v4492_v55 = vmul.f32 %v6241_v5, %v4460_v33  ;;  %v4480_v24 = vsub.f32 2.0, %v4448_v12  ;;  %v4758_v5 = vld [vmem:[%s10008_s15 + $0x70] sm:$0xff]  ;;  %v4179_v12 = vpop.xlane.xlu1 %4178 }
 0x721   : > { %v4461_v58 = vsub.f32 2.0, %v4429_v11  ;;  %4765 = vmatpush.msra.mxu1 %v4758_v5  ;;  %5952 = vmatpush.msra.mxu3 %v4758_v5  ;;  %v4756_v11 = vld [vmem:[%s10008_s15 + $0x60] sm:$0xff]  ;;  %v4751_v5 = vld [vmem:[%s10008_s15 + $0x38] sm:$0xff] }
 0x722   : > { %v6249_v43 = vpop.eup %6248  ;;  %4542 = vperm.xlu2 %6188, %v4492_v55   ;;  %v4512_v59 = vmul.f32 %v6245_v54, %v4480_v24 }
 0x723   : > { %v6251_v8 = vpop.eup %6250  ;;  %v4386_v23 = vadd.f32 1.0, %v6249_v43  ;;  %v4493_v53 = vmul.f32 %v6247_v37, %v4461_v58  ;;  %4766 = vmatpush.msra.mxu1 %v4757_v31  ;;  %5953 = vmatpush.msra.mxu3 %v4757_v31  ;;  %v4755_v58 = vld [vmem:[%s10008_s15 + $0x58] sm:$0xff]  ;;  %v4750_v31 = vld [vmem:[%s10008_s15 + $0x30] sm:$0xff] }
 0x724   : > { %v4449_v40 = vmul.f32 %v6251_v8, %v4385_v10 }
 0x725   : > { %v6253_v46 = vpop.eup %6252  ;;  %6254 = vrcp.f32 %v4386_v23  ;;  %4547 = vperm.xlu0 %6189, %v4493_v53   ;;  %4767 = vmatpush.msra.mxu1 %v4756_v11 }
 0x726   : > { %v4481_v57 = vsub.f32 2.0, %v4449_v40  ;;  %v4183_v35 = vpop.xlane.xlu0 %4182  ;;  %v4430_v16 = vmul.f32 %v6253_v46, %v4366_v56  ;;  %5954 = vmatpush.msra.mxu3 %v4756_v11  ;;  %v4240_v11 = vadd.f32 %v9167_v14, %v9197_v19  ;;  %v4746_v19 = vld [vmem:[%s10008_s15 + $0x10] sm:$0xff] }
 0x727   : > { %v4241_v10 = vadd.f32 %v9167_v14, %v4183_v35  ;;  %4768 = vmatpush.msra.mxu1 %v4755_v58 }
 0x728   : > { %v4513_v54 = vmul.f32 %v6251_v8, %v4481_v57  ;;  %v4462_v43 = vsub.f32 2.0, %v4430_v16  ;;  %v4754_v8 = vld [vmem:[%s10008_s15 + $0x50] sm:$0xff]  ;;  %5955 = vmatpush.msra.mxu3 %v4755_v58  ;;  %v4221_v53 = vpop.xlane.xlu1 %4220  ;;  %v4752_v57 = vld [vmem:[%s10008_s15 + $0x40] sm:$0xff]  ;;  %v4747_v58 = vld [vmem:[%s10008_s15 + $0x18] sm:$0xff] }
 0x729   : > { %v4273_v33 = vsub.f32 0.0, %v4241_v10  ;;  %4769 = vmatpush.msra.mxu1 %v4754_v8  ;;  %v4051_v10 = vpop.f32.mrf.mxu0 }
 0x72a   : > { %4642 = vperm.xlu2 %6188, %v4512_v59   ;;  %v4494_v40 = vmul.f32 %v6253_v46, %v4462_v43  ;;  %5956 = vmatpush.msra.mxu3 %v4754_v8  ;;  %v4239_v59 = vadd.f32 %v9167_v14, %v4179_v12  ;;  %v4749_v12 = vld [vmem:[%s10008_s15 + $0x28] sm:$0xff] }
 0x72b   : > { %v6255_v37 = vpop.eup %6254  ;;  %v4314_v55 = vmul.f32 1.442695, %v4273_v33  ;;  %v9235_v33 = vadd.f32 %v8956_v26, %v4051_v10 }
 0x72c   : > { %v4450_v56 = vmul.f32 %v6255_v37, %v4386_v23  ;;  %v4753_v23 = vld [vmem:[%s10008_s15 + $0x48] sm:$0xff]  ;;  %v4271_v16 = vsub.f32 0.0, %v4239_v59 }
 0x72d   : > { %6256 = vpow2.f32 %v4314_v55  ;;  %4647 = vperm.xlu0 %6189, %v4513_v54   ;;  %4770 = vmatpush.msra.mxu1 %v4753_v23  ;;  %v9237_v54 = vpop.xlane.xlu2 %4218  ;;  %v10118_v8 = vmax.f32 %v9235_v33, 0.0  ;;  %v4745_v59 = vld [vmem:[%s10008_s15 + $0x8] sm:$0xff] }
 0x72e   : > { %v4482_v24 = vsub.f32 2.0, %v4450_v56  ;;  %5957 = vmatpush.msra.mxu3 %v4753_v23  ;;  %v4748_v56 = vld [vmem:[%s10008_s15 + $0x20] sm:$0xff] }
 0x72f   : > { %4771 = vmatpush.msra.mxu1 %v4752_v57 }
 0x730   : > { %v4514_v62 = vmul.f32 %v6255_v37, %v4482_v24  ;;  %5958 = vmatpush.msra.mxu3 %v4752_v57  ;;  %v4310_v37 = vmul.f32 1.442695, %v4271_v16  ;;  %v4185_v55 = vpop.xlane.xlu1 %4184  ;;  %v4149_v57 = vmul.f32 %v8964_v36, %v10118_v8 }
 0x731   : > { %4772 = vmatpush.msra.mxu1 %v4751_v5 }
 0x732   : > { %4552 = vperm.xlu2 %6188, %v4494_v40   ;;  %5959 = vmatpush.msra.mxu3 %v4751_v5  ;;  %v4272_v40 = vsub.f32 0.0, %v4240_v11  ;;  %v4744_v5 = vld [vmem:[%s10008_s15] sm:$0xff] }
 0x733   : > { %v6257_v35 = vpop.eup %6256  ;;  %4773 = vmatpush.msra.mxu1 %v4750_v31 }
 0x734   : > { %v4369_v46 = vadd.f32 1.0, %v6257_v35  ;;  %5960 = vmatpush.msra.mxu3 %v4750_v31 }
 0x735   : > { %4652 = vperm.xlu0 %6189, %v4514_v62   ;;  %4774 = vmatpush.msra.mxu1 %v4749_v12  ;;  %v4260_v62 = vadd.f32 %v9167_v14, %v4221_v53  ;;  %v4223_v16 = vpop.xlane.xlu2 %4222 }
 0x736   : > { %6258 = vrcp.f32 %v4369_v46  ;;  %5961 = vmatpush.msra.mxu3 %v4749_v12  ;;  %v4261_v31 = vadd.f32 %v9167_v14, %v4223_v16 }
 0x737   : > { %4775 = vmatpush.msra.mxu1 %v4748_v56  ;;  %6260 = vpow2.f32 %v4310_v37  ;;  %v4292_v10 = vsub.f32 0.0, %v4260_v62  ;;  %v4054_v37 = vpop.f32.mrf.mxu0 }
 0x738   : > { %5962 = vmatpush.msra.mxu3 %v4748_v56  ;;  %v9262_v12 = vpop.xlane.xlu1 %4224 }
 0x739   : > { %4776 = vmatpush.msra.mxu1 %v4747_v58  ;;  %v4352_v56 = vmul.f32 1.442695, %v4292_v10  ;;  %v4262_v2 = vadd.f32 %v9167_v14, %v9262_v12 }
 0x73a   : > { %5963 = vmatpush.msra.mxu3 %v4747_v58 }
 0x73b   : > { %4777 = vmatpush.msra.mxu1 %v4746_v19 }
 0x73c   : > { %v6259_v43 = vpop.eup %6258  ;;  %5964 = vmatpush.msra.mxu3 %v4746_v19 }
 0x73d   : > { %v4433_v24 = vmul.f32 %v6259_v43, %v4369_v46  ;;  %4778 = vmatpush.msra.mxu1 %v4745_v59  ;;  %v4312_v46 = vmul.f32 1.442695, %v4272_v40  ;;  %v6261_v53 = vpop.eup %6260 }
 0x73e   : > { %5965 = vmatpush.msra.mxu3 %v4745_v59  ;;  %v4367_v11 = vadd.f32 1.0, %v6261_v53  ;;  %v4189_v58 = vpop.xlane.xlu0 %4188 }
 0x73f   : > { %v4465_v23 = vsub.f32 2.0, %v4433_v24  ;;  %4779 = vmatpush.msra.mxu1 %v4744_v5  ;;  %6262 = vpow2.f32 %v4312_v46  ;;  %v4242_v24 = vadd.f32 %v9167_v14, %v4185_v55  ;;  %v4244_v39 = vadd.f32 %v9167_v14, %v4189_v58 }
 0x740   : > { %5966 = vmatpush.msra.mxu3 %v4744_v5  ;;  %6264 = vrcp.f32 %v4367_v11  ;;  %v4187_v59 = vpop.xlane.xlu1 %4186 }
 0x741   : > { %v4497_v35 = vmul.f32 %v6259_v43, %v4465_v23  ;;  %v4293_v43 = vsub.f32 0.0, %v4261_v31  ;;  %6266 = vpow2.f32 %v4352_v56  ;;  %v4274_v23 = vsub.f32 0.0, %v4242_v24 }
 0x742   : > { %v4243_v46 = vadd.f32 %v9167_v14, %v4187_v59  ;;  %v4276_v20 = vsub.f32 0.0, %v4244_v39 }
 0x743   : > { %4567 = vperm.xlu2 %6188, %v4497_v35   ;;  %v4354_v19 = vmul.f32 1.442695, %v4293_v43  ;;  %v4057_v35 = vpop.f32.mrf.mxu0 }
 0x744   : > { %v9267_v53 = vadd.f32 %v8956_v26, %v4057_v35  ;;  %v4275_v56 = vsub.f32 0.0, %v4243_v46 }
 0x745   : > { %4198 = vadd.xlane.f32.xlu1 %v4149_v57  ;;  %v6263_v40 = vpop.eup %6262  ;;  %6268 = vpow2.f32 %v4354_v19  ;;  %v4316_v57 = vmul.f32 1.442695, %v4274_v23 }
 0x746   : > { %v4368_v62 = vadd.f32 1.0, %v6263_v40  ;;  %v6265_v5 = vpop.eup %6264  ;;  %v4191_v10 = vpop.xlane.xlu0 %4190  ;;  %v4115_v24 = vmax.f32 %v9267_v53, 0.0  ;;  %v4259_v40 = vadd.f32 %v9167_v14, %v9237_v54  ;;  %v4318_v35 = vmul.f32 1.442695, %v4275_v56 }
 0x747   : > { %v6267_v16 = vpop.eup %6266  ;;  %v4431_v55 = vmul.f32 %v6265_v5, %v4367_v11 }
 0x748   : > { %6270 = vrcp.f32 %v4368_v62  ;;  %v4388_v31 = vadd.f32 1.0, %v6267_v16  ;;  %v4151_v11 = vmul.f32 %v8964_v36, %v4115_v24  ;;  %v4291_v46 = vsub.f32 0.0, %v4259_v40 }
 0x749   : > { %6272 = vpow2.f32 %v4316_v57  ;;  %v4463_v19 = vsub.f32 2.0, %v4431_v55  ;;  %v9281_v36 = vadd.f32 %v8956_v26, %v4054_v37  ;;  %v4320_v40 = vmul.f32 1.442695, %v4276_v20 }
 0x74a   : > { %6274 = vrcp.f32 %v4388_v31  ;;  %v4350_v56 = vmul.f32 1.442695, %v4291_v46  ;;  %v6328_v46 = vld [vmem:[%s10006_s13] ss:$0 sm:$0xff] }
 0x74b   : > { %v6269_v8 = vpop.eup %6268  ;;  %v4495_v21 = vmul.f32 %v6265_v5, %v4463_v19 }
 0x74c   : > { %v4389_v59 = vadd.f32 1.0, %v6269_v8 }
 0x74e   : > { %v6271_v23 = vpop.eup %6270  ;;  %6276 = vrcp.f32 %v4389_v59  ;;  %v4193_v61 = vpop.xlane.xlu0 %4192 }
 0x74f   : > { %v6273_v16 = vpop.eup %6272  ;;  %v4432_v57 = vmul.f32 %v6271_v23, %v4368_v62  ;;  %6278 = vpow2.f32 %v4318_v35  ;;  %v4246_v62 = vadd.f32 %v9167_v14, %v4193_v61 }
 0x750   : > { %v6275_v55 = vpop.eup %6274  ;;  %v4370_v8 = vadd.f32 1.0, %v6273_v16 }
 0x751   : > { %v4464_v5 = vsub.f32 2.0, %v4432_v57  ;;  %v4452_v39 = vmul.f32 %v6275_v55, %v4388_v31  ;;  %v4278_v26 = vsub.f32 0.0, %v4246_v62 }
 0x752   : > { %6280 = vrcp.f32 %v4370_v8 }
 0x753   : > { %6282 = vpow2.f32 %v4350_v56  ;;  %v4496_v37 = vmul.f32 %v6271_v23, %v4464_v5  ;;  %v4484_v35 = vsub.f32 2.0, %v4452_v39  ;;  %v4324_v57 = vmul.f32 1.442695, %v4278_v26 }
 0x754   : > { %v6277_v19 = vpop.eup %6276  ;;  %6284 = vpow2.f32 %v4320_v40 }
 0x755   : > { %v6279_v50 = vpop.eup %6278  ;;  %v4453_v16 = vmul.f32 %v6277_v19, %v4389_v59  ;;  %v4516_v56 = vmul.f32 %v6275_v55, %v4484_v35 }
 0x756   : > { %v4195_v43 = vpop.xlane.xlu2 %4194 }
 0x757   : > { %v4485_v5 = vsub.f32 2.0, %v4453_v16 }
 0x759   : > { %v4517_v55 = vmul.f32 %v6277_v19, %v4485_v5 }
 0x75e   : > { %4557 = vperm.xlu1 %6190, %v4495_v21   ;;  %v4523_v54 = vpop.permute.xlu2 %4522  ;;  %v4245_v21 = vadd.f32 %v9167_v14, %v4191_v10  ;;  %v4247_v10 = vadd.f32 %v9167_v14, %v4195_v43  ;;  %v4197_v62 = vpop.xlane.xlu0 %4196 }
 0x75f   : > { %4202 = vadd.xlane.f32.xlu0 %v4151_v11  ;;  %v9278_v58 = vmul.f32 %v4523_v54, %v4096_v47  ;;  %v4114_v47 = vmax.f32 %v9281_v36, 0.0  ;;  %v4371_v11 = vadd.f32 1.0, %v6279_v50  ;;  %v6281_v54 = vpop.eup %6280  ;;  %v4294_v50 = vsub.f32 0.0, %v4262_v2 }
 0x760   : > { %v4277_v61 = vsub.f32 0.0, %v4245_v21  ;;  %v6283_v59 = vpop.eup %6282  ;;  %v4434_v40 = vmul.f32 %v6281_v54, %v4370_v8  ;;  %v4279_v39 = vsub.f32 0.0, %v4247_v10 }
 0x761   : > { %4712 = vst [vmem:[%s6685_s23] sm:$0xff] %v9278_v58  ;;  %4780 = vmatmul.f32.vlgmr.msra.gmra.mxu1 %v9278_v58  ;;  %v4150_v23 = vmul.f32 %v6328_v46, %v4114_v47  ;;  %v6285_v43 = vpop.eup %6284  ;;  %6286 = vrcp.f32 %v4371_v11  ;;  %v4387_v21 = vadd.f32 1.0, %v6283_v59  ;;  %v4356_v46 = vmul.f32 1.442695, %v4294_v50 }
 0x762   : > { %6288 = vpow2.f32 %v4324_v57  ;;  %v4372_v26 = vadd.f32 1.0, %v6285_v43  ;;  %v4326_v35 = vmul.f32 1.442695, %v4279_v39  ;;  %v4466_v16 = vsub.f32 2.0, %v4434_v40 }
 0x764   : > { %v4498_v19 = vmul.f32 %v6281_v54, %v4466_v16 }
 0x766   : > { %4562 = vperm.xlu1 %6190, %v4496_v37   ;;  %v4623_v20 = vpop.permute.xlu2 %4622  ;;  %v4248_v37 = vadd.f32 %v9167_v14, %v4197_v62 }
 0x767   : > { %v9291_v31 = vmul.f32 %v4623_v20, %v4116_v1  ;;  %v4322_v1 = vmul.f32 1.442695, %v4277_v61  ;;  %v4227_v61 = vpop.xlane.xlu1 %4226  ;;  %v6287_v10 = vpop.eup %6286 }
 0x768   : > { %v4263_v8 = vadd.f32 %v9167_v14, %v4227_v61  ;;  %v6289_v57 = vpop.eup %6288  ;;  %v4435_v25 = vmul.f32 %v6287_v10, %v4371_v11  ;;  %v10317_v61 = vmax.f32 %v9014_v38, 0.0 }
 0x769   : > { %4732 = vst [vmem:[%s6685_s23 + $0xa0] sm:$0xff] %v9291_v31  ;;  %4840 = vmatmul.f32.vlgmr.msra.gmra.mxu3 %v9291_v31  ;;  %6290 = vpow2.f32 %v4322_v1  ;;  %v4374_v2 = vadd.f32 1.0, %v6289_v57 }
 0x76a   : > { %6292 = vrcp.f32 %v4387_v21  ;;  %v4467_v11 = vsub.f32 2.0, %v4435_v25 }
 0x76b   : > { %6294 = vrcp.f32 %v4372_v26 }
 0x76c   : > { %4200 = vadd.xlane.f32.xlu2 %v4150_v23  ;;  %v4280_v23 = vsub.f32 0.0, %v4248_v37  ;;  %6296 = vpow2.f32 %v4326_v35 }
 0x76d   : > { %6298 = vpow2.f32 %v4356_v46 }
 0x76e   : > { %4662 = vperm.xlu1 %6190, %v4516_v56   ;;  %v4533_v20 = vpop.permute.xlu2 %4532  ;;  %v4328_v14 = vmul.f32 1.442695, %v4280_v23  ;;  %6300 = vrcp.f32 %v4374_v2 }
 0x76f   : > { %v9307_v12 = vmul.f32 %v4533_v20, %v4098_v44  ;;  %v6291_v59 = vpop.eup %6290  ;;  %v4295_v44 = vsub.f32 0.0, %v4263_v8  ;;  %v10316_v20 = vmax.f32 %v8985_v22, 0.0  ;;  %v4499_v8 = vmul.f32 %v6287_v10, %v4467_v11 }
 0x770   : > { %v6293_v43 = vpop.eup %6292  ;;  %v4373_v62 = vadd.f32 1.0, %v6291_v59  ;;  %6302 = vpow2.f32 %v4328_v14 }
 0x771   : > { %4714 = vst [vmem:[%s6685_s23 + $0x10] sm:$0xff] %v9307_v12  ;;  %v6295_v5 = vpop.eup %6294  ;;  %v4358_v40 = vmul.f32 1.442695, %v4295_v44  ;;  %v4451_v39 = vmul.f32 %v6293_v43, %v4387_v21 }
 0x772   : > { %v6297_v54 = vpop.eup %6296  ;;  %v4436_v50 = vmul.f32 %v6295_v5, %v4372_v26  ;;  %6304 = vrcp.f32 %v4373_v62 }
 0x773   : > { %4667 = vperm.xlu0 %6189, %v4517_v55   ;;  %v6299_v37 = vpop.eup %6298  ;;  %6306 = vpow2.f32 %v4358_v40  ;;  %v4375_v16 = vadd.f32 1.0, %v6297_v54  ;;  %v4483_v21 = vsub.f32 2.0, %v4451_v39 }
 0x774   : > { %v6301_v26 = vpop.eup %6300  ;;  %v4390_v57 = vadd.f32 1.0, %v6299_v37  ;;  %v4468_v22 = vsub.f32 2.0, %v4436_v50 }
 0x775   : > { %v4528_v1 = vpop.permute.xlu0 %4527  ;;  %6308 = vrcp.f32 %v4375_v16  ;;  %v4438_v10 = vmul.f32 %v6301_v26, %v4374_v2  ;;  %v4515_v59 = vmul.f32 %v6293_v43, %v4483_v21  ;;  %v10319_v2 = vmax.f32 %v8996_v7, 0.0 }
 0x776   : > { %4572 = vperm.xlu1 %6190, %v4498_v19   ;;  %v9314_v56 = vmul.f32 %v4528_v1, %v4097_v41  ;;  %v6303_v46 = vpop.eup %6302  ;;  %6310 = vrcp.f32 %v4390_v57  ;;  %v10318_v1 = vmax.f32 %v9024_v30, 0.0  ;;  %v4500_v40 = vmul.f32 %v6295_v5, %v4468_v22 }
 0x777   : > { %v4376_v25 = vadd.f32 1.0, %v6303_v46  ;;  %v4470_v39 = vsub.f32 2.0, %v4438_v10  ;;  %v10321_v46 = vmax.f32 %v9000_v29, 0.0 }
 0x778   : > { %4713 = vst [vmem:[%s6685_s23 + $0x8] sm:$0xff] %v9314_v56  ;;  %4783 = vmatmul.f32.gmra.mxu1 %v9314_v56  ;;  %v6305_v38 = vpop.eup %6304 }
 0x779   : > { %v6307_v23 = vpop.eup %6306  ;;  %v4437_v19 = vmul.f32 %v6305_v38, %v4373_v62  ;;  %6312 = vrcp.f32 %v4376_v25  ;;  %v4502_v5 = vmul.f32 %v6301_v26, %v4470_v39 }
 0x77a   : > { %v4391_v11 = vadd.f32 1.0, %v6307_v23 }
 0x77b   : > { %v4628_v0 = vpop.permute.xlu1 %4627  ;;  %v6309_v50 = vpop.eup %6308  ;;  %v4469_v62 = vsub.f32 2.0, %v4437_v19 }
 0x77c   : > { %v4543_v41 = vpop.permute.xlu2 %4542  ;;  %v9321_v55 = vmul.f32 %v4628_v0, %v10316_v20  ;;  %v6311_v0 = vpop.eup %6310  ;;  %6314 = vrcp.f32 %v4391_v11  ;;  %v4439_v30 = vmul.f32 %v6309_v50, %v4375_v16  ;;  %v10320_v20 = vmax.f32 %v9046_v3, 0.0 }
 0x77d   : > { %v9325_v35 = vmul.f32 %v4543_v41, %v10317_v61  ;;  %v4454_v37 = vmul.f32 %v6311_v0, %v4390_v57  ;;  %v4501_v7 = vmul.f32 %v6305_v38, %v4469_v62  ;;  %v10322_v57 = vmax.f32 %v9010_v15, 0.0 }
 0x77e   : > { %4733 = vst [vmem:[%s6685_s23 + $0xa8] sm:$0xff] %v9321_v55  ;;  %4577 = vperm.xlu1 %6190, %v4499_v8   ;;  %4843 = vmatmul.f32.gmra.mxu3 %v9321_v55  ;;  %v4471_v26 = vsub.f32 2.0, %v4439_v30 }
 0x77f   : > { %4716 = vst [vmem:[%s6685_s23 + $0x20] sm:$0xff] %v9325_v35  ;;  %v6313_v8 = vpop.eup %6312  ;;  %v4486_v38 = vsub.f32 2.0, %v4454_v37 }
 0x780   : > { %4786 = vmatmul.f32.gmra.mxu1 %v9307_v12  ;;  %v4440_v10 = vmul.f32 %v6313_v8, %v4376_v25 }
 0x782   : > { %v6315_v23 = vpop.eup %6314  ;;  %v4472_v19 = vsub.f32 2.0, %v4440_v10 }
 0x783   : > { %v4455_v29 = vmul.f32 %v6315_v23, %v4391_v11 }
 0x784   : > { %v4643_v44 = vpop.permute.xlu2 %4642  ;;  %4657 = vperm.xlu2 %6188, %v4515_v59   ;;  %v4503_v59 = vmul.f32 %v6309_v50, %v4471_v26  ;;  %v10324_v50 = vmax.f32 %v9092_v60, 0.0  ;;  %v6329_v60 = vld [vmem:[#allocation8] ss:$0 sm:$0xff]  ;;  %v10327_v26 = vmax.f32 %v9064_v52, 0.0 }
 0x785   : > { %v9335_v14 = vmul.f32 %v4643_v44, %v10318_v1  ;;  %v4633_v54 = vpop.permute.xlu0 %4632  ;;  %v4518_v44 = vmul.f32 %v6311_v0, %v4486_v38  ;;  %v4487_v15 = vsub.f32 2.0, %v4455_v29  ;;  %v10323_v1 = vmax.f32 %v9028_v45, 0.0 }
 0x786   : > { %4582 = vperm.xlu1 %6190, %v4500_v40   ;;  %v9341_v43 = vmul.f32 %v4633_v54, %v10319_v2  ;;  %v4504_v54 = vmul.f32 %v6313_v8, %v4472_v19  ;;  %v10325_v45 = vmax.f32 %v9041_v42, 0.0 }
 0x787   : > { %4736 = vst [vmem:[%s6685_s23 + $0xc0] sm:$0xff] %v9335_v14  ;;  %v4519_v11 = vmul.f32 %v6315_v23, %v4487_v15  ;;  %v10328_v15 = vmax.f32 %v9071_v63, 0.0 }
 0x788   : > { %4734 = vst [vmem:[%s6685_s23 + $0xb0] sm:$0xff] %v9341_v43  ;;  %4846 = vmatmul.f32.gmra.mxu3 %v9341_v43 }
 0x78c   : > { %v4553_v41 = vpop.permute.xlu2 %4552  ;;  %4592 = vperm.xlu2 %6188, %v4502_v5   ;;  %v10326_v5 = vmax.f32 %v9059_v6, 0.0 }
 0x78d   : > { %v9348_v61 = vmul.f32 %v4553_v41, %v10320_v20  ;;  %v4538_v21 = vpop.permute.xlu1 %4537  ;;  %v4638_v16 = vpop.permute.xlu0 %4637 }
 0x78e   : > { %v9352_v22 = vmul.f32 %v4538_v21, %v10321_v46  ;;  %4587 = vperm.xlu1 %6190, %v4501_v7   ;;  %v9358_v3 = vmul.f32 %v4638_v16, %v10322_v57 }
 0x78f   : > { %4718 = vst [vmem:[%s6685_s23 + $0x30] sm:$0xff] %v9348_v61 }
 0x790   : > { %4715 = vst [vmem:[%s6685_s23 + $0x18] sm:$0xff] %v9352_v22  ;;  %4789 = vmatmul.f32.gmra.mxu1 %v9352_v22  ;;  %4849 = vmatmul.f32.gmra.mxu3 %v9358_v3 }
 0x791   : > { %4735 = vst [vmem:[%s6685_s23 + $0xb8] sm:$0xff] %v9358_v3 }
 0x794   : > { %4597 = vperm.xlu2 %6188, %v4503_v59  }
 0x796   : > { %4672 = vperm.xlu1 %6190, %v4518_v44  }
 0x797   : > { %v4548_v25 = vpop.permute.xlu0 %4547 }
 0x798   : > { %v9368_v40 = vmul.f32 %v4548_v25, %v10323_v1  ;;  %4792 = vmatmul.f32.gmra.mxu1 %v9325_v35  ;;  %4852 = vmatmul.f32.gmra.mxu3 %v9335_v14 }
 0x79a   : > { %4717 = vst [vmem:[%s6685_s23 + $0x28] sm:$0xff] %v9368_v40 }
 0x79c   : > { %4602 = vperm.xlu2 %6188, %v4504_v54  }
 0x79d   : > { %v4568_v39 = vpop.permute.xlu2 %4567 }
 0x79e   : > { %4677 = vperm.xlu1 %6190, %v4519_v11   ;;  %v9376_v2 = vmul.f32 %v4568_v39, %v10324_v50  ;;  %v10329_v50 = vmax.f32 %v9088_v17, 0.0 }
 0x79f   : > { %v4648_v62 = vpop.permute.xlu0 %4647 }
 0x7a0   : > { %4721 = vst [vmem:[%s6685_s23 + $0x48] sm:$0xff] %v9376_v2  ;;  %v9382_v0 = vmul.f32 %v4648_v62, %v10325_v45  ;;  %4795 = vmatmul.f32.gmra.mxu1 %v9368_v40 }
 0x7a2   : > { %4737 = vst [vmem:[%s6685_s23 + $0xc8] sm:$0xff] %v9382_v0  ;;  %4855 = vmatmul.f32.gmra.mxu3 %v9382_v0 }
 0x7a7   : > { %v4653_v30 = vpop.permute.xlu0 %4652 }
 0x7a8   : > { %v9390_v41 = vmul.f32 %v4653_v30, %v10326_v5  ;;  %4798 = vmatmul.f32.gmra.mxu1 %v9348_v61  ;;  %v10330_v5 = vmax.f32 %v9110_v18, 0.0 }
 0x7aa   : > { %4738 = vst [vmem:[%s6685_s23 + $0xd0] sm:$0xff] %v9390_v41  ;;  %4858 = vmatmul.f32.gmra.mxu3 %v9390_v41 }
 0x7b8   : > { %v4199_v42 = vpop.xlane.xlu1 %4198 }
 0x7b9   : > { %v4249_v37 = vadd.f32 %v6329_v60, %v4199_v42 }
 0x7bb   : > { %v4281_v20 = vsub.f32 0.0, %v4249_v37 }
 0x7bd   : > { %v4330_v7 = vmul.f32 1.442695, %v4281_v20  ;;  %v10331_v20 = vmax.f32 %v9079_v34, 0.0 }
 0x7bf   : > { %6316 = vpow2.f32 %v4330_v7 }
 0x7c5   : > { %v6317_v8 = vpop.eup %6316 }
 0x7c6   : > { %v4377_v21 = vadd.f32 1.0, %v6317_v8 }
 0x7c8   : > { %6318 = vrcp.f32 %v4377_v21 }
 0x7ce   : > { %v6319_v46 = vpop.eup %6318 }
 0x7cf   : > { %v4441_v6 = vmul.f32 %v6319_v46, %v4377_v21  ;;  %v10332_v21 = vmax.f32 %v9114_v27, 0.0 }
 0x7d0   : > { %v4558_v16 = vpop.permute.xlu1 %4557 }
 0x7d1   : > { %v9398_v23 = vmul.f32 %v4558_v16, %v10327_v26  ;;  %v4473_v57 = vsub.f32 2.0, %v4441_v6 }
 0x7d2   : > { %v4203_v10 = vpop.xlane.xlu0 %4202 }
 0x7d3   : > { %4719 = vst [vmem:[%s6685_s23 + $0x38] sm:$0xff] %v9398_v23  ;;  %v4251_v38 = vadd.f32 %v6329_v60, %v4203_v10  ;;  %4801 = vmatmul.f32.gmra.mxu1 %v9398_v23  ;;  %v4505_v29 = vmul.f32 %v6319_v46, %v4473_v57  ;;  %v10333_v10 = vmax.f32 %v9161_v28, 0.0 }
 0x7d5   : > { %v4283_v59 = vsub.f32 0.0, %v4251_v38  ;;  %4607 = vperm.xlu0 %6189, %v4505_v29   ;;  %v10334_v38 = vmax.f32 %v9130_v9, 0.0 }
 0x7d7   : > { %v4334_v44 = vmul.f32 1.442695, %v4283_v59 }
 0x7d8   : > { %v4563_v19 = vpop.permute.xlu1 %4562 }
 0x7d9   : > { %6320 = vpow2.f32 %v4334_v44  ;;  %v9405_v25 = vmul.f32 %v4563_v19, %v10328_v15 }
 0x7db   : > { %4720 = vst [vmem:[%s6685_s23 + $0x40] sm:$0xff] %v9405_v25  ;;  %4804 = vmatmul.f32.gmra.mxu1 %v9405_v25 }
 0x7de   : > { %v9439_v59 = vpop.f32.mrf.mxu1 }
 0x7df   : > { %v6321_v52 = vpop.eup %6320  ;;  %v4201_v1 = vpop.xlane.xlu2 %4200 }
 0x7e0   : > { %v4379_v54 = vadd.f32 1.0, %v6321_v52  ;;  %v4663_v11 = vpop.permute.xlu1 %4662  ;;  %v4250_v39 = vadd.f32 %v6329_v60, %v4201_v1  ;;  %v10335_v1 = vmax.f32 %v9170_v51, 0.0 }
 0x7e1   : > { %v9412_v62 = vmul.f32 %v4663_v11, %v10329_v50  ;;  %v10336_v11 = vmax.f32 %v9137_v13, 0.0  ;;  %v10337_v13 = vmax.f32 %v9179_v49, 0.0  ;;  %v10339_v49 = vmax.f32 %v9126_v32, 0.0  ;;  %v9480_v32 = vld [vmem:[%s10009_s16] ss:$0 sm:$0xff] }
 0x7e2   : > { %6322 = vrcp.f32 %v4379_v54  ;;  %v4282_v45 = vsub.f32 0.0, %v4250_v39 }
 0x7e3   : > { %4740 = vst [vmem:[%s6685_s23 + $0xe0] sm:$0xff] %v9412_v62  ;;  %4807 = vmatmul.f32.gmra.mxu1 %v9376_v2 }
 0x7e4   : > { %v4332_v63 = vmul.f32 1.442695, %v4282_v45 }
 0x7e5   : > { %v4668_v30 = vpop.permute.xlu0 %4667 }
 0x7e6   : > { %6324 = vpow2.f32 %v4332_v63  ;;  %v9419_v42 = vmul.f32 %v4668_v30, %v10330_v5  ;;  %v10338_v5 = vmax.f32 %v9151_v48, 0.0 }
 0x7e7   : > { %v4658_v60 = vpop.permute.xlu2 %4657 }
 0x7e8   : > { %v6323_v37 = vpop.eup %6322  ;;  %4741 = vst [vmem:[%s6685_s23 + $0xe8] sm:$0xff] %v9419_v42  ;;  %v4573_v17 = vpop.permute.xlu1 %4572  ;;  %v9425_v7 = vmul.f32 %v4658_v60, %v10331_v20 }
 0x7e9   : > { %v4443_v8 = vmul.f32 %v6323_v37, %v4379_v54  ;;  %v4690_v46 = vmul.f32 %v4573_v17, %v10332_v21 }
 0x7ea   : > { %4739 = vst [vmem:[%s6685_s23 + $0xd8] sm:$0xff] %v9425_v7  ;;  %4861 = vmatmul.f32.gmra.mxu3 %v9425_v7 }
 0x7eb   : > { %4722 = vst [vmem:[%s6685_s23 + $0x50] sm:$0xff] %v4690_v46  ;;  %4810 = vmatmul.f32.gmra.mxu1 %v4690_v46  ;;  %v4475_v18 = vsub.f32 2.0, %v4443_v8 }
 0x7ec   : > { %v6325_v6 = vpop.eup %6324  ;;  %v9446_v39 = vpop.f32.mrf.mxu3 }
 0x7ed   : > { %v4378_v16 = vadd.f32 1.0, %v6325_v6  ;;  %v4507_v26 = vmul.f32 %v6323_v37, %v4475_v18  ;;  %v10340_v6 = vmax.f32 %v9147_v4, 0.0 }
 0x7ef   : > { %6326 = vrcp.f32 %v4378_v16  ;;  %4617 = vperm.xlu2 %6188, %v4507_v26   ;;  %v4593_v34 = vpop.permute.xlu2 %4592 }
 0x7f0   : > { %v4578_v57 = vpop.permute.xlu1 %4577  ;;  %v4694_v27 = vmul.f32 %v4593_v34, %v10333_v10 }
 0x7f1   : > { %v4691_v29 = vmul.f32 %v4578_v57, %v10334_v38 }
 0x7f2   : > { %4726 = vst [vmem:[%s6685_s23 + $0x70] sm:$0xff] %v4694_v27  ;;  %4864 = vmatmul.f32.gmra.mxu3 %v9412_v62 }
 0x7f3   : > { %4723 = vst [vmem:[%s6685_s23 + $0x58] sm:$0xff] %v4691_v29  ;;  %4813 = vmatmul.f32.gmra.mxu1 %v4691_v29 }
 0x7f5   : > { %v6327_v44 = vpop.eup %6326  ;;  %v9450_v45 = vpop.f32.mrf.mxu1 }
 0x7f6   : > { %v4442_v19 = vmul.f32 %v6327_v44, %v4378_v16 }
 0x7f7   : > { %v4598_v15 = vpop.permute.xlu2 %4597 }
 0x7f8   : > { %v4583_v52 = vpop.permute.xlu1 %4582  ;;  %v4695_v28 = vmul.f32 %v4598_v15, %v10335_v1  ;;  %v4474_v54 = vsub.f32 2.0, %v4442_v19 }
 0x7f9   : > { %v4692_v9 = vmul.f32 %v4583_v52, %v10336_v11 }
 0x7fa   : > { %4727 = vst [vmem:[%s6685_s23 + $0x78] sm:$0xff] %v4695_v28  ;;  %4867 = vmatmul.f32.gmra.mxu3 %v9419_v42  ;;  %5130 = vmatpush.msrb.mxu2 %v4695_v28  ;;  %v4506_v50 = vmul.f32 %v6327_v44, %v4474_v54  ;;  %v10341_v44 = vmax.f32 %v9235_v33, 0.0 }
 0x7fb   : > { %4724 = vst [vmem:[%s6685_s23 + $0x60] sm:$0xff] %v4692_v9  ;;  %4816 = vmatmul.f32.gmra.mxu1 %v4692_v9 }
 0x7fc   : > { %4612 = vperm.xlu1 %6190, %v4506_v50   ;;  %5131 = vmatpush.msrb.mxu2 %v4694_v27 }
 0x7fd   : > { %v9464_v17 = vpop.f32.mrf.mxu1 }
 0x7ff   : > { %v4603_v51 = vpop.permute.xlu2 %4602 }
 0x800   : > { %v4588_v63 = vpop.permute.xlu1 %4587  ;;  %v9455_v30 = vmul.f32 %v4603_v51, %v10337_v13 }
 0x801   : > { %v4693_v60 = vmul.f32 %v4588_v63, %v10338_v5  ;;  %v9461_v37 = vpop.f32.mrf.mxu3 }
 0x802   : > { %4728 = vst [vmem:[%s6685_s23 + $0x80] sm:$0xff] %v9455_v30 }
 0x803   : > { %4725 = vst [vmem:[%s6685_s23 + $0x68] sm:$0xff] %v4693_v60  ;;  %4819 = vmatmul.f32.gmra.mxu1 %v4693_v60  ;;  %5132 = vmatpush.msrb.mxu2 %v4693_v60 }
 0x805   : > { %5133 = vmatpush.msrb.mxu2 %v4692_v9 }
 0x807   : > { %5134 = vmatpush.msrb.mxu2 %v4691_v29 }
 0x808   : > { %v4673_v20 = vpop.permute.xlu1 %4672 }
 0x809   : > { %v4710_v8 = vmul.f32 %v4673_v20, %v10339_v49  ;;  %5135 = vmatpush.msrb.mxu2 %v4690_v46 }
 0x80b   : > { %4742 = vst [vmem:[%s6685_s23 + $0xf0] sm:$0xff] %v4710_v8  ;;  %4822 = vmatmul.f32.gmra.mxu1 %v4694_v27  ;;  %4870 = vmatmul.f32.gmra.mxu3 %v4710_v8  ;;  %v4847_v48 = vpop.f32.mrf.mxu3 }
 0x80c   : > { %5136 = vmatpush.msrb.mxu2 %v9376_v2 }
 0x80d   : > { %v9470_v21 = vpop.f32.mrf.mxu1 }
 0x80e   : > { %5137 = vmatpush.msrb.mxu2 %v9405_v25 }
 0x810   : > { %5138 = vmatpush.msrb.mxu2 %v9398_v23  ;;  %v4678_v18 = vpop.permute.xlu1 %4677 }
 0x811   : > { %v4711_v16 = vmul.f32 %v4678_v18, %v10340_v6 }
 0x812   : > { %5139 = vmatpush.msrb.mxu2 %v9348_v61  ;;  %v9491_v61 = vld [vmem:[%s10010_s17] ss:$0 sm:$0xff] }
 0x813   : > { %4743 = vst [vmem:[%s6685_s23 + $0xf8] sm:$0xff] %v4711_v16  ;;  %4825 = vmatmul.f32.gmra.mxu1 %v4695_v28  ;;  %4873 = vmatmul.f32.gmra.mxu3 %v4711_v16  ;;  %v4850_v2 = vpop.f32.mrf.mxu3 }
 0x814   : > { %5140 = vmatpush.msrb.mxu2 %v9368_v40  ;;  %5156 = vmatpush.msrb.mxu3 %v4711_v16  ;;  %v4851_v23 = vadd.f32 %v9480_v32, %v4850_v2 }
 0x815   : > { %v9485_v25 = vpop.f32.mrf.mxu1 }
 0x816   : > { %5141 = vmatpush.msrb.mxu2 %v9325_v35  ;;  %5157 = vmatpush.msrb.mxu3 %v4710_v8  ;;  %v4900_v4 = vmax.f32 %v4851_v23, 0.0  ;;  %v4848_v35 = vadd.f32 %v9480_v32, %v4847_v48 }
 0x818   : > { %5142 = vmatpush.msrb.mxu2 %v9352_v22  ;;  %5158 = vmatpush.msrb.mxu3 %v9419_v42  ;;  %v4936_v40 = vmul.f32 %v9491_v61, %v4900_v4 }
 0x81a   : > { %5143 = vmatpush.msrb.mxu2 %v9307_v12  ;;  %5159 = vmatpush.msrb.mxu3 %v9412_v62  ;;  %v4899_v62 = vmax.f32 %v4848_v35, 0.0 }
 0x81b   : > { %4991 = vadd.xlane.f32.xlu2 %v4936_v40  ;;  %4828 = vmatmul.f32.gmra.mxu1 %v9455_v30  ;;  %v4853_v46 = vpop.f32.mrf.mxu3 }
 0x81c   : > { %5144 = vmatpush.msrb.mxu2 %v9314_v56  ;;  %5160 = vmatpush.msrb.mxu3 %v9425_v7  ;;  %v4854_v22 = vadd.f32 %v9480_v32, %v4853_v46  ;;  %v4935_v56 = vmul.f32 %v9491_v61, %v4899_v62 }
 0x81d   : > { %v9503_v26 = vpop.f32.mrf.mxu1 }
 0x81e   : > { %5145 = vmatpush.msrb.mxu2 %v9278_v58  ;;  %5161 = vmatpush.msrb.mxu3 %v9390_v41  ;;  %v4901_v12 = vmax.f32 %v4854_v22, 0.0 }
 0x820   : > { %5162 = vmatpush.msrb.mxu3 %v9382_v0  ;;  %v4937_v42 = vmul.f32 %v9491_v61, %v4901_v12 }
 0x822   : > { %5163 = vmatpush.msrb.mxu3 %v9335_v14  ;;  %4993 = vadd.xlane.f32.xlu0 %v4937_v42 }
 0x824   : > { %5164 = vmatpush.msrb.mxu3 %v9358_v3 }
 0x825   : > { %v4799_v7 = vpop.f32.mrf.mxu1  ;;  %v4856_v34 = vpop.f32.mrf.mxu3 }
 0x826   : > { %v4800_v57 = vadd.f32 %v9480_v32, %v4799_v7  ;;  %v4857_v58 = vadd.f32 %v9480_v32, %v4856_v34  ;;  %5165 = vmatpush.msrb.mxu3 %v9341_v43  ;;  %4989 = vadd.xlane.f32.xlu1 %v4935_v56 }
 0x828   : > { %v4883_v41 = vmax.f32 %v4800_v57, 0.0  ;;  %v4902_v0 = vmax.f32 %v4857_v58, 0.0  ;;  %5166 = vmatpush.msrb.mxu3 %v9321_v55 }
 0x82a   : > { %5167 = vmatpush.msrb.mxu3 %v9291_v31  ;;  %v4919_v14 = vmul.f32 %v9491_v61, %v4883_v41  ;;  %v4938_v3 = vmul.f32 %v9491_v61, %v4902_v0  ;;  %v4797_v0 = vadd.f32 %v9480_v32, %v9503_v26 }
 0x82c   : > { %4957 = vadd.xlane.f32.xlu0 %v4919_v14 }
 0x82d   : > { %v4859_v10 = vpop.f32.mrf.mxu3 }
 0x82e   : > { %v4860_v27 = vadd.f32 %v9480_v32, %v4859_v10  ;;  %4995 = vadd.xlane.f32.xlu1 %v4938_v3 }
 0x830   : > { %v4903_v38 = vmax.f32 %v4860_v27, 0.0  ;;  %v4882_v27 = vmax.f32 %v4797_v0, 0.0 }
 0x832   : > { %v4939_v43 = vmul.f32 %v9491_v61, %v4903_v38  ;;  %v4918_v26 = vmul.f32 %v9491_v61, %v4882_v27 }
 0x834   : > { %4997 = vadd.xlane.f32.xlu2 %v4939_v43 }
 0x847   : > { %v4608_v29 = vpop.permute.xlu0 %4607 }
 0x848   : > { %v4697_v55 = vmul.f32 %v4608_v29, %v10341_v44 }
 0x849   : > { %v4618_v19 = vpop.permute.xlu2 %4617 }
 0x84a   : > { %4729 = vst [vmem:[%s6685_s23 + $0x88] sm:$0xff] %v4697_v55  ;;  %v4699_v31 = vmul.f32 %v4618_v19, %v4115_v24  ;;  %4831 = vmatmul.f32.gmra.mxu1 %v4697_v55  ;;  %v4842_v19 = vadd.f32 %v9480_v32, %v9446_v39 }
 0x84c   : > { %4731 = vst [vmem:[%s6685_s23 + $0x98] sm:$0xff] %v4699_v31  ;;  %5168 = vmatpush.msrb.mxu3 %v4699_v31 }
 0x850   : > { %v4802_v15 = vpop.f32.mrf.mxu1 }
 0x851   : > { %v4803_v52 = vadd.f32 %v9480_v32, %v4802_v15 }
 0x853   : > { %v4884_v1 = vmax.f32 %v4803_v52, 0.0 }
 0x855   : > { %v4920_v28 = vmul.f32 %v9491_v61, %v4884_v1 }
 0x857   : > { %4959 = vadd.xlane.f32.xlu1 %v4920_v28  ;;  %v4897_v28 = vmax.f32 %v4842_v19, 0.0  ;;  %v3786_v19 = vld [vmem:[%s9611_s3 + $0xf8] sm:$0xff] }
 0x858   : > { %v4805_v54 = vpop.f32.mrf.mxu1 }
 0x859   : > { %v4806_v33 = vadd.f32 %v9480_v32, %v4805_v54  ;;  %v4933_v39 = vmul.f32 %v9491_v61, %v4897_v28 }
 0x85b   : > { %v4885_v11 = vmax.f32 %v4806_v33, 0.0 }
 0x85d   : > { %v4921_v9 = vmul.f32 %v9491_v61, %v4885_v11  ;;  %v4788_v11 = vadd.f32 %v9480_v32, %v9464_v17 }
 0x85f   : > { %4961 = vadd.xlane.f32.xlu2 %v4921_v9  ;;  %v4845_v9 = vadd.f32 %v9480_v32, %v9461_v37  ;;  %v4791_v37 = vadd.f32 %v9480_v32, %v9470_v21 }
 0x860   : > { %v4808_v53 = vpop.f32.mrf.mxu1 }
 0x861   : > { %v4809_v20 = vadd.f32 %v9480_v32, %v4808_v53  ;;  %v4794_v53 = vadd.f32 %v9480_v32, %v9485_v25 }
 0x863   : > { %v4886_v48 = vmax.f32 %v4809_v20, 0.0 }
 0x865   : > { %v4922_v2 = vmul.f32 %v9491_v61, %v4886_v48 }
 0x868   : > { %v4811_v24 = vpop.f32.mrf.mxu1 }
 0x86d   : > { %v4862_v50 = vpop.f32.mrf.mxu3 }
 0x86e   : > { %v4863_v51 = vadd.f32 %v9480_v32, %v4862_v50  ;;  %v4613_v63 = vpop.permute.xlu1 %4612 }
 0x86f   : > { %v4698_v13 = vmul.f32 %v4613_v63, %v4114_v47  ;;  %v4812_v47 = vadd.f32 %v9480_v32, %v4811_v24  ;;  %v4898_v63 = vmax.f32 %v4845_v9, 0.0  ;;  %v3781_v9 = vld [vmem:[%s9611_s3 + $0xd0] sm:$0xff] }
 0x870   : > { %v4904_v5 = vmax.f32 %v4863_v51, 0.0  ;;  %v4814_v60 = vpop.f32.mrf.mxu1  ;;  %v4879_v51 = vmax.f32 %v4788_v11, 0.0 }
 0x871   : > { %4730 = vst [vmem:[%s6685_s23 + $0x90] sm:$0xff] %v4698_v13  ;;  %4834 = vmatmul.f32.gmra.mxu1 %v4698_v13  ;;  %5169 = vmatpush.msrb.mxu3 %v4698_v13  ;;  %v4887_v4 = vmax.f32 %v4812_v47, 0.0  ;;  %v4815_v46 = vadd.f32 %v9480_v32, %v4814_v60  ;;  %v4881_v13 = vmax.f32 %v4794_v53, 0.0  ;;  %v4934_v60 = vmul.f32 %v9491_v61, %v4898_v63  ;;  %v3769_v53 = vld [vmem:[%s9611_s3 + $0x70] sm:$0xff] }
 0x872   : > { %v4940_v49 = vmul.f32 %v9491_v61, %v4904_v5  ;;  %v4915_v17 = vmul.f32 %v9491_v61, %v4879_v51  ;;  %v4785_v5 = vadd.f32 %v9480_v32, %v9450_v45 }
 0x873   : > { %5170 = vmatpush.msrb.mxu3 %v4697_v55  ;;  %v4923_v22 = vmul.f32 %v9491_v61, %v4887_v4  ;;  %v4888_v62 = vmax.f32 %v4815_v46, 0.0  ;;  %v4917_v25 = vmul.f32 %v9491_v61, %v4881_v13  ;;  %v3780_v13 = vld [vmem:[%s9611_s3 + $0xc8] sm:$0xff] }
 0x874   : > { %4999 = vadd.xlane.f32.xlu0 %v4940_v49  ;;  %v4878_v20 = vmax.f32 %v4785_v5, 0.0  ;;  %v4880_v49 = vmax.f32 %v4791_v37, 0.0 }
 0x875   : > { %v4865_v8 = vpop.f32.mrf.mxu3  ;;  %5171 = vmatpush.msrb.mxu3 %v9455_v30  ;;  %v4924_v7 = vmul.f32 %v9491_v61, %v4888_v62 }
 0x876   : > { %v4866_v18 = vadd.f32 %v9480_v32, %v4865_v8  ;;  %v4914_v8 = vmul.f32 %v9491_v61, %v4878_v20  ;;  %v4916_v48 = vmul.f32 %v9491_v61, %v4880_v49 }
 0x878   : > { %v4905_v6 = vmax.f32 %v4866_v18, 0.0  ;;  %v4817_v36 = vpop.f32.mrf.mxu1 }
 0x879   : > { %4837 = vmatmul.f32.gmra.mxu1 %v4699_v31  ;;  %v4818_v3 = vadd.f32 %v9480_v32, %v4817_v36 }
 0x87a   : > { %v4941_v16 = vmul.f32 %v9491_v61, %v4905_v6 }
 0x87b   : > { %v4889_v43 = vmax.f32 %v4818_v3, 0.0 }
 0x87c   : > { %5001 = vadd.xlane.f32.xlu1 %v4941_v16  ;;  %4963 = vadd.xlane.f32.xlu0 %v4922_v2 }
 0x87d   : > { %v4868_v23 = vpop.f32.mrf.mxu3  ;;  %v4925_v1 = vmul.f32 %v9491_v61, %v4889_v43 }
 0x87e   : > { %v4869_v40 = vadd.f32 %v9480_v32, %v4868_v23 }
 0x880   : > { %v4906_v35 = vmax.f32 %v4869_v40, 0.0  ;;  %v4820_v30 = vpop.f32.mrf.mxu1 }
 0x881   : > { %v4821_v31 = vadd.f32 %v9480_v32, %v4820_v30 }
 0x882   : > { %v4942_v12 = vmul.f32 %v9491_v61, %v4906_v35 }
 0x883   : > { %v4890_v54 = vmax.f32 %v4821_v31, 0.0 }
 0x884   : > { %4965 = vadd.xlane.f32.xlu1 %v4923_v22  ;;  %5003 = vadd.xlane.f32.xlu2 %v4942_v12  ;;  %v4782_v12 = vadd.f32 %v9480_v32, %v9439_v59 }
 0x885   : > { %v4926_v24 = vmul.f32 %v9491_v61, %v4890_v54 }
 0x888   : > { %v4823_v42 = vpop.f32.mrf.mxu1 }
 0x889   : > { %v4824_v56 = vadd.f32 %v9480_v32, %v4823_v42 }
 0x88b   : > { %v4891_v34 = vmax.f32 %v4824_v56, 0.0 }
 0x88c   : > { %4967 = vadd.xlane.f32.xlu2 %v4924_v7 }
 0x88d   : > { %v4927_v14 = vmul.f32 %v9491_v61, %v4891_v34  ;;  %v4877_v34 = vmax.f32 %v4782_v12, 0.0 }
 0x88e   : > { %v4871_v57 = vpop.f32.mrf.mxu3  ;;  %v9582_v47 = vpop.xlane.xlu2 %4991 }
 0x88f   : > { %v4872_v58 = vadd.f32 %v9480_v32, %v4871_v57  ;;  %v4913_v3 = vmul.f32 %v9491_v61, %v4877_v34 }
 0x890   : > { %v4826_v44 = vpop.f32.mrf.mxu1 }
 0x891   : > { %v4907_v41 = vmax.f32 %v4872_v58, 0.0  ;;  %v4827_v15 = vadd.f32 %v9480_v32, %v4826_v44 }
 0x893   : > { %v4943_v10 = vmul.f32 %v9491_v61, %v4907_v41  ;;  %v4892_v33 = vmax.f32 %v4827_v15, 0.0 }
 0x894   : > { %4973 = vadd.xlane.f32.xlu2 %v4927_v14 }
 0x895   : > { %5005 = vadd.xlane.f32.xlu0 %v4943_v10  ;;  %v4928_v50 = vmul.f32 %v9491_v61, %v4892_v33  ;;  %v9586_v2 = vpop.xlane.xlu0 %4993  ;;  %v3782_v33 = vld [vmem:[%s9611_s3 + $0xd8] sm:$0xff] }
 0x896   : > { %v4874_v38 = vpop.f32.mrf.mxu3 }
 0x897   : > { %v4875_v29 = vadd.f32 %v9480_v32, %v4874_v38 }
 0x898   : > { %v4829_v18 = vpop.f32.mrf.mxu1 }
 0x899   : > { %v4908_v55 = vmax.f32 %v4875_v29, 0.0  ;;  %v9584_v16 = vpop.xlane.xlu1 %4989  ;;  %v4830_v0 = vadd.f32 %v9480_v32, %v4829_v18 }
 0x89b   : > { %v4944_v52 = vmul.f32 %v9491_v61, %v4908_v55  ;;  %v4893_v10 = vmax.f32 %v4830_v0, 0.0 }
 0x89c   : > { %4955 = vadd.xlane.f32.xlu2 %v4918_v26  ;;  %v3784_v26 = vld [vmem:[%s9611_s3 + $0xe8] sm:$0xff] }
 0x89d   : > { %5007 = vadd.xlane.f32.xlu1 %v4944_v52  ;;  %4969 = vadd.xlane.f32.xlu0 %v4925_v1  ;;  %v4929_v43 = vmul.f32 %v9491_v61, %v4893_v10  ;;  %v3783_v1 = vld [vmem:[%s9611_s3 + $0xe0] sm:$0xff] }
 0x89f   : > { %v9590_v40 = vpop.xlane.xlu0 %4957 }
 0x8a1   : > { %v9588_v4 = vpop.xlane.xlu1 %4995 }
 0x8a2   : > { %v5034_v18 = vmul.f32 %v9588_v4, %v3780_v13  ;;  %v3758_v13 = vld [vmem:[%s9611_s3 + $0x18] sm:$0xff] }
 0x8a4   : > { %4985 = vadd.xlane.f32.xlu2 %v4933_v39 }
 0x8a5   : > { %4971 = vadd.xlane.f32.xlu1 %v4926_v24  ;;  %4975 = vadd.xlane.f32.xlu0 %v4928_v50  ;;  %v3770_v24 = vld [vmem:[%s9611_s3 + $0x78] sm:$0xff] }
 0x8a7   : > { %v4998_v23 = vpop.xlane.xlu2 %4997 }
 0x8ac   : > { %4949 = vadd.xlane.f32.xlu2 %v4915_v17  ;;  %v3768_v17 = vld [vmem:[%s9611_s3 + $0x68] sm:$0xff] }
 0x8ad   : > { %4953 = vadd.xlane.f32.xlu1 %v4917_v25  ;;  %4987 = vadd.xlane.f32.xlu0 %v4934_v60  ;;  %v5035_v25 = vmul.f32 %v4998_v23, %v3781_v9  ;;  %v3777_v23 = vld [vmem:[%s9611_s3 + $0xb0] sm:$0xff] }
 0x8b5   : > { %4947 = vadd.xlane.f32.xlu1 %v4914_v8  ;;  %4951 = vadd.xlane.f32.xlu0 %v4916_v48  ;;  %v3779_v8 = vld [vmem:[%s9611_s3 + $0xc0] sm:$0xff] }
 0x8b6   : > { %v3767_v48 = vld [vmem:[%s9611_s3 + $0x60] sm:$0xff] }
 0x8c7   : > { %v4832_v45 = vpop.f32.mrf.mxu1 }
 0x8c8   : > { %v4833_v6 = vadd.f32 %v9480_v32, %v4832_v45 }
 0x8ca   : > { %v4894_v21 = vmax.f32 %v4833_v6, 0.0  ;;  %v9598_v42 = vpop.xlane.xlu1 %4959 }
 0x8cc   : > { %v4930_v36 = vmul.f32 %v9491_v61, %v4894_v21 }
 0x8ce   : > { %4979 = vadd.xlane.f32.xlu2 %v4930_v36  ;;  %v3778_v36 = vld [vmem:[%s9611_s3 + $0xb8] sm:$0xff] }
 0x8cf   : > { %v5032_v4 = vmul.f32 %v9582_v47, %v3778_v36  ;;  %v3775_v47 = vld [vmem:[%s9611_s3 + $0xa0] sm:$0xff] }
 0x8d2   : > { %v9593_v46 = vpop.xlane.xlu2 %4961 }
 0x8e7   : > { %v5000_v56 = vpop.xlane.xlu0 %4999 }
 0x8e8   : > { %v5036_v50 = vmul.f32 %v5000_v56, %v3782_v33  ;;  %v3765_v56 = vld [vmem:[%s9611_s3 + $0x50] sm:$0xff] }
 0x8ea   : > { %v5882_v45 = vclamps-f32 %v5036_v50, 100.0  ;;  %v6439_v50 = vmov 1.0  }
 0x8ee   : > { %v4835_v35 = vpop.f32.mrf.mxu1 }
 0x8ef   : > { %v4836_v30 = vadd.f32 %v9480_v32, %v4835_v35  ;;  %v5002_v59 = vpop.xlane.xlu1 %5001  ;;  %v9604_v27 = vpop.xlane.xlu0 %4963  ;;  %v3766_v35 = vld [vmem:[%s9611_s3 + $0x58] sm:$0xff] }
 0x8f0   : > { %v5037_v11 = vmul.f32 %v5002_v59, %v3783_v1  ;;  %v3761_v1 = vld [vmem:[%s9611_s3 + $0x30] sm:$0xff] }
 0x8f1   : > { %v4895_v22 = vmax.f32 %v4836_v30, 0.0  ;;  %v5033_v30 = vmul.f32 %v9586_v2, %v3779_v8  ;;  %v3764_v2 = vld [vmem:[%s9611_s3 + $0x48] sm:$0xff]  ;;  %v5015_v9 = vmul.f32 %v9590_v40, %v3761_v1 }
 0x8f2   : > { %v5883_v60 = vclamps-f32 %v5037_v11, 100.0  ;;  %v3756_v8 = vld [vmem:[%s9611_s3 + $0x8] sm:$0xff] }
 0x8f3   : > { %v4931_v62 = vmul.f32 %v9491_v61, %v4895_v22  ;;  %v5881_v22 = vclamps-f32 %v5035_v25, 100.0  ;;  %v3757_v25 = vld [vmem:[%s9611_s3 + $0x10] sm:$0xff] }
 0x8f5   : > { %4981 = vadd.xlane.f32.xlu0 %v4931_v62 }
 0x8f6   : > { %v4838_v7 = vpop.f32.mrf.mxu1 }
 0x8f7   : > { %v4839_v57 = vadd.f32 %v9480_v32, %v4838_v7  ;;  %v5004_v41 = vpop.xlane.xlu2 %5003  ;;  %v9607_v29 = vpop.xlane.xlu1 %4965  ;;  %v3785_v32 = vld [vmem:[%s9611_s3 + $0xf0] sm:$0xff]  ;;  %v5880_v7 = vclamps-f32 %v5034_v18, 100.0 }
 0x8f8   : > { %v5038_v28 = vmul.f32 %v5004_v41, %v3784_v26  ;;  %v3776_v41 = vld [vmem:[%s9611_s3 + $0xa8] sm:$0xff]  ;;  %v5019_v59 = vmul.f32 %v9607_v29, %v3765_v56  ;;  %v5109_v29 = vld [vmem:[%s896_s25] sm:$0x3]  ;;  %s6440_s25 = smov (!%p5905_p4), 4  }
 0x8f9   : > { %v4896_v58 = vmax.f32 %v4839_v57, 0.0 }
 0x8fa   : > { %v5884_v51 = vclamps-f32 %v5038_v28, 100.0 }
 0x8fb   : > { %v4932_v14 = vmul.f32 %v9491_v61, %v4896_v58  ;;  %v5031_v58 = vmul.f32 %v9584_v16, %v3777_v23 }
 0x8fd   : > { %4983 = vadd.xlane.f32.xlu1 %v4932_v14  ;;  %4945 = vadd.xlane.f32.xlu0 %v4913_v3  ;;  %v5879_v14 = vclamps-f32 %v5033_v30, 100.0  ;;  %v3763_v3 = vld [vmem:[%s9611_s3 + $0x40] sm:$0xff] }
 0x8fe   : > { %v5017_v26 = vmul.f32 %v9593_v46, %v3763_v3 }
 0x8ff   : > { %v4968_v38 = vpop.xlane.xlu2 %4967 }
 0x900   : > { %v5020_v34 = vmul.f32 %v4968_v38, %v3766_v35  ;;  %v5878_v38 = vclamps-f32 %v5032_v4, 100.0  ;;  %v3772_v4 = vld [vmem:[%s9611_s3 + $0x88] sm:$0xff] }
 0x905   : > { %4977 = vadd.xlane.f32.xlu1 %v4929_v43 }
 0x907   : > { %v4974_v55 = vpop.xlane.xlu2 %4973 }
 0x908   : > { %v5006_v44 = vpop.xlane.xlu0 %5005  ;;  %v5023_v20 = vmul.f32 %v4974_v55, %v3769_v53  ;;  %v5866_v55 = vclamps-f32 %v5020_v34, 100.0  ;;  %v5863_v53 = vclamps-f32 %v5017_v26, 100.0 }
 0x909   : > { %v5039_v15 = vmul.f32 %v5006_v44, %v3785_v32  ;;  %v5018_v44 = vmul.f32 %v9604_v27, %v3764_v2  ;;  %v5877_v32 = vclamps-f32 %v5031_v58, 100.0  ;;  %v9648_v27 = vperm.slane %v5109_v29, 0 }
 0x90a   : > { %v5869_v12 = vclamps-f32 %v5023_v20, 100.0 }
 0x90b   : > { %v5885_v39 = vclamps-f32 %v5039_v15, 100.0  ;;  %v5864_v33 = vclamps-f32 %v5018_v44, 100.0 }
 0x90f   : > { %v9621_v63 = vpop.xlane.xlu2 %4955 }
 0x910   : > { %v5008_v61 = vpop.xlane.xlu1 %5007  ;;  %v4970_v31 = vpop.xlane.xlu0 %4969 }
 0x911   : > { %v5040_v52 = vmul.f32 %v5008_v61, %v3786_v19  ;;  %v5021_v62 = vmul.f32 %v4970_v31, %v3767_v48  ;;  %v3762_v19 = vld [vmem:[%s9611_s3 + $0x38] sm:$0xff]  ;;  %v5105_v61 = vlaneseq  ;;  %v5865_v31 = vclamps-f32 %v5019_v59, 100.0  ;;  %v3771_v59 = vld [vmem:[%s9611_s3 + $0x80] sm:$0xff] }
 0x912   : > { %v5016_v46 = vmul.f32 %v9598_v42, %v3762_v19  ;;  %v3759_v42 = vld [vmem:[%s9611_s3 + $0x20] sm:$0xff] }
 0x913   : > { %v5886_v54 = vclamps-f32 %v5040_v52, 100.0  ;;  %v5867_v10 = vclamps-f32 %v5021_v62, 100.0  ;;  %v9650_v52 = vperm.slane %v5109_v29, 1  ;;  %v3755_v62 = vld [vmem:[%s9611_s3] sm:$0xff] }
 0x914   : > { %v5235_v29 = vld [vmem:[#allocation4] sm:$0xff] }
 0x915   : > { %5208 = vmatpush.msra.mxu3 %v5886_v54  ;;  %v9653_v54 = vshrl.u32 %v5105_v61, 7 }
 0x917   : > { %5209 = vmatpush.msra.mxu3 %v5885_v39  ;;  %v4986_v43 = vpop.xlane.xlu2 %4985  ;;  %v3760_v39 = vld [vmem:[%s9611_s3 + $0x28] sm:$0xff]  ;;  %vm5112_vm15 = vcmp.eq.s32.totalorder %v9653_v54, %v9648_v27  ;;  %vm5113_vm3 = vcmp.eq.s32.totalorder %v9653_v54, %v9650_v52  ;;  %v5107_v35 = vadd.s32 8, %v9653_v54  ;;  %v5108_v30 = vadd.s32 16, %v9653_v54 }
 0x918   : > { %v4972_v5 = vpop.xlane.xlu1 %4971  ;;  %v4976_v37 = vpop.xlane.xlu0 %4975  ;;  %v5029_v15 = vmul.f32 %v4986_v43, %v3775_v47  ;;  %5893 = vmatmul.msk.f32.vlgmr.msrb.gmra.mxu2 %vm5112_vm15, %v6439_v50  ;;  %5896 = vmatmul.msk.f32.vlgmr.msrb.gmra.mxu3 %vm5113_vm3, %v6439_v50  ;;  %v5014_v40 = vmul.f32 %v9621_v63, %v3760_v39 }
 0x919   : > { %v5024_v49 = vmul.f32 %v4976_v37, %v3770_v24  ;;  %5210 = vmatpush.msra.mxu3 %v5884_v51  ;;  %v5022_v6 = vmul.f32 %v4972_v5, %v3768_v17  ;;  %v5862_v51 = vclamps-f32 %v5016_v46, 100.0  ;;  %v5861_v5 = vclamps-f32 %v5015_v9, 100.0 }
 0x91a   : > { %v5875_v24 = vclamps-f32 %v5029_v15, 100.0  ;;  %v5860_v20 = vclamps-f32 %v5014_v40, 100.0  ;;  %vm5114_vm0 = vcmp.eq.s32.totalorder %v5107_v35, %v9648_v27  ;;  %vm5115_vm1 = vcmp.eq.s32.totalorder %v5107_v35, %v9650_v52 }
 0x91b   : > { %v5870_v21 = vclamps-f32 %v5024_v49, 100.0  ;;  %5211 = vmatpush.msra.mxu3 %v5883_v60  ;;  %v5868_v57 = vclamps-f32 %v5022_v6, 100.0  ;;  %vm5116_vm4 = vcmp.eq.s32.totalorder %v5108_v30, %v9648_v27  ;;  %vm5117_vm5 = vcmp.eq.s32.totalorder %v5108_v30, %v9650_v52  ;;  %v5236_v27 = vld [vmem:[#allocation4 + $0x8] sm:$0xff] }
 0x91d   : > { %5182 = vmatpush.msra.mxu2 %v5870_v21  ;;  %5212 = vmatpush.msra.mxu3 %v5882_v45 }
 0x91f   : > { %5183 = vmatpush.msra.mxu2 %v5869_v12  ;;  %5213 = vmatpush.msra.mxu3 %v5881_v22  ;;  %v4950_v60 = vpop.xlane.xlu2 %4949  ;;  %v3773_v22 = vld [vmem:[%s9611_s3 + $0x90] sm:$0xff]  ;;  %v3774_v12 = vld [vmem:[%s9611_s3 + $0x98] sm:$0xff]  ;;  %s10346_s3 = sld [smem:[#allocation86_spill]] (!%p5905_p4) }
 0x920   : > { %v4988_v0 = vpop.xlane.xlu0 %4987  ;;  %v4954_v28 = vpop.xlane.xlu1 %4953  ;;  %v5011_v45 = vmul.f32 %v4950_v60, %v3757_v25  ;;  %5894 = vmatmul.msk.f32.gmra.mxu2 %vm5114_vm0, %v6439_v50  ;;  %5897 = vmatmul.msk.f32.gmra.mxu3 %vm5115_vm1, %v6439_v50 }
 0x921   : > { %5184 = vmatpush.msra.mxu2 %v5868_v57  ;;  %5214 = vmatpush.msra.mxu3 %v5880_v7  ;;  %v5030_v16 = vmul.f32 %v4988_v0, %v3776_v41  ;;  %v5013_v37 = vmul.f32 %v4954_v28, %v3759_v42  ;;  %v5244_v42 = vld [vmem:[#allocation5 + $0x8] sm:$0xff] }
 0x922   : > { %v5857_v63 = vclamps-f32 %v5011_v45, 100.0 }
 0x923   : > { %5185 = vmatpush.msra.mxu2 %v5867_v10  ;;  %5215 = vmatpush.msra.mxu3 %v5879_v14  ;;  %v5876_v11 = vclamps-f32 %v5030_v16, 100.0  ;;  %v5859_v18 = vclamps-f32 %v5013_v37, 100.0  ;;  %v5234_v16 = vld [vmem:[#allocation4 + $0x10] sm:$0xff] }
 0x925   : > { %5186 = vmatpush.msra.mxu2 %v5866_v55  ;;  %5216 = vmatpush.msra.mxu3 %v5878_v38 }
 0x927   : > { %5187 = vmatpush.msra.mxu2 %v5865_v31  ;;  %5217 = vmatpush.msra.mxu3 %v5877_v32 }
 0x928   : > { %v4952_v17 = vpop.xlane.xlu0 %4951  ;;  %v4948_v48 = vpop.xlane.xlu1 %4947  ;;  %5895 = vmatmul.msk.f32.gmra.mxu2 %vm5116_vm4, %v6439_v50  ;;  %5898 = vmatmul.msk.f32.gmra.mxu3 %vm5117_vm5, %v6439_v50 }
 0x929   : > { %5188 = vmatpush.msra.mxu2 %v5864_v33  ;;  %5218 = vmatpush.msra.mxu3 %v5876_v11  ;;  %v5012_v49 = vmul.f32 %v4952_v17, %v3758_v13  ;;  %v5010_v6 = vmul.f32 %v4948_v48, %v3756_v8  ;;  %v5243_v11 = vld [vmem:[#allocation5] sm:$0xff]  ;;  %v5245_v17 = vld [vmem:[#allocation5 + $0x10] sm:$0xff] }
 0x92b   : > { %5189 = vmatpush.msra.mxu2 %v5863_v53  ;;  %5219 = vmatpush.msra.mxu3 %v5875_v24  ;;  %v5858_v21 = vclamps-f32 %v5012_v49, 100.0  ;;  %v5856_v36 = vclamps-f32 %v5010_v6, 100.0 }
 0x92d   : > { %5190 = vmatpush.msra.mxu2 %v5862_v51 }
 0x92f   : > { %5191 = vmatpush.msra.mxu2 %v5861_v5 }
 0x931   : > { %5192 = vmatpush.msra.mxu2 %v5860_v20 }
 0x933   : > { %5193 = vmatpush.msra.mxu2 %v5859_v18 }
 0x935   : > { %5194 = vmatpush.msra.mxu2 %v5858_v21 }
 0x937   : > { %5195 = vmatpush.msra.mxu2 %v5857_v63 }
 0x939   : > { %5196 = vmatpush.msra.mxu2 %v5856_v36 }
 0x941   : > { %v4980_v56 = vpop.xlane.xlu2 %4979 }
 0x942   : > { %v5026_v41 = vmul.f32 %v4980_v56, %v3772_v4 }
 0x944   : > { %v5872_v10 = vclamps-f32 %v5026_v41, 100.0 }
 0x968   : > { %v4982_v23 = vpop.xlane.xlu0 %4981 }
 0x969   : > { %v5027_v57 = vmul.f32 %v4982_v23, %v3773_v22 }
 0x96b   : > { %v5873_v3 = vclamps-f32 %v5027_v57, 100.0 }
 0x970   : > { %v4984_v7 = vpop.xlane.xlu1 %4983  ;;  %v4946_v34 = vpop.xlane.xlu0 %4945 }
 0x971   : > { %v5028_v58 = vmul.f32 %v4984_v7, %v3774_v12  ;;  %v5009_v2 = vmul.f32 %v4946_v34, %v3755_v62 }
 0x973   : > { %v5874_v0 = vclamps-f32 %v5028_v58, 100.0  ;;  %v5855_v14 = vclamps-f32 %v5009_v2, 100.0 }
 0x975   : > { %5197 = vmatpush.msra.mxu2 %v5855_v14  ;;  %5220 = vmatpush.msra.mxu3 %v5874_v0 }
 0x976   : > { %5899 = vmatmul.msk.f32.vlgmr.msra.gmra.mxu2 %vm5112_vm15, %v6439_v50 }
 0x977   : > { %5221 = vmatpush.msra.mxu3 %v5873_v3 }
 0x978   : > { %v4978_v47 = vpop.xlane.xlu1 %4977 }
 0x979   : > { %v5025_v43 = vmul.f32 %v4978_v47, %v3771_v59  ;;  %5222 = vmatpush.msra.mxu3 %v5872_v10 }
 0x97b   : > { %v5871_v38 = vclamps-f32 %v5025_v43, 100.0 }
 0x97d   : > { %5223 = vmatpush.msra.mxu3 %v5871_v38 }
 0x97e   : > { %5902 = vmatmul.msk.f32.vlgmr.msra.gmra.mxu3 %vm5113_vm3, %v6439_v50  ;;  %5900 = vmatmul.msk.f32.gmra.mxu2 %vm5114_vm0, %v6439_v50 }
 0x986   : > { %5903 = vmatmul.msk.f32.gmra.mxu3 %vm5115_vm1, %v6439_v50  ;;  %5901 = vmatmul.msk.f32.gmra.mxu2 %vm5116_vm4, %v6439_v50 }
 0x98e   : > { %5904 = vmatmul.msk.f32.gmra.mxu3 %vm5117_vm5, %v6439_v50 }
 0x99b   : > { %v5147_v44 = vpop.f32.mrf.mxu2  ;;  %v5173_v55 = vpop.f32.mrf.mxu3 }
 0x99c   : > { %v5174_v32 = vadd.f32 %v5173_v55, %v5147_v44 }
 0x99e   : > { %v5237_v19 = vadd.f32 %v5234_v16, %v5174_v32 }
 0x9a0   : > { %5240 = vst [vmem:[#allocation4 + $0x10] sm:$0xff] %v5237_v19 }
 0x9a3   : > { %v5150_v26 = vpop.f32.mrf.mxu2  ;;  %v5176_v61 = vpop.f32.mrf.mxu3 }
 0x9a4   : > { %v5177_v31 = vadd.f32 %v5176_v61, %v5150_v26 }
 0x9a6   : > { %v5238_v15 = vadd.f32 %v5235_v29, %v5177_v31 }
 0x9a8   : > { %5241 = vst [vmem:[#allocation4] sm:$0xff] %v5238_v15 }
 0x9ab   : > { %v5153_v1 = vpop.f32.mrf.mxu2  ;;  %v5179_v28 = vpop.f32.mrf.mxu3 }
 0x9ac   : > { %v5180_v54 = vadd.f32 %v5179_v28, %v5153_v1 }
 0x9ae   : > { %v5239_v46 = vadd.f32 %v5236_v27, %v5180_v54 }
 0x9b0   : > { %5242 = vst [vmem:[#allocation4 + $0x8] sm:$0xff] %v5239_v46 }
 0x9f9   : > { %v5199_v52 = vpop.f32.mrf.mxu2 }
 0xa01   : > { %v5225_v33 = vpop.f32.mrf.mxu3  ;;  %v5202_v53 = vpop.f32.mrf.mxu2 }
 0xa02   : > { %v5226_v39 = vadd.f32 %v5225_v33, %v5199_v52 }
 0xa04   : > { %v5246_v9 = vadd.f32 %v5243_v11, %v5226_v39 }
 0xa06   : > { %5250 = vst.msk [vmem:[#allocation5] sm:$0xff] %vm5249_vm6, %v5246_v9 }
 0xa09   : > { %v5228_v24 = vpop.f32.mrf.mxu3  ;;  %v5205_v40 = vpop.f32.mrf.mxu2 }
 0xa0a   : > { %v5229_v50 = vadd.f32 %v5228_v24, %v5202_v53 }
 0xa0c   : > { %v5247_v51 = vadd.f32 %v5244_v42, %v5229_v50 }
 0xa0e   : > { %5251 = vst.msk [vmem:[#allocation5 + $0x8] sm:$0xff] %vm5249_vm6, %v5247_v51 }
 0xa11   : > { %v5231_v13 = vpop.f32.mrf.mxu3 }
 0xa12   : > { %v5232_v5 = vadd.f32 %v5231_v13, %v5205_v40  ;;  %5256 = sbr.rel (%p5905_p4) target bundleno = 3207 (0xc87), region = 144 }
 0xa14   : > { %v5248_v37 = vadd.f32 %v5245_v17, %v5232_v5 }
 0xa16   : > { %5252 = vst.msk [vmem:[#allocation5 + $0x10] sm:$0xff] %vm5249_vm6, %v5248_v37 }
 0xa17   : > { %v5324_v25 = vld [vmem:[%s10012_s19 + $0x78] sm:$0xff]  ;;  %v5323_v20 = vld [vmem:[%s10012_s19 + $0x70] sm:$0xff]  ;;  %v5322_v8 = vld [vmem:[%s10012_s19 + $0x68] sm:$0xff]  ;;  %vm5391_vm7 = vcmask 1041408   ;;  %vm5381_vm8 = vcmask 15360   ;;  %vm5575_vm11 = vcmask 130048  }
 0xa18   : > { %v5305_v60 = vld [vmem:[%s10011_s18 + $0x78] sm:$0xff]  ;;  %5325 = vmatpush.msra.mxu0 %v5324_v25  ;;  %v5304_v49 = vld [vmem:[%s10011_s18 + $0x70] sm:$0xff]  ;;  %v5303_v48 = vld [vmem:[%s10011_s18 + $0x68] sm:$0xff] }
 0xa19   : > { %5351 = vmatpush.msra.mxu1 %v5305_v60  ;;  %v5321_v18 = vld [vmem:[%s10012_s19 + $0x60] sm:$0xff]  ;;  %v5320_v6 = vld [vmem:[%s10012_s19 + $0x58] sm:$0xff]  ;;  %v5319_v63 = vld [vmem:[%s10012_s19 + $0x50] sm:$0xff] }
 0xa1a   : > { %5326 = vmatpush.msra.mxu0 %v5323_v20  ;;  %v5302_v45 = vld [vmem:[%s10011_s18 + $0x60] sm:$0xff]  ;;  %v5301_v21 = vld [vmem:[%s10011_s18 + $0x58] sm:$0xff]  ;;  %v5300_v36 = vld [vmem:[%s10011_s18 + $0x50] sm:$0xff] }
 0xa1b   : > { %5352 = vmatpush.msra.mxu1 %v5304_v49  ;;  %v5380_v35 = vld [vmem:[%s10013_s20] sm:$0x3]  ;;  %v5318_v23 = vld [vmem:[%s10012_s19 + $0x48] sm:$0xff]  ;;  %v5316_v56 = vld [vmem:[%s10012_s19 + $0x38] sm:$0xff] }
 0xa1c   : > { %5327 = vmatpush.msra.mxu0 %v5322_v8  ;;  %v5377_v30 = vld [vmem:[%s10343_s29] sm:$0xff]  ;;  %v5299_v22 = vld [vmem:[%s10011_s18 + $0x48] sm:$0xff]  ;;  %5906 = vmatpush.msk.msra.mxu2 %vm5391_vm7, %v5380_v35  ;;  %v5297_v4 = vld [vmem:[%s10011_s18 + $0x38] sm:$0xff] }
 0xa1d   : > { %5353 = vmatpush.msra.mxu1 %v5303_v48  ;;  %v5317_v12 = vld [vmem:[%s10012_s19 + $0x40] sm:$0xff]  ;;  %5907 = vmatmul.msk.f32.vlgmr.msra.gmra.mxu2 %vm5381_vm8, %v5377_v30  ;;  %v5315_v7 = vld [vmem:[%s10012_s19 + $0x30] sm:$0xff]  ;;  %v5378_v57 = vld [vmem:[%s10344_s8 + $0x8] sm:$0xff] }
 0xa1e   : > { %5328 = vmatpush.msra.mxu0 %v5321_v18  ;;  %v5298_v62 = vld [vmem:[%s10011_s18 + $0x40] sm:$0xff]  ;;  %v5296_v34 = vld [vmem:[%s10011_s18 + $0x30] sm:$0xff]  ;;  %v5314_v58 = vld [vmem:[%s10012_s19 + $0x28] sm:$0xff] }
 0xa1f   : > { %5354 = vmatpush.msra.mxu1 %v5302_v45  ;;  %v5295_v2 = vld [vmem:[%s10011_s18 + $0x28] sm:$0xff]  ;;  %v5313_v41 = vld [vmem:[%s10012_s19 + $0x20] sm:$0xff]  ;;  %v5312_v14 = vld [vmem:[%s10012_s19 + $0x18] sm:$0xff] }
 0xa20   : > { %5329 = vmatpush.msra.mxu0 %v5320_v6  ;;  %v5294_v0 = vld [vmem:[%s10011_s18 + $0x20] sm:$0xff]  ;;  %v5293_v3 = vld [vmem:[%s10011_s18 + $0x18] sm:$0xff]  ;;  %v5311_v59 = vld [vmem:[%s10012_s19 + $0x10] sm:$0xff] }
 0xa21   : > { %5355 = vmatpush.msra.mxu1 %v5301_v21  ;;  %v5292_v10 = vld [vmem:[%s10011_s18 + $0x10] sm:$0xff]  ;;  %v5310_v43 = vld [vmem:[%s10012_s19 + $0x8] sm:$0xff]  ;;  %v5309_v44 = vld [vmem:[%s10012_s19] sm:$0xff] }
 0xa22   : > { %5330 = vmatpush.msra.mxu0 %v5319_v63  ;;  %v5379_v47 = vld [vmem:[%s10344_s8 + $0x10] sm:$0xff]  ;;  %v5291_v38 = vld [vmem:[%s10011_s18 + $0x8] sm:$0xff]  ;;  %v5290_v55 = vld [vmem:[%s10011_s18] sm:$0xff] }
 0xa23   : > { %5356 = vmatpush.msra.mxu1 %v5300_v36  ;;  %v5306_v16 = vld [vmem:[#allocation4 + $0x10] sm:$0xff]  ;;  %v9836_v32 = vld [vmem:[%s10345_s4] sm:$0xff]  ;;  %v9842_v26 = vld [vmem:[%s10345_s4 + $0x8] sm:$0xff] }
 0xa24   : > { %5331 = vmatpush.msra.mxu0 %v5318_v23  ;;  %v5307_v19 = vld [vmem:[#allocation4] sm:$0xff]  ;;  %v5308_v61 = vld [vmem:[#allocation4 + $0x8] sm:$0xff]  ;;  %v5517_v52 = vld [vmem:[%s10017_s24 + $0x78] sm:$0xff] }
 0xa25   : > { %5357 = vmatpush.msra.mxu1 %v5299_v22  ;;  %5908 = vmatmul.msk.f32.gmra.mxu2 %vm5381_vm8, %v5378_v57  ;;  %v9848_v29 = vld [vmem:[%s10345_s4 + $0x10] sm:$0xff]  ;;  %v5515_v39 = vld [vmem:[%s10017_s24 + $0x68] sm:$0xff]  ;;  %v5514_v53 = vld [vmem:[%s10017_s24 + $0x60] sm:$0xff] }
 0xa26   : > { %5332 = vmatpush.msra.mxu0 %v5317_v12  ;;  %v5516_v33 = vld [vmem:[%s10017_s24 + $0x70] sm:$0xff]  ;;  %5522 = vmatpush.msra.mxu3 %v5517_v52  ;;  %v6333_v42 = vld [vmem:[%s10014_s21] ss:$0 sm:$0xff]  ;;  %v5513_v51 = vld [vmem:[%s10017_s24 + $0x58] sm:$0xff] }
 0xa27   : > { %5358 = vmatpush.msra.mxu1 %v5298_v62  ;;  %v5512_v37 = vld [vmem:[%s10017_s24 + $0x50] sm:$0xff]  ;;  %v5511_v20 = vld [vmem:[%s10017_s24 + $0x48] sm:$0xff]  ;;  %v5510_v48 = vld [vmem:[%s10017_s24 + $0x40] sm:$0xff] }
 0xa28   : > { %5333 = vmatpush.msra.mxu0 %v5316_v56  ;;  %5523 = vmatpush.msra.mxu3 %v5516_v33  ;;  %v5509_v45 = vld [vmem:[%s10017_s24 + $0x38] sm:$0xff]  ;;  %v5508_v21 = vld [vmem:[%s10017_s24 + $0x30] sm:$0xff]  ;;  %v5507_v36 = vld [vmem:[%s10017_s24 + $0x28] sm:$0xff] }
 0xa29   : > { %5359 = vmatpush.msra.mxu1 %v5297_v4  ;;  %v5506_v30 = vld [vmem:[%s10017_s24 + $0x20] sm:$0xff]  ;;  %v5505_v22 = vld [vmem:[%s10017_s24 + $0x18] sm:$0xff]  ;;  %v5504_v62 = vld [vmem:[%s10017_s24 + $0x10] sm:$0xff] }
 0xa2a   : > { %5334 = vmatpush.msra.mxu0 %v5315_v7  ;;  %5524 = vmatpush.msra.mxu3 %v5515_v39  ;;  %v5503_v4 = vld [vmem:[%s10017_s24 + $0x8] sm:$0xff] }
 0xa2b   : > { %5360 = vmatpush.msra.mxu1 %v5296_v34  ;;  %v5502_v34 = vld [vmem:[%s10017_s24] sm:$0xff] }
 0xa2c   : > { %5335 = vmatpush.msra.mxu0 %v5314_v58  ;;  %5525 = vmatpush.msra.mxu3 %v5514_v53 }
 0xa2d   : > { %5361 = vmatpush.msra.mxu1 %v5295_v2  ;;  %5909 = vmatmul.msk.f32.gmra.mxu2 %vm5381_vm8, %v5379_v47 }
 0xa2e   : > { %5336 = vmatpush.msra.mxu0 %v5313_v41  ;;  %5526 = vmatpush.msra.mxu3 %v5513_v51 }
 0xa2f   : > { %5362 = vmatpush.msra.mxu1 %v5294_v0 }
 0xa30   : > { %5337 = vmatpush.msra.mxu0 %v5312_v14  ;;  %5527 = vmatpush.msra.mxu3 %v5512_v37  ;;  %v6336_v37 = vld [vmem:[%s10347_s30] ss:$0 sm:$0xff] }
 0xa31   : > { %5363 = vmatpush.msra.mxu1 %v5293_v3 }
 0xa32   : > { %5338 = vmatpush.msra.mxu0 %v5311_v59  ;;  %5528 = vmatpush.msra.mxu3 %v5511_v20 }
 0xa33   : > { %5364 = vmatpush.msra.mxu1 %v5292_v10 }
 0xa34   : > { %5339 = vmatpush.msra.mxu0 %v5310_v43  ;;  %5529 = vmatpush.msra.mxu3 %v5510_v48 }
 0xa35   : > { %5365 = vmatpush.msra.mxu1 %v5291_v38 }
 0xa36   : > { %5340 = vmatpush.msra.mxu0 %v5309_v44  ;;  %5530 = vmatpush.msra.mxu3 %v5509_v45  ;;  %v5263_v45 = vld [vmem:[%s10349_s28] sm:$0xff] }
 0xa37   : > { %5366 = vmatpush.msra.mxu1 %v5290_v55  ;;  %5341 = vmatmul.f32.vlgmr.msra.gmra.mxu0 %v5306_v16 }
 0xa38   : > { %5367 = vmatmul.f32.vlgmr.msra.gmra.mxu1 %v9836_v32  ;;  %5531 = vmatpush.msra.mxu3 %v5508_v21  ;;  %v5265_v21 = vld [vmem:[%s10349_s28 + $0x10] sm:$0xff] }
 0xa3a   : > { %5532 = vmatpush.msra.mxu3 %v5507_v36 }
 0xa3c   : > { %5533 = vmatpush.msra.mxu3 %v5506_v30 }
 0xa3e   : > { %5534 = vmatpush.msra.mxu3 %v5505_v22 }
 0xa3f   : > { %5344 = vmatmul.f32.gmra.mxu0 %v5307_v19 }
 0xa40   : > { %5370 = vmatmul.f32.gmra.mxu1 %v9842_v26  ;;  %5535 = vmatpush.msra.mxu3 %v5504_v62 }
 0xa42   : > { %5536 = vmatpush.msra.mxu3 %v5503_v4 }
 0xa44   : > { %5537 = vmatpush.msra.mxu3 %v5502_v34 }
 0xa47   : > { %5347 = vmatmul.f32.gmra.mxu0 %v5308_v61 }
 0xa48   : > { %5373 = vmatmul.f32.gmra.mxu1 %v9848_v29 }
 0xaa0   : > { %v5412_v31 = vpop.f32.mrf.mxu2 }
 0xaa8   : > { %v5415_v28 = vpop.f32.mrf.mxu2 }
 0xab0   : > { %v5418_v50 = vpop.f32.mrf.mxu2 }
 0xab4   : > { %v5342_v15 = vpop.f32.mrf.mxu0 }
 0xab5   : > { %v5368_v1 = vpop.f32.mrf.mxu1 }
 0xab6   : > { %v5369_v11 = vadd.f32 %v5368_v1, %v5342_v15 }
 0xab8   : > { %v5421_v24 = vadd.f32 %v5412_v31, %v5369_v11  ;;  %v6335_v11 = vld [vmem:[%s10346_s3] ss:$0 sm:$0xff] }
 0xaba   : > { %v5428_v25 = vadd.f32 %v6333_v42, %v5421_v24 }
 0xabc   : > { %v5345_v27 = vpop.f32.mrf.mxu0 }
 0xabd   : > { %v5371_v54 = vpop.f32.mrf.mxu1 }
 0xabe   : > { %v5372_v46 = vadd.f32 %v5371_v54, %v5345_v27 }
 0xac0   : > { %v5422_v9 = vadd.f32 %v5415_v28, %v5372_v46  ;;  %v6334_v46 = vld [vmem:[%s10015_s22] ss:$0 sm:$0xff] }
 0xac2   : > { %v5429_v17 = vadd.f32 %v6333_v42, %v5422_v9 }
 0xac4   : > { %v5348_v40 = vpop.f32.mrf.mxu0  ;;  %v5443_v49 = vadd.f32 %v5429_v17, %v5428_v25 }
 0xac5   : > { %v5374_v13 = vpop.f32.mrf.mxu1 }
 0xac6   : > { %v5375_v5 = vadd.f32 %v5374_v13, %v5348_v40 }
 0xac8   : > { %v5423_v60 = vadd.f32 %v5418_v50, %v5375_v5 }
 0xaca   : > { %v5430_v8 = vadd.f32 %v6333_v42, %v5423_v60 }
 0xacc   : > { %v5444_v18 = vadd.f32 %v5443_v49, %v5430_v8 }
 0xace   : > { %v5445_v6 = vrot.slane %v5444_v18, 4 }
 0xad0   : > { %v5446_v63 = vadd.f32 %v5445_v6, %v5444_v18  ;;  %v5264_v18 = vld [vmem:[%s10348_s11 + $0x8] sm:$0xff]  ;;  %v6441_v6 = vmov 0  }
 0xad1   : > { %6331 = vset.pattern.permute.xlu2 %v6441_v6  ;;  %6330 = vset.pattern.permute.xlu1 %v6441_v6 }
 0xad2   : > { %v5447_v35 = vrot.slane %v5446_v63, 2  ;;  %5273 = vperm.xlu2 %6331, %v5264_v18   ;;  %6332 = vset.pattern.permute.xlu0 %v6441_v6 }
 0xad4   : > { %v5448_v23 = vadd.f32 %v5447_v35, %v5446_v63 }
 0xad6   : > { %v5449_v12 = vrot.slane %v5448_v23, 1 }
 0xad8   : > { %v5450_v56 = vadd.f32 %v5449_v12, %v5448_v23  ;;  %v5261_v12 = vld [vmem:[#allocation5 + $0x8] sm:$0xff] }
 0xada   : > { %v5451_v7 = vmul.f32 0.041666668, %v5450_v56  ;;  %5278 = vperm.xlu2 %6331, %v5265_v21  }
 0xadc   : > { %v5453_v57 = vsub.f32 %v5429_v17, %v5451_v7  ;;  %v5454_v58 = vsub.f32 %v5430_v8, %v5451_v7  ;;  %v5452_v2 = vsub.f32 %v5428_v25, %v5451_v7  ;;  %v5262_v7 = vld [vmem:[#allocation5 + $0x10] sm:$0xff] }
 0xade   : > { %v5455_v41 = vmul.f32 %v5452_v2, %v5452_v2  ;;  %v5456_v0 = vmul.f32 %v5453_v57, %v5453_v57  ;;  %v5457_v14 = vmul.f32 %v5454_v58, %v5454_v58 }
 0xae0   : > { %v5461_v3 = vadd.f32 %v5456_v0, %v5455_v41 }
 0xae2   : > { %v5462_v59 = vadd.f32 %v5461_v3, %v5457_v14 }
 0xae4   : > { %v5463_v10 = vrot.slane %v5462_v59, 4 }
 0xae6   : > { %v5464_v47 = vadd.f32 %v5463_v10, %v5462_v59 }
 0xae8   : > { %v5465_v43 = vrot.slane %v5464_v47, 2 }
 0xaea   : > { %v5466_v38 = vadd.f32 %v5465_v43, %v5464_v47 }
 0xaec   : > { %v5467_v44 = vrot.slane %v5466_v38, 1 }
 0xaee   : > { %v5468_v55 = vadd.f32 %v5467_v44, %v5466_v38 }
 0xaf0   : > { %v5469_v16 = vmul.f32 0.041666668, %v5468_v55 }
 0xaf2   : > { %v5470_v19 = vmax.f32 %v5469_v16, 0.0 }
 0xaf4   : > { %v5471_v61 = vadd.f32 1e-05, %v5470_v19 }
 0xaf6   : > { %6337 = vrsqrt.f32 %v5471_v61  ;;  %vm5478_vm9 = vweird.f32 %v5471_v61 }
 0xafc   : > { %v6338_v31 = vpop.eup %6337 }
 0xafd   : > { %v5473_v15 = vmul.f32 %v6338_v31, %v5471_v61  ;;  %vm5479_vm2 = vweird.f32 %v6338_v31 }
 0xafe   : > { %vm5480_vm10 = vmor %vm5478_vm9, %vm5479_vm2 }
 0xaff   : > { %v5474_v1 = vmul.f32 %v6338_v31, %v5473_v15 }
 0xb01   : > { %v5475_v28 = vmul.f32 0.5, %v5474_v1 }
 0xb03   : > { %v5476_v27 = vsub.f32 1.5, %v5475_v28 }
 0xb05   : > { %v5477_v54 = vmul.f32 %v6338_v31, %v5476_v27 }
 0xb07   : > { %v5481_v52 = vsel %vm5480_vm10, %v6338_v31, %v5477_v54 }
 0xb08   : > { %v5482_v33 = vmul.f32 %v5481_v52, %v5452_v2  ;;  %v5483_v9 = vmul.f32 %v5481_v52, %v5453_v57  ;;  %v5484_v51 = vmul.f32 %v5481_v52, %v5454_v58  ;;  %v5260_v2 = vld [vmem:[#allocation5] sm:$0xff] }
 0xb0a   : > { %v5489_v39 = vmul.f32 %v6334_v46, %v5482_v33  ;;  %v5490_v42 = vmul.f32 %v6334_v46, %v5483_v9  ;;  %v5491_v13 = vmul.f32 %v6334_v46, %v5484_v51 }
 0xb0c   : > { %v5496_v53 = vadd.f32 %v6335_v11, %v5489_v39  ;;  %v5497_v50 = vadd.f32 %v6335_v11, %v5490_v42  ;;  %v5498_v17 = vadd.f32 %v6335_v11, %v5491_v13 }
 0xb0e   : > { %v5499_v24 = vmax.f32 %v5496_v53, 0.0  ;;  %v5500_v40 = vmax.f32 %v5497_v50, 0.0  ;;  %v5501_v5 = vmax.f32 %v5498_v17, 0.0 }
 0xb10   : > { %5538 = vmatmul.f32.vlgmr.msra.gmra.mxu3 %v5499_v24 }
 0xb18   : > { %5541 = vmatmul.f32.gmra.mxu3 %v5500_v40 }
 0xb20   : > { %5544 = vmatmul.f32.gmra.mxu3 %v5501_v5 }
 0xb2c   : > { %v5274_v62 = vpop.permute.xlu2 %5273 }
 0xb2d   : > { %v5282_v56 = vmul.f32 %v5274_v62, %v5261_v12 }
 0xb2f   : > { %v5285_v4 = vadd.f32 %v5282_v56, %v9842_v26 }
 0xb31   : > { %5288 = vst.msk [vmem:[%s10020_s27 + $0x8] sm:$0xff] %vm5249_vm6, %v5285_v4 }
 0xb34   : > { %v5279_v34 = vpop.permute.xlu2 %5278 }
 0xb35   : > { %v5283_v57 = vmul.f32 %v5279_v34, %v5262_v7 }
 0xb37   : > { %v5286_v58 = vadd.f32 %v5283_v57, %v9848_v29 }
 0xb39   : > { %5289 = vst.msk [vmem:[%s10020_s27 + $0x10] sm:$0xff] %vm5249_vm6, %v5286_v58 }
 0xb93   : > { %v5539_v25 = vpop.f32.mrf.mxu3 }
 0xb94   : > { %v5540_v60 = vadd.f32 %v6336_v37, %v5539_v25 }
 0xb96   : > { %5551 = vrot.lane.b32.xlu0 %v5540_v60, %s6440_s25 }
 0xb9b   : > { %v5542_v20 = vpop.f32.mrf.mxu3 }
 0xb9c   : > { %v5543_v49 = vadd.f32 %v6336_v37, %v5542_v20 }
 0xb9e   : > { %5553 = vrot.lane.b32.xlu0 %v5543_v49, %s6440_s25 }
 0xba3   : > { %v5545_v8 = vpop.f32.mrf.mxu3 }
 0xba4   : > { %v5546_v48 = vadd.f32 %v6336_v37, %v5545_v8 }
 0xba6   : > { %5555 = vrot.lane.b32.xlu1 %v5546_v48, %s6440_s25 }
 0xbae   : > { %5268 = vperm.xlu1 %6330, %v5263_v45  }
 0xc08   : > { %v5552_v63 = vpop.permute.xlu0 %5551 }
 0xc09   : > { %v5560_v36 = vadd.f32 %v5552_v63, %v9836_v32 }
 0xc0b   : > { %5566 = vrot.lane.b32.xlu0 %v5560_v36, %s6442_s0 }
 0xc10   : > { %v5554_v35 = vpop.permute.xlu0 %5553 }
 0xc11   : > { %v5561_v30 = vadd.f32 %v5554_v35, %v9842_v26 }
 0xc13   : > { %5568 = vrot.lane.b32.xlu1 %v5561_v30, %s6442_s0 }
 0xc18   : > { %v5556_v23 = vpop.permute.xlu1 %5555 }
 0xc19   : > { %v5562_v22 = vadd.f32 %v5556_v23, %v9848_v29 }
 0xc1b   : > { %5570 = vrot.lane.b32.xlu2 %v5562_v22, %s6442_s0 }
 0xc20   : > { %v5269_v41 = vpop.permute.xlu1 %5268 }
 0xc21   : > { %v5281_v0 = vmul.f32 %v5269_v41, %v5260_v2 }
 0xc23   : > { %v5284_v26 = vadd.f32 %v5281_v0, %v9836_v32 }
 0xc25   : > { %5287 = vst.msk [vmem:[%s10020_s27] sm:$0xff] %vm5249_vm6, %v5284_v26 }
 0xc75   : > { %v5571_v14 = vpop.permute.xlu2 %5570 }
 0xc76   : > { %5578 = vst.msk [vmem:[%s10019_s26 + $0x10] sm:$0xff] %vm5575_vm11, %v5571_v14 }
 0xc7d   : > { %v5567_v29 = vpop.permute.xlu0 %5566 }
 0xc7e   : > { %5576 = vst.msk [vmem:[%s10019_s26] sm:$0xff] %vm5575_vm11, %v5567_v29 }
 0xc85   : > { %v5569_v3 = vpop.permute.xlu1 %5568 }
 0xc86   : > { %5577 = vst.msk [vmem:[%s10019_s26 + $0x8] sm:$0xff] %vm5575_vm11, %v5569_v3 }
 0xc87 PF: > { %s10350_s30 = sld [smem:[#allocation13_spill]]  ;;  %s5593_s4 = smul.u32 %s6417_s6, %s6421_s10 }
 0xc88   : > { %s5599_s29 = sshll.u32 %s6685_s23, 4  ;;  %s10352_s14 = sld [smem:[#allocation88_spill]]  ;;  %s5600_s29 = int_to_ptr.vmem [resolvable:$true] %s5599_s29 }
 0xc89   : > { %s5915_s11 = sshll.u32 %s5593_s4, 8 }
 0xc8d   : > { %s10353_s7 = sand.u32 1, %s10350_s30  }
 0xc8e   : > { %s5598_s3 = scalar_lea.hbm %s10352_s14, %s5915_s11  ;;  %s5580_s0 = scalar_lea.sflag [#allocation10], %s10353_s7 }
 0xc8f   : > { %s5601_s1 = sshll.u32 %s5598_s3, 4  ;;  %s6359_s23 = scalar_lea.hbm %s10352_s14, 512  ;;  %s5602_s1 = int_to_ptr.hbm [resolvable:$true] %s5601_s1 }
 0xc90   : > { %s6353_s9 = sshra.s32 %s5602_s1, 4  ;;  %s6354_s9 = int_to_ptr.hbm [resolvable:$true] %s6353_s9 }
 0xc91   : > { %s6355_s8 = scalar_lea.hbm %s6354_s9, 256  ;;  %p6360_p10 = scmp.lt.s32.totalorder %s6354_s9, %s10352_s14 }
 0xc92   : > { %p6356_p5 = scmp.ne.s32.totalorder %s6354_s9, %s6355_s8  ;;  %p6361_p11 = scmp.lt.s32.totalorder %s6359_s23, %s6355_s8 }
 0xc94   : > { %p6357_p7 = pnand %p6356_p5, %p6646_p6  ;;  %p6362_p12 = por %p6361_p11, %p6360_p10 }
 0xc96   : > { %p6358_p9 = pneg %p6357_p7 }
 0xc98   : > { %p6363_p13 = pnand %p6362_p12, %p6358_p9 }
 0xc9a   : > { %6366 = shalt.err (!%p6363_p13)
}
 0xc9b   : > { %s6443_s7 = smov 128   ;;  %s6444_s30 = smov 8  }
 0xc9c   : > { %5967 = dma.vmem_to_hbm [thread:$0]  (%p6646_p6), %s5600_s29, 4096, %s5602_s1, %s5580_s0, %s6443_s7, %s6443_s7, %s6444_s30  }
 0xc9d PF: > { %s10354_s11 = sld [smem:[#allocation17_spill]] }
 0xc9e   : > { %s10355_s2 = sld [smem:[#allocation12_spill]] }
 0xca3   : > { %p5973_p0 = scmp.ge.s32.totalorder %s10354_s11, 2 }
 0xca4   : > { %s5622_s12 = sand.u32 1, %s10355_s2  }
 0xca5   : > { %p5970_p1 = pnand %p5973_p0, %p6653_p8  ;;  %s5623_s3 = scalar_lea.sflag [#allocation10], %s5622_s12 }
 0xca7   : > { %p5971_p2 = pneg %p5970_p1 }
 0xca9   : > { %6400 = dma.done.wait (%p5971_p2), %s5623_s3, 4096  }
 0xcaa   : > { %6402 = vsyncadd (%p5971_p2), %s5623_s3, 4294963200  ;;  %s44_s29 = sadd.s32 1, %s10354_s11   ;;  %s10357_s9 = sld [smem:[#allocation13_spill]] }
 0xcab   : > { %p41_p3 = scmp.ge.s32.totalorder %s44_s29, 6   ;;  %s10358_s30 = sld [smem:[#allocation14_spill]] }
 0xcac   : > { %s10359_s3 = sld [smem:[#allocation22_spill]] }
 0xcad   : > { %s10360_s6 = sld [smem:[#allocation15_spill]]  ;;  %43 = sbr.rel (!%p41_p3) target bundleno = 22 (0x16), region = 205 }
 0xcae   : > { %s10361_s10 = sld [smem:[#allocation16_spill]] }
 0xcaf   : > { %s10362_s0 = sld [smem:[#allocation18_spill]] }
 0xcb0   : > { %s10363_s11 = sld [smem:[#allocation20_spill]] }
 0xcb2   :  { %5629 = vsyncpa [#allocation10], 1 }
 0xcb3   :  { %5631 = vsyncpa [#allocation10 + $0x1], 1 }

</bundles_post_ra>
